<compile_context>
chip_gen: v7x
topology: tpu7x:2x2x1
jax: 0.10.0
libtpu: 0.0.40
codegen_flags: <defaults>
</compile_context>

<pallas_src>
import functools
import math

import jax
import jax.numpy as jnp
import numpy as np
from jax.experimental import pallas as pl
from jax.experimental.pallas import tpu as pltpu

# pl.reciprocal(approx=True) uses the EUP slot and stays within the 2e-3 reference
# tolerance; set False for exact softmax division.
_APPROX_RECIP = True

_PARALLEL = pltpu.CompilerParams(dimension_semantics=("parallel",))


def _smem_spec():
    return pl.BlockSpec(memory_space=pltpu.MemorySpace.SMEM)


# ----------------------------------------------------------------------------
# In-kernel attention math (shared by the three kernels), rows-on-lanes layout
# ----------------------------------------------------------------------------
def _softmax_over_keys(logits):
    """Softmax over axis=1 (the key axis) of an (L_q, L_k, TB) tensor."""
    m = jnp.max(logits, axis=1, keepdims=True)
    e = jnp.exp(logits - m)
    d = jnp.sum(e, axis=1, keepdims=True)
    if _APPROX_RECIP:
        return e * pl.reciprocal(d, approx=True)
    return e / d


def _attention_core(h, wq_ref, bq_ref, qe_ref, ke_ref, ve_ref, simp_ref,
                    outp_ref, groups, gp, apply_relu):
    """One AxialAttention_dynamic layer on a block of TB rows of length L.

    h        : list of C arrays, each (L, TB)  -- channel c of the activations
    wq_ref   : SMEM (2*OP, C)  qkv weight, bn_qkv scale folded (original channel order)
    bq_ref   : SMEM (2*OP,)    bn_qkv bias
    qe_ref   : VMEM (gp/2, L, L, TB)  q_embedding[c, i, j], lane-replicated
    ke_ref   : VMEM (gp/2, L, L, TB)  k_embedding[c, j, i] (transpose folded), lane-replicated
    ve_ref   : VMEM (gp,   L, L, TB)  v_embedding[c, i, j], lane-replicated
    simp_ref : SMEM (4, G)   [s_qk, 0.1*s_qr, 0.1*s_kr, bias_sum] per group
    outp_ref : SMEM (3, OP)  [s_sv, 0.1*s_sve, bias_sum] per output channel
    returns list of OP arrays, each (L, TB) float32
    """
    C = len(h)
    gp2 = gp // 2

    # qkv_transform (1x1 conv) + folded bn_qkv: tiny channel contraction on the VPU.
    qkv = []
    for o in range(2 * groups * gp):
        a = h[0] * wq_ref[o, 0]
        for c in range(1, C):
            a = a + h[c] * wq_ref[o, c]
        qkv.append(a + bq_ref[o])

    outs = []
    for g in range(groups):        # static; groups == 1 for AxialBlock_dynamic
        base = 2 * gp * g
        q = [qkv[base + c] for c in range(gp2)]
        k = [qkv[base + gp2 + c] for c in range(gp2)]
        v = [qkv[base + gp + c] for c in range(gp)]

        # logits[i, j, t]  (i = query pos, j = key pos, t = row on lanes)
        qk = q[0][:, None, :] * k[0][None, :, :]
        qr = q[0][:, None, :] * qe_ref[0]
        kr = k[0][None, :, :] * ke_ref[0]
        for c in range(1, gp2):
            qk = qk + q[c][:, None, :] * k[c][None, :, :]
            qr = qr + q[c][:, None, :] * qe_ref[c]
            kr = kr + k[c][None, :, :] * ke_ref[c]

        # folded bn_similarity (f_qr = f_kr = 0.1) + per-group bias sum
        logits = (simp_ref[0, g] * qk + simp_ref[1, g] * qr
                  + simp_ref[2, g] * kr + simp_ref[3, g])
        sim = _softmax_over_keys(logits)

        # folded bn_output (f_sv = 1.0, f_sve = 0.1)
        for cv in range(gp):
            sv = jnp.sum(sim * v[cv][None, :, :], axis=1)      # (L, TB)
            sve = jnp.sum(sim * ve_ref[cv], axis=1)            # (L, TB)
            op = g * gp + cv
            o = outp_ref[0, op] * sv + outp_ref[1, op] * sve + outp_ref[2, op]
            if apply_relu:
                o = jnp.maximum(o, 0.0)
            outs.append(o)
    return outs


# ----------------------------------------------------------------------------
# Pallas kernels
# ----------------------------------------------------------------------------
def _stage1_kernel(x_ref, wd_ref, bd_ref, wq_ref, bq_ref, qe_ref, ke_ref,
                   ve_ref, simp_ref, outp_ref, o_ref, *, groups, gp):
    """conv_down + bn1 + relu fused with the length-axis attention."""
    cin = x_ref.shape[0]
    width = wd_ref.shape[0]
    x = [x_ref[c] for c in range(cin)]
    h = []
    for o in range(width):
        a = x[0] * wd_ref[o, 0]
        for c in range(1, cin):
            a = a + x[c] * wd_ref[o, c]
        h.append(jnp.maximum(a + bd_ref[o], 0.0))
    outs = _attention_core(h, wq_ref, bq_ref, qe_ref, ke_ref, ve_ref,
                           simp_ref, outp_ref, groups, gp, apply_relu=False)
    for oc in range(len(outs)):
        o_ref[oc] = outs[oc].astype(o_ref.dtype)


def _stage2_kernel(x_ref, wq_ref, bq_ref, qe_ref, ke_ref, ve_ref, simp_ref,
                   outp_ref, o_ref, *, groups, gp):
    """height-axis attention only."""
    C = x_ref.shape[0]
    h = [x_ref[c] for c in range(C)]
    outs = _attention_core(h, wq_ref, bq_ref, qe_ref, ke_ref, ve_ref,
                           simp_ref, outp_ref, groups, gp, apply_relu=False)
    for oc in range(len(outs)):
        o_ref[oc] = outs[oc].astype(o_ref.dtype)


def _stage3_kernel(x_ref, wq_ref, bq_ref, qe_ref, ke_ref, ve_ref, simp_ref,
                   outp_ref, wu_ref, bu_ref, r_ref, o_ref, *, groups, gp):
    """depth-axis attention + relu + conv_up + bn2 + residual + relu fused."""
    C = x_ref.shape[0]
    h = [x_ref[c] for c in range(C)]
    attn = _attention_core(h, wq_ref, bq_ref, qe_ref, ke_ref, ve_ref,
                           simp_ref, outp_ref, groups, gp, apply_relu=True)
    width = len(attn)
    cout = wu_ref.shape[0]
    for co in range(cout):
        a = attn[0] * wu_ref[co, 0]
        for c in range(1, width):
            a = a + attn[c] * wu_ref[co, c]
        y = a + bu_ref[co] + r_ref[co]
        o_ref[co] = jnp.maximum(y, 0.0).astype(o_ref.dtype)


# ----------------------------------------------------------------------------
# pallas_call wrappers
# ----------------------------------------------------------------------------
def _choose_tile(rows, cap):
    """Largest multiple-of-128 tile <= cap that divides `rows` (no host pad/slice).
    Prefers >=2 grid steps when rows allow it (v7x megacore balance)."""
    cap = max(128, cap - cap % 128)
    if rows >= 256:
        start = min(cap, (rows // 2) - ((rows // 2) % 128))
    else:
        start = min(cap, rows - rows % 128)
    t = start
    while t >= 128:
        if rows % t == 0:
            return t, 0
        t -= 128
    if rows <= cap:
        return rows, 0              # single full-row block (last dim == full array dim)
    # Fallback: pad rows to a multiple of 128 (extra HBM copy; padded lanes stay finite).
    return 128, (-rows) % 128


def _pad_rows(a, pad):
    return jnp.pad(a, ((0, 0), (0, 0), (0, pad))) if pad else a


def _attn_specs(groups, gp, L, tb):
    gp2 = gp // 2
    return [
        _smem_spec(),                                             # wq
        _smem_spec(),                                             # bq
        pl.BlockSpec((gp2, L, L, tb), lambda i: (0, 0, 0, 0)),    # qe
        pl.BlockSpec((gp2, L, L, tb), lambda i: (0, 0, 0, 0)),    # ke (transposed)
        pl.BlockSpec((gp, L, L, tb), lambda i: (0, 0, 0, 0)),     # ve
        _smem_spec(),                                             # simp
        _smem_spec(),                                             # outp
    ]


def _attn_args(p, tb):
    lane_rep = lambda e: jnp.broadcast_to(e[..., None], e.shape + (tb,))
    return (p['w'], p['bq'], lane_rep(p['qe']), lane_rep(p['ke']),
            lane_rep(p['ve']), p['simp'], p['outp'])


def run_stage1(x_clr, w_down, b_down, attn_p, groups, gp, row_tile):
    cin, L, R = x_clr.shape
    width = w_down.shape[0]
    tb, pad = _choose_tile(R, row_tile)
    Rp = R + pad
    kern = functools.partial(_stage1_kernel, groups=groups, gp=gp)
    out = pl.pallas_call(
        kern,
        out_shape=jax.ShapeDtypeStruct((width, L, Rp), jnp.float32),
        grid=(Rp // tb,),
        in_specs=[pl.BlockSpec((cin, L, tb), lambda i: (0, 0, i)),
                  _smem_spec(), _smem_spec()] + _attn_specs(groups, gp, L, tb),
        out_specs=pl.BlockSpec((width, L, tb), lambda i: (0, 0, i)),
        compiler_params=_PARALLEL,
    )(_pad_rows(x_clr, pad), w_down, b_down, *_attn_args(attn_p, tb))
    return out[:, :, :R] if pad else out


def run_stage2(x_clr, attn_p, groups, gp, row_tile):
    C, L, R = x_clr.shape
    OP = groups * gp
    tb, pad = _choose_tile(R, row_tile)
    Rp = R + pad
    kern = functools.partial(_stage2_kernel, groups=groups, gp=gp)
    out = pl.pallas_call(
        kern,
        out_shape=jax.ShapeDtypeStruct((OP, L, Rp), jnp.float32),
        grid=(Rp // tb,),
        in_specs=[pl.BlockSpec((C, L, tb), lambda i: (0, 0, i))]
                 + _attn_specs(groups, gp, L, tb),
        out_specs=pl.BlockSpec((OP, L, tb), lambda i: (0, 0, i)),
        compiler_params=_PARALLEL,
    )(_pad_rows(x_clr, pad), *_attn_args(attn_p, tb))
    return out[:, :, :R] if pad else out


def run_stage3(x_clr, res_clr, attn_p, w_up, b_up, groups, gp, row_tile):
    C, L, R = x_clr.shape
    cout = w_up.shape[0]
    tb, pad = _choose_tile(R, row_tile)
    Rp = R + pad
    kern = functools.partial(_stage3_kernel, groups=groups, gp=gp)
    out = pl.pallas_call(
        kern,
        out_shape=jax.ShapeDtypeStruct((cout, L, Rp), jnp.float32),
        grid=(Rp // tb,),
        in_specs=[pl.BlockSpec((C, L, tb), lambda i: (0, 0, i))]
                 + _attn_specs(groups, gp, L, tb)
                 + [_smem_spec(), _smem_spec(),
                    pl.BlockSpec((cout, L, tb), lambda i: (0, 0, i))],
        out_specs=pl.BlockSpec((cout, L, tb), lambda i: (0, 0, i)),
        compiler_params=_PARALLEL,
    )(_pad_rows(x_clr, pad), *_attn_args(attn_p, tb), w_up, b_up,
      _pad_rows(res_clr, pad))
    return out[:, :, :R] if pad else out


# ----------------------------------------------------------------------------
# Parameter initialization (deterministic, synthetic) + BN folding
# ----------------------------------------------------------------------------
def _bn_affine(key, c, eps=1e-5):
    k1, k2, k3, k4 = jax.random.split(key, 4)
    gamma = 1.0 + 0.1 * jax.random.normal(k1, (c,), jnp.float32)
    beta = 0.1 * jax.random.normal(k2, (c,), jnp.float32)
    mean = 0.1 * jax.random.normal(k3, (c,), jnp.float32)
    var = 1.0 + 0.2 * jax.random.uniform(k4, (c,), jnp.float32)
    scale = gamma / jnp.sqrt(var + eps)
    bias = beta - mean * scale
    return scale, bias


def init_axial_params(key, in_planes, out_planes, groups, L):
    gp = out_planes // groups
    gp2 = gp // 2
    ks = jax.random.split(key, 5)
    w_qkv = jax.random.normal(ks[0], (out_planes * 2, in_planes), jnp.float32) * math.sqrt(1.0 / in_planes)
    relative = jax.random.normal(ks[1], (gp * 2, 2 * L - 1), jnp.float32) * math.sqrt(1.0 / gp)
    s_qkv, b_qkv = _bn_affine(ks[2], out_planes * 2)
    s_sim, b_sim = _bn_affine(ks[3], groups * 3)
    s_out, b_out = _bn_affine(ks[4], out_planes * 2)

    raw = dict(w_qkv=w_qkv, relative=relative, s_qkv=s_qkv, b_qkv=b_qkv,
               s_sim=s_sim, b_sim=b_sim, s_out=s_out, b_out=b_out)

    # relative-position gather (torch index_select): all_emb[c,i,j] = relative[c, i-j+L-1]
    idx = jnp.arange(L)[:, None] - jnp.arange(L)[None, :] + L - 1
    all_emb = relative[:, idx]                               # (2gp, L, L)
    q_emb, k_emb, v_emb = all_emb[:gp2], all_emb[gp2:gp], all_emb[gp:]

    fold = dict(
        w=w_qkv * s_qkv[:, None],                  # (2OP, C)  bn_qkv scale folded
        bq=b_qkv,                                  # (2OP,)
        qe=q_emb,                                  # (gp/2, L, L)  [c, i, j]
        ke=jnp.transpose(k_emb, (0, 2, 1)),        # (gp/2, L, L)  [c, i, j] = k_emb[c, j, i]
        ve=v_emb,                                  # (gp,   L, L)  [c, i, j]
        # bn_similarity folded with f_qr = f_kr = 0.1
        simp=jnp.stack([s_sim[0:groups],
                        0.1 * s_sim[groups:2 * groups],
                        0.1 * s_sim[2 * groups:3 * groups],
                        b_sim[0:groups] + b_sim[groups:2 * groups] + b_sim[2 * groups:3 * groups]],
                       axis=0),                    # (4, G)
        # bn_output folded with f_sv = 1.0, f_sve = 0.1
        outp=jnp.stack([s_out[0::2],
                        0.1 * s_out[1::2],
                        b_out[0::2] + b_out[1::2]], axis=0),   # (3, OP)
    )
    return fold, raw


def init_block_params(key, inplanes, planes, groups, kernel_size):
    D, Hs, Ws = kernel_size
    expansion = 2
    width = int(planes * (64 / 64.0))
    ks = jax.random.split(key, 7)
    w_down = jax.random.normal(ks[0], (width, inplanes), jnp.float32) * math.sqrt(1.0 / inplanes)
    s1, b1 = _bn_affine(ks[1], width)
    w_up = jax.random.normal(ks[2], (planes * expansion, width), jnp.float32) * math.sqrt(1.0 / width)
    s2, b2 = _bn_affine(ks[3], planes * expansion)
    len_f, len_r = init_axial_params(ks[4], width, width, groups, Ws)   # width=0 -> kernel_size[2]
    hig_f, hig_r = init_axial_params(ks[5], width, width, groups, Hs)   # width=1 -> kernel_size[1]
    wid_f, wid_r = init_axial_params(ks[6], width, width, groups, D)    # width=2 -> kernel_size[0]

    fold = dict(w_down=w_down * s1[:, None], b_down=b1,
                w_up=w_up * s2[:, None], b_up=b2,
                len_=len_f, hig=hig_f, wid=wid_f)
    raw = dict(w_down=w_down, s1=s1, b1=b1, w_up=w_up, s2=s2, b2=b2,
               len_=len_r, hig=hig_r, wid=wid_r, width=width, groups=groups)
    return fold, raw


# ----------------------------------------------------------------------------
# Full AxialBlock_dynamic forward (3 fused Pallas kernels + layout glue)
# ----------------------------------------------------------------------------
def axial_block_forward(x_ncdhw, p, *, groups, row_tile=512):
    N, cin, D, H, W = x_ncdhw.shape
    width = p['w_down'].shape[0]
    cout = p['w_up'].shape[0]
    gp = width // groups
    assert cin == cout, "residual requires inplanes == planes * expansion (downsample=None)"

    x32 = x_ncdhw.astype(jnp.float32)

    # stage 1: rows = (n, d, h) on lanes, seq = W     layout (Cin, W, rows)
    x1 = jnp.transpose(x32, (1, 4, 0, 2, 3)).reshape(cin, W, N * D * H)
    h1 = run_stage1(x1, p['w_down'], p['b_down'], p['len_'], groups, gp, row_tile)

    # relayout: rows = (n, d, w), seq = H
    h1 = h1.reshape(width, W, N, D, H)
    x2 = jnp.transpose(h1, (0, 4, 2, 3, 1)).reshape(width, H, N * D * W)
    h2 = run_stage2(x2, p['hig'], groups, gp, row_tile)

    # relayout: rows = (n, h, w), seq = D  (residual in the matching layout)
    h2 = h2.reshape(width, H, N, D, W)
    x3 = jnp.transpose(h2, (0, 3, 2, 1, 4)).reshape(width, D, N * H * W)
    res = jnp.transpose(x32, (1, 2, 0, 3, 4)).reshape(cin, D, N * H * W)
    y = run_stage3(x3, res, p['wid'], p['w_up'], p['b_up'], groups, gp, row_tile)

    # back to NCDHW
    y = y.reshape(cout, D, N, H, W)
    return jnp.transpose(y, (2, 0, 1, 3, 4))


# ----------------------------------------------------------------------------
# Pure-JAX reference (mirrors the PyTorch code line by line) for verification
# ----------------------------------------------------------------------------
def _ref_axial_attention(x, r, groups, gp, width_flag):
    if width_flag == 0:
        x = jnp.transpose(x, (0, 2, 3, 1, 4))
    elif width_flag == 1:
        x = jnp.transpose(x, (0, 4, 2, 1, 3))
    else:
        x = jnp.transpose(x, (0, 3, 4, 1, 2))
    N, W_, L_, C, H_ = x.shape
    gp2 = gp // 2
    OP = groups * gp
    x = x.reshape(N * W_ * L_, C, H_)
    qkv = jnp.einsum('oc,bch->boh', r['w_qkv'], x)
    qkv = qkv * r['s_qkv'][None, :, None] + r['b_qkv'][None, :, None]
    qkv = qkv.reshape(-1, groups, gp * 2, H_)
    q, k, v = qkv[:, :, :gp2], qkv[:, :, gp2:gp], qkv[:, :, gp:]
    idx = jnp.arange(H_)[:, None] - jnp.arange(H_)[None, :] + H_ - 1
    all_emb = r['relative'][:, idx]
    q_emb, k_emb, v_emb = all_emb[:gp2], all_emb[gp2:gp], all_emb[gp:]
    qr = jnp.einsum('bgci,cij->bgij', q, q_emb) * 0.1
    kr = jnp.swapaxes(jnp.einsum('bgci,cij->bgij', k, k_emb), 2, 3) * 0.1
    qk = jnp.einsum('bgci,bgcj->bgij', q, k)
    stacked = jnp.concatenate([qk, qr, kr], axis=1)
    stacked = stacked * r['s_sim'][None, :, None, None] + r['b_sim'][None, :, None, None]
    stacked = stacked.reshape(-1, 3, groups, H_, H_).sum(axis=1)
    sim = jax.nn.softmax(stacked, axis=3)
    sv = jnp.einsum('bgij,bgcj->bgci', sim, v) * 1.0
    sve = jnp.einsum('bgij,cij->bgci', sim, v_emb) * 0.1
    so = jnp.concatenate([sv, sve], axis=-1).reshape(-1, OP * 2, H_)
    so = so * r['s_out'][None, :, None] + r['b_out'][None, :, None]
    out = so.reshape(N, W_, L_, OP, 2, H_).sum(axis=-2)
    if width_flag == 0:
        return jnp.transpose(out, (0, 3, 1, 2, 4))
    elif width_flag == 1:
        return jnp.transpose(out, (0, 3, 2, 4, 1))
    return jnp.transpose(out, (0, 3, 4, 1, 2))


def ref_block(x, r):
    groups, width = r['groups'], r['width']
    gp = width // groups
    h = jnp.einsum('oc,ncdhw->nodhw', r['w_down'], x)
    h = h * r['s1'][None, :, None, None, None] + r['b1'][None, :, None, None, None]
    h = jnp.maximum(h, 0.0)
    h = _ref_axial_attention(h, r['len_'], groups, gp, 0)
    h = _ref_axial_attention(h, r['hig'], groups, gp, 1)
    h = _ref_axial_attention(h, r['wid'], groups, gp, 2)
    h = jnp.maximum(h, 0.0)
    h = jnp.einsum('oc,ncdhw->nodhw', r['w_up'], h)
    h = h * r['s2'][None, :, None, None, None] + r['b2'][None, :, None, None, None]
    h = h + x
    return jnp.maximum(h, 0.0)


# ----------------------------------------------------------------------------
if __name__ == "__main__":
    N, inplanes, planes = 2, 8, 4          # inplanes == planes * expansion -> residual valid
    D = Hs = Ws = 8
    groups = 1                              # AxialBlock_dynamic default

    key = jax.random.PRNGKey(0)
    kx, kp = jax.random.split(key)
    x = jax.random.normal(kx, (N, inplanes, D, Hs, Ws), jnp.float32)

    fold_params, raw_params = init_block_params(kp, inplanes, planes, groups, (D, Hs, Ws))

    fwd = jax.jit(functools.partial(axial_block_forward, groups=groups, row_tile=512))
    out = jax.block_until_ready(fwd(x, fold_params))
    assert out.shape == (N, planes * 2, D, Hs, Ws)

    ref = jax.block_until_ready(ref_block(x, raw_params))
    np.testing.assert_allclose(np.asarray(out), np.asarray(ref), rtol=2e-3, atol=2e-3)

    print("KERNEL_OK")
</pallas_src>

<mosaic_0001>
module attributes {stable_mosaic.version = 11 : i64} {
  func.func @_stage1_kernel(%arg0: i32, %arg1: memref<8x8x128xf32, #tpu.memory_space<vmem>>, %arg2: memref<4x8xf32, #tpu.memory_space<smem>>, %arg3: memref<4xf32, #tpu.memory_space<smem>>, %arg4: memref<8x4xf32, #tpu.memory_space<smem>>, %arg5: memref<8xf32, #tpu.memory_space<smem>>, %arg6: memref<2x8x8x128xf32, #tpu.memory_space<vmem>>, %arg7: memref<2x8x8x128xf32, #tpu.memory_space<vmem>>, %arg8: memref<4x8x8x128xf32, #tpu.memory_space<vmem>>, %arg9: memref<4x1xf32, #tpu.memory_space<smem>>, %arg10: memref<3x4xf32, #tpu.memory_space<smem>>, %arg11: memref<4x8x128xf32, #tpu.memory_space<vmem>>) attributes {dimension_semantics = [#tpu.dimension_semantics<parallel>], iteration_bounds = array<i64: 1>, scalar_prefetch = 0 : i64, scratch_operands = 0 : i64, tpu.core_type = #tpu.core_type<tc>, window_params = [{transform_indices = @transform_0, window_bounds = array<i64: 8, 8, 128>}, {transform_indices = @transform_1, window_bounds = array<i64: 4, 8>}, {transform_indices = @transform_2, window_bounds = array<i64: 4>}, {transform_indices = @transform_3, window_bounds = array<i64: 8, 4>}, {transform_indices = @transform_4, window_bounds = array<i64: 8>}, {pipeline_mode = #tpu.pipeline_mode<synchronous>, transform_indices = @transform_5, window_bounds = array<i64: 2, 8, 8, 128>}, {pipeline_mode = #tpu.pipeline_mode<synchronous>, transform_indices = @transform_6, window_bounds = array<i64: 2, 8, 8, 128>}, {pipeline_mode = #tpu.pipeline_mode<synchronous>, transform_indices = @transform_7, window_bounds = array<i64: 4, 8, 8, 128>}, {transform_indices = @transform_8, window_bounds = array<i64: 4, 1>}, {transform_indices = @transform_9, window_bounds = array<i64: 3, 4>}, {transform_indices = @transform_10, window_bounds = array<i64: 4, 8, 128>}]} {
    %c0 = arith.constant 0 : index
    %c0_0 = arith.constant 0 : index
    %c0_1 = arith.constant 0 : index
    %0 = vector.load %arg1[%c0, %c0_0, %c0_1] : memref<8x8x128xf32, #tpu.memory_space<vmem>>, vector<1x8x128xf32>
    %1 = vector.shape_cast %0 : vector<1x8x128xf32> to vector<8x128xf32>
    %c1 = arith.constant 1 : index
    %c0_2 = arith.constant 0 : index
    %c0_3 = arith.constant 0 : index
    %2 = vector.load %arg1[%c1, %c0_2, %c0_3] : memref<8x8x128xf32, #tpu.memory_space<vmem>>, vector<1x8x128xf32>
    %3 = vector.shape_cast %2 : vector<1x8x128xf32> to vector<8x128xf32>
    %c2 = arith.constant 2 : index
    %c0_4 = arith.constant 0 : index
    %c0_5 = arith.constant 0 : index
    %4 = vector.load %arg1[%c2, %c0_4, %c0_5] : memref<8x8x128xf32, #tpu.memory_space<vmem>>, vector<1x8x128xf32>
    %5 = vector.shape_cast %4 : vector<1x8x128xf32> to vector<8x128xf32>
    %c3 = arith.constant 3 : index
    %c0_6 = arith.constant 0 : index
    %c0_7 = arith.constant 0 : index
    %6 = vector.load %arg1[%c3, %c0_6, %c0_7] : memref<8x8x128xf32, #tpu.memory_space<vmem>>, vector<1x8x128xf32>
    %7 = vector.shape_cast %6 : vector<1x8x128xf32> to vector<8x128xf32>
    %c4 = arith.constant 4 : index
    %c0_8 = arith.constant 0 : index
    %c0_9 = arith.constant 0 : index
    %8 = vector.load %arg1[%c4, %c0_8, %c0_9] : memref<8x8x128xf32, #tpu.memory_space<vmem>>, vector<1x8x128xf32>
    %9 = vector.shape_cast %8 : vector<1x8x128xf32> to vector<8x128xf32>
    %c5 = arith.constant 5 : index
    %c0_10 = arith.constant 0 : index
    %c0_11 = arith.constant 0 : index
    %10 = vector.load %arg1[%c5, %c0_10, %c0_11] : memref<8x8x128xf32, #tpu.memory_space<vmem>>, vector<1x8x128xf32>
    %11 = vector.shape_cast %10 : vector<1x8x128xf32> to vector<8x128xf32>
    %c6 = arith.constant 6 : index
    %c0_12 = arith.constant 0 : index
    %c0_13 = arith.constant 0 : index
    %12 = vector.load %arg1[%c6, %c0_12, %c0_13] : memref<8x8x128xf32, #tpu.memory_space<vmem>>, vector<1x8x128xf32>
    %13 = vector.shape_cast %12 : vector<1x8x128xf32> to vector<8x128xf32>
    %c7 = arith.constant 7 : index
    %c0_14 = arith.constant 0 : index
    %c0_15 = arith.constant 0 : index
    %14 = vector.load %arg1[%c7, %c0_14, %c0_15] : memref<8x8x128xf32, #tpu.memory_space<vmem>>, vector<1x8x128xf32>
    %15 = vector.shape_cast %14 : vector<1x8x128xf32> to vector<8x128xf32>
    %c0_16 = arith.constant 0 : index
    %c0_17 = arith.constant 0 : index
    %16 = memref.load %arg2[%c0_16, %c0_17] : memref<4x8xf32, #tpu.memory_space<smem>>
    %17 = vector.broadcast %16 : f32 to vector<8x128xf32>
    %18 = arith.mulf %1, %17 : vector<8x128xf32>
    %c0_18 = arith.constant 0 : index
    %c1_19 = arith.constant 1 : index
    %19 = memref.load %arg2[%c0_18, %c1_19] : memref<4x8xf32, #tpu.memory_space<smem>>
    %20 = vector.broadcast %19 : f32 to vector<8x128xf32>
    %21 = arith.mulf %3, %20 : vector<8x128xf32>
    %22 = arith.addf %18, %21 : vector<8x128xf32>
    %c0_20 = arith.constant 0 : index
    %c2_21 = arith.constant 2 : index
    %23 = memref.load %arg2[%c0_20, %c2_21] : memref<4x8xf32, #tpu.memory_space<smem>>
    %24 = vector.broadcast %23 : f32 to vector<8x128xf32>
    %25 = arith.mulf %5, %24 : vector<8x128xf32>
    %26 = arith.addf %22, %25 : vector<8x128xf32>
    %c0_22 = arith.constant 0 : index
    %c3_23 = arith.constant 3 : index
    %27 = memref.load %arg2[%c0_22, %c3_23] : memref<4x8xf32, #tpu.memory_space<smem>>
    %28 = vector.broadcast %27 : f32 to vector<8x128xf32>
    %29 = arith.mulf %7, %28 : vector<8x128xf32>
    %30 = arith.addf %26, %29 : vector<8x128xf32>
    %c0_24 = arith.constant 0 : index
    %c4_25 = arith.constant 4 : index
    %31 = memref.load %arg2[%c0_24, %c4_25] : memref<4x8xf32, #tpu.memory_space<smem>>
    %32 = vector.broadcast %31 : f32 to vector<8x128xf32>
    %33 = arith.mulf %9, %32 : vector<8x128xf32>
    %34 = arith.addf %30, %33 : vector<8x128xf32>
    %c0_26 = arith.constant 0 : index
    %c5_27 = arith.constant 5 : index
    %35 = memref.load %arg2[%c0_26, %c5_27] : memref<4x8xf32, #tpu.memory_space<smem>>
    %36 = vector.broadcast %35 : f32 to vector<8x128xf32>
    %37 = arith.mulf %11, %36 : vector<8x128xf32>
    %38 = arith.addf %34, %37 : vector<8x128xf32>
    %c0_28 = arith.constant 0 : index
    %c6_29 = arith.constant 6 : index
    %39 = memref.load %arg2[%c0_28, %c6_29] : memref<4x8xf32, #tpu.memory_space<smem>>
    %40 = vector.broadcast %39 : f32 to vector<8x128xf32>
    %41 = arith.mulf %13, %40 : vector<8x128xf32>
    %42 = arith.addf %38, %41 : vector<8x128xf32>
    %c0_30 = arith.constant 0 : index
    %c7_31 = arith.constant 7 : index
    %43 = memref.load %arg2[%c0_30, %c7_31] : memref<4x8xf32, #tpu.memory_space<smem>>
    %44 = vector.broadcast %43 : f32 to vector<8x128xf32>
    %45 = arith.mulf %15, %44 : vector<8x128xf32>
    %46 = arith.addf %42, %45 : vector<8x128xf32>
    %c0_32 = arith.constant 0 : index
    %47 = memref.load %arg3[%c0_32] : memref<4xf32, #tpu.memory_space<smem>>
    %48 = vector.broadcast %47 : f32 to vector<8x128xf32>
    %49 = arith.addf %46, %48 : vector<8x128xf32>
    %cst = arith.constant 0.000000e+00 : f32
    %50 = vector.broadcast %cst : f32 to vector<8x128xf32>
    %51 = arith.maximumf %49, %50 : vector<8x128xf32>
    %c1_33 = arith.constant 1 : index
    %c0_34 = arith.constant 0 : index
    %52 = memref.load %arg2[%c1_33, %c0_34] : memref<4x8xf32, #tpu.memory_space<smem>>
    %53 = vector.broadcast %52 : f32 to vector<8x128xf32>
    %54 = arith.mulf %1, %53 : vector<8x128xf32>
    %c1_35 = arith.constant 1 : index
    %c1_36 = arith.constant 1 : index
    %55 = memref.load %arg2[%c1_35, %c1_36] : memref<4x8xf32, #tpu.memory_space<smem>>
    %56 = vector.broadcast %55 : f32 to vector<8x128xf32>
    %57 = arith.mulf %3, %56 : vector<8x128xf32>
    %58 = arith.addf %54, %57 : vector<8x128xf32>
    %c1_37 = arith.constant 1 : index
    %c2_38 = arith.constant 2 : index
    %59 = memref.load %arg2[%c1_37, %c2_38] : memref<4x8xf32, #tpu.memory_space<smem>>
    %60 = vector.broadcast %59 : f32 to vector<8x128xf32>
    %61 = arith.mulf %5, %60 : vector<8x128xf32>
    %62 = arith.addf %58, %61 : vector<8x128xf32>
    %c1_39 = arith.constant 1 : index
    %c3_40 = arith.constant 3 : index
    %63 = memref.load %arg2[%c1_39, %c3_40] : memref<4x8xf32, #tpu.memory_space<smem>>
    %64 = vector.broadcast %63 : f32 to vector<8x128xf32>
    %65 = arith.mulf %7, %64 : vector<8x128xf32>
    %66 = arith.addf %62, %65 : vector<8x128xf32>
    %c1_41 = arith.constant 1 : index
    %c4_42 = arith.constant 4 : index
    %67 = memref.load %arg2[%c1_41, %c4_42] : memref<4x8xf32, #tpu.memory_space<smem>>
    %68 = vector.broadcast %67 : f32 to vector<8x128xf32>
    %69 = arith.mulf %9, %68 : vector<8x128xf32>
    %70 = arith.addf %66, %69 : vector<8x128xf32>
    %c1_43 = arith.constant 1 : index
    %c5_44 = arith.constant 5 : index
    %71 = memref.load %arg2[%c1_43, %c5_44] : memref<4x8xf32, #tpu.memory_space<smem>>
    %72 = vector.broadcast %71 : f32 to vector<8x128xf32>
    %73 = arith.mulf %11, %72 : vector<8x128xf32>
    %74 = arith.addf %70, %73 : vector<8x128xf32>
    %c1_45 = arith.constant 1 : index
    %c6_46 = arith.constant 6 : index
    %75 = memref.load %arg2[%c1_45, %c6_46] : memref<4x8xf32, #tpu.memory_space<smem>>
    %76 = vector.broadcast %75 : f32 to vector<8x128xf32>
    %77 = arith.mulf %13, %76 : vector<8x128xf32>
    %78 = arith.addf %74, %77 : vector<8x128xf32>
    %c1_47 = arith.constant 1 : index
    %c7_48 = arith.constant 7 : index
    %79 = memref.load %arg2[%c1_47, %c7_48] : memref<4x8xf32, #tpu.memory_space<smem>>
    %80 = vector.broadcast %79 : f32 to vector<8x128xf32>
    %81 = arith.mulf %15, %80 : vector<8x128xf32>
    %82 = arith.addf %78, %81 : vector<8x128xf32>
    %c1_49 = arith.constant 1 : index
    %83 = memref.load %arg3[%c1_49] : memref<4xf32, #tpu.memory_space<smem>>
    %84 = vector.broadcast %83 : f32 to vector<8x128xf32>
    %85 = arith.addf %82, %84 : vector<8x128xf32>
    %cst_50 = arith.constant 0.000000e+00 : f32
    %86 = vector.broadcast %cst_50 : f32 to vector<8x128xf32>
    %87 = arith.maximumf %85, %86 : vector<8x128xf32>
    %c2_51 = arith.constant 2 : index
    %c0_52 = arith.constant 0 : index
    %88 = memref.load %arg2[%c2_51, %c0_52] : memref<4x8xf32, #tpu.memory_space<smem>>
    %89 = vector.broadcast %88 : f32 to vector<8x128xf32>
    %90 = arith.mulf %1, %89 : vector<8x128xf32>
    %c2_53 = arith.constant 2 : index
    %c1_54 = arith.constant 1 : index
    %91 = memref.load %arg2[%c2_53, %c1_54] : memref<4x8xf32, #tpu.memory_space<smem>>
    %92 = vector.broadcast %91 : f32 to vector<8x128xf32>
    %93 = arith.mulf %3, %92 : vector<8x128xf32>
    %94 = arith.addf %90, %93 : vector<8x128xf32>
    %c2_55 = arith.constant 2 : index
    %c2_56 = arith.constant 2 : index
    %95 = memref.load %arg2[%c2_55, %c2_56] : memref<4x8xf32, #tpu.memory_space<smem>>
    %96 = vector.broadcast %95 : f32 to vector<8x128xf32>
    %97 = arith.mulf %5, %96 : vector<8x128xf32>
    %98 = arith.addf %94, %97 : vector<8x128xf32>
    %c2_57 = arith.constant 2 : index
    %c3_58 = arith.constant 3 : index
    %99 = memref.load %arg2[%c2_57, %c3_58] : memref<4x8xf32, #tpu.memory_space<smem>>
    %100 = vector.broadcast %99 : f32 to vector<8x128xf32>
    %101 = arith.mulf %7, %100 : vector<8x128xf32>
    %102 = arith.addf %98, %101 : vector<8x128xf32>
    %c2_59 = arith.constant 2 : index
    %c4_60 = arith.constant 4 : index
    %103 = memref.load %arg2[%c2_59, %c4_60] : memref<4x8xf32, #tpu.memory_space<smem>>
    %104 = vector.broadcast %103 : f32 to vector<8x128xf32>
    %105 = arith.mulf %9, %104 : vector<8x128xf32>
    %106 = arith.addf %102, %105 : vector<8x128xf32>
    %c2_61 = arith.constant 2 : index
    %c5_62 = arith.constant 5 : index
    %107 = memref.load %arg2[%c2_61, %c5_62] : memref<4x8xf32, #tpu.memory_space<smem>>
    %108 = vector.broadcast %107 : f32 to vector<8x128xf32>
    %109 = arith.mulf %11, %108 : vector<8x128xf32>
    %110 = arith.addf %106, %109 : vector<8x128xf32>
    %c2_63 = arith.constant 2 : index
    %c6_64 = arith.constant 6 : index
    %111 = memref.load %arg2[%c2_63, %c6_64] : memref<4x8xf32, #tpu.memory_space<smem>>
    %112 = vector.broadcast %111 : f32 to vector<8x128xf32>
    %113 = arith.mulf %13, %112 : vector<8x128xf32>
    %114 = arith.addf %110, %113 : vector<8x128xf32>
    %c2_65 = arith.constant 2 : index
    %c7_66 = arith.constant 7 : index
    %115 = memref.load %arg2[%c2_65, %c7_66] : memref<4x8xf32, #tpu.memory_space<smem>>
    %116 = vector.broadcast %115 : f32 to vector<8x128xf32>
    %117 = arith.mulf %15, %116 : vector<8x128xf32>
    %118 = arith.addf %114, %117 : vector<8x128xf32>
    %c2_67 = arith.constant 2 : index
    %119 = memref.load %arg3[%c2_67] : memref<4xf32, #tpu.memory_space<smem>>
    %120 = vector.broadcast %119 : f32 to vector<8x128xf32>
    %121 = arith.addf %118, %120 : vector<8x128xf32>
    %cst_68 = arith.constant 0.000000e+00 : f32
    %122 = vector.broadcast %cst_68 : f32 to vector<8x128xf32>
    %123 = arith.maximumf %121, %122 : vector<8x128xf32>
    %c3_69 = arith.constant 3 : index
    %c0_70 = arith.constant 0 : index
    %124 = memref.load %arg2[%c3_69, %c0_70] : memref<4x8xf32, #tpu.memory_space<smem>>
    %125 = vector.broadcast %124 : f32 to vector<8x128xf32>
    %126 = arith.mulf %1, %125 : vector<8x128xf32>
    %c3_71 = arith.constant 3 : index
    %c1_72 = arith.constant 1 : index
    %127 = memref.load %arg2[%c3_71, %c1_72] : memref<4x8xf32, #tpu.memory_space<smem>>
    %128 = vector.broadcast %127 : f32 to vector<8x128xf32>
    %129 = arith.mulf %3, %128 : vector<8x128xf32>
    %130 = arith.addf %126, %129 : vector<8x128xf32>
    %c3_73 = arith.constant 3 : index
    %c2_74 = arith.constant 2 : index
    %131 = memref.load %arg2[%c3_73, %c2_74] : memref<4x8xf32, #tpu.memory_space<smem>>
    %132 = vector.broadcast %131 : f32 to vector<8x128xf32>
    %133 = arith.mulf %5, %132 : vector<8x128xf32>
    %134 = arith.addf %130, %133 : vector<8x128xf32>
    %c3_75 = arith.constant 3 : index
    %c3_76 = arith.constant 3 : index
    %135 = memref.load %arg2[%c3_75, %c3_76] : memref<4x8xf32, #tpu.memory_space<smem>>
    %136 = vector.broadcast %135 : f32 to vector<8x128xf32>
    %137 = arith.mulf %7, %136 : vector<8x128xf32>
    %138 = arith.addf %134, %137 : vector<8x128xf32>
    %c3_77 = arith.constant 3 : index
    %c4_78 = arith.constant 4 : index
    %139 = memref.load %arg2[%c3_77, %c4_78] : memref<4x8xf32, #tpu.memory_space<smem>>
    %140 = vector.broadcast %139 : f32 to vector<8x128xf32>
    %141 = arith.mulf %9, %140 : vector<8x128xf32>
    %142 = arith.addf %138, %141 : vector<8x128xf32>
    %c3_79 = arith.constant 3 : index
    %c5_80 = arith.constant 5 : index
    %143 = memref.load %arg2[%c3_79, %c5_80] : memref<4x8xf32, #tpu.memory_space<smem>>
    %144 = vector.broadcast %143 : f32 to vector<8x128xf32>
    %145 = arith.mulf %11, %144 : vector<8x128xf32>
    %146 = arith.addf %142, %145 : vector<8x128xf32>
    %c3_81 = arith.constant 3 : index
    %c6_82 = arith.constant 6 : index
    %147 = memref.load %arg2[%c3_81, %c6_82] : memref<4x8xf32, #tpu.memory_space<smem>>
    %148 = vector.broadcast %147 : f32 to vector<8x128xf32>
    %149 = arith.mulf %13, %148 : vector<8x128xf32>
    %150 = arith.addf %146, %149 : vector<8x128xf32>
    %c3_83 = arith.constant 3 : index
    %c7_84 = arith.constant 7 : index
    %151 = memref.load %arg2[%c3_83, %c7_84] : memref<4x8xf32, #tpu.memory_space<smem>>
    %152 = vector.broadcast %151 : f32 to vector<8x128xf32>
    %153 = arith.mulf %15, %152 : vector<8x128xf32>
    %154 = arith.addf %150, %153 : vector<8x128xf32>
    %c3_85 = arith.constant 3 : index
    %155 = memref.load %arg3[%c3_85] : memref<4xf32, #tpu.memory_space<smem>>
    %156 = vector.broadcast %155 : f32 to vector<8x128xf32>
    %157 = arith.addf %154, %156 : vector<8x128xf32>
    %cst_86 = arith.constant 0.000000e+00 : f32
    %158 = vector.broadcast %cst_86 : f32 to vector<8x128xf32>
    %159 = arith.maximumf %157, %158 : vector<8x128xf32>
    %c0_87 = arith.constant 0 : index
    %c0_88 = arith.constant 0 : index
    %160 = memref.load %arg4[%c0_87, %c0_88] : memref<8x4xf32, #tpu.memory_space<smem>>
    %161 = vector.broadcast %160 : f32 to vector<8x128xf32>
    %162 = arith.mulf %51, %161 : vector<8x128xf32>
    %c0_89 = arith.constant 0 : index
    %c1_90 = arith.constant 1 : index
    %163 = memref.load %arg4[%c0_89, %c1_90] : memref<8x4xf32, #tpu.memory_space<smem>>
    %164 = vector.broadcast %163 : f32 to vector<8x128xf32>
    %165 = arith.mulf %87, %164 : vector<8x128xf32>
    %166 = arith.addf %162, %165 : vector<8x128xf32>
    %c0_91 = arith.constant 0 : index
    %c2_92 = arith.constant 2 : index
    %167 = memref.load %arg4[%c0_91, %c2_92] : memref<8x4xf32, #tpu.memory_space<smem>>
    %168 = vector.broadcast %167 : f32 to vector<8x128xf32>
    %169 = arith.mulf %123, %168 : vector<8x128xf32>
    %170 = arith.addf %166, %169 : vector<8x128xf32>
    %c0_93 = arith.constant 0 : index
    %c3_94 = arith.constant 3 : index
    %171 = memref.load %arg4[%c0_93, %c3_94] : memref<8x4xf32, #tpu.memory_space<smem>>
    %172 = vector.broadcast %171 : f32 to vector<8x128xf32>
    %173 = arith.mulf %159, %172 : vector<8x128xf32>
    %174 = arith.addf %170, %173 : vector<8x128xf32>
    %c0_95 = arith.constant 0 : index
    %175 = memref.load %arg5[%c0_95] : memref<8xf32, #tpu.memory_space<smem>>
    %176 = vector.broadcast %175 : f32 to vector<8x128xf32>
    %177 = arith.addf %174, %176 : vector<8x128xf32>
    %c1_96 = arith.constant 1 : index
    %c0_97 = arith.constant 0 : index
    %178 = memref.load %arg4[%c1_96, %c0_97] : memref<8x4xf32, #tpu.memory_space<smem>>
    %179 = vector.broadcast %178 : f32 to vector<8x128xf32>
    %180 = arith.mulf %51, %179 : vector<8x128xf32>
    %c1_98 = arith.constant 1 : index
    %c1_99 = arith.constant 1 : index
    %181 = memref.load %arg4[%c1_98, %c1_99] : memref<8x4xf32, #tpu.memory_space<smem>>
    %182 = vector.broadcast %181 : f32 to vector<8x128xf32>
    %183 = arith.mulf %87, %182 : vector<8x128xf32>
    %184 = arith.addf %180, %183 : vector<8x128xf32>
    %c1_100 = arith.constant 1 : index
    %c2_101 = arith.constant 2 : index
    %185 = memref.load %arg4[%c1_100, %c2_101] : memref<8x4xf32, #tpu.memory_space<smem>>
    %186 = vector.broadcast %185 : f32 to vector<8x128xf32>
    %187 = arith.mulf %123, %186 : vector<8x128xf32>
    %188 = arith.addf %184, %187 : vector<8x128xf32>
    %c1_102 = arith.constant 1 : index
    %c3_103 = arith.constant 3 : index
    %189 = memref.load %arg4[%c1_102, %c3_103] : memref<8x4xf32, #tpu.memory_space<smem>>
    %190 = vector.broadcast %189 : f32 to vector<8x128xf32>
    %191 = arith.mulf %159, %190 : vector<8x128xf32>
    %192 = arith.addf %188, %191 : vector<8x128xf32>
    %c1_104 = arith.constant 1 : index
    %193 = memref.load %arg5[%c1_104] : memref<8xf32, #tpu.memory_space<smem>>
    %194 = vector.broadcast %193 : f32 to vector<8x128xf32>
    %195 = arith.addf %192, %194 : vector<8x128xf32>
    %c2_105 = arith.constant 2 : index
    %c0_106 = arith.constant 0 : index
    %196 = memref.load %arg4[%c2_105, %c0_106] : memref<8x4xf32, #tpu.memory_space<smem>>
    %197 = vector.broadcast %196 : f32 to vector<8x128xf32>
    %198 = arith.mulf %51, %197 : vector<8x128xf32>
    %c2_107 = arith.constant 2 : index
    %c1_108 = arith.constant 1 : index
    %199 = memref.load %arg4[%c2_107, %c1_108] : memref<8x4xf32, #tpu.memory_space<smem>>
    %200 = vector.broadcast %199 : f32 to vector<8x128xf32>
    %201 = arith.mulf %87, %200 : vector<8x128xf32>
    %202 = arith.addf %198, %201 : vector<8x128xf32>
    %c2_109 = arith.constant 2 : index
    %c2_110 = arith.constant 2 : index
    %203 = memref.load %arg4[%c2_109, %c2_110] : memref<8x4xf32, #tpu.memory_space<smem>>
    %204 = vector.broadcast %203 : f32 to vector<8x128xf32>
    %205 = arith.mulf %123, %204 : vector<8x128xf32>
    %206 = arith.addf %202, %205 : vector<8x128xf32>
    %c2_111 = arith.constant 2 : index
    %c3_112 = arith.constant 3 : index
    %207 = memref.load %arg4[%c2_111, %c3_112] : memref<8x4xf32, #tpu.memory_space<smem>>
    %208 = vector.broadcast %207 : f32 to vector<8x128xf32>
    %209 = arith.mulf %159, %208 : vector<8x128xf32>
    %210 = arith.addf %206, %209 : vector<8x128xf32>
    %c2_113 = arith.constant 2 : index
    %211 = memref.load %arg5[%c2_113] : memref<8xf32, #tpu.memory_space<smem>>
    %212 = vector.broadcast %211 : f32 to vector<8x128xf32>
    %213 = arith.addf %210, %212 : vector<8x128xf32>
    %c3_114 = arith.constant 3 : index
    %c0_115 = arith.constant 0 : index
    %214 = memref.load %arg4[%c3_114, %c0_115] : memref<8x4xf32, #tpu.memory_space<smem>>
    %215 = vector.broadcast %214 : f32 to vector<8x128xf32>
    %216 = arith.mulf %51, %215 : vector<8x128xf32>
    %c3_116 = arith.constant 3 : index
    %c1_117 = arith.constant 1 : index
    %217 = memref.load %arg4[%c3_116, %c1_117] : memref<8x4xf32, #tpu.memory_space<smem>>
    %218 = vector.broadcast %217 : f32 to vector<8x128xf32>
    %219 = arith.mulf %87, %218 : vector<8x128xf32>
    %220 = arith.addf %216, %219 : vector<8x128xf32>
    %c3_118 = arith.constant 3 : index
    %c2_119 = arith.constant 2 : index
    %221 = memref.load %arg4[%c3_118, %c2_119] : memref<8x4xf32, #tpu.memory_space<smem>>
    %222 = vector.broadcast %221 : f32 to vector<8x128xf32>
    %223 = arith.mulf %123, %222 : vector<8x128xf32>
    %224 = arith.addf %220, %223 : vector<8x128xf32>
    %c3_120 = arith.constant 3 : index
    %c3_121 = arith.constant 3 : index
    %225 = memref.load %arg4[%c3_120, %c3_121] : memref<8x4xf32, #tpu.memory_space<smem>>
    %226 = vector.broadcast %225 : f32 to vector<8x128xf32>
    %227 = arith.mulf %159, %226 : vector<8x128xf32>
    %228 = arith.addf %224, %227 : vector<8x128xf32>
    %c3_122 = arith.constant 3 : index
    %229 = memref.load %arg5[%c3_122] : memref<8xf32, #tpu.memory_space<smem>>
    %230 = vector.broadcast %229 : f32 to vector<8x128xf32>
    %231 = arith.addf %228, %230 : vector<8x128xf32>
    %c4_123 = arith.constant 4 : index
    %c0_124 = arith.constant 0 : index
    %232 = memref.load %arg4[%c4_123, %c0_124] : memref<8x4xf32, #tpu.memory_space<smem>>
    %233 = vector.broadcast %232 : f32 to vector<8x128xf32>
    %234 = arith.mulf %51, %233 : vector<8x128xf32>
    %c4_125 = arith.constant 4 : index
    %c1_126 = arith.constant 1 : index
    %235 = memref.load %arg4[%c4_125, %c1_126] : memref<8x4xf32, #tpu.memory_space<smem>>
    %236 = vector.broadcast %235 : f32 to vector<8x128xf32>
    %237 = arith.mulf %87, %236 : vector<8x128xf32>
    %238 = arith.addf %234, %237 : vector<8x128xf32>
    %c4_127 = arith.constant 4 : index
    %c2_128 = arith.constant 2 : index
    %239 = memref.load %arg4[%c4_127, %c2_128] : memref<8x4xf32, #tpu.memory_space<smem>>
    %240 = vector.broadcast %239 : f32 to vector<8x128xf32>
    %241 = arith.mulf %123, %240 : vector<8x128xf32>
    %242 = arith.addf %238, %241 : vector<8x128xf32>
    %c4_129 = arith.constant 4 : index
    %c3_130 = arith.constant 3 : index
    %243 = memref.load %arg4[%c4_129, %c3_130] : memref<8x4xf32, #tpu.memory_space<smem>>
    %244 = vector.broadcast %243 : f32 to vector<8x128xf32>
    %245 = arith.mulf %159, %244 : vector<8x128xf32>
    %246 = arith.addf %242, %245 : vector<8x128xf32>
    %c4_131 = arith.constant 4 : index
    %247 = memref.load %arg5[%c4_131] : memref<8xf32, #tpu.memory_space<smem>>
    %248 = vector.broadcast %247 : f32 to vector<8x128xf32>
    %249 = arith.addf %246, %248 : vector<8x128xf32>
    %c5_132 = arith.constant 5 : index
    %c0_133 = arith.constant 0 : index
    %250 = memref.load %arg4[%c5_132, %c0_133] : memref<8x4xf32, #tpu.memory_space<smem>>
    %251 = vector.broadcast %250 : f32 to vector<8x128xf32>
    %252 = arith.mulf %51, %251 : vector<8x128xf32>
    %c5_134 = arith.constant 5 : index
    %c1_135 = arith.constant 1 : index
    %253 = memref.load %arg4[%c5_134, %c1_135] : memref<8x4xf32, #tpu.memory_space<smem>>
    %254 = vector.broadcast %253 : f32 to vector<8x128xf32>
    %255 = arith.mulf %87, %254 : vector<8x128xf32>
    %256 = arith.addf %252, %255 : vector<8x128xf32>
    %c5_136 = arith.constant 5 : index
    %c2_137 = arith.constant 2 : index
    %257 = memref.load %arg4[%c5_136, %c2_137] : memref<8x4xf32, #tpu.memory_space<smem>>
    %258 = vector.broadcast %257 : f32 to vector<8x128xf32>
    %259 = arith.mulf %123, %258 : vector<8x128xf32>
    %260 = arith.addf %256, %259 : vector<8x128xf32>
    %c5_138 = arith.constant 5 : index
    %c3_139 = arith.constant 3 : index
    %261 = memref.load %arg4[%c5_138, %c3_139] : memref<8x4xf32, #tpu.memory_space<smem>>
    %262 = vector.broadcast %261 : f32 to vector<8x128xf32>
    %263 = arith.mulf %159, %262 : vector<8x128xf32>
    %264 = arith.addf %260, %263 : vector<8x128xf32>
    %c5_140 = arith.constant 5 : index
    %265 = memref.load %arg5[%c5_140] : memref<8xf32, #tpu.memory_space<smem>>
    %266 = vector.broadcast %265 : f32 to vector<8x128xf32>
    %267 = arith.addf %264, %266 : vector<8x128xf32>
    %c6_141 = arith.constant 6 : index
    %c0_142 = arith.constant 0 : index
    %268 = memref.load %arg4[%c6_141, %c0_142] : memref<8x4xf32, #tpu.memory_space<smem>>
    %269 = vector.broadcast %268 : f32 to vector<8x128xf32>
    %270 = arith.mulf %51, %269 : vector<8x128xf32>
    %c6_143 = arith.constant 6 : index
    %c1_144 = arith.constant 1 : index
    %271 = memref.load %arg4[%c6_143, %c1_144] : memref<8x4xf32, #tpu.memory_space<smem>>
    %272 = vector.broadcast %271 : f32 to vector<8x128xf32>
    %273 = arith.mulf %87, %272 : vector<8x128xf32>
    %274 = arith.addf %270, %273 : vector<8x128xf32>
    %c6_145 = arith.constant 6 : index
    %c2_146 = arith.constant 2 : index
    %275 = memref.load %arg4[%c6_145, %c2_146] : memref<8x4xf32, #tpu.memory_space<smem>>
    %276 = vector.broadcast %275 : f32 to vector<8x128xf32>
    %277 = arith.mulf %123, %276 : vector<8x128xf32>
    %278 = arith.addf %274, %277 : vector<8x128xf32>
    %c6_147 = arith.constant 6 : index
    %c3_148 = arith.constant 3 : index
    %279 = memref.load %arg4[%c6_147, %c3_148] : memref<8x4xf32, #tpu.memory_space<smem>>
    %280 = vector.broadcast %279 : f32 to vector<8x128xf32>
    %281 = arith.mulf %159, %280 : vector<8x128xf32>
    %282 = arith.addf %278, %281 : vector<8x128xf32>
    %c6_149 = arith.constant 6 : index
    %283 = memref.load %arg5[%c6_149] : memref<8xf32, #tpu.memory_space<smem>>
    %284 = vector.broadcast %283 : f32 to vector<8x128xf32>
    %285 = arith.addf %282, %284 : vector<8x128xf32>
    %c7_150 = arith.constant 7 : index
    %c0_151 = arith.constant 0 : index
    %286 = memref.load %arg4[%c7_150, %c0_151] : memref<8x4xf32, #tpu.memory_space<smem>>
    %287 = vector.broadcast %286 : f32 to vector<8x128xf32>
    %288 = arith.mulf %51, %287 : vector<8x128xf32>
    %c7_152 = arith.constant 7 : index
    %c1_153 = arith.constant 1 : index
    %289 = memref.load %arg4[%c7_152, %c1_153] : memref<8x4xf32, #tpu.memory_space<smem>>
    %290 = vector.broadcast %289 : f32 to vector<8x128xf32>
    %291 = arith.mulf %87, %290 : vector<8x128xf32>
    %292 = arith.addf %288, %291 : vector<8x128xf32>
    %c7_154 = arith.constant 7 : index
    %c2_155 = arith.constant 2 : index
    %293 = memref.load %arg4[%c7_154, %c2_155] : memref<8x4xf32, #tpu.memory_space<smem>>
    %294 = vector.broadcast %293 : f32 to vector<8x128xf32>
    %295 = arith.mulf %123, %294 : vector<8x128xf32>
    %296 = arith.addf %292, %295 : vector<8x128xf32>
    %c7_156 = arith.constant 7 : index
    %c3_157 = arith.constant 3 : index
    %297 = memref.load %arg4[%c7_156, %c3_157] : memref<8x4xf32, #tpu.memory_space<smem>>
    %298 = vector.broadcast %297 : f32 to vector<8x128xf32>
    %299 = arith.mulf %159, %298 : vector<8x128xf32>
    %300 = arith.addf %296, %299 : vector<8x128xf32>
    %c7_158 = arith.constant 7 : index
    %301 = memref.load %arg5[%c7_158] : memref<8xf32, #tpu.memory_space<smem>>
    %302 = vector.broadcast %301 : f32 to vector<8x128xf32>
    %303 = arith.addf %300, %302 : vector<8x128xf32>
    %304 = vector.shape_cast %177 : vector<8x128xf32> to vector<8x1x128xf32>
    %305 = vector.shape_cast %213 : vector<8x128xf32> to vector<1x8x128xf32>
    %306 = vector.broadcast %304 : vector<8x1x128xf32> to vector<8x8x128xf32>
    %307 = vector.broadcast %305 : vector<1x8x128xf32> to vector<8x8x128xf32>
    %308 = arith.mulf %306, %307 : vector<8x8x128xf32>
    %309 = vector.shape_cast %177 : vector<8x128xf32> to vector<8x1x128xf32>
    %c0_159 = arith.constant 0 : index
    %c0_160 = arith.constant 0 : index
    %c0_161 = arith.constant 0 : index
    %c0_162 = arith.constant 0 : index
    %310 = vector.load %arg6[%c0_159, %c0_160, %c0_161, %c0_162] : memref<2x8x8x128xf32, #tpu.memory_space<vmem>>, vector<1x8x8x128xf32>
    %311 = vector.shape_cast %310 : vector<1x8x8x128xf32> to vector<8x8x128xf32>
    %312 = vector.broadcast %309 : vector<8x1x128xf32> to vector<8x8x128xf32>
    %313 = arith.mulf %312, %311 : vector<8x8x128xf32>
    %314 = vector.shape_cast %213 : vector<8x128xf32> to vector<1x8x128xf32>
    %c0_163 = arith.constant 0 : index
    %c0_164 = arith.constant 0 : index
    %c0_165 = arith.constant 0 : index
    %c0_166 = arith.constant 0 : index
    %315 = vector.load %arg7[%c0_163, %c0_164, %c0_165, %c0_166] : memref<2x8x8x128xf32, #tpu.memory_space<vmem>>, vector<1x8x8x128xf32>
    %316 = vector.shape_cast %315 : vector<1x8x8x128xf32> to vector<8x8x128xf32>
    %317 = vector.broadcast %314 : vector<1x8x128xf32> to vector<8x8x128xf32>
    %318 = arith.mulf %317, %316 : vector<8x8x128xf32>
    %319 = vector.shape_cast %195 : vector<8x128xf32> to vector<8x1x128xf32>
    %320 = vector.shape_cast %231 : vector<8x128xf32> to vector<1x8x128xf32>
    %321 = vector.broadcast %319 : vector<8x1x128xf32> to vector<8x8x128xf32>
    %322 = vector.broadcast %320 : vector<1x8x128xf32> to vector<8x8x128xf32>
    %323 = arith.mulf %321, %322 : vector<8x8x128xf32>
    %324 = arith.addf %308, %323 : vector<8x8x128xf32>
    %325 = vector.shape_cast %195 : vector<8x128xf32> to vector<8x1x128xf32>
    %c1_167 = arith.constant 1 : index
    %c0_168 = arith.constant 0 : index
    %c0_169 = arith.constant 0 : index
    %c0_170 = arith.constant 0 : index
    %326 = vector.load %arg6[%c1_167, %c0_168, %c0_169, %c0_170] : memref<2x8x8x128xf32, #tpu.memory_space<vmem>>, vector<1x8x8x128xf32>
    %327 = vector.shape_cast %326 : vector<1x8x8x128xf32> to vector<8x8x128xf32>
    %328 = vector.broadcast %325 : vector<8x1x128xf32> to vector<8x8x128xf32>
    %329 = arith.mulf %328, %327 : vector<8x8x128xf32>
    %330 = arith.addf %313, %329 : vector<8x8x128xf32>
    %331 = vector.shape_cast %231 : vector<8x128xf32> to vector<1x8x128xf32>
    %c1_171 = arith.constant 1 : index
    %c0_172 = arith.constant 0 : index
    %c0_173 = arith.constant 0 : index
    %c0_174 = arith.constant 0 : index
    %332 = vector.load %arg7[%c1_171, %c0_172, %c0_173, %c0_174] : memref<2x8x8x128xf32, #tpu.memory_space<vmem>>, vector<1x8x8x128xf32>
    %333 = vector.shape_cast %332 : vector<1x8x8x128xf32> to vector<8x8x128xf32>
    %334 = vector.broadcast %331 : vector<1x8x128xf32> to vector<8x8x128xf32>
    %335 = arith.mulf %334, %333 : vector<8x8x128xf32>
    %336 = arith.addf %318, %335 : vector<8x8x128xf32>
    %c0_175 = arith.constant 0 : index
    %c0_176 = arith.constant 0 : index
    %337 = memref.load %arg9[%c0_175, %c0_176] : memref<4x1xf32, #tpu.memory_space<smem>>
    %338 = vector.broadcast %337 : f32 to vector<8x8x128xf32>
    %339 = arith.mulf %338, %324 : vector<8x8x128xf32>
    %c1_177 = arith.constant 1 : index
    %c0_178 = arith.constant 0 : index
    %340 = memref.load %arg9[%c1_177, %c0_178] : memref<4x1xf32, #tpu.memory_space<smem>>
    %341 = vector.broadcast %340 : f32 to vector<8x8x128xf32>
    %342 = arith.mulf %341, %330 : vector<8x8x128xf32>
    %343 = arith.addf %339, %342 : vector<8x8x128xf32>
    %c2_179 = arith.constant 2 : index
    %c0_180 = arith.constant 0 : index
    %344 = memref.load %arg9[%c2_179, %c0_180] : memref<4x1xf32, #tpu.memory_space<smem>>
    %345 = vector.broadcast %344 : f32 to vector<8x8x128xf32>
    %346 = arith.mulf %345, %336 : vector<8x8x128xf32>
    %347 = arith.addf %343, %346 : vector<8x8x128xf32>
    %c3_181 = arith.constant 3 : index
    %c0_182 = arith.constant 0 : index
    %348 = memref.load %arg9[%c3_181, %c0_182] : memref<4x1xf32, #tpu.memory_space<smem>>
    %349 = vector.broadcast %348 : f32 to vector<8x8x128xf32>
    %350 = arith.addf %347, %349 : vector<8x8x128xf32>
    %cst_183 = arith.constant dense<0xFF800000> : vector<8x128xf32>
    %351 = vector.multi_reduction <maximumf>, %350, %cst_183 [1] : vector<8x8x128xf32> to vector<8x128xf32>
    %352 = vector.shape_cast %351 : vector<8x128xf32> to vector<8x1x128xf32>
    %353 = vector.broadcast %352 : vector<8x1x128xf32> to vector<8x8x128xf32>
    %354 = arith.subf %350, %353 : vector<8x8x128xf32>
    %355 = math.exp %354 : vector<8x8x128xf32>
    %cst_184 = arith.constant dense<0.000000e+00> : vector<8x128xf32>
    %356 = vector.multi_reduction <add>, %355, %cst_184 [1] : vector<8x8x128xf32> to vector<8x128xf32>
    %357 = vector.shape_cast %356 : vector<8x128xf32> to vector<8x1x128xf32>
    %358 = tpu.reciprocal %357 {approx = true} : vector<8x1x128xf32> -> vector<8x1x128xf32>
    %359 = vector.broadcast %358 : vector<8x1x128xf32> to vector<8x8x128xf32>
    %360 = arith.mulf %355, %359 : vector<8x8x128xf32>
    %361 = vector.shape_cast %249 : vector<8x128xf32> to vector<1x8x128xf32>
    %362 = vector.broadcast %361 : vector<1x8x128xf32> to vector<8x8x128xf32>
    %363 = arith.mulf %360, %362 : vector<8x8x128xf32>
    %cst_185 = arith.constant dense<0.000000e+00> : vector<8x128xf32>
    %364 = vector.multi_reduction <add>, %363, %cst_185 [1] : vector<8x8x128xf32> to vector<8x128xf32>
    %c0_186 = arith.constant 0 : index
    %c0_187 = arith.constant 0 : index
    %c0_188 = arith.constant 0 : index
    %c0_189 = arith.constant 0 : index
    %365 = vector.load %arg8[%c0_186, %c0_187, %c0_188, %c0_189] : memref<4x8x8x128xf32, #tpu.memory_space<vmem>>, vector<1x8x8x128xf32>
    %366 = vector.shape_cast %365 : vector<1x8x8x128xf32> to vector<8x8x128xf32>
    %367 = arith.mulf %360, %366 : vector<8x8x128xf32>
    %cst_190 = arith.constant dense<0.000000e+00> : vector<8x128xf32>
    %368 = vector.multi_reduction <add>, %367, %cst_190 [1] : vector<8x8x128xf32> to vector<8x128xf32>
    %c0_191 = arith.constant 0 : index
    %c0_192 = arith.constant 0 : index
    %369 = memref.load %arg10[%c0_191, %c0_192] : memref<3x4xf32, #tpu.memory_space<smem>>
    %370 = vector.broadcast %369 : f32 to vector<8x128xf32>
    %371 = arith.mulf %370, %364 : vector<8x128xf32>
    %c1_193 = arith.constant 1 : index
    %c0_194 = arith.constant 0 : index
    %372 = memref.load %arg10[%c1_193, %c0_194] : memref<3x4xf32, #tpu.memory_space<smem>>
    %373 = vector.broadcast %372 : f32 to vector<8x128xf32>
    %374 = arith.mulf %373, %368 : vector<8x128xf32>
    %375 = arith.addf %371, %374 : vector<8x128xf32>
    %c2_195 = arith.constant 2 : index
    %c0_196 = arith.constant 0 : index
    %376 = memref.load %arg10[%c2_195, %c0_196] : memref<3x4xf32, #tpu.memory_space<smem>>
    %377 = vector.broadcast %376 : f32 to vector<8x128xf32>
    %378 = arith.addf %375, %377 : vector<8x128xf32>
    %379 = vector.shape_cast %267 : vector<8x128xf32> to vector<1x8x128xf32>
    %380 = vector.broadcast %379 : vector<1x8x128xf32> to vector<8x8x128xf32>
    %381 = arith.mulf %360, %380 : vector<8x8x128xf32>
    %cst_197 = arith.constant dense<0.000000e+00> : vector<8x128xf32>
    %382 = vector.multi_reduction <add>, %381, %cst_197 [1] : vector<8x8x128xf32> to vector<8x128xf32>
    %c1_198 = arith.constant 1 : index
    %c0_199 = arith.constant 0 : index
    %c0_200 = arith.constant 0 : index
    %c0_201 = arith.constant 0 : index
    %383 = vector.load %arg8[%c1_198, %c0_199, %c0_200, %c0_201] : memref<4x8x8x128xf32, #tpu.memory_space<vmem>>, vector<1x8x8x128xf32>
    %384 = vector.shape_cast %383 : vector<1x8x8x128xf32> to vector<8x8x128xf32>
    %385 = arith.mulf %360, %384 : vector<8x8x128xf32>
    %cst_202 = arith.constant dense<0.000000e+00> : vector<8x128xf32>
    %386 = vector.multi_reduction <add>, %385, %cst_202 [1] : vector<8x8x128xf32> to vector<8x128xf32>
    %c0_203 = arith.constant 0 : index
    %c1_204 = arith.constant 1 : index
    %387 = memref.load %arg10[%c0_203, %c1_204] : memref<3x4xf32, #tpu.memory_space<smem>>
    %388 = vector.broadcast %387 : f32 to vector<8x128xf32>
    %389 = arith.mulf %388, %382 : vector<8x128xf32>
    %c1_205 = arith.constant 1 : index
    %c1_206 = arith.constant 1 : index
    %390 = memref.load %arg10[%c1_205, %c1_206] : memref<3x4xf32, #tpu.memory_space<smem>>
    %391 = vector.broadcast %390 : f32 to vector<8x128xf32>
    %392 = arith.mulf %391, %386 : vector<8x128xf32>
    %393 = arith.addf %389, %392 : vector<8x128xf32>
    %c2_207 = arith.constant 2 : index
    %c1_208 = arith.constant 1 : index
    %394 = memref.load %arg10[%c2_207, %c1_208] : memref<3x4xf32, #tpu.memory_space<smem>>
    %395 = vector.broadcast %394 : f32 to vector<8x128xf32>
    %396 = arith.addf %393, %395 : vector<8x128xf32>
    %397 = vector.shape_cast %285 : vector<8x128xf32> to vector<1x8x128xf32>
    %398 = vector.broadcast %397 : vector<1x8x128xf32> to vector<8x8x128xf32>
    %399 = arith.mulf %360, %398 : vector<8x8x128xf32>
    %cst_209 = arith.constant dense<0.000000e+00> : vector<8x128xf32>
    %400 = vector.multi_reduction <add>, %399, %cst_209 [1] : vector<8x8x128xf32> to vector<8x128xf32>
    %c2_210 = arith.constant 2 : index
    %c0_211 = arith.constant 0 : index
    %c0_212 = arith.constant 0 : index
    %c0_213 = arith.constant 0 : index
    %401 = vector.load %arg8[%c2_210, %c0_211, %c0_212, %c0_213] : memref<4x8x8x128xf32, #tpu.memory_space<vmem>>, vector<1x8x8x128xf32>
    %402 = vector.shape_cast %401 : vector<1x8x8x128xf32> to vector<8x8x128xf32>
    %403 = arith.mulf %360, %402 : vector<8x8x128xf32>
    %cst_214 = arith.constant dense<0.000000e+00> : vector<8x128xf32>
    %404 = vector.multi_reduction <add>, %403, %cst_214 [1] : vector<8x8x128xf32> to vector<8x128xf32>
    %c0_215 = arith.constant 0 : index
    %c2_216 = arith.constant 2 : index
    %405 = memref.load %arg10[%c0_215, %c2_216] : memref<3x4xf32, #tpu.memory_space<smem>>
    %406 = vector.broadcast %405 : f32 to vector<8x128xf32>
    %407 = arith.mulf %406, %400 : vector<8x128xf32>
    %c1_217 = arith.constant 1 : index
    %c2_218 = arith.constant 2 : index
    %408 = memref.load %arg10[%c1_217, %c2_218] : memref<3x4xf32, #tpu.memory_space<smem>>
    %409 = vector.broadcast %408 : f32 to vector<8x128xf32>
    %410 = arith.mulf %409, %404 : vector<8x128xf32>
    %411 = arith.addf %407, %410 : vector<8x128xf32>
    %c2_219 = arith.constant 2 : index
    %c2_220 = arith.constant 2 : index
    %412 = memref.load %arg10[%c2_219, %c2_220] : memref<3x4xf32, #tpu.memory_space<smem>>
    %413 = vector.broadcast %412 : f32 to vector<8x128xf32>
    %414 = arith.addf %411, %413 : vector<8x128xf32>
    %415 = vector.shape_cast %303 : vector<8x128xf32> to vector<1x8x128xf32>
    %416 = vector.broadcast %415 : vector<1x8x128xf32> to vector<8x8x128xf32>
    %417 = arith.mulf %360, %416 : vector<8x8x128xf32>
    %cst_221 = arith.constant dense<0.000000e+00> : vector<8x128xf32>
    %418 = vector.multi_reduction <add>, %417, %cst_221 [1] : vector<8x8x128xf32> to vector<8x128xf32>
    %c3_222 = arith.constant 3 : index
    %c0_223 = arith.constant 0 : index
    %c0_224 = arith.constant 0 : index
    %c0_225 = arith.constant 0 : index
    %419 = vector.load %arg8[%c3_222, %c0_223, %c0_224, %c0_225] : memref<4x8x8x128xf32, #tpu.memory_space<vmem>>, vector<1x8x8x128xf32>
    %420 = vector.shape_cast %419 : vector<1x8x8x128xf32> to vector<8x8x128xf32>
    %421 = arith.mulf %360, %420 : vector<8x8x128xf32>
    %cst_226 = arith.constant dense<0.000000e+00> : vector<8x128xf32>
    %422 = vector.multi_reduction <add>, %421, %cst_226 [1] : vector<8x8x128xf32> to vector<8x128xf32>
    %c0_227 = arith.constant 0 : index
    %c3_228 = arith.constant 3 : index
    %423 = memref.load %arg10[%c0_227, %c3_228] : memref<3x4xf32, #tpu.memory_space<smem>>
    %424 = vector.broadcast %423 : f32 to vector<8x128xf32>
    %425 = arith.mulf %424, %418 : vector<8x128xf32>
    %c1_229 = arith.constant 1 : index
    %c3_230 = arith.constant 3 : index
    %426 = memref.load %arg10[%c1_229, %c3_230] : memref<3x4xf32, #tpu.memory_space<smem>>
    %427 = vector.broadcast %426 : f32 to vector<8x128xf32>
    %428 = arith.mulf %427, %422 : vector<8x128xf32>
    %429 = arith.addf %425, %428 : vector<8x128xf32>
    %c2_231 = arith.constant 2 : index
    %c3_232 = arith.constant 3 : index
    %430 = memref.load %arg10[%c2_231, %c3_232] : memref<3x4xf32, #tpu.memory_space<smem>>
    %431 = vector.broadcast %430 : f32 to vector<8x128xf32>
    %432 = arith.addf %429, %431 : vector<8x128xf32>
    %c0_233 = arith.constant 0 : index
    %c0_234 = arith.constant 0 : index
    %c0_235 = arith.constant 0 : index
    %433 = vector.load %arg11[%c0_233, %c0_234, %c0_235] : memref<4x8x128xf32, #tpu.memory_space<vmem>>, vector<1x8x128xf32>
    %434 = vector.shape_cast %433 : vector<1x8x128xf32> to vector<8x128xf32>
    %435 = vector.shape_cast %378 : vector<8x128xf32> to vector<1x8x128xf32>
    tpu.vector_store %arg11[%c0_233, %c0_234, %c0_235], %435 {strides = array<i32>} : memref<4x8x128xf32, #tpu.memory_space<vmem>>, vector<1x8x128xf32>,
    %c1_236 = arith.constant 1 : index
    %c0_237 = arith.constant 0 : index
    %c0_238 = arith.constant 0 : index
    %436 = vector.load %arg11[%c1_236, %c0_237, %c0_238] : memref<4x8x128xf32, #tpu.memory_space<vmem>>, vector<1x8x128xf32>
    %437 = vector.shape_cast %436 : vector<1x8x128xf32> to vector<8x128xf32>
    %438 = vector.shape_cast %396 : vector<8x128xf32> to vector<1x8x128xf32>
    tpu.vector_store %arg11[%c1_236, %c0_237, %c0_238], %438 {strides = array<i32>} : memref<4x8x128xf32, #tpu.memory_space<vmem>>, vector<1x8x128xf32>,
    %c2_239 = arith.constant 2 : index
    %c0_240 = arith.constant 0 : index
    %c0_241 = arith.constant 0 : index
    %439 = vector.load %arg11[%c2_239, %c0_240, %c0_241] : memref<4x8x128xf32, #tpu.memory_space<vmem>>, vector<1x8x128xf32>
    %440 = vector.shape_cast %439 : vector<1x8x128xf32> to vector<8x128xf32>
    %441 = vector.shape_cast %414 : vector<8x128xf32> to vector<1x8x128xf32>
    tpu.vector_store %arg11[%c2_239, %c0_240, %c0_241], %441 {strides = array<i32>} : memref<4x8x128xf32, #tpu.memory_space<vmem>>, vector<1x8x128xf32>,
    %c3_242 = arith.constant 3 : index
    %c0_243 = arith.constant 0 : index
    %c0_244 = arith.constant 0 : index
    %442 = vector.load %arg11[%c3_242, %c0_243, %c0_244] : memref<4x8x128xf32, #tpu.memory_space<vmem>>, vector<1x8x128xf32>
    %443 = vector.shape_cast %442 : vector<1x8x128xf32> to vector<8x128xf32>
    %444 = vector.shape_cast %432 : vector<8x128xf32> to vector<1x8x128xf32>
    tpu.vector_store %arg11[%c3_242, %c0_243, %c0_244], %444 {strides = array<i32>} : memref<4x8x128xf32, #tpu.memory_space<vmem>>, vector<1x8x128xf32>,
    return
  }
  func.func @transform_0(%arg0: i32) -> (i32, i32, i32) {
    %c0_i32 = arith.constant 0 : i32
    %c0_i32_0 = arith.constant 0 : i32
    %c0_i32_1 = arith.constant 0 : i32
    return %c0_i32, %c0_i32_0, %arg0 : i32, i32, i32
  }
  func.func @transform_1(%arg0: i32) -> (i32, i32) {
    %c0_i32 = arith.constant 0 : i32
    %c0_i32_0 = arith.constant 0 : i32
    %c0_i32_1 = arith.constant 0 : i32
    return %c0_i32, %c0_i32_0 : i32, i32
  }
  func.func @transform_2(%arg0: i32) -> i32 {
    %c0_i32 = arith.constant 0 : i32
    %c0_i32_0 = arith.constant 0 : i32
    return %c0_i32 : i32
  }
  func.func @transform_3(%arg0: i32) -> (i32, i32) {
    %c0_i32 = arith.constant 0 : i32
    %c0_i32_0 = arith.constant 0 : i32
    %c0_i32_1 = arith.constant 0 : i32
    return %c0_i32, %c0_i32_0 : i32, i32
  }
  func.func @transform_4(%arg0: i32) -> i32 {
    %c0_i32 = arith.constant 0 : i32
    %c0_i32_0 = arith.constant 0 : i32
    return %c0_i32 : i32
  }
  func.func @transform_5(%arg0: i32) -> (i32, i32, i32, i32) {
    %c0_i32 = arith.constant 0 : i32
    %c0_i32_0 = arith.constant 0 : i32
    %c0_i32_1 = arith.constant 0 : i32
    %c0_i32_2 = arith.constant 0 : i32
    %c0_i32_3 = arith.constant 0 : i32
    return %c0_i32, %c0_i32_0, %c0_i32_1, %c0_i32_2 : i32, i32, i32, i32
  }
  func.func @transform_6(%arg0: i32) -> (i32, i32, i32, i32) {
    %c0_i32 = arith.constant 0 : i32
    %c0_i32_0 = arith.constant 0 : i32
    %c0_i32_1 = arith.constant 0 : i32
    %c0_i32_2 = arith.constant 0 : i32
    %c0_i32_3 = arith.constant 0 : i32
    return %c0_i32, %c0_i32_0, %c0_i32_1, %c0_i32_2 : i32, i32, i32, i32
  }
  func.func @transform_7(%arg0: i32) -> (i32, i32, i32, i32) {
    %c0_i32 = arith.constant 0 : i32
    %c0_i32_0 = arith.constant 0 : i32
    %c0_i32_1 = arith.constant 0 : i32
    %c0_i32_2 = arith.constant 0 : i32
    %c0_i32_3 = arith.constant 0 : i32
    return %c0_i32, %c0_i32_0, %c0_i32_1, %c0_i32_2 : i32, i32, i32, i32
  }
  func.func @transform_8(%arg0: i32) -> (i32, i32) {
    %c0_i32 = arith.constant 0 : i32
    %c0_i32_0 = arith.constant 0 : i32
    %c0_i32_1 = arith.constant 0 : i32
    return %c0_i32, %c0_i32_0 : i32, i32
  }
  func.func @transform_9(%arg0: i32) -> (i32, i32) {
    %c0_i32 = arith.constant 0 : i32
    %c0_i32_0 = arith.constant 0 : i32
    %c0_i32_1 = arith.constant 0 : i32
    return %c0_i32, %c0_i32_0 : i32, i32
  }
  func.func @transform_10(%arg0: i32) -> (i32, i32, i32) {
    %c0_i32 = arith.constant 0 : i32
    %c0_i32_0 = arith.constant 0 : i32
    %c0_i32_1 = arith.constant 0 : i32
    return %c0_i32, %c0_i32_0, %arg0 : i32, i32, i32
  }
}

module attributes {stable_mosaic.version = 11 : i64} {
  func.func @_stage2_kernel(%arg0: i32, %arg1: memref<4x8x128xf32, #tpu.memory_space<vmem>>, %arg2: memref<8x4xf32, #tpu.memory_space<smem>>, %arg3: memref<8xf32, #tpu.memory_space<smem>>, %arg4: memref<2x8x8x128xf32, #tpu.memory_space<vmem>>, %arg5: memref<2x8x8x128xf32, #tpu.memory_space<vmem>>, %arg6: memref<4x8x8x128xf32, #tpu.memory_space<vmem>>, %arg7: memref<4x1xf32, #tpu.memory_space<smem>>, %arg8: memref<3x4xf32, #tpu.memory_space<smem>>, %arg9: memref<4x8x128xf32, #tpu.memory_space<vmem>>) attributes {dimension_semantics = [#tpu.dimension_semantics<parallel>], iteration_bounds = array<i64: 1>, scalar_prefetch = 0 : i64, scratch_operands = 0 : i64, tpu.core_type = #tpu.core_type<tc>, window_params = [{transform_indices = @transform_0, window_bounds = array<i64: 4, 8, 128>}, {transform_indices = @transform_1, window_bounds = array<i64: 8, 4>}, {transform_indices = @transform_2, window_bounds = array<i64: 8>}, {pipeline_mode = #tpu.pipeline_mode<synchronous>, transform_indices = @transform_3, window_bounds = array<i64: 2, 8, 8, 128>}, {pipeline_mode = #tpu.pipeline_mode<synchronous>, transform_indices = @transform_4, window_bounds = array<i64: 2, 8, 8, 128>}, {pipeline_mode = #tpu.pipeline_mode<synchronous>, transform_indices = @transform_5, window_bounds = array<i64: 4, 8, 8, 128>}, {transform_indices = @transform_6, window_bounds = array<i64: 4, 1>}, {transform_indices = @transform_7, window_bounds = array<i64: 3, 4>}, {transform_indices = @transform_8, window_bounds = array<i64: 4, 8, 128>}]} {
    %c0 = arith.constant 0 : index
    %c0_0 = arith.constant 0 : index
    %c0_1 = arith.constant 0 : index
    %0 = vector.load %arg1[%c0, %c0_0, %c0_1] : memref<4x8x128xf32, #tpu.memory_space<vmem>>, vector<1x8x128xf32>
    %1 = vector.shape_cast %0 : vector<1x8x128xf32> to vector<8x128xf32>
    %c1 = arith.constant 1 : index
    %c0_2 = arith.constant 0 : index
    %c0_3 = arith.constant 0 : index
    %2 = vector.load %arg1[%c1, %c0_2, %c0_3] : memref<4x8x128xf32, #tpu.memory_space<vmem>>, vector<1x8x128xf32>
    %3 = vector.shape_cast %2 : vector<1x8x128xf32> to vector<8x128xf32>
    %c2 = arith.constant 2 : index
    %c0_4 = arith.constant 0 : index
    %c0_5 = arith.constant 0 : index
    %4 = vector.load %arg1[%c2, %c0_4, %c0_5] : memref<4x8x128xf32, #tpu.memory_space<vmem>>, vector<1x8x128xf32>
    %5 = vector.shape_cast %4 : vector<1x8x128xf32> to vector<8x128xf32>
    %c3 = arith.constant 3 : index
    %c0_6 = arith.constant 0 : index
    %c0_7 = arith.constant 0 : index
    %6 = vector.load %arg1[%c3, %c0_6, %c0_7] : memref<4x8x128xf32, #tpu.memory_space<vmem>>, vector<1x8x128xf32>
    %7 = vector.shape_cast %6 : vector<1x8x128xf32> to vector<8x128xf32>
    %c0_8 = arith.constant 0 : index
    %c0_9 = arith.constant 0 : index
    %8 = memref.load %arg2[%c0_8, %c0_9] : memref<8x4xf32, #tpu.memory_space<smem>>
    %9 = vector.broadcast %8 : f32 to vector<8x128xf32>
    %10 = arith.mulf %1, %9 : vector<8x128xf32>
    %c0_10 = arith.constant 0 : index
    %c1_11 = arith.constant 1 : index
    %11 = memref.load %arg2[%c0_10, %c1_11] : memref<8x4xf32, #tpu.memory_space<smem>>
    %12 = vector.broadcast %11 : f32 to vector<8x128xf32>
    %13 = arith.mulf %3, %12 : vector<8x128xf32>
    %14 = arith.addf %10, %13 : vector<8x128xf32>
    %c0_12 = arith.constant 0 : index
    %c2_13 = arith.constant 2 : index
    %15 = memref.load %arg2[%c0_12, %c2_13] : memref<8x4xf32, #tpu.memory_space<smem>>
    %16 = vector.broadcast %15 : f32 to vector<8x128xf32>
    %17 = arith.mulf %5, %16 : vector<8x128xf32>
    %18 = arith.addf %14, %17 : vector<8x128xf32>
    %c0_14 = arith.constant 0 : index
    %c3_15 = arith.constant 3 : index
    %19 = memref.load %arg2[%c0_14, %c3_15] : memref<8x4xf32, #tpu.memory_space<smem>>
    %20 = vector.broadcast %19 : f32 to vector<8x128xf32>
    %21 = arith.mulf %7, %20 : vector<8x128xf32>
    %22 = arith.addf %18, %21 : vector<8x128xf32>
    %c0_16 = arith.constant 0 : index
    %23 = memref.load %arg3[%c0_16] : memref<8xf32, #tpu.memory_space<smem>>
    %24 = vector.broadcast %23 : f32 to vector<8x128xf32>
    %25 = arith.addf %22, %24 : vector<8x128xf32>
    %c1_17 = arith.constant 1 : index
    %c0_18 = arith.constant 0 : index
    %26 = memref.load %arg2[%c1_17, %c0_18] : memref<8x4xf32, #tpu.memory_space<smem>>
    %27 = vector.broadcast %26 : f32 to vector<8x128xf32>
    %28 = arith.mulf %1, %27 : vector<8x128xf32>
    %c1_19 = arith.constant 1 : index
    %c1_20 = arith.constant 1 : index
    %29 = memref.load %arg2[%c1_19, %c1_20] : memref<8x4xf32, #tpu.memory_space<smem>>
    %30 = vector.broadcast %29 : f32 to vector<8x128xf32>
    %31 = arith.mulf %3, %30 : vector<8x128xf32>
    %32 = arith.addf %28, %31 : vector<8x128xf32>
    %c1_21 = arith.constant 1 : index
    %c2_22 = arith.constant 2 : index
    %33 = memref.load %arg2[%c1_21, %c2_22] : memref<8x4xf32, #tpu.memory_space<smem>>
    %34 = vector.broadcast %33 : f32 to vector<8x128xf32>
    %35 = arith.mulf %5, %34 : vector<8x128xf32>
    %36 = arith.addf %32, %35 : vector<8x128xf32>
    %c1_23 = arith.constant 1 : index
    %c3_24 = arith.constant 3 : index
    %37 = memref.load %arg2[%c1_23, %c3_24] : memref<8x4xf32, #tpu.memory_space<smem>>
    %38 = vector.broadcast %37 : f32 to vector<8x128xf32>
    %39 = arith.mulf %7, %38 : vector<8x128xf32>
    %40 = arith.addf %36, %39 : vector<8x128xf32>
    %c1_25 = arith.constant 1 : index
    %41 = memref.load %arg3[%c1_25] : memref<8xf32, #tpu.memory_space<smem>>
    %42 = vector.broadcast %41 : f32 to vector<8x128xf32>
    %43 = arith.addf %40, %42 : vector<8x128xf32>
    %c2_26 = arith.constant 2 : index
    %c0_27 = arith.constant 0 : index
    %44 = memref.load %arg2[%c2_26, %c0_27] : memref<8x4xf32, #tpu.memory_space<smem>>
    %45 = vector.broadcast %44 : f32 to vector<8x128xf32>
    %46 = arith.mulf %1, %45 : vector<8x128xf32>
    %c2_28 = arith.constant 2 : index
    %c1_29 = arith.constant 1 : index
    %47 = memref.load %arg2[%c2_28, %c1_29] : memref<8x4xf32, #tpu.memory_space<smem>>
    %48 = vector.broadcast %47 : f32 to vector<8x128xf32>
    %49 = arith.mulf %3, %48 : vector<8x128xf32>
    %50 = arith.addf %46, %49 : vector<8x128xf32>
    %c2_30 = arith.constant 2 : index
    %c2_31 = arith.constant 2 : index
    %51 = memref.load %arg2[%c2_30, %c2_31] : memref<8x4xf32, #tpu.memory_space<smem>>
    %52 = vector.broadcast %51 : f32 to vector<8x128xf32>
    %53 = arith.mulf %5, %52 : vector<8x128xf32>
    %54 = arith.addf %50, %53 : vector<8x128xf32>
    %c2_32 = arith.constant 2 : index
    %c3_33 = arith.constant 3 : index
    %55 = memref.load %arg2[%c2_32, %c3_33] : memref<8x4xf32, #tpu.memory_space<smem>>
    %56 = vector.broadcast %55 : f32 to vector<8x128xf32>
    %57 = arith.mulf %7, %56 : vector<8x128xf32>
    %58 = arith.addf %54, %57 : vector<8x128xf32>
    %c2_34 = arith.constant 2 : index
    %59 = memref.load %arg3[%c2_34] : memref<8xf32, #tpu.memory_space<smem>>
    %60 = vector.broadcast %59 : f32 to vector<8x128xf32>
    %61 = arith.addf %58, %60 : vector<8x128xf32>
    %c3_35 = arith.constant 3 : index
    %c0_36 = arith.constant 0 : index
    %62 = memref.load %arg2[%c3_35, %c0_36] : memref<8x4xf32, #tpu.memory_space<smem>>
    %63 = vector.broadcast %62 : f32 to vector<8x128xf32>
    %64 = arith.mulf %1, %63 : vector<8x128xf32>
    %c3_37 = arith.constant 3 : index
    %c1_38 = arith.constant 1 : index
    %65 = memref.load %arg2[%c3_37, %c1_38] : memref<8x4xf32, #tpu.memory_space<smem>>
    %66 = vector.broadcast %65 : f32 to vector<8x128xf32>
    %67 = arith.mulf %3, %66 : vector<8x128xf32>
    %68 = arith.addf %64, %67 : vector<8x128xf32>
    %c3_39 = arith.constant 3 : index
    %c2_40 = arith.constant 2 : index
    %69 = memref.load %arg2[%c3_39, %c2_40] : memref<8x4xf32, #tpu.memory_space<smem>>
    %70 = vector.broadcast %69 : f32 to vector<8x128xf32>
    %71 = arith.mulf %5, %70 : vector<8x128xf32>
    %72 = arith.addf %68, %71 : vector<8x128xf32>
    %c3_41 = arith.constant 3 : index
    %c3_42 = arith.constant 3 : index
    %73 = memref.load %arg2[%c3_41, %c3_42] : memref<8x4xf32, #tpu.memory_space<smem>>
    %74 = vector.broadcast %73 : f32 to vector<8x128xf32>
    %75 = arith.mulf %7, %74 : vector<8x128xf32>
    %76 = arith.addf %72, %75 : vector<8x128xf32>
    %c3_43 = arith.constant 3 : index
    %77 = memref.load %arg3[%c3_43] : memref<8xf32, #tpu.memory_space<smem>>
    %78 = vector.broadcast %77 : f32 to vector<8x128xf32>
    %79 = arith.addf %76, %78 : vector<8x128xf32>
    %c4 = arith.constant 4 : index
    %c0_44 = arith.constant 0 : index
    %80 = memref.load %arg2[%c4, %c0_44] : memref<8x4xf32, #tpu.memory_space<smem>>
    %81 = vector.broadcast %80 : f32 to vector<8x128xf32>
    %82 = arith.mulf %1, %81 : vector<8x128xf32>
    %c4_45 = arith.constant 4 : index
    %c1_46 = arith.constant 1 : index
    %83 = memref.load %arg2[%c4_45, %c1_46] : memref<8x4xf32, #tpu.memory_space<smem>>
    %84 = vector.broadcast %83 : f32 to vector<8x128xf32>
    %85 = arith.mulf %3, %84 : vector<8x128xf32>
    %86 = arith.addf %82, %85 : vector<8x128xf32>
    %c4_47 = arith.constant 4 : index
    %c2_48 = arith.constant 2 : index
    %87 = memref.load %arg2[%c4_47, %c2_48] : memref<8x4xf32, #tpu.memory_space<smem>>
    %88 = vector.broadcast %87 : f32 to vector<8x128xf32>
    %89 = arith.mulf %5, %88 : vector<8x128xf32>
    %90 = arith.addf %86, %89 : vector<8x128xf32>
    %c4_49 = arith.constant 4 : index
    %c3_50 = arith.constant 3 : index
    %91 = memref.load %arg2[%c4_49, %c3_50] : memref<8x4xf32, #tpu.memory_space<smem>>
    %92 = vector.broadcast %91 : f32 to vector<8x128xf32>
    %93 = arith.mulf %7, %92 : vector<8x128xf32>
    %94 = arith.addf %90, %93 : vector<8x128xf32>
    %c4_51 = arith.constant 4 : index
    %95 = memref.load %arg3[%c4_51] : memref<8xf32, #tpu.memory_space<smem>>
    %96 = vector.broadcast %95 : f32 to vector<8x128xf32>
    %97 = arith.addf %94, %96 : vector<8x128xf32>
    %c5 = arith.constant 5 : index
    %c0_52 = arith.constant 0 : index
    %98 = memref.load %arg2[%c5, %c0_52] : memref<8x4xf32, #tpu.memory_space<smem>>
    %99 = vector.broadcast %98 : f32 to vector<8x128xf32>
    %100 = arith.mulf %1, %99 : vector<8x128xf32>
    %c5_53 = arith.constant 5 : index
    %c1_54 = arith.constant 1 : index
    %101 = memref.load %arg2[%c5_53, %c1_54] : memref<8x4xf32, #tpu.memory_space<smem>>
    %102 = vector.broadcast %101 : f32 to vector<8x128xf32>
    %103 = arith.mulf %3, %102 : vector<8x128xf32>
    %104 = arith.addf %100, %103 : vector<8x128xf32>
    %c5_55 = arith.constant 5 : index
    %c2_56 = arith.constant 2 : index
    %105 = memref.load %arg2[%c5_55, %c2_56] : memref<8x4xf32, #tpu.memory_space<smem>>
    %106 = vector.broadcast %105 : f32 to vector<8x128xf32>
    %107 = arith.mulf %5, %106 : vector<8x128xf32>
    %108 = arith.addf %104, %107 : vector<8x128xf32>
    %c5_57 = arith.constant 5 : index
    %c3_58 = arith.constant 3 : index
    %109 = memref.load %arg2[%c5_57, %c3_58] : memref<8x4xf32, #tpu.memory_space<smem>>
    %110 = vector.broadcast %109 : f32 to vector<8x128xf32>
    %111 = arith.mulf %7, %110 : vector<8x128xf32>
    %112 = arith.addf %108, %111 : vector<8x128xf32>
    %c5_59 = arith.constant 5 : index
    %113 = memref.load %arg3[%c5_59] : memref<8xf32, #tpu.memory_space<smem>>
    %114 = vector.broadcast %113 : f32 to vector<8x128xf32>
    %115 = arith.addf %112, %114 : vector<8x128xf32>
    %c6 = arith.constant 6 : index
    %c0_60 = arith.constant 0 : index
    %116 = memref.load %arg2[%c6, %c0_60] : memref<8x4xf32, #tpu.memory_space<smem>>
    %117 = vector.broadcast %116 : f32 to vector<8x128xf32>
    %118 = arith.mulf %1, %117 : vector<8x128xf32>
    %c6_61 = arith.constant 6 : index
    %c1_62 = arith.constant 1 : index
    %119 = memref.load %arg2[%c6_61, %c1_62] : memref<8x4xf32, #tpu.memory_space<smem>>
    %120 = vector.broadcast %119 : f32 to vector<8x128xf32>
    %121 = arith.mulf %3, %120 : vector<8x128xf32>
    %122 = arith.addf %118, %121 : vector<8x128xf32>
    %c6_63 = arith.constant 6 : index
    %c2_64 = arith.constant 2 : index
    %123 = memref.load %arg2[%c6_63, %c2_64] : memref<8x4xf32, #tpu.memory_space<smem>>
    %124 = vector.broadcast %123 : f32 to vector<8x128xf32>
    %125 = arith.mulf %5, %124 : vector<8x128xf32>
    %126 = arith.addf %122, %125 : vector<8x128xf32>
    %c6_65 = arith.constant 6 : index
    %c3_66 = arith.constant 3 : index
    %127 = memref.load %arg2[%c6_65, %c3_66] : memref<8x4xf32, #tpu.memory_space<smem>>
    %128 = vector.broadcast %127 : f32 to vector<8x128xf32>
    %129 = arith.mulf %7, %128 : vector<8x128xf32>
    %130 = arith.addf %126, %129 : vector<8x128xf32>
    %c6_67 = arith.constant 6 : index
    %131 = memref.load %arg3[%c6_67] : memref<8xf32, #tpu.memory_space<smem>>
    %132 = vector.broadcast %131 : f32 to vector<8x128xf32>
    %133 = arith.addf %130, %132 : vector<8x128xf32>
    %c7 = arith.constant 7 : index
    %c0_68 = arith.constant 0 : index
    %134 = memref.load %arg2[%c7, %c0_68] : memref<8x4xf32, #tpu.memory_space<smem>>
    %135 = vector.broadcast %134 : f32 to vector<8x128xf32>
    %136 = arith.mulf %1, %135 : vector<8x128xf32>
    %c7_69 = arith.constant 7 : index
    %c1_70 = arith.constant 1 : index
    %137 = memref.load %arg2[%c7_69, %c1_70] : memref<8x4xf32, #tpu.memory_space<smem>>
    %138 = vector.broadcast %137 : f32 to vector<8x128xf32>
    %139 = arith.mulf %3, %138 : vector<8x128xf32>
    %140 = arith.addf %136, %139 : vector<8x128xf32>
    %c7_71 = arith.constant 7 : index
    %c2_72 = arith.constant 2 : index
    %141 = memref.load %arg2[%c7_71, %c2_72] : memref<8x4xf32, #tpu.memory_space<smem>>
    %142 = vector.broadcast %141 : f32 to vector<8x128xf32>
    %143 = arith.mulf %5, %142 : vector<8x128xf32>
    %144 = arith.addf %140, %143 : vector<8x128xf32>
    %c7_73 = arith.constant 7 : index
    %c3_74 = arith.constant 3 : index
    %145 = memref.load %arg2[%c7_73, %c3_74] : memref<8x4xf32, #tpu.memory_space<smem>>
    %146 = vector.broadcast %145 : f32 to vector<8x128xf32>
    %147 = arith.mulf %7, %146 : vector<8x128xf32>
    %148 = arith.addf %144, %147 : vector<8x128xf32>
    %c7_75 = arith.constant 7 : index
    %149 = memref.load %arg3[%c7_75] : memref<8xf32, #tpu.memory_space<smem>>
    %150 = vector.broadcast %149 : f32 to vector<8x128xf32>
    %151 = arith.addf %148, %150 : vector<8x128xf32>
    %152 = vector.shape_cast %25 : vector<8x128xf32> to vector<8x1x128xf32>
    %153 = vector.shape_cast %61 : vector<8x128xf32> to vector<1x8x128xf32>
    %154 = vector.broadcast %152 : vector<8x1x128xf32> to vector<8x8x128xf32>
    %155 = vector.broadcast %153 : vector<1x8x128xf32> to vector<8x8x128xf32>
    %156 = arith.mulf %154, %155 : vector<8x8x128xf32>
    %157 = vector.shape_cast %25 : vector<8x128xf32> to vector<8x1x128xf32>
    %c0_76 = arith.constant 0 : index
    %c0_77 = arith.constant 0 : index
    %c0_78 = arith.constant 0 : index
    %c0_79 = arith.constant 0 : index
    %158 = vector.load %arg4[%c0_76, %c0_77, %c0_78, %c0_79] : memref<2x8x8x128xf32, #tpu.memory_space<vmem>>, vector<1x8x8x128xf32>
    %159 = vector.shape_cast %158 : vector<1x8x8x128xf32> to vector<8x8x128xf32>
    %160 = vector.broadcast %157 : vector<8x1x128xf32> to vector<8x8x128xf32>
    %161 = arith.mulf %160, %159 : vector<8x8x128xf32>
    %162 = vector.shape_cast %61 : vector<8x128xf32> to vector<1x8x128xf32>
    %c0_80 = arith.constant 0 : index
    %c0_81 = arith.constant 0 : index
    %c0_82 = arith.constant 0 : index
    %c0_83 = arith.constant 0 : index
    %163 = vector.load %arg5[%c0_80, %c0_81, %c0_82, %c0_83] : memref<2x8x8x128xf32, #tpu.memory_space<vmem>>, vector<1x8x8x128xf32>
    %164 = vector.shape_cast %163 : vector<1x8x8x128xf32> to vector<8x8x128xf32>
    %165 = vector.broadcast %162 : vector<1x8x128xf32> to vector<8x8x128xf32>
    %166 = arith.mulf %165, %164 : vector<8x8x128xf32>
    %167 = vector.shape_cast %43 : vector<8x128xf32> to vector<8x1x128xf32>
    %168 = vector.shape_cast %79 : vector<8x128xf32> to vector<1x8x128xf32>
    %169 = vector.broadcast %167 : vector<8x1x128xf32> to vector<8x8x128xf32>
    %170 = vector.broadcast %168 : vector<1x8x128xf32> to vector<8x8x128xf32>
    %171 = arith.mulf %169, %170 : vector<8x8x128xf32>
    %172 = arith.addf %156, %171 : vector<8x8x128xf32>
    %173 = vector.shape_cast %43 : vector<8x128xf32> to vector<8x1x128xf32>
    %c1_84 = arith.constant 1 : index
    %c0_85 = arith.constant 0 : index
    %c0_86 = arith.constant 0 : index
    %c0_87 = arith.constant 0 : index
    %174 = vector.load %arg4[%c1_84, %c0_85, %c0_86, %c0_87] : memref<2x8x8x128xf32, #tpu.memory_space<vmem>>, vector<1x8x8x128xf32>
    %175 = vector.shape_cast %174 : vector<1x8x8x128xf32> to vector<8x8x128xf32>
    %176 = vector.broadcast %173 : vector<8x1x128xf32> to vector<8x8x128xf32>
    %177 = arith.mulf %176, %175 : vector<8x8x128xf32>
    %178 = arith.addf %161, %177 : vector<8x8x128xf32>
    %179 = vector.shape_cast %79 : vector<8x128xf32> to vector<1x8x128xf32>
    %c1_88 = arith.constant 1 : index
    %c0_89 = arith.constant 0 : index
    %c0_90 = arith.constant 0 : index
    %c0_91 = arith.constant 0 : index
    %180 = vector.load %arg5[%c1_88, %c0_89, %c0_90, %c0_91] : memref<2x8x8x128xf32, #tpu.memory_space<vmem>>, vector<1x8x8x128xf32>
    %181 = vector.shape_cast %180 : vector<1x8x8x128xf32> to vector<8x8x128xf32>
    %182 = vector.broadcast %179 : vector<1x8x128xf32> to vector<8x8x128xf32>
    %183 = arith.mulf %182, %181 : vector<8x8x128xf32>
    %184 = arith.addf %166, %183 : vector<8x8x128xf32>
    %c0_92 = arith.constant 0 : index
    %c0_93 = arith.constant 0 : index
    %185 = memref.load %arg7[%c0_92, %c0_93] : memref<4x1xf32, #tpu.memory_space<smem>>
    %186 = vector.broadcast %185 : f32 to vector<8x8x128xf32>
    %187 = arith.mulf %186, %172 : vector<8x8x128xf32>
    %c1_94 = arith.constant 1 : index
    %c0_95 = arith.constant 0 : index
    %188 = memref.load %arg7[%c1_94, %c0_95] : memref<4x1xf32, #tpu.memory_space<smem>>
    %189 = vector.broadcast %188 : f32 to vector<8x8x128xf32>
    %190 = arith.mulf %189, %178 : vector<8x8x128xf32>
    %191 = arith.addf %187, %190 : vector<8x8x128xf32>
    %c2_96 = arith.constant 2 : index
    %c0_97 = arith.constant 0 : index
    %192 = memref.load %arg7[%c2_96, %c0_97] : memref<4x1xf32, #tpu.memory_space<smem>>
    %193 = vector.broadcast %192 : f32 to vector<8x8x128xf32>
    %194 = arith.mulf %193, %184 : vector<8x8x128xf32>
    %195 = arith.addf %191, %194 : vector<8x8x128xf32>
    %c3_98 = arith.constant 3 : index
    %c0_99 = arith.constant 0 : index
    %196 = memref.load %arg7[%c3_98, %c0_99] : memref<4x1xf32, #tpu.memory_space<smem>>
    %197 = vector.broadcast %196 : f32 to vector<8x8x128xf32>
    %198 = arith.addf %195, %197 : vector<8x8x128xf32>
    %cst = arith.constant dense<0xFF800000> : vector<8x128xf32>
    %199 = vector.multi_reduction <maximumf>, %198, %cst [1] : vector<8x8x128xf32> to vector<8x128xf32>
    %200 = vector.shape_cast %199 : vector<8x128xf32> to vector<8x1x128xf32>
    %201 = vector.broadcast %200 : vector<8x1x128xf32> to vector<8x8x128xf32>
    %202 = arith.subf %198, %201 : vector<8x8x128xf32>
    %203 = math.exp %202 : vector<8x8x128xf32>
    %cst_100 = arith.constant dense<0.000000e+00> : vector<8x128xf32>
    %204 = vector.multi_reduction <add>, %203, %cst_100 [1] : vector<8x8x128xf32> to vector<8x128xf32>
    %205 = vector.shape_cast %204 : vector<8x128xf32> to vector<8x1x128xf32>
    %206 = tpu.reciprocal %205 {approx = true} : vector<8x1x128xf32> -> vector<8x1x128xf32>
    %207 = vector.broadcast %206 : vector<8x1x128xf32> to vector<8x8x128xf32>
    %208 = arith.mulf %203, %207 : vector<8x8x128xf32>
    %209 = vector.shape_cast %97 : vector<8x128xf32> to vector<1x8x128xf32>
    %210 = vector.broadcast %209 : vector<1x8x128xf32> to vector<8x8x128xf32>
    %211 = arith.mulf %208, %210 : vector<8x8x128xf32>
    %cst_101 = arith.constant dense<0.000000e+00> : vector<8x128xf32>
    %212 = vector.multi_reduction <add>, %211, %cst_101 [1] : vector<8x8x128xf32> to vector<8x128xf32>
    %c0_102 = arith.constant 0 : index
    %c0_103 = arith.constant 0 : index
    %c0_104 = arith.constant 0 : index
    %c0_105 = arith.constant 0 : index
    %213 = vector.load %arg6[%c0_102, %c0_103, %c0_104, %c0_105] : memref<4x8x8x128xf32, #tpu.memory_space<vmem>>, vector<1x8x8x128xf32>
    %214 = vector.shape_cast %213 : vector<1x8x8x128xf32> to vector<8x8x128xf32>
    %215 = arith.mulf %208, %214 : vector<8x8x128xf32>
    %cst_106 = arith.constant dense<0.000000e+00> : vector<8x128xf32>
    %216 = vector.multi_reduction <add>, %215, %cst_106 [1] : vector<8x8x128xf32> to vector<8x128xf32>
    %c0_107 = arith.constant 0 : index
    %c0_108 = arith.constant 0 : index
    %217 = memref.load %arg8[%c0_107, %c0_108] : memref<3x4xf32, #tpu.memory_space<smem>>
    %218 = vector.broadcast %217 : f32 to vector<8x128xf32>
    %219 = arith.mulf %218, %212 : vector<8x128xf32>
    %c1_109 = arith.constant 1 : index
    %c0_110 = arith.constant 0 : index
    %220 = memref.load %arg8[%c1_109, %c0_110] : memref<3x4xf32, #tpu.memory_space<smem>>
    %221 = vector.broadcast %220 : f32 to vector<8x128xf32>
    %222 = arith.mulf %221, %216 : vector<8x128xf32>
    %223 = arith.addf %219, %222 : vector<8x128xf32>
    %c2_111 = arith.constant 2 : index
    %c0_112 = arith.constant 0 : index
    %224 = memref.load %arg8[%c2_111, %c0_112] : memref<3x4xf32, #tpu.memory_space<smem>>
    %225 = vector.broadcast %224 : f32 to vector<8x128xf32>
    %226 = arith.addf %223, %225 : vector<8x128xf32>
    %227 = vector.shape_cast %115 : vector<8x128xf32> to vector<1x8x128xf32>
    %228 = vector.broadcast %227 : vector<1x8x128xf32> to vector<8x8x128xf32>
    %229 = arith.mulf %208, %228 : vector<8x8x128xf32>
    %cst_113 = arith.constant dense<0.000000e+00> : vector<8x128xf32>
    %230 = vector.multi_reduction <add>, %229, %cst_113 [1] : vector<8x8x128xf32> to vector<8x128xf32>
    %c1_114 = arith.constant 1 : index
    %c0_115 = arith.constant 0 : index
    %c0_116 = arith.constant 0 : index
    %c0_117 = arith.constant 0 : index
    %231 = vector.load %arg6[%c1_114, %c0_115, %c0_116, %c0_117] : memref<4x8x8x128xf32, #tpu.memory_space<vmem>>, vector<1x8x8x128xf32>
    %232 = vector.shape_cast %231 : vector<1x8x8x128xf32> to vector<8x8x128xf32>
    %233 = arith.mulf %208, %232 : vector<8x8x128xf32>
    %cst_118 = arith.constant dense<0.000000e+00> : vector<8x128xf32>
    %234 = vector.multi_reduction <add>, %233, %cst_118 [1] : vector<8x8x128xf32> to vector<8x128xf32>
    %c0_119 = arith.constant 0 : index
    %c1_120 = arith.constant 1 : index
    %235 = memref.load %arg8[%c0_119, %c1_120] : memref<3x4xf32, #tpu.memory_space<smem>>
    %236 = vector.broadcast %235 : f32 to vector<8x128xf32>
    %237 = arith.mulf %236, %230 : vector<8x128xf32>
    %c1_121 = arith.constant 1 : index
    %c1_122 = arith.constant 1 : index
    %238 = memref.load %arg8[%c1_121, %c1_122] : memref<3x4xf32, #tpu.memory_space<smem>>
    %239 = vector.broadcast %238 : f32 to vector<8x128xf32>
    %240 = arith.mulf %239, %234 : vector<8x128xf32>
    %241 = arith.addf %237, %240 : vector<8x128xf32>
    %c2_123 = arith.constant 2 : index
    %c1_124 = arith.constant 1 : index
    %242 = memref.load %arg8[%c2_123, %c1_124] : memref<3x4xf32, #tpu.memory_space<smem>>
    %243 = vector.broadcast %242 : f32 to vector<8x128xf32>
    %244 = arith.addf %241, %243 : vector<8x128xf32>
    %245 = vector.shape_cast %133 : vector<8x128xf32> to vector<1x8x128xf32>
    %246 = vector.broadcast %245 : vector<1x8x128xf32> to vector<8x8x128xf32>
    %247 = arith.mulf %208, %246 : vector<8x8x128xf32>
    %cst_125 = arith.constant dense<0.000000e+00> : vector<8x128xf32>
    %248 = vector.multi_reduction <add>, %247, %cst_125 [1] : vector<8x8x128xf32> to vector<8x128xf32>
    %c2_126 = arith.constant 2 : index
    %c0_127 = arith.constant 0 : index
    %c0_128 = arith.constant 0 : index
    %c0_129 = arith.constant 0 : index
    %249 = vector.load %arg6[%c2_126, %c0_127, %c0_128, %c0_129] : memref<4x8x8x128xf32, #tpu.memory_space<vmem>>, vector<1x8x8x128xf32>
    %250 = vector.shape_cast %249 : vector<1x8x8x128xf32> to vector<8x8x128xf32>
    %251 = arith.mulf %208, %250 : vector<8x8x128xf32>
    %cst_130 = arith.constant dense<0.000000e+00> : vector<8x128xf32>
    %252 = vector.multi_reduction <add>, %251, %cst_130 [1] : vector<8x8x128xf32> to vector<8x128xf32>
    %c0_131 = arith.constant 0 : index
    %c2_132 = arith.constant 2 : index
    %253 = memref.load %arg8[%c0_131, %c2_132] : memref<3x4xf32, #tpu.memory_space<smem>>
    %254 = vector.broadcast %253 : f32 to vector<8x128xf32>
    %255 = arith.mulf %254, %248 : vector<8x128xf32>
    %c1_133 = arith.constant 1 : index
    %c2_134 = arith.constant 2 : index
    %256 = memref.load %arg8[%c1_133, %c2_134] : memref<3x4xf32, #tpu.memory_space<smem>>
    %257 = vector.broadcast %256 : f32 to vector<8x128xf32>
    %258 = arith.mulf %257, %252 : vector<8x128xf32>
    %259 = arith.addf %255, %258 : vector<8x128xf32>
    %c2_135 = arith.constant 2 : index
    %c2_136 = arith.constant 2 : index
    %260 = memref.load %arg8[%c2_135, %c2_136] : memref<3x4xf32, #tpu.memory_space<smem>>
    %261 = vector.broadcast %260 : f32 to vector<8x128xf32>
    %262 = arith.addf %259, %261 : vector<8x128xf32>
    %263 = vector.shape_cast %151 : vector<8x128xf32> to vector<1x8x128xf32>
    %264 = vector.broadcast %263 : vector<1x8x128xf32> to vector<8x8x128xf32>
    %265 = arith.mulf %208, %264 : vector<8x8x128xf32>
    %cst_137 = arith.constant dense<0.000000e+00> : vector<8x128xf32>
    %266 = vector.multi_reduction <add>, %265, %cst_137 [1] : vector<8x8x128xf32> to vector<8x128xf32>
    %c3_138 = arith.constant 3 : index
    %c0_139 = arith.constant 0 : index
    %c0_140 = arith.constant 0 : index
    %c0_141 = arith.constant 0 : index
    %267 = vector.load %arg6[%c3_138, %c0_139, %c0_140, %c0_141] : memref<4x8x8x128xf32, #tpu.memory_space<vmem>>, vector<1x8x8x128xf32>
    %268 = vector.shape_cast %267 : vector<1x8x8x128xf32> to vector<8x8x128xf32>
    %269 = arith.mulf %208, %268 : vector<8x8x128xf32>
    %cst_142 = arith.constant dense<0.000000e+00> : vector<8x128xf32>
    %270 = vector.multi_reduction <add>, %269, %cst_142 [1] : vector<8x8x128xf32> to vector<8x128xf32>
    %c0_143 = arith.constant 0 : index
    %c3_144 = arith.constant 3 : index
    %271 = memref.load %arg8[%c0_143, %c3_144] : memref<3x4xf32, #tpu.memory_space<smem>>
    %272 = vector.broadcast %271 : f32 to vector<8x128xf32>
    %273 = arith.mulf %272, %266 : vector<8x128xf32>
    %c1_145 = arith.constant 1 : index
    %c3_146 = arith.constant 3 : index
    %274 = memref.load %arg8[%c1_145, %c3_146] : memref<3x4xf32, #tpu.memory_space<smem>>
    %275 = vector.broadcast %274 : f32 to vector<8x128xf32>
    %276 = arith.mulf %275, %270 : vector<8x128xf32>
    %277 = arith.addf %273, %276 : vector<8x128xf32>
    %c2_147 = arith.constant 2 : index
    %c3_148 = arith.constant 3 : index
    %278 = memref.load %arg8[%c2_147, %c3_148] : memref<3x4xf32, #tpu.memory_space<smem>>
    %279 = vector.broadcast %278 : f32 to vector<8x128xf32>
    %280 = arith.addf %277, %279 : vector<8x128xf32>
    %c0_149 = arith.constant 0 : index
    %c0_150 = arith.constant 0 : index
    %c0_151 = arith.constant 0 : index
    %281 = vector.load %arg9[%c0_149, %c0_150, %c0_151] : memref<4x8x128xf32, #tpu.memory_space<vmem>>, vector<1x8x128xf32>
    %282 = vector.shape_cast %281 : vector<1x8x128xf32> to vector<8x128xf32>
    %283 = vector.shape_cast %226 : vector<8x128xf32> to vector<1x8x128xf32>
    tpu.vector_store %arg9[%c0_149, %c0_150, %c0_151], %283 {strides = array<i32>} : memref<4x8x128xf32, #tpu.memory_space<vmem>>, vector<1x8x128xf32>,
    %c1_152 = arith.constant 1 : index
    %c0_153 = arith.constant 0 : index
    %c0_154 = arith.constant 0 : index
    %284 = vector.load %arg9[%c1_152, %c0_153, %c0_154] : memref<4x8x128xf32, #tpu.memory_space<vmem>>, vector<1x8x128xf32>
    %285 = vector.shape_cast %284 : vector<1x8x128xf32> to vector<8x128xf32>
    %286 = vector.shape_cast %244 : vector<8x128xf32> to vector<1x8x128xf32>
    tpu.vector_store %arg9[%c1_152, %c0_153, %c0_154], %286 {strides = array<i32>} : memref<4x8x128xf32, #tpu.memory_space<vmem>>, vector<1x8x128xf32>,
    %c2_155 = arith.constant 2 : index
    %c0_156 = arith.constant 0 : index
    %c0_157 = arith.constant 0 : index
    %287 = vector.load %arg9[%c2_155, %c0_156, %c0_157] : memref<4x8x128xf32, #tpu.memory_space<vmem>>, vector<1x8x128xf32>
    %288 = vector.shape_cast %287 : vector<1x8x128xf32> to vector<8x128xf32>
    %289 = vector.shape_cast %262 : vector<8x128xf32> to vector<1x8x128xf32>
    tpu.vector_store %arg9[%c2_155, %c0_156, %c0_157], %289 {strides = array<i32>} : memref<4x8x128xf32, #tpu.memory_space<vmem>>, vector<1x8x128xf32>,
    %c3_158 = arith.constant 3 : index
    %c0_159 = arith.constant 0 : index
    %c0_160 = arith.constant 0 : index
    %290 = vector.load %arg9[%c3_158, %c0_159, %c0_160] : memref<4x8x128xf32, #tpu.memory_space<vmem>>, vector<1x8x128xf32>
    %291 = vector.shape_cast %290 : vector<1x8x128xf32> to vector<8x128xf32>
    %292 = vector.shape_cast %280 : vector<8x128xf32> to vector<1x8x128xf32>
    tpu.vector_store %arg9[%c3_158, %c0_159, %c0_160], %292 {strides = array<i32>} : memref<4x8x128xf32, #tpu.memory_space<vmem>>, vector<1x8x128xf32>,
    return
  }
  func.func @transform_0(%arg0: i32) -> (i32, i32, i32) {
    %c0_i32 = arith.constant 0 : i32
    %c0_i32_0 = arith.constant 0 : i32
    %c0_i32_1 = arith.constant 0 : i32
    return %c0_i32, %c0_i32_0, %arg0 : i32, i32, i32
  }
  func.func @transform_1(%arg0: i32) -> (i32, i32) {
    %c0_i32 = arith.constant 0 : i32
    %c0_i32_0 = arith.constant 0 : i32
    %c0_i32_1 = arith.constant 0 : i32
    return %c0_i32, %c0_i32_0 : i32, i32
  }
  func.func @transform_2(%arg0: i32) -> i32 {
    %c0_i32 = arith.constant 0 : i32
    %c0_i32_0 = arith.constant 0 : i32
    return %c0_i32 : i32
  }
  func.func @transform_3(%arg0: i32) -> (i32, i32, i32, i32) {
    %c0_i32 = arith.constant 0 : i32
    %c0_i32_0 = arith.constant 0 : i32
    %c0_i32_1 = arith.constant 0 : i32
    %c0_i32_2 = arith.constant 0 : i32
    %c0_i32_3 = arith.constant 0 : i32
    return %c0_i32, %c0_i32_0, %c0_i32_1, %c0_i32_2 : i32, i32, i32, i32
  }
  func.func @transform_4(%arg0: i32) -> (i32, i32, i32, i32) {
    %c0_i32 = arith.constant 0 : i32
    %c0_i32_0 = arith.constant 0 : i32
    %c0_i32_1 = arith.constant 0 : i32
    %c0_i32_2 = arith.constant 0 : i32
    %c0_i32_3 = arith.constant 0 : i32
    return %c0_i32, %c0_i32_0, %c0_i32_1, %c0_i32_2 : i32, i32, i32, i32
  }
  func.func @transform_5(%arg0: i32) -> (i32, i32, i32, i32) {
    %c0_i32 = arith.constant 0 : i32
    %c0_i32_0 = arith.constant 0 : i32
    %c0_i32_1 = arith.constant 0 : i32
    %c0_i32_2 = arith.constant 0 : i32
    %c0_i32_3 = arith.constant 0 : i32
    return %c0_i32, %c0_i32_0, %c0_i32_1, %c0_i32_2 : i32, i32, i32, i32
  }
  func.func @transform_6(%arg0: i32) -> (i32, i32) {
    %c0_i32 = arith.constant 0 : i32
    %c0_i32_0 = arith.constant 0 : i32
    %c0_i32_1 = arith.constant 0 : i32
    return %c0_i32, %c0_i32_0 : i32, i32
  }
  func.func @transform_7(%arg0: i32) -> (i32, i32) {
    %c0_i32 = arith.constant 0 : i32
    %c0_i32_0 = arith.constant 0 : i32
    %c0_i32_1 = arith.constant 0 : i32
    return %c0_i32, %c0_i32_0 : i32, i32
  }
  func.func @transform_8(%arg0: i32) -> (i32, i32, i32) {
    %c0_i32 = arith.constant 0 : i32
    %c0_i32_0 = arith.constant 0 : i32
    %c0_i32_1 = arith.constant 0 : i32
    return %c0_i32, %c0_i32_0, %arg0 : i32, i32, i32
  }
}

module attributes {stable_mosaic.version = 11 : i64} {
  func.func @_stage3_kernel(%arg0: i32, %arg1: memref<4x8x128xf32, #tpu.memory_space<vmem>>, %arg2: memref<8x4xf32, #tpu.memory_space<smem>>, %arg3: memref<8xf32, #tpu.memory_space<smem>>, %arg4: memref<2x8x8x128xf32, #tpu.memory_space<vmem>>, %arg5: memref<2x8x8x128xf32, #tpu.memory_space<vmem>>, %arg6: memref<4x8x8x128xf32, #tpu.memory_space<vmem>>, %arg7: memref<4x1xf32, #tpu.memory_space<smem>>, %arg8: memref<3x4xf32, #tpu.memory_space<smem>>, %arg9: memref<8x4xf32, #tpu.memory_space<smem>>, %arg10: memref<8xf32, #tpu.memory_space<smem>>, %arg11: memref<8x8x128xf32, #tpu.memory_space<vmem>>, %arg12: memref<8x8x128xf32, #tpu.memory_space<vmem>>) attributes {dimension_semantics = [#tpu.dimension_semantics<parallel>], iteration_bounds = array<i64: 1>, scalar_prefetch = 0 : i64, scratch_operands = 0 : i64, tpu.core_type = #tpu.core_type<tc>, window_params = [{transform_indices = @transform_0, window_bounds = array<i64: 4, 8, 128>}, {transform_indices = @transform_1, window_bounds = array<i64: 8, 4>}, {transform_indices = @transform_2, window_bounds = array<i64: 8>}, {pipeline_mode = #tpu.pipeline_mode<synchronous>, transform_indices = @transform_3, window_bounds = array<i64: 2, 8, 8, 128>}, {pipeline_mode = #tpu.pipeline_mode<synchronous>, transform_indices = @transform_4, window_bounds = array<i64: 2, 8, 8, 128>}, {pipeline_mode = #tpu.pipeline_mode<synchronous>, transform_indices = @transform_5, window_bounds = array<i64: 4, 8, 8, 128>}, {transform_indices = @transform_6, window_bounds = array<i64: 4, 1>}, {transform_indices = @transform_7, window_bounds = array<i64: 3, 4>}, {transform_indices = @transform_8, window_bounds = array<i64: 8, 4>}, {transform_indices = @transform_9, window_bounds = array<i64: 8>}, {transform_indices = @transform_10, window_bounds = array<i64: 8, 8, 128>}, {transform_indices = @transform_11, window_bounds = array<i64: 8, 8, 128>}]} {
    %c0 = arith.constant 0 : index
    %c0_0 = arith.constant 0 : index
    %c0_1 = arith.constant 0 : index
    %0 = vector.load %arg1[%c0, %c0_0, %c0_1] : memref<4x8x128xf32, #tpu.memory_space<vmem>>, vector<1x8x128xf32>
    %1 = vector.shape_cast %0 : vector<1x8x128xf32> to vector<8x128xf32>
    %c1 = arith.constant 1 : index
    %c0_2 = arith.constant 0 : index
    %c0_3 = arith.constant 0 : index
    %2 = vector.load %arg1[%c1, %c0_2, %c0_3] : memref<4x8x128xf32, #tpu.memory_space<vmem>>, vector<1x8x128xf32>
    %3 = vector.shape_cast %2 : vector<1x8x128xf32> to vector<8x128xf32>
    %c2 = arith.constant 2 : index
    %c0_4 = arith.constant 0 : index
    %c0_5 = arith.constant 0 : index
    %4 = vector.load %arg1[%c2, %c0_4, %c0_5] : memref<4x8x128xf32, #tpu.memory_space<vmem>>, vector<1x8x128xf32>
    %5 = vector.shape_cast %4 : vector<1x8x128xf32> to vector<8x128xf32>
    %c3 = arith.constant 3 : index
    %c0_6 = arith.constant 0 : index
    %c0_7 = arith.constant 0 : index
    %6 = vector.load %arg1[%c3, %c0_6, %c0_7] : memref<4x8x128xf32, #tpu.memory_space<vmem>>, vector<1x8x128xf32>
    %7 = vector.shape_cast %6 : vector<1x8x128xf32> to vector<8x128xf32>
    %c0_8 = arith.constant 0 : index
    %c0_9 = arith.constant 0 : index
    %8 = memref.load %arg2[%c0_8, %c0_9] : memref<8x4xf32, #tpu.memory_space<smem>>
    %9 = vector.broadcast %8 : f32 to vector<8x128xf32>
    %10 = arith.mulf %1, %9 : vector<8x128xf32>
    %c0_10 = arith.constant 0 : index
    %c1_11 = arith.constant 1 : index
    %11 = memref.load %arg2[%c0_10, %c1_11] : memref<8x4xf32, #tpu.memory_space<smem>>
    %12 = vector.broadcast %11 : f32 to vector<8x128xf32>
    %13 = arith.mulf %3, %12 : vector<8x128xf32>
    %14 = arith.addf %10, %13 : vector<8x128xf32>
    %c0_12 = arith.constant 0 : index
    %c2_13 = arith.constant 2 : index
    %15 = memref.load %arg2[%c0_12, %c2_13] : memref<8x4xf32, #tpu.memory_space<smem>>
    %16 = vector.broadcast %15 : f32 to vector<8x128xf32>
    %17 = arith.mulf %5, %16 : vector<8x128xf32>
    %18 = arith.addf %14, %17 : vector<8x128xf32>
    %c0_14 = arith.constant 0 : index
    %c3_15 = arith.constant 3 : index
    %19 = memref.load %arg2[%c0_14, %c3_15] : memref<8x4xf32, #tpu.memory_space<smem>>
    %20 = vector.broadcast %19 : f32 to vector<8x128xf32>
    %21 = arith.mulf %7, %20 : vector<8x128xf32>
    %22 = arith.addf %18, %21 : vector<8x128xf32>
    %c0_16 = arith.constant 0 : index
    %23 = memref.load %arg3[%c0_16] : memref<8xf32, #tpu.memory_space<smem>>
    %24 = vector.broadcast %23 : f32 to vector<8x128xf32>
    %25 = arith.addf %22, %24 : vector<8x128xf32>
    %c1_17 = arith.constant 1 : index
    %c0_18 = arith.constant 0 : index
    %26 = memref.load %arg2[%c1_17, %c0_18] : memref<8x4xf32, #tpu.memory_space<smem>>
    %27 = vector.broadcast %26 : f32 to vector<8x128xf32>
    %28 = arith.mulf %1, %27 : vector<8x128xf32>
    %c1_19 = arith.constant 1 : index
    %c1_20 = arith.constant 1 : index
    %29 = memref.load %arg2[%c1_19, %c1_20] : memref<8x4xf32, #tpu.memory_space<smem>>
    %30 = vector.broadcast %29 : f32 to vector<8x128xf32>
    %31 = arith.mulf %3, %30 : vector<8x128xf32>
    %32 = arith.addf %28, %31 : vector<8x128xf32>
    %c1_21 = arith.constant 1 : index
    %c2_22 = arith.constant 2 : index
    %33 = memref.load %arg2[%c1_21, %c2_22] : memref<8x4xf32, #tpu.memory_space<smem>>
    %34 = vector.broadcast %33 : f32 to vector<8x128xf32>
    %35 = arith.mulf %5, %34 : vector<8x128xf32>
    %36 = arith.addf %32, %35 : vector<8x128xf32>
    %c1_23 = arith.constant 1 : index
    %c3_24 = arith.constant 3 : index
    %37 = memref.load %arg2[%c1_23, %c3_24] : memref<8x4xf32, #tpu.memory_space<smem>>
    %38 = vector.broadcast %37 : f32 to vector<8x128xf32>
    %39 = arith.mulf %7, %38 : vector<8x128xf32>
    %40 = arith.addf %36, %39 : vector<8x128xf32>
    %c1_25 = arith.constant 1 : index
    %41 = memref.load %arg3[%c1_25] : memref<8xf32, #tpu.memory_space<smem>>
    %42 = vector.broadcast %41 : f32 to vector<8x128xf32>
    %43 = arith.addf %40, %42 : vector<8x128xf32>
    %c2_26 = arith.constant 2 : index
    %c0_27 = arith.constant 0 : index
    %44 = memref.load %arg2[%c2_26, %c0_27] : memref<8x4xf32, #tpu.memory_space<smem>>
    %45 = vector.broadcast %44 : f32 to vector<8x128xf32>
    %46 = arith.mulf %1, %45 : vector<8x128xf32>
    %c2_28 = arith.constant 2 : index
    %c1_29 = arith.constant 1 : index
    %47 = memref.load %arg2[%c2_28, %c1_29] : memref<8x4xf32, #tpu.memory_space<smem>>
    %48 = vector.broadcast %47 : f32 to vector<8x128xf32>
    %49 = arith.mulf %3, %48 : vector<8x128xf32>
    %50 = arith.addf %46, %49 : vector<8x128xf32>
    %c2_30 = arith.constant 2 : index
    %c2_31 = arith.constant 2 : index
    %51 = memref.load %arg2[%c2_30, %c2_31] : memref<8x4xf32, #tpu.memory_space<smem>>
    %52 = vector.broadcast %51 : f32 to vector<8x128xf32>
    %53 = arith.mulf %5, %52 : vector<8x128xf32>
    %54 = arith.addf %50, %53 : vector<8x128xf32>
    %c2_32 = arith.constant 2 : index
    %c3_33 = arith.constant 3 : index
    %55 = memref.load %arg2[%c2_32, %c3_33] : memref<8x4xf32, #tpu.memory_space<smem>>
    %56 = vector.broadcast %55 : f32 to vector<8x128xf32>
    %57 = arith.mulf %7, %56 : vector<8x128xf32>
    %58 = arith.addf %54, %57 : vector<8x128xf32>
    %c2_34 = arith.constant 2 : index
    %59 = memref.load %arg3[%c2_34] : memref<8xf32, #tpu.memory_space<smem>>
    %60 = vector.broadcast %59 : f32 to vector<8x128xf32>
    %61 = arith.addf %58, %60 : vector<8x128xf32>
    %c3_35 = arith.constant 3 : index
    %c0_36 = arith.constant 0 : index
    %62 = memref.load %arg2[%c3_35, %c0_36] : memref<8x4xf32, #tpu.memory_space<smem>>
    %63 = vector.broadcast %62 : f32 to vector<8x128xf32>
    %64 = arith.mulf %1, %63 : vector<8x128xf32>
    %c3_37 = arith.constant 3 : index
    %c1_38 = arith.constant 1 : index
    %65 = memref.load %arg2[%c3_37, %c1_38] : memref<8x4xf32, #tpu.memory_space<smem>>
    %66 = vector.broadcast %65 : f32 to vector<8x128xf32>
    %67 = arith.mulf %3, %66 : vector<8x128xf32>
    %68 = arith.addf %64, %67 : vector<8x128xf32>
    %c3_39 = arith.constant 3 : index
    %c2_40 = arith.constant 2 : index
    %69 = memref.load %arg2[%c3_39, %c2_40] : memref<8x4xf32, #tpu.memory_space<smem>>
    %70 = vector.broadcast %69 : f32 to vector<8x128xf32>
    %71 = arith.mulf %5, %70 : vector<8x128xf32>
    %72 = arith.addf %68, %71 : vector<8x128xf32>
    %c3_41 = arith.constant 3 : index
    %c3_42 = arith.constant 3 : index
    %73 = memref.load %arg2[%c3_41, %c3_42] : memref<8x4xf32, #tpu.memory_space<smem>>
    %74 = vector.broadcast %73 : f32 to vector<8x128xf32>
    %75 = arith.mulf %7, %74 : vector<8x128xf32>
    %76 = arith.addf %72, %75 : vector<8x128xf32>
    %c3_43 = arith.constant 3 : index
    %77 = memref.load %arg3[%c3_43] : memref<8xf32, #tpu.memory_space<smem>>
    %78 = vector.broadcast %77 : f32 to vector<8x128xf32>
    %79 = arith.addf %76, %78 : vector<8x128xf32>
    %c4 = arith.constant 4 : index
    %c0_44 = arith.constant 0 : index
    %80 = memref.load %arg2[%c4, %c0_44] : memref<8x4xf32, #tpu.memory_space<smem>>
    %81 = vector.broadcast %80 : f32 to vector<8x128xf32>
    %82 = arith.mulf %1, %81 : vector<8x128xf32>
    %c4_45 = arith.constant 4 : index
    %c1_46 = arith.constant 1 : index
    %83 = memref.load %arg2[%c4_45, %c1_46] : memref<8x4xf32, #tpu.memory_space<smem>>
    %84 = vector.broadcast %83 : f32 to vector<8x128xf32>
    %85 = arith.mulf %3, %84 : vector<8x128xf32>
    %86 = arith.addf %82, %85 : vector<8x128xf32>
    %c4_47 = arith.constant 4 : index
    %c2_48 = arith.constant 2 : index
    %87 = memref.load %arg2[%c4_47, %c2_48] : memref<8x4xf32, #tpu.memory_space<smem>>
    %88 = vector.broadcast %87 : f32 to vector<8x128xf32>
    %89 = arith.mulf %5, %88 : vector<8x128xf32>
    %90 = arith.addf %86, %89 : vector<8x128xf32>
    %c4_49 = arith.constant 4 : index
    %c3_50 = arith.constant 3 : index
    %91 = memref.load %arg2[%c4_49, %c3_50] : memref<8x4xf32, #tpu.memory_space<smem>>
    %92 = vector.broadcast %91 : f32 to vector<8x128xf32>
    %93 = arith.mulf %7, %92 : vector<8x128xf32>
    %94 = arith.addf %90, %93 : vector<8x128xf32>
    %c4_51 = arith.constant 4 : index
    %95 = memref.load %arg3[%c4_51] : memref<8xf32, #tpu.memory_space<smem>>
    %96 = vector.broadcast %95 : f32 to vector<8x128xf32>
    %97 = arith.addf %94, %96 : vector<8x128xf32>
    %c5 = arith.constant 5 : index
    %c0_52 = arith.constant 0 : index
    %98 = memref.load %arg2[%c5, %c0_52] : memref<8x4xf32, #tpu.memory_space<smem>>
    %99 = vector.broadcast %98 : f32 to vector<8x128xf32>
    %100 = arith.mulf %1, %99 : vector<8x128xf32>
    %c5_53 = arith.constant 5 : index
    %c1_54 = arith.constant 1 : index
    %101 = memref.load %arg2[%c5_53, %c1_54] : memref<8x4xf32, #tpu.memory_space<smem>>
    %102 = vector.broadcast %101 : f32 to vector<8x128xf32>
    %103 = arith.mulf %3, %102 : vector<8x128xf32>
    %104 = arith.addf %100, %103 : vector<8x128xf32>
    %c5_55 = arith.constant 5 : index
    %c2_56 = arith.constant 2 : index
    %105 = memref.load %arg2[%c5_55, %c2_56] : memref<8x4xf32, #tpu.memory_space<smem>>
    %106 = vector.broadcast %105 : f32 to vector<8x128xf32>
    %107 = arith.mulf %5, %106 : vector<8x128xf32>
    %108 = arith.addf %104, %107 : vector<8x128xf32>
    %c5_57 = arith.constant 5 : index
    %c3_58 = arith.constant 3 : index
    %109 = memref.load %arg2[%c5_57, %c3_58] : memref<8x4xf32, #tpu.memory_space<smem>>
    %110 = vector.broadcast %109 : f32 to vector<8x128xf32>
    %111 = arith.mulf %7, %110 : vector<8x128xf32>
    %112 = arith.addf %108, %111 : vector<8x128xf32>
    %c5_59 = arith.constant 5 : index
    %113 = memref.load %arg3[%c5_59] : memref<8xf32, #tpu.memory_space<smem>>
    %114 = vector.broadcast %113 : f32 to vector<8x128xf32>
    %115 = arith.addf %112, %114 : vector<8x128xf32>
    %c6 = arith.constant 6 : index
    %c0_60 = arith.constant 0 : index
    %116 = memref.load %arg2[%c6, %c0_60] : memref<8x4xf32, #tpu.memory_space<smem>>
    %117 = vector.broadcast %116 : f32 to vector<8x128xf32>
    %118 = arith.mulf %1, %117 : vector<8x128xf32>
    %c6_61 = arith.constant 6 : index
    %c1_62 = arith.constant 1 : index
    %119 = memref.load %arg2[%c6_61, %c1_62] : memref<8x4xf32, #tpu.memory_space<smem>>
    %120 = vector.broadcast %119 : f32 to vector<8x128xf32>
    %121 = arith.mulf %3, %120 : vector<8x128xf32>
    %122 = arith.addf %118, %121 : vector<8x128xf32>
    %c6_63 = arith.constant 6 : index
    %c2_64 = arith.constant 2 : index
    %123 = memref.load %arg2[%c6_63, %c2_64] : memref<8x4xf32, #tpu.memory_space<smem>>
    %124 = vector.broadcast %123 : f32 to vector<8x128xf32>
    %125 = arith.mulf %5, %124 : vector<8x128xf32>
    %126 = arith.addf %122, %125 : vector<8x128xf32>
    %c6_65 = arith.constant 6 : index
    %c3_66 = arith.constant 3 : index
    %127 = memref.load %arg2[%c6_65, %c3_66] : memref<8x4xf32, #tpu.memory_space<smem>>
    %128 = vector.broadcast %127 : f32 to vector<8x128xf32>
    %129 = arith.mulf %7, %128 : vector<8x128xf32>
    %130 = arith.addf %126, %129 : vector<8x128xf32>
    %c6_67 = arith.constant 6 : index
    %131 = memref.load %arg3[%c6_67] : memref<8xf32, #tpu.memory_space<smem>>
    %132 = vector.broadcast %131 : f32 to vector<8x128xf32>
    %133 = arith.addf %130, %132 : vector<8x128xf32>
    %c7 = arith.constant 7 : index
    %c0_68 = arith.constant 0 : index
    %134 = memref.load %arg2[%c7, %c0_68] : memref<8x4xf32, #tpu.memory_space<smem>>
    %135 = vector.broadcast %134 : f32 to vector<8x128xf32>
    %136 = arith.mulf %1, %135 : vector<8x128xf32>
    %c7_69 = arith.constant 7 : index
    %c1_70 = arith.constant 1 : index
    %137 = memref.load %arg2[%c7_69, %c1_70] : memref<8x4xf32, #tpu.memory_space<smem>>
    %138 = vector.broadcast %137 : f32 to vector<8x128xf32>
    %139 = arith.mulf %3, %138 : vector<8x128xf32>
    %140 = arith.addf %136, %139 : vector<8x128xf32>
    %c7_71 = arith.constant 7 : index
    %c2_72 = arith.constant 2 : index
    %141 = memref.load %arg2[%c7_71, %c2_72] : memref<8x4xf32, #tpu.memory_space<smem>>
    %142 = vector.broadcast %141 : f32 to vector<8x128xf32>
    %143 = arith.mulf %5, %142 : vector<8x128xf32>
    %144 = arith.addf %140, %143 : vector<8x128xf32>
    %c7_73 = arith.constant 7 : index
    %c3_74 = arith.constant 3 : index
    %145 = memref.load %arg2[%c7_73, %c3_74] : memref<8x4xf32, #tpu.memory_space<smem>>
    %146 = vector.broadcast %145 : f32 to vector<8x128xf32>
    %147 = arith.mulf %7, %146 : vector<8x128xf32>
    %148 = arith.addf %144, %147 : vector<8x128xf32>
    %c7_75 = arith.constant 7 : index
    %149 = memref.load %arg3[%c7_75] : memref<8xf32, #tpu.memory_space<smem>>
    %150 = vector.broadcast %149 : f32 to vector<8x128xf32>
    %151 = arith.addf %148, %150 : vector<8x128xf32>
    %152 = vector.shape_cast %25 : vector<8x128xf32> to vector<8x1x128xf32>
    %153 = vector.shape_cast %61 : vector<8x128xf32> to vector<1x8x128xf32>
    %154 = vector.broadcast %152 : vector<8x1x128xf32> to vector<8x8x128xf32>
    %155 = vector.broadcast %153 : vector<1x8x128xf32> to vector<8x8x128xf32>
    %156 = arith.mulf %154, %155 : vector<8x8x128xf32>
    %157 = vector.shape_cast %25 : vector<8x128xf32> to vector<8x1x128xf32>
    %c0_76 = arith.constant 0 : index
    %c0_77 = arith.constant 0 : index
    %c0_78 = arith.constant 0 : index
    %c0_79 = arith.constant 0 : index
    %158 = vector.load %arg4[%c0_76, %c0_77, %c0_78, %c0_79] : memref<2x8x8x128xf32, #tpu.memory_space<vmem>>, vector<1x8x8x128xf32>
    %159 = vector.shape_cast %158 : vector<1x8x8x128xf32> to vector<8x8x128xf32>
    %160 = vector.broadcast %157 : vector<8x1x128xf32> to vector<8x8x128xf32>
    %161 = arith.mulf %160, %159 : vector<8x8x128xf32>
    %162 = vector.shape_cast %61 : vector<8x128xf32> to vector<1x8x128xf32>
    %c0_80 = arith.constant 0 : index
    %c0_81 = arith.constant 0 : index
    %c0_82 = arith.constant 0 : index
    %c0_83 = arith.constant 0 : index
    %163 = vector.load %arg5[%c0_80, %c0_81, %c0_82, %c0_83] : memref<2x8x8x128xf32, #tpu.memory_space<vmem>>, vector<1x8x8x128xf32>
    %164 = vector.shape_cast %163 : vector<1x8x8x128xf32> to vector<8x8x128xf32>
    %165 = vector.broadcast %162 : vector<1x8x128xf32> to vector<8x8x128xf32>
    %166 = arith.mulf %165, %164 : vector<8x8x128xf32>
    %167 = vector.shape_cast %43 : vector<8x128xf32> to vector<8x1x128xf32>
    %168 = vector.shape_cast %79 : vector<8x128xf32> to vector<1x8x128xf32>
    %169 = vector.broadcast %167 : vector<8x1x128xf32> to vector<8x8x128xf32>
    %170 = vector.broadcast %168 : vector<1x8x128xf32> to vector<8x8x128xf32>
    %171 = arith.mulf %169, %170 : vector<8x8x128xf32>
    %172 = arith.addf %156, %171 : vector<8x8x128xf32>
    %173 = vector.shape_cast %43 : vector<8x128xf32> to vector<8x1x128xf32>
    %c1_84 = arith.constant 1 : index
    %c0_85 = arith.constant 0 : index
    %c0_86 = arith.constant 0 : index
    %c0_87 = arith.constant 0 : index
    %174 = vector.load %arg4[%c1_84, %c0_85, %c0_86, %c0_87] : memref<2x8x8x128xf32, #tpu.memory_space<vmem>>, vector<1x8x8x128xf32>
    %175 = vector.shape_cast %174 : vector<1x8x8x128xf32> to vector<8x8x128xf32>
    %176 = vector.broadcast %173 : vector<8x1x128xf32> to vector<8x8x128xf32>
    %177 = arith.mulf %176, %175 : vector<8x8x128xf32>
    %178 = arith.addf %161, %177 : vector<8x8x128xf32>
    %179 = vector.shape_cast %79 : vector<8x128xf32> to vector<1x8x128xf32>
    %c1_88 = arith.constant 1 : index
    %c0_89 = arith.constant 0 : index
    %c0_90 = arith.constant 0 : index
    %c0_91 = arith.constant 0 : index
    %180 = vector.load %arg5[%c1_88, %c0_89, %c0_90, %c0_91] : memref<2x8x8x128xf32, #tpu.memory_space<vmem>>, vector<1x8x8x128xf32>
    %181 = vector.shape_cast %180 : vector<1x8x8x128xf32> to vector<8x8x128xf32>
    %182 = vector.broadcast %179 : vector<1x8x128xf32> to vector<8x8x128xf32>
    %183 = arith.mulf %182, %181 : vector<8x8x128xf32>
    %184 = arith.addf %166, %183 : vector<8x8x128xf32>
    %c0_92 = arith.constant 0 : index
    %c0_93 = arith.constant 0 : index
    %185 = memref.load %arg7[%c0_92, %c0_93] : memref<4x1xf32, #tpu.memory_space<smem>>
    %186 = vector.broadcast %185 : f32 to vector<8x8x128xf32>
    %187 = arith.mulf %186, %172 : vector<8x8x128xf32>
    %c1_94 = arith.constant 1 : index
    %c0_95 = arith.constant 0 : index
    %188 = memref.load %arg7[%c1_94, %c0_95] : memref<4x1xf32, #tpu.memory_space<smem>>
    %189 = vector.broadcast %188 : f32 to vector<8x8x128xf32>
    %190 = arith.mulf %189, %178 : vector<8x8x128xf32>
    %191 = arith.addf %187, %190 : vector<8x8x128xf32>
    %c2_96 = arith.constant 2 : index
    %c0_97 = arith.constant 0 : index
    %192 = memref.load %arg7[%c2_96, %c0_97] : memref<4x1xf32, #tpu.memory_space<smem>>
    %193 = vector.broadcast %192 : f32 to vector<8x8x128xf32>
    %194 = arith.mulf %193, %184 : vector<8x8x128xf32>
    %195 = arith.addf %191, %194 : vector<8x8x128xf32>
    %c3_98 = arith.constant 3 : index
    %c0_99 = arith.constant 0 : index
    %196 = memref.load %arg7[%c3_98, %c0_99] : memref<4x1xf32, #tpu.memory_space<smem>>
    %197 = vector.broadcast %196 : f32 to vector<8x8x128xf32>
    %198 = arith.addf %195, %197 : vector<8x8x128xf32>
    %cst = arith.constant dense<0xFF800000> : vector<8x128xf32>
    %199 = vector.multi_reduction <maximumf>, %198, %cst [1] : vector<8x8x128xf32> to vector<8x128xf32>
    %200 = vector.shape_cast %199 : vector<8x128xf32> to vector<8x1x128xf32>
    %201 = vector.broadcast %200 : vector<8x1x128xf32> to vector<8x8x128xf32>
    %202 = arith.subf %198, %201 : vector<8x8x128xf32>
    %203 = math.exp %202 : vector<8x8x128xf32>
    %cst_100 = arith.constant dense<0.000000e+00> : vector<8x128xf32>
    %204 = vector.multi_reduction <add>, %203, %cst_100 [1] : vector<8x8x128xf32> to vector<8x128xf32>
    %205 = vector.shape_cast %204 : vector<8x128xf32> to vector<8x1x128xf32>
    %206 = tpu.reciprocal %205 {approx = true} : vector<8x1x128xf32> -> vector<8x1x128xf32>
    %207 = vector.broadcast %206 : vector<8x1x128xf32> to vector<8x8x128xf32>
    %208 = arith.mulf %203, %207 : vector<8x8x128xf32>
    %209 = vector.shape_cast %97 : vector<8x128xf32> to vector<1x8x128xf32>
    %210 = vector.broadcast %209 : vector<1x8x128xf32> to vector<8x8x128xf32>
    %211 = arith.mulf %208, %210 : vector<8x8x128xf32>
    %cst_101 = arith.constant dense<0.000000e+00> : vector<8x128xf32>
    %212 = vector.multi_reduction <add>, %211, %cst_101 [1] : vector<8x8x128xf32> to vector<8x128xf32>
    %c0_102 = arith.constant 0 : index
    %c0_103 = arith.constant 0 : index
    %c0_104 = arith.constant 0 : index
    %c0_105 = arith.constant 0 : index
    %213 = vector.load %arg6[%c0_102, %c0_103, %c0_104, %c0_105] : memref<4x8x8x128xf32, #tpu.memory_space<vmem>>, vector<1x8x8x128xf32>
    %214 = vector.shape_cast %213 : vector<1x8x8x128xf32> to vector<8x8x128xf32>
    %215 = arith.mulf %208, %214 : vector<8x8x128xf32>
    %cst_106 = arith.constant dense<0.000000e+00> : vector<8x128xf32>
    %216 = vector.multi_reduction <add>, %215, %cst_106 [1] : vector<8x8x128xf32> to vector<8x128xf32>
    %c0_107 = arith.constant 0 : index
    %c0_108 = arith.constant 0 : index
    %217 = memref.load %arg8[%c0_107, %c0_108] : memref<3x4xf32, #tpu.memory_space<smem>>
    %218 = vector.broadcast %217 : f32 to vector<8x128xf32>
    %219 = arith.mulf %218, %212 : vector<8x128xf32>
    %c1_109 = arith.constant 1 : index
    %c0_110 = arith.constant 0 : index
    %220 = memref.load %arg8[%c1_109, %c0_110] : memref<3x4xf32, #tpu.memory_space<smem>>
    %221 = vector.broadcast %220 : f32 to vector<8x128xf32>
    %222 = arith.mulf %221, %216 : vector<8x128xf32>
    %223 = arith.addf %219, %222 : vector<8x128xf32>
    %c2_111 = arith.constant 2 : index
    %c0_112 = arith.constant 0 : index
    %224 = memref.load %arg8[%c2_111, %c0_112] : memref<3x4xf32, #tpu.memory_space<smem>>
    %225 = vector.broadcast %224 : f32 to vector<8x128xf32>
    %226 = arith.addf %223, %225 : vector<8x128xf32>
    %cst_113 = arith.constant 0.000000e+00 : f32
    %227 = vector.broadcast %cst_113 : f32 to vector<8x128xf32>
    %228 = arith.maximumf %226, %227 : vector<8x128xf32>
    %229 = vector.shape_cast %115 : vector<8x128xf32> to vector<1x8x128xf32>
    %230 = vector.broadcast %229 : vector<1x8x128xf32> to vector<8x8x128xf32>
    %231 = arith.mulf %208, %230 : vector<8x8x128xf32>
    %cst_114 = arith.constant dense<0.000000e+00> : vector<8x128xf32>
    %232 = vector.multi_reduction <add>, %231, %cst_114 [1] : vector<8x8x128xf32> to vector<8x128xf32>
    %c1_115 = arith.constant 1 : index
    %c0_116 = arith.constant 0 : index
    %c0_117 = arith.constant 0 : index
    %c0_118 = arith.constant 0 : index
    %233 = vector.load %arg6[%c1_115, %c0_116, %c0_117, %c0_118] : memref<4x8x8x128xf32, #tpu.memory_space<vmem>>, vector<1x8x8x128xf32>
    %234 = vector.shape_cast %233 : vector<1x8x8x128xf32> to vector<8x8x128xf32>
    %235 = arith.mulf %208, %234 : vector<8x8x128xf32>
    %cst_119 = arith.constant dense<0.000000e+00> : vector<8x128xf32>
    %236 = vector.multi_reduction <add>, %235, %cst_119 [1] : vector<8x8x128xf32> to vector<8x128xf32>
    %c0_120 = arith.constant 0 : index
    %c1_121 = arith.constant 1 : index
    %237 = memref.load %arg8[%c0_120, %c1_121] : memref<3x4xf32, #tpu.memory_space<smem>>
    %238 = vector.broadcast %237 : f32 to vector<8x128xf32>
    %239 = arith.mulf %238, %232 : vector<8x128xf32>
    %c1_122 = arith.constant 1 : index
    %c1_123 = arith.constant 1 : index
    %240 = memref.load %arg8[%c1_122, %c1_123] : memref<3x4xf32, #tpu.memory_space<smem>>
    %241 = vector.broadcast %240 : f32 to vector<8x128xf32>
    %242 = arith.mulf %241, %236 : vector<8x128xf32>
    %243 = arith.addf %239, %242 : vector<8x128xf32>
    %c2_124 = arith.constant 2 : index
    %c1_125 = arith.constant 1 : index
    %244 = memref.load %arg8[%c2_124, %c1_125] : memref<3x4xf32, #tpu.memory_space<smem>>
    %245 = vector.broadcast %244 : f32 to vector<8x128xf32>
    %246 = arith.addf %243, %245 : vector<8x128xf32>
    %cst_126 = arith.constant 0.000000e+00 : f32
    %247 = vector.broadcast %cst_126 : f32 to vector<8x128xf32>
    %248 = arith.maximumf %246, %247 : vector<8x128xf32>
    %249 = vector.shape_cast %133 : vector<8x128xf32> to vector<1x8x128xf32>
    %250 = vector.broadcast %249 : vector<1x8x128xf32> to vector<8x8x128xf32>
    %251 = arith.mulf %208, %250 : vector<8x8x128xf32>
    %cst_127 = arith.constant dense<0.000000e+00> : vector<8x128xf32>
    %252 = vector.multi_reduction <add>, %251, %cst_127 [1] : vector<8x8x128xf32> to vector<8x128xf32>
    %c2_128 = arith.constant 2 : index
    %c0_129 = arith.constant 0 : index
    %c0_130 = arith.constant 0 : index
    %c0_131 = arith.constant 0 : index
    %253 = vector.load %arg6[%c2_128, %c0_129, %c0_130, %c0_131] : memref<4x8x8x128xf32, #tpu.memory_space<vmem>>, vector<1x8x8x128xf32>
    %254 = vector.shape_cast %253 : vector<1x8x8x128xf32> to vector<8x8x128xf32>
    %255 = arith.mulf %208, %254 : vector<8x8x128xf32>
    %cst_132 = arith.constant dense<0.000000e+00> : vector<8x128xf32>
    %256 = vector.multi_reduction <add>, %255, %cst_132 [1] : vector<8x8x128xf32> to vector<8x128xf32>
    %c0_133 = arith.constant 0 : index
    %c2_134 = arith.constant 2 : index
    %257 = memref.load %arg8[%c0_133, %c2_134] : memref<3x4xf32, #tpu.memory_space<smem>>
    %258 = vector.broadcast %257 : f32 to vector<8x128xf32>
    %259 = arith.mulf %258, %252 : vector<8x128xf32>
    %c1_135 = arith.constant 1 : index
    %c2_136 = arith.constant 2 : index
    %260 = memref.load %arg8[%c1_135, %c2_136] : memref<3x4xf32, #tpu.memory_space<smem>>
    %261 = vector.broadcast %260 : f32 to vector<8x128xf32>
    %262 = arith.mulf %261, %256 : vector<8x128xf32>
    %263 = arith.addf %259, %262 : vector<8x128xf32>
    %c2_137 = arith.constant 2 : index
    %c2_138 = arith.constant 2 : index
    %264 = memref.load %arg8[%c2_137, %c2_138] : memref<3x4xf32, #tpu.memory_space<smem>>
    %265 = vector.broadcast %264 : f32 to vector<8x128xf32>
    %266 = arith.addf %263, %265 : vector<8x128xf32>
    %cst_139 = arith.constant 0.000000e+00 : f32
    %267 = vector.broadcast %cst_139 : f32 to vector<8x128xf32>
    %268 = arith.maximumf %266, %267 : vector<8x128xf32>
    %269 = vector.shape_cast %151 : vector<8x128xf32> to vector<1x8x128xf32>
    %270 = vector.broadcast %269 : vector<1x8x128xf32> to vector<8x8x128xf32>
    %271 = arith.mulf %208, %270 : vector<8x8x128xf32>
    %cst_140 = arith.constant dense<0.000000e+00> : vector<8x128xf32>
    %272 = vector.multi_reduction <add>, %271, %cst_140 [1] : vector<8x8x128xf32> to vector<8x128xf32>
    %c3_141 = arith.constant 3 : index
    %c0_142 = arith.constant 0 : index
    %c0_143 = arith.constant 0 : index
    %c0_144 = arith.constant 0 : index
    %273 = vector.load %arg6[%c3_141, %c0_142, %c0_143, %c0_144] : memref<4x8x8x128xf32, #tpu.memory_space<vmem>>, vector<1x8x8x128xf32>
    %274 = vector.shape_cast %273 : vector<1x8x8x128xf32> to vector<8x8x128xf32>
    %275 = arith.mulf %208, %274 : vector<8x8x128xf32>
    %cst_145 = arith.constant dense<0.000000e+00> : vector<8x128xf32>
    %276 = vector.multi_reduction <add>, %275, %cst_145 [1] : vector<8x8x128xf32> to vector<8x128xf32>
    %c0_146 = arith.constant 0 : index
    %c3_147 = arith.constant 3 : index
    %277 = memref.load %arg8[%c0_146, %c3_147] : memref<3x4xf32, #tpu.memory_space<smem>>
    %278 = vector.broadcast %277 : f32 to vector<8x128xf32>
    %279 = arith.mulf %278, %272 : vector<8x128xf32>
    %c1_148 = arith.constant 1 : index
    %c3_149 = arith.constant 3 : index
    %280 = memref.load %arg8[%c1_148, %c3_149] : memref<3x4xf32, #tpu.memory_space<smem>>
    %281 = vector.broadcast %280 : f32 to vector<8x128xf32>
    %282 = arith.mulf %281, %276 : vector<8x128xf32>
    %283 = arith.addf %279, %282 : vector<8x128xf32>
    %c2_150 = arith.constant 2 : index
    %c3_151 = arith.constant 3 : index
    %284 = memref.load %arg8[%c2_150, %c3_151] : memref<3x4xf32, #tpu.memory_space<smem>>
    %285 = vector.broadcast %284 : f32 to vector<8x128xf32>
    %286 = arith.addf %283, %285 : vector<8x128xf32>
    %cst_152 = arith.constant 0.000000e+00 : f32
    %287 = vector.broadcast %cst_152 : f32 to vector<8x128xf32>
    %288 = arith.maximumf %286, %287 : vector<8x128xf32>
    %c0_153 = arith.constant 0 : index
    %c0_154 = arith.constant 0 : index
    %289 = memref.load %arg9[%c0_153, %c0_154] : memref<8x4xf32, #tpu.memory_space<smem>>
    %290 = vector.broadcast %289 : f32 to vector<8x128xf32>
    %291 = arith.mulf %228, %290 : vector<8x128xf32>
    %c0_155 = arith.constant 0 : index
    %c1_156 = arith.constant 1 : index
    %292 = memref.load %arg9[%c0_155, %c1_156] : memref<8x4xf32, #tpu.memory_space<smem>>
    %293 = vector.broadcast %292 : f32 to vector<8x128xf32>
    %294 = arith.mulf %248, %293 : vector<8x128xf32>
    %295 = arith.addf %291, %294 : vector<8x128xf32>
    %c0_157 = arith.constant 0 : index
    %c2_158 = arith.constant 2 : index
    %296 = memref.load %arg9[%c0_157, %c2_158] : memref<8x4xf32, #tpu.memory_space<smem>>
    %297 = vector.broadcast %296 : f32 to vector<8x128xf32>
    %298 = arith.mulf %268, %297 : vector<8x128xf32>
    %299 = arith.addf %295, %298 : vector<8x128xf32>
    %c0_159 = arith.constant 0 : index
    %c3_160 = arith.constant 3 : index
    %300 = memref.load %arg9[%c0_159, %c3_160] : memref<8x4xf32, #tpu.memory_space<smem>>
    %301 = vector.broadcast %300 : f32 to vector<8x128xf32>
    %302 = arith.mulf %288, %301 : vector<8x128xf32>
    %303 = arith.addf %299, %302 : vector<8x128xf32>
    %c0_161 = arith.constant 0 : index
    %304 = memref.load %arg10[%c0_161] : memref<8xf32, #tpu.memory_space<smem>>
    %305 = vector.broadcast %304 : f32 to vector<8x128xf32>
    %306 = arith.addf %303, %305 : vector<8x128xf32>
    %c0_162 = arith.constant 0 : index
    %c0_163 = arith.constant 0 : index
    %c0_164 = arith.constant 0 : index
    %307 = vector.load %arg11[%c0_162, %c0_163, %c0_164] : memref<8x8x128xf32, #tpu.memory_space<vmem>>, vector<1x8x128xf32>
    %308 = vector.shape_cast %307 : vector<1x8x128xf32> to vector<8x128xf32>
    %309 = arith.addf %306, %308 : vector<8x128xf32>
    %cst_165 = arith.constant 0.000000e+00 : f32
    %310 = vector.broadcast %cst_165 : f32 to vector<8x128xf32>
    %311 = arith.maximumf %309, %310 : vector<8x128xf32>
    %c0_166 = arith.constant 0 : index
    %c0_167 = arith.constant 0 : index
    %c0_168 = arith.constant 0 : index
    %312 = vector.load %arg12[%c0_166, %c0_167, %c0_168] : memref<8x8x128xf32, #tpu.memory_space<vmem>>, vector<1x8x128xf32>
    %313 = vector.shape_cast %312 : vector<1x8x128xf32> to vector<8x128xf32>
    %314 = vector.shape_cast %311 : vector<8x128xf32> to vector<1x8x128xf32>
    tpu.vector_store %arg12[%c0_166, %c0_167, %c0_168], %314 {strides = array<i32>} : memref<8x8x128xf32, #tpu.memory_space<vmem>>, vector<1x8x128xf32>,
    %c1_169 = arith.constant 1 : index
    %c0_170 = arith.constant 0 : index
    %315 = memref.load %arg9[%c1_169, %c0_170] : memref<8x4xf32, #tpu.memory_space<smem>>
    %316 = vector.broadcast %315 : f32 to vector<8x128xf32>
    %317 = arith.mulf %228, %316 : vector<8x128xf32>
    %c1_171 = arith.constant 1 : index
    %c1_172 = arith.constant 1 : index
    %318 = memref.load %arg9[%c1_171, %c1_172] : memref<8x4xf32, #tpu.memory_space<smem>>
    %319 = vector.broadcast %318 : f32 to vector<8x128xf32>
    %320 = arith.mulf %248, %319 : vector<8x128xf32>
    %321 = arith.addf %317, %320 : vector<8x128xf32>
    %c1_173 = arith.constant 1 : index
    %c2_174 = arith.constant 2 : index
    %322 = memref.load %arg9[%c1_173, %c2_174] : memref<8x4xf32, #tpu.memory_space<smem>>
    %323 = vector.broadcast %322 : f32 to vector<8x128xf32>
    %324 = arith.mulf %268, %323 : vector<8x128xf32>
    %325 = arith.addf %321, %324 : vector<8x128xf32>
    %c1_175 = arith.constant 1 : index
    %c3_176 = arith.constant 3 : index
    %326 = memref.load %arg9[%c1_175, %c3_176] : memref<8x4xf32, #tpu.memory_space<smem>>
    %327 = vector.broadcast %326 : f32 to vector<8x128xf32>
    %328 = arith.mulf %288, %327 : vector<8x128xf32>
    %329 = arith.addf %325, %328 : vector<8x128xf32>
    %c1_177 = arith.constant 1 : index
    %330 = memref.load %arg10[%c1_177] : memref<8xf32, #tpu.memory_space<smem>>
    %331 = vector.broadcast %330 : f32 to vector<8x128xf32>
    %332 = arith.addf %329, %331 : vector<8x128xf32>
    %c1_178 = arith.constant 1 : index
    %c0_179 = arith.constant 0 : index
    %c0_180 = arith.constant 0 : index
    %333 = vector.load %arg11[%c1_178, %c0_179, %c0_180] : memref<8x8x128xf32, #tpu.memory_space<vmem>>, vector<1x8x128xf32>
    %334 = vector.shape_cast %333 : vector<1x8x128xf32> to vector<8x128xf32>
    %335 = arith.addf %332, %334 : vector<8x128xf32>
    %cst_181 = arith.constant 0.000000e+00 : f32
    %336 = vector.broadcast %cst_181 : f32 to vector<8x128xf32>
    %337 = arith.maximumf %335, %336 : vector<8x128xf32>
    %c1_182 = arith.constant 1 : index
    %c0_183 = arith.constant 0 : index
    %c0_184 = arith.constant 0 : index
    %338 = vector.load %arg12[%c1_182, %c0_183, %c0_184] : memref<8x8x128xf32, #tpu.memory_space<vmem>>, vector<1x8x128xf32>
    %339 = vector.shape_cast %338 : vector<1x8x128xf32> to vector<8x128xf32>
    %340 = vector.shape_cast %337 : vector<8x128xf32> to vector<1x8x128xf32>
    tpu.vector_store %arg12[%c1_182, %c0_183, %c0_184], %340 {strides = array<i32>} : memref<8x8x128xf32, #tpu.memory_space<vmem>>, vector<1x8x128xf32>,
    %c2_185 = arith.constant 2 : index
    %c0_186 = arith.constant 0 : index
    %341 = memref.load %arg9[%c2_185, %c0_186] : memref<8x4xf32, #tpu.memory_space<smem>>
    %342 = vector.broadcast %341 : f32 to vector<8x128xf32>
    %343 = arith.mulf %228, %342 : vector<8x128xf32>
    %c2_187 = arith.constant 2 : index
    %c1_188 = arith.constant 1 : index
    %344 = memref.load %arg9[%c2_187, %c1_188] : memref<8x4xf32, #tpu.memory_space<smem>>
    %345 = vector.broadcast %344 : f32 to vector<8x128xf32>
    %346 = arith.mulf %248, %345 : vector<8x128xf32>
    %347 = arith.addf %343, %346 : vector<8x128xf32>
    %c2_189 = arith.constant 2 : index
    %c2_190 = arith.constant 2 : index
    %348 = memref.load %arg9[%c2_189, %c2_190] : memref<8x4xf32, #tpu.memory_space<smem>>
    %349 = vector.broadcast %348 : f32 to vector<8x128xf32>
    %350 = arith.mulf %268, %349 : vector<8x128xf32>
    %351 = arith.addf %347, %350 : vector<8x128xf32>
    %c2_191 = arith.constant 2 : index
    %c3_192 = arith.constant 3 : index
    %352 = memref.load %arg9[%c2_191, %c3_192] : memref<8x4xf32, #tpu.memory_space<smem>>
    %353 = vector.broadcast %352 : f32 to vector<8x128xf32>
    %354 = arith.mulf %288, %353 : vector<8x128xf32>
    %355 = arith.addf %351, %354 : vector<8x128xf32>
    %c2_193 = arith.constant 2 : index
    %356 = memref.load %arg10[%c2_193] : memref<8xf32, #tpu.memory_space<smem>>
    %357 = vector.broadcast %356 : f32 to vector<8x128xf32>
    %358 = arith.addf %355, %357 : vector<8x128xf32>
    %c2_194 = arith.constant 2 : index
    %c0_195 = arith.constant 0 : index
    %c0_196 = arith.constant 0 : index
    %359 = vector.load %arg11[%c2_194, %c0_195, %c0_196] : memref<8x8x128xf32, #tpu.memory_space<vmem>>, vector<1x8x128xf32>
    %360 = vector.shape_cast %359 : vector<1x8x128xf32> to vector<8x128xf32>
    %361 = arith.addf %358, %360 : vector<8x128xf32>
    %cst_197 = arith.constant 0.000000e+00 : f32
    %362 = vector.broadcast %cst_197 : f32 to vector<8x128xf32>
    %363 = arith.maximumf %361, %362 : vector<8x128xf32>
    %c2_198 = arith.constant 2 : index
    %c0_199 = arith.constant 0 : index
    %c0_200 = arith.constant 0 : index
    %364 = vector.load %arg12[%c2_198, %c0_199, %c0_200] : memref<8x8x128xf32, #tpu.memory_space<vmem>>, vector<1x8x128xf32>
    %365 = vector.shape_cast %364 : vector<1x8x128xf32> to vector<8x128xf32>
    %366 = vector.shape_cast %363 : vector<8x128xf32> to vector<1x8x128xf32>
    tpu.vector_store %arg12[%c2_198, %c0_199, %c0_200], %366 {strides = array<i32>} : memref<8x8x128xf32, #tpu.memory_space<vmem>>, vector<1x8x128xf32>,
    %c3_201 = arith.constant 3 : index
    %c0_202 = arith.constant 0 : index
    %367 = memref.load %arg9[%c3_201, %c0_202] : memref<8x4xf32, #tpu.memory_space<smem>>
    %368 = vector.broadcast %367 : f32 to vector<8x128xf32>
    %369 = arith.mulf %228, %368 : vector<8x128xf32>
    %c3_203 = arith.constant 3 : index
    %c1_204 = arith.constant 1 : index
    %370 = memref.load %arg9[%c3_203, %c1_204] : memref<8x4xf32, #tpu.memory_space<smem>>
    %371 = vector.broadcast %370 : f32 to vector<8x128xf32>
    %372 = arith.mulf %248, %371 : vector<8x128xf32>
    %373 = arith.addf %369, %372 : vector<8x128xf32>
    %c3_205 = arith.constant 3 : index
    %c2_206 = arith.constant 2 : index
    %374 = memref.load %arg9[%c3_205, %c2_206] : memref<8x4xf32, #tpu.memory_space<smem>>
    %375 = vector.broadcast %374 : f32 to vector<8x128xf32>
    %376 = arith.mulf %268, %375 : vector<8x128xf32>
    %377 = arith.addf %373, %376 : vector<8x128xf32>
    %c3_207 = arith.constant 3 : index
    %c3_208 = arith.constant 3 : index
    %378 = memref.load %arg9[%c3_207, %c3_208] : memref<8x4xf32, #tpu.memory_space<smem>>
    %379 = vector.broadcast %378 : f32 to vector<8x128xf32>
    %380 = arith.mulf %288, %379 : vector<8x128xf32>
    %381 = arith.addf %377, %380 : vector<8x128xf32>
    %c3_209 = arith.constant 3 : index
    %382 = memref.load %arg10[%c3_209] : memref<8xf32, #tpu.memory_space<smem>>
    %383 = vector.broadcast %382 : f32 to vector<8x128xf32>
    %384 = arith.addf %381, %383 : vector<8x128xf32>
    %c3_210 = arith.constant 3 : index
    %c0_211 = arith.constant 0 : index
    %c0_212 = arith.constant 0 : index
    %385 = vector.load %arg11[%c3_210, %c0_211, %c0_212] : memref<8x8x128xf32, #tpu.memory_space<vmem>>, vector<1x8x128xf32>
    %386 = vector.shape_cast %385 : vector<1x8x128xf32> to vector<8x128xf32>
    %387 = arith.addf %384, %386 : vector<8x128xf32>
    %cst_213 = arith.constant 0.000000e+00 : f32
    %388 = vector.broadcast %cst_213 : f32 to vector<8x128xf32>
    %389 = arith.maximumf %387, %388 : vector<8x128xf32>
    %c3_214 = arith.constant 3 : index
    %c0_215 = arith.constant 0 : index
    %c0_216 = arith.constant 0 : index
    %390 = vector.load %arg12[%c3_214, %c0_215, %c0_216] : memref<8x8x128xf32, #tpu.memory_space<vmem>>, vector<1x8x128xf32>
    %391 = vector.shape_cast %390 : vector<1x8x128xf32> to vector<8x128xf32>
    %392 = vector.shape_cast %389 : vector<8x128xf32> to vector<1x8x128xf32>
    tpu.vector_store %arg12[%c3_214, %c0_215, %c0_216], %392 {strides = array<i32>} : memref<8x8x128xf32, #tpu.memory_space<vmem>>, vector<1x8x128xf32>,
    %c4_217 = arith.constant 4 : index
    %c0_218 = arith.constant 0 : index
    %393 = memref.load %arg9[%c4_217, %c0_218] : memref<8x4xf32, #tpu.memory_space<smem>>
    %394 = vector.broadcast %393 : f32 to vector<8x128xf32>
    %395 = arith.mulf %228, %394 : vector<8x128xf32>
    %c4_219 = arith.constant 4 : index
    %c1_220 = arith.constant 1 : index
    %396 = memref.load %arg9[%c4_219, %c1_220] : memref<8x4xf32, #tpu.memory_space<smem>>
    %397 = vector.broadcast %396 : f32 to vector<8x128xf32>
    %398 = arith.mulf %248, %397 : vector<8x128xf32>
    %399 = arith.addf %395, %398 : vector<8x128xf32>
    %c4_221 = arith.constant 4 : index
    %c2_222 = arith.constant 2 : index
    %400 = memref.load %arg9[%c4_221, %c2_222] : memref<8x4xf32, #tpu.memory_space<smem>>
    %401 = vector.broadcast %400 : f32 to vector<8x128xf32>
    %402 = arith.mulf %268, %401 : vector<8x128xf32>
    %403 = arith.addf %399, %402 : vector<8x128xf32>
    %c4_223 = arith.constant 4 : index
    %c3_224 = arith.constant 3 : index
    %404 = memref.load %arg9[%c4_223, %c3_224] : memref<8x4xf32, #tpu.memory_space<smem>>
    %405 = vector.broadcast %404 : f32 to vector<8x128xf32>
    %406 = arith.mulf %288, %405 : vector<8x128xf32>
    %407 = arith.addf %403, %406 : vector<8x128xf32>
    %c4_225 = arith.constant 4 : index
    %408 = memref.load %arg10[%c4_225] : memref<8xf32, #tpu.memory_space<smem>>
    %409 = vector.broadcast %408 : f32 to vector<8x128xf32>
    %410 = arith.addf %407, %409 : vector<8x128xf32>
    %c4_226 = arith.constant 4 : index
    %c0_227 = arith.constant 0 : index
    %c0_228 = arith.constant 0 : index
    %411 = vector.load %arg11[%c4_226, %c0_227, %c0_228] : memref<8x8x128xf32, #tpu.memory_space<vmem>>, vector<1x8x128xf32>
    %412 = vector.shape_cast %411 : vector<1x8x128xf32> to vector<8x128xf32>
    %413 = arith.addf %410, %412 : vector<8x128xf32>
    %cst_229 = arith.constant 0.000000e+00 : f32
    %414 = vector.broadcast %cst_229 : f32 to vector<8x128xf32>
    %415 = arith.maximumf %413, %414 : vector<8x128xf32>
    %c4_230 = arith.constant 4 : index
    %c0_231 = arith.constant 0 : index
    %c0_232 = arith.constant 0 : index
    %416 = vector.load %arg12[%c4_230, %c0_231, %c0_232] : memref<8x8x128xf32, #tpu.memory_space<vmem>>, vector<1x8x128xf32>
    %417 = vector.shape_cast %416 : vector<1x8x128xf32> to vector<8x128xf32>
    %418 = vector.shape_cast %415 : vector<8x128xf32> to vector<1x8x128xf32>
    tpu.vector_store %arg12[%c4_230, %c0_231, %c0_232], %418 {strides = array<i32>} : memref<8x8x128xf32, #tpu.memory_space<vmem>>, vector<1x8x128xf32>,
    %c5_233 = arith.constant 5 : index
    %c0_234 = arith.constant 0 : index
    %419 = memref.load %arg9[%c5_233, %c0_234] : memref<8x4xf32, #tpu.memory_space<smem>>
    %420 = vector.broadcast %419 : f32 to vector<8x128xf32>
    %421 = arith.mulf %228, %420 : vector<8x128xf32>
    %c5_235 = arith.constant 5 : index
    %c1_236 = arith.constant 1 : index
    %422 = memref.load %arg9[%c5_235, %c1_236] : memref<8x4xf32, #tpu.memory_space<smem>>
    %423 = vector.broadcast %422 : f32 to vector<8x128xf32>
    %424 = arith.mulf %248, %423 : vector<8x128xf32>
    %425 = arith.addf %421, %424 : vector<8x128xf32>
    %c5_237 = arith.constant 5 : index
    %c2_238 = arith.constant 2 : index
    %426 = memref.load %arg9[%c5_237, %c2_238] : memref<8x4xf32, #tpu.memory_space<smem>>
    %427 = vector.broadcast %426 : f32 to vector<8x128xf32>
    %428 = arith.mulf %268, %427 : vector<8x128xf32>
    %429 = arith.addf %425, %428 : vector<8x128xf32>
    %c5_239 = arith.constant 5 : index
    %c3_240 = arith.constant 3 : index
    %430 = memref.load %arg9[%c5_239, %c3_240] : memref<8x4xf32, #tpu.memory_space<smem>>
    %431 = vector.broadcast %430 : f32 to vector<8x128xf32>
    %432 = arith.mulf %288, %431 : vector<8x128xf32>
    %433 = arith.addf %429, %432 : vector<8x128xf32>
    %c5_241 = arith.constant 5 : index
    %434 = memref.load %arg10[%c5_241] : memref<8xf32, #tpu.memory_space<smem>>
    %435 = vector.broadcast %434 : f32 to vector<8x128xf32>
    %436 = arith.addf %433, %435 : vector<8x128xf32>
    %c5_242 = arith.constant 5 : index
    %c0_243 = arith.constant 0 : index
    %c0_244 = arith.constant 0 : index
    %437 = vector.load %arg11[%c5_242, %c0_243, %c0_244] : memref<8x8x128xf32, #tpu.memory_space<vmem>>, vector<1x8x128xf32>
    %438 = vector.shape_cast %437 : vector<1x8x128xf32> to vector<8x128xf32>
    %439 = arith.addf %436, %438 : vector<8x128xf32>
    %cst_245 = arith.constant 0.000000e+00 : f32
    %440 = vector.broadcast %cst_245 : f32 to vector<8x128xf32>
    %441 = arith.maximumf %439, %440 : vector<8x128xf32>
    %c5_246 = arith.constant 5 : index
    %c0_247 = arith.constant 0 : index
    %c0_248 = arith.constant 0 : index
    %442 = vector.load %arg12[%c5_246, %c0_247, %c0_248] : memref<8x8x128xf32, #tpu.memory_space<vmem>>, vector<1x8x128xf32>
    %443 = vector.shape_cast %442 : vector<1x8x128xf32> to vector<8x128xf32>
    %444 = vector.shape_cast %441 : vector<8x128xf32> to vector<1x8x128xf32>
    tpu.vector_store %arg12[%c5_246, %c0_247, %c0_248], %444 {strides = array<i32>} : memref<8x8x128xf32, #tpu.memory_space<vmem>>, vector<1x8x128xf32>,
    %c6_249 = arith.constant 6 : index
    %c0_250 = arith.constant 0 : index
    %445 = memref.load %arg9[%c6_249, %c0_250] : memref<8x4xf32, #tpu.memory_space<smem>>
    %446 = vector.broadcast %445 : f32 to vector<8x128xf32>
    %447 = arith.mulf %228, %446 : vector<8x128xf32>
    %c6_251 = arith.constant 6 : index
    %c1_252 = arith.constant 1 : index
    %448 = memref.load %arg9[%c6_251, %c1_252] : memref<8x4xf32, #tpu.memory_space<smem>>
    %449 = vector.broadcast %448 : f32 to vector<8x128xf32>
    %450 = arith.mulf %248, %449 : vector<8x128xf32>
    %451 = arith.addf %447, %450 : vector<8x128xf32>
    %c6_253 = arith.constant 6 : index
    %c2_254 = arith.constant 2 : index
    %452 = memref.load %arg9[%c6_253, %c2_254] : memref<8x4xf32, #tpu.memory_space<smem>>
    %453 = vector.broadcast %452 : f32 to vector<8x128xf32>
    %454 = arith.mulf %268, %453 : vector<8x128xf32>
    %455 = arith.addf %451, %454 : vector<8x128xf32>
    %c6_255 = arith.constant 6 : index
    %c3_256 = arith.constant 3 : index
    %456 = memref.load %arg9[%c6_255, %c3_256] : memref<8x4xf32, #tpu.memory_space<smem>>
    %457 = vector.broadcast %456 : f32 to vector<8x128xf32>
    %458 = arith.mulf %288, %457 : vector<8x128xf32>
    %459 = arith.addf %455, %458 : vector<8x128xf32>
    %c6_257 = arith.constant 6 : index
    %460 = memref.load %arg10[%c6_257] : memref<8xf32, #tpu.memory_space<smem>>
    %461 = vector.broadcast %460 : f32 to vector<8x128xf32>
    %462 = arith.addf %459, %461 : vector<8x128xf32>
    %c6_258 = arith.constant 6 : index
    %c0_259 = arith.constant 0 : index
    %c0_260 = arith.constant 0 : index
    %463 = vector.load %arg11[%c6_258, %c0_259, %c0_260] : memref<8x8x128xf32, #tpu.memory_space<vmem>>, vector<1x8x128xf32>
    %464 = vector.shape_cast %463 : vector<1x8x128xf32> to vector<8x128xf32>
    %465 = arith.addf %462, %464 : vector<8x128xf32>
    %cst_261 = arith.constant 0.000000e+00 : f32
    %466 = vector.broadcast %cst_261 : f32 to vector<8x128xf32>
    %467 = arith.maximumf %465, %466 : vector<8x128xf32>
    %c6_262 = arith.constant 6 : index
    %c0_263 = arith.constant 0 : index
    %c0_264 = arith.constant 0 : index
    %468 = vector.load %arg12[%c6_262, %c0_263, %c0_264] : memref<8x8x128xf32, #tpu.memory_space<vmem>>, vector<1x8x128xf32>
    %469 = vector.shape_cast %468 : vector<1x8x128xf32> to vector<8x128xf32>
    %470 = vector.shape_cast %467 : vector<8x128xf32> to vector<1x8x128xf32>
    tpu.vector_store %arg12[%c6_262, %c0_263, %c0_264], %470 {strides = array<i32>} : memref<8x8x128xf32, #tpu.memory_space<vmem>>, vector<1x8x128xf32>,
    %c7_265 = arith.constant 7 : index
    %c0_266 = arith.constant 0 : index
    %471 = memref.load %arg9[%c7_265, %c0_266] : memref<8x4xf32, #tpu.memory_space<smem>>
    %472 = vector.broadcast %471 : f32 to vector<8x128xf32>
    %473 = arith.mulf %228, %472 : vector<8x128xf32>
    %c7_267 = arith.constant 7 : index
    %c1_268 = arith.constant 1 : index
    %474 = memref.load %arg9[%c7_267, %c1_268] : memref<8x4xf32, #tpu.memory_space<smem>>
    %475 = vector.broadcast %474 : f32 to vector<8x128xf32>
    %476 = arith.mulf %248, %475 : vector<8x128xf32>
    %477 = arith.addf %473, %476 : vector<8x128xf32>
    %c7_269 = arith.constant 7 : index
    %c2_270 = arith.constant 2 : index
    %478 = memref.load %arg9[%c7_269, %c2_270] : memref<8x4xf32, #tpu.memory_space<smem>>
    %479 = vector.broadcast %478 : f32 to vector<8x128xf32>
    %480 = arith.mulf %268, %479 : vector<8x128xf32>
    %481 = arith.addf %477, %480 : vector<8x128xf32>
    %c7_271 = arith.constant 7 : index
    %c3_272 = arith.constant 3 : index
    %482 = memref.load %arg9[%c7_271, %c3_272] : memref<8x4xf32, #tpu.memory_space<smem>>
    %483 = vector.broadcast %482 : f32 to vector<8x128xf32>
    %484 = arith.mulf %288, %483 : vector<8x128xf32>
    %485 = arith.addf %481, %484 : vector<8x128xf32>
    %c7_273 = arith.constant 7 : index
    %486 = memref.load %arg10[%c7_273] : memref<8xf32, #tpu.memory_space<smem>>
    %487 = vector.broadcast %486 : f32 to vector<8x128xf32>
    %488 = arith.addf %485, %487 : vector<8x128xf32>
    %c7_274 = arith.constant 7 : index
    %c0_275 = arith.constant 0 : index
    %c0_276 = arith.constant 0 : index
    %489 = vector.load %arg11[%c7_274, %c0_275, %c0_276] : memref<8x8x128xf32, #tpu.memory_space<vmem>>, vector<1x8x128xf32>
    %490 = vector.shape_cast %489 : vector<1x8x128xf32> to vector<8x128xf32>
    %491 = arith.addf %488, %490 : vector<8x128xf32>
    %cst_277 = arith.constant 0.000000e+00 : f32
    %492 = vector.broadcast %cst_277 : f32 to vector<8x128xf32>
    %493 = arith.maximumf %491, %492 : vector<8x128xf32>
    %c7_278 = arith.constant 7 : index
    %c0_279 = arith.constant 0 : index
    %c0_280 = arith.constant 0 : index
    %494 = vector.load %arg12[%c7_278, %c0_279, %c0_280] : memref<8x8x128xf32, #tpu.memory_space<vmem>>, vector<1x8x128xf32>
    %495 = vector.shape_cast %494 : vector<1x8x128xf32> to vector<8x128xf32>
    %496 = vector.shape_cast %493 : vector<8x128xf32> to vector<1x8x128xf32>
    tpu.vector_store %arg12[%c7_278, %c0_279, %c0_280], %496 {strides = array<i32>} : memref<8x8x128xf32, #tpu.memory_space<vmem>>, vector<1x8x128xf32>,
    return
  }
  func.func @transform_0(%arg0: i32) -> (i32, i32, i32) {
    %c0_i32 = arith.constant 0 : i32
    %c0_i32_0 = arith.constant 0 : i32
    %c0_i32_1 = arith.constant 0 : i32
    return %c0_i32, %c0_i32_0, %arg0 : i32, i32, i32
  }
  func.func @transform_1(%arg0: i32) -> (i32, i32) {
    %c0_i32 = arith.constant 0 : i32
    %c0_i32_0 = arith.constant 0 : i32
    %c0_i32_1 = arith.constant 0 : i32
    return %c0_i32, %c0_i32_0 : i32, i32
  }
  func.func @transform_2(%arg0: i32) -> i32 {
    %c0_i32 = arith.constant 0 : i32
    %c0_i32_0 = arith.constant 0 : i32
    return %c0_i32 : i32
  }
  func.func @transform_3(%arg0: i32) -> (i32, i32, i32, i32) {
    %c0_i32 = arith.constant 0 : i32
    %c0_i32_0 = arith.constant 0 : i32
    %c0_i32_1 = arith.constant 0 : i32
    %c0_i32_2 = arith.constant 0 : i32
    %c0_i32_3 = arith.constant 0 : i32
    return %c0_i32, %c0_i32_0, %c0_i32_1, %c0_i32_2 : i32, i32, i32, i32
  }
  func.func @transform_4(%arg0: i32) -> (i32, i32, i32, i32) {
    %c0_i32 = arith.constant 0 : i32
    %c0_i32_0 = arith.constant 0 : i32
    %c0_i32_1 = arith.constant 0 : i32
    %c0_i32_2 = arith.constant 0 : i32
    %c0_i32_3 = arith.constant 0 : i32
    return %c0_i32, %c0_i32_0, %c0_i32_1, %c0_i32_2 : i32, i32, i32, i32
  }
  func.func @transform_5(%arg0: i32) -> (i32, i32, i32, i32) {
    %c0_i32 = arith.constant 0 : i32
    %c0_i32_0 = arith.constant 0 : i32
    %c0_i32_1 = arith.constant 0 : i32
    %c0_i32_2 = arith.constant 0 : i32
    %c0_i32_3 = arith.constant 0 : i32
    return %c0_i32, %c0_i32_0, %c0_i32_1, %c0_i32_2 : i32, i32, i32, i32
  }
  func.func @transform_6(%arg0: i32) -> (i32, i32) {
    %c0_i32 = arith.constant 0 : i32
    %c0_i32_0 = arith.constant 0 : i32
    %c0_i32_1 = arith.constant 0 : i32
    return %c0_i32, %c0_i32_0 : i32, i32
  }
  func.func @transform_7(%arg0: i32) -> (i32, i32) {
    %c0_i32 = arith.constant 0 : i32
    %c0_i32_0 = arith.constant 0 : i32
    %c0_i32_1 = arith.constant 0 : i32
    return %c0_i32, %c0_i32_0 : i32, i32
  }
  func.func @transform_8(%arg0: i32) -> (i32, i32) {
    %c0_i32 = arith.constant 0 : i32
    %c0_i32_0 = arith.constant 0 : i32
    %c0_i32_1 = arith.constant 0 : i32
    return %c0_i32, %c0_i32_0 : i32, i32
  }
  func.func @transform_9(%arg0: i32) -> i32 {
    %c0_i32 = arith.constant 0 : i32
    %c0_i32_0 = arith.constant 0 : i32
    return %c0_i32 : i32
  }
  func.func @transform_10(%arg0: i32) -> (i32, i32, i32) {
    %c0_i32 = arith.constant 0 : i32
    %c0_i32_0 = arith.constant 0 : i32
    %c0_i32_1 = arith.constant 0 : i32
    return %c0_i32, %c0_i32_0, %arg0 : i32, i32, i32
  }
  func.func @transform_11(%arg0: i32) -> (i32, i32, i32) {
    %c0_i32 = arith.constant 0 : i32
    %c0_i32_0 = arith.constant 0 : i32
    %c0_i32_1 = arith.constant 0 : i32
    return %c0_i32, %c0_i32_0, %arg0 : i32, i32, i32
  }
}

</mosaic_0001>

<bundles_post_ra>
// kernel: axial_block_forward.4
= control target key start
LH: loop header
LB: loop body
LE: loop exit
PB: predicated region body
PF: predicated region fallthrough
CT: control target
= control target key end

     0   :  { %13 = vsyncpa [#allocation3], 0  ;;  %s2756_s0 = inlined_call_operand.vmem [shape: f32[4,8,128], index: 0, kind: input, shape index: {}]   ;;  %s2757_s1 = inlined_call_operand.vmem [shape: f32[8,4], index: 1, kind: input, shape index: {}]   ;;  %s2758_s2 = inlined_call_operand.vmem [shape: f32[8], index: 2, kind: input, shape index: {}]   ;;  %s2759_s3 = inlined_call_operand.vmem [shape: f32[2,8,8,128], index: 3, kind: input, shape index: {}]   ;;  %s2760_s4 = inlined_call_operand.vmem [shape: f32[2,8,8,128], index: 4, kind: input, shape index: {}]   ;;  %s2761_s5 = inlined_call_operand.vmem [shape: f32[4,8,8,128], index: 5, kind: input, shape index: {}]   ;;  %s2762_s6 = inlined_call_operand.vmem [shape: f32[4,1], index: 6, kind: input, shape index: {}]   ;;  %s2763_s7 = inlined_call_operand.vmem [shape: f32[3,4], index: 7, kind: input, shape index: {}]   ;;  %s2764_s8 = inlined_call_operand.vmem [shape: f32[4,8,128], index: 8, kind: output, shape index: {}]  }
   0x1   :  { %14 = vsyncpa [#allocation5], 0  ;;  %s34_s29 = sshll.u32 %s2758_s2, 4  ;;  %s35_s29 = int_to_ptr.vmem [resolvable:$true] %s34_s29 }
   0x2   :  { %15 = vsyncpa [#allocation8], 0  ;;  %s24_s10 = sshll.u32 %s2757_s1, 4  ;;  %s1561_s11 = scalar_lea.vmem %s35_s29, 16  ;;  %s25_s10 = int_to_ptr.vmem [resolvable:$true] %s24_s10 }
   0x3   :  { %p1562_p0 = scmp.ne.s32.totalorder %s35_s29, %s1561_s11  ;;  %p1566_p1 = scmp.lt.s32.totalorder %s35_s29, %s35_s29 }
   0x4   :  { %p1567_p2 = scmp.lt.s32.totalorder %s1561_s11, %s1561_s11 }
   0x6   :  { %p1568_p3 = por %p1567_p2, %p1566_p1 }
   0x8   :  { %p1569_p4 = pnand %p1568_p3, %p1562_p0 }
   0xa   :  { %1572 = shalt.err (!%p1569_p4)
}
   0xb   :  { %s1615_s12 = smov [#allocation4]   ;;  %s1573_s13 = scalar_lea.vmem %s25_s10, 128 }
   0xc   :  { %37 = dma.vmem_to_smem %s35_s29, 16, %s1615_s12, [#allocation5]  }
   0xd   :  { %p1574_p5 = scmp.ne.s32.totalorder %s25_s10, %s1573_s13  ;;  %p1578_p6 = scmp.lt.s32.totalorder %s25_s10, %s25_s10 }
   0xe   :  { %p1579_p7 = scmp.lt.s32.totalorder %s1573_s13, %s1573_s13 }
  0x10   :  { %p1580_p8 = por %p1579_p7, %p1578_p6 }
  0x12   :  { %p1581_p9 = pnand %p1580_p8, %p1574_p5 }
  0x14   :  { %1584 = shalt.err (!%p1581_p9)
}
  0x15   :  { %s1616_s2 = smov [#allocation2]   ;;  %s50_s15 = sshll.u32 %s2762_s6, 4  ;;  %s51_s15 = int_to_ptr.vmem [resolvable:$true] %s50_s15 }
  0x16   :  { %27 = dma.vmem_to_smem %s25_s10, 128, %s1616_s2, [#allocation3]  }
  0x17   :  { %s60_s18 = sshll.u32 %s2763_s7, 4  ;;  %s1585_s19 = scalar_lea.vmem %s51_s15, 64  ;;  %s61_s18 = int_to_ptr.vmem [resolvable:$true] %s60_s18 }
  0x18   :  { %p1586_p10 = scmp.ne.s32.totalorder %s51_s15, %s1585_s19  ;;  %p1590_p11 = scmp.lt.s32.totalorder %s51_s15, %s51_s15 }
  0x19   :  { %p1591_p12 = scmp.lt.s32.totalorder %s1585_s19, %s1585_s19 }
  0x1b   :  { %p1592_p13 = por %p1591_p12, %p1590_p11 }
  0x1d   :  { %p1593_p0 = pnand %p1592_p13, %p1586_p10 }
  0x1f   :  { %1596 = shalt.err (!%p1593_p0)
}
  0x20   :  { %s1617_s20 = smov [#allocation6]   ;;  %s1597_s21 = scalar_lea.vmem %s61_s18, 64 }
  0x21   :  { %53 = dma.vmem_to_smem %s51_s15, 64, %s1617_s20, [#allocation5]  }
  0x22   :  { %p1598_p1 = scmp.ne.s32.totalorder %s61_s18, %s1597_s21  ;;  %p1602_p2 = scmp.lt.s32.totalorder %s61_s18, %s61_s18 }
  0x23   :  { %p1603_p3 = scmp.lt.s32.totalorder %s1597_s21, %s1597_s21 }
  0x25   :  { %p1604_p4 = por %p1603_p3, %p1602_p2 }
  0x27   :  { %p1605_p5 = pnand %p1604_p4, %p1598_p1 }
  0x29   :  { %1608 = shalt.err (!%p1605_p5)
}
  0x2a   :  { %s1618_s6 = smov [#allocation7]  }
  0x2b   :  { %63 = dma.vmem_to_smem %s61_s18, 64, %s1618_s6, [#allocation8]  }
  0x2c   :  { %1609 = dma.done.wait [#allocation3], 128  }
  0x2d   :  { %1610 = vsyncadd [#allocation3], 4294967168 }
  0x2e   :  { %1611 = dma.done.wait [#allocation5], 80  }
  0x2f   :  { %1612 = vsyncadd [#allocation5], 4294967216 }
  0x30   :  { %1613 = dma.done.wait [#allocation8], 64  }
  0x31   :  { %1614 = vsyncadd [#allocation8], 4294967232 }
  0x32   :  { %76 = sfence }
  0x33   :  { %s84_s7 = sld [smem:[#allocation2]]  ;;  %s1429_s22 = sld [smem:[#allocation2 + $0x1]]  ;;  %v233_v0 = vlaneseq  ;;  %v1684_v1 = vld [vmem:[%s2756_s0] sm:$0xff]  ;;  %v1619_v2 = vmov 1966171168   ;;  %v1693_v4 = vld [vmem:[%s2756_s0 + $0x8] sm:$0xff] }
  0x34   :  { %s1430_s23 = sld [smem:[#allocation2 + $0x2]]  ;;  %s1431_s24 = sld [smem:[#allocation2 + $0x3]]  ;;  %v231_v3 = vunpack.c.l.s4 %v1619_v2  ;;  %v1698_v5 = vld [vmem:[%s2756_s0 + $0x10] sm:$0xff]  ;;  %v1707_v6 = vld [vmem:[%s2756_s0 + $0x18] sm:$0xff]  ;;  %vm1349_vm0 = vcmask 1041409   ;;  %vm1351_vm1 = vcmask 1042434  }
  0x35   :  { %s1677_s25 = sld [smem:[#allocation2 + $0x80]]  ;;  %s1679_s26 = sld [smem:[#allocation2 + $0x81]]  ;;  %v1718_v11 = vshrl.u32 %v233_v0, 7  ;;  %vm1353_vm2 = vcmask 1043459   ;;  %vm1355_vm3 = vcmask 1044484   ;;  %vm1357_vm4 = vcmask 1045509  }
  0x36   :  { %s1686_s29 = sld [smem:[#allocation4]]  ;;  %s1688_s30 = sld [smem:[#allocation2 + $0x82]]  ;;  %v232_v15 = vunpack.c.0.s8 %v231_v3  ;;  %vm1359_vm5 = vcmask 1046534   ;;  %vm1361_vm6 = vcmask 1047559  }
  0x37   :  { %s1700_s13 = sld [smem:[#allocation2 + $0x83]]  ;;  %s1702_s2 = sld [smem:[#allocation2 + $0x100]] }
  0x38   :  { %s1709_s15 = sld [smem:[#allocation2 + $0x101]]  ;;  %s1711_s16 = sld [smem:[#allocation2 + $0x102]]  ;;  %v1748_v25 = vsub.s32 %v232_v15, %v1718_v11 }
  0x39   :  { %v85_v7 = vstv %s84_s7  ;;  %v88_v9 = vstv %s1429_s22  ;;  %s1714_s17 = sld [smem:[#allocation4 + $0x1]]  ;;  %s1716_s18 = sld [smem:[#allocation2 + $0x103]] }
  0x3a   :  { %v86_v8 = vmul.f32 %v85_v7, %v1684_v1  ;;  %v92_v10 = vstv %s1430_s23  ;;  %v89_v12 = vmul.f32 %v1693_v4, %v88_v9  ;;  %v96_v14 = vstv %s1431_s24  ;;  %s1722_s0 = sld [smem:[#allocation2 + $0x180]]  ;;  %s1724_s19 = sld [smem:[#allocation2 + $0x181]] }
  0x3b   :  { %v93_v13 = vmul.f32 %v1698_v5, %v92_v10  ;;  %v97_v16 = vmul.f32 %v1707_v6, %v96_v14  ;;  %v103_v17 = vstv %s1677_s25  ;;  %v106_v18 = vstv %s1679_s26  ;;  %s1729_s20 = sld [smem:[#allocation4 + $0x2]]  ;;  %s1736_s6 = sld [smem:[#allocation2 + $0x200]] }
  0x3c   :  { %s1731_s21 = sld [smem:[#allocation2 + $0x182]]  ;;  %v90_v19 = vadd.f32 %v89_v12, %v86_v8  ;;  %v104_v20 = vmul.f32 %v103_v17, %v1684_v1  ;;  %v107_v21 = vmul.f32 %v1693_v4, %v106_v18  ;;  %v110_v22 = vstv %s1688_s30  ;;  %s1739_s7 = sld [smem:[#allocation2 + $0x201]] }
  0x3d   :  { %v121_v23 = vstv %s1702_s2  ;;  %s1741_s22 = sld [smem:[#allocation2 + $0x202]]  ;;  %s1743_s23 = sld [smem:[#allocation2 + $0x183]]  ;;  %v111_v27 = vmul.f32 %v1698_v5, %v110_v22  ;;  %v114_v28 = vstv %s1700_s13  ;;  %v100_v34 = vstv %s1686_s29 }
  0x3e   :  { %v94_v24 = vadd.f32 %v93_v13, %v90_v19  ;;  %s1745_s24 = sld [smem:[#allocation2 + $0x203]]  ;;  %v108_v26 = vadd.f32 %v107_v21, %v104_v20  ;;  %v124_v29 = vstv %s1709_s15  ;;  %s1755_s26 = sld [smem:[#allocation2 + $0x280]]  ;;  %v122_v31 = vmul.f32 %v121_v23, %v1684_v1 }
  0x3f   :  { %s1753_s25 = sld [smem:[#allocation4 + $0x3]]  ;;  %v125_v32 = vmul.f32 %v1693_v4, %v124_v29  ;;  %v128_v33 = vstv %s1711_s16  ;;  %s1760_s27 = sld [smem:[#allocation2 + $0x281]]  ;;  %v132_v35 = vstv %s1716_s18  ;;  %v115_v38 = vmul.f32 %v1707_v6, %v114_v28 }
  0x40   :  { %v98_v30 = vadd.f32 %v97_v16, %v94_v24  ;;  %v139_v36 = vstv %s1722_s0  ;;  %v142_v37 = vstv %s1724_s19  ;;  %s1766_s28 = sld [smem:[#allocation2 + $0x282]]  ;;  %s1768_s30 = sld [smem:[#allocation2 + $0x283]]  ;;  %v118_v39 = vstv %s1714_s17 }
  0x41   :  { %v140_v40 = vmul.f32 %v139_v36, %v1684_v1  ;;  %v112_v42 = vadd.f32 %v111_v27, %v108_v26  ;;  %v129_v43 = vmul.f32 %v1698_v5, %v128_v33  ;;  %v136_v44 = vstv %s1729_s20  ;;  %s1777_s29 = sld [smem:[#allocation2 + $0x300]]  ;;  %s1779_s9 = sld [smem:[#allocation2 + $0x301]] }
  0x42   :  { %v146_v41 = vstv %s1731_s21  ;;  %v143_v45 = vmul.f32 %v1693_v4, %v142_v37  ;;  %v1781_v46 = vadd.f32 %v100_v34, %v98_v30  ;;  %v126_v47 = vadd.f32 %v125_v32, %v122_v31  ;;  %s1785_s10 = sld [smem:[#allocation2 + $0x302]]  ;;  %s1791_s11 = sld [smem:[#allocation2 + $0x303]] }
  0x43   :  { %v133_v48 = vmul.f32 %v1707_v6, %v132_v35  ;;  %v157_v49 = vstv %s1736_s6  ;;  %v147_v50 = vmul.f32 %v1698_v5, %v146_v41  ;;  %v160_v52 = vstv %s1739_s7  ;;  %s1796_s12 = sld [smem:[#allocation2 + $0x380]]  ;;  %s1801_s13 = sld [smem:[#allocation2 + $0x381]]  ;;  %v342_v41 = vld [vmem:[%s2760_s4] sm:$0xff] }
  0x44   :  { %v158_v51 = vmul.f32 %v157_v49, %v1684_v1  ;;  %v164_v53 = vstv %s1741_s22  ;;  %v144_v54 = vadd.f32 %v143_v45, %v140_v40  ;;  %v161_v55 = vmul.f32 %v1693_v4, %v160_v52  ;;  %s1803_s2 = sld [smem:[#allocation2 + $0x382]]  ;;  %s1808_s1 = sld [smem:[#allocation2 + $0x383]] }
  0x45   :  { %v165_v56 = vmul.f32 %v1698_v5, %v164_v53  ;;  %v168_v57 = vstv %s1745_s24  ;;  %v116_v58 = vadd.f32 %v115_v38, %v112_v42  ;;  %v150_v59 = vstv %s1743_s23  ;;  %s2087_s17 = sld [smem:[#allocation6 + $0x80]]  ;;  %s2197_s24 = sld [smem:[#allocation4 + $0x5]] }
  0x46   :  { %v154_v60 = vstv %s1753_s25  ;;  %v175_v61 = vstv %s1755_s26  ;;  %v162_v62 = vadd.f32 %v161_v55, %v158_v51  ;;  %v169_v63 = vmul.f32 %v1707_v6, %v168_v57  ;;  %v347_v57 = vld [vmem:[%s2760_s4 + $0x28] sm:$0xff]  ;;  %s2093_s22 = sld [smem:[#allocation6 + $0x100]]  ;;  %s2199_s25 = sld [smem:[#allocation4 + $0x6]] }
  0x47   :  { %v176_v0 = vmul.f32 %v175_v61, %v1684_v1  ;;  %v178_v2 = vstv %s1760_s27  ;;  %v130_v3 = vadd.f32 %v129_v43, %v126_v47  ;;  %v182_v8 = vstv %s1766_s28  ;;  %s2095_s23 = sld [smem:[#allocation6 + $0x180]]  ;;  %s2201_s26 = sld [smem:[#allocation4 + $0x7]] }
  0x48   :  { %v179_v7 = vmul.f32 %v1693_v4, %v178_v2  ;;  %v186_v9 = vstv %s1768_s30  ;;  %v148_v10 = vadd.f32 %v147_v50, %v144_v54  ;;  %v151_v12 = vmul.f32 %v1707_v6, %v150_v59  ;;  %v346_v54 = vld [vmem:[%s2760_s4 + $0x20] sm:$0xff]  ;;  %s2203_s27 = sld [smem:[#allocation7]]  ;;  %s2680_s18 = sld [smem:[#allocation7 + $0x83]] }
  0x49   :  { %v166_v13 = vadd.f32 %v165_v56, %v162_v62  ;;  %v183_v14 = vmul.f32 %v1698_v5, %v182_v8  ;;  %v187_v16 = vmul.f32 %v1707_v6, %v186_v9  ;;  %v193_v17 = vstv %s1777_s29  ;;  %s2205_s28 = sld [smem:[#allocation7 + $0x80]]  ;;  %s2209_s29 = sld [smem:[#allocation7 + $0x1]] }
  0x4a   :  { %v180_v15 = vadd.f32 %v179_v7, %v176_v0  ;;  %v196_v18 = vstv %s1779_s9  ;;  %v194_v20 = vmul.f32 %v193_v17, %v1684_v1  ;;  %v200_v22 = vstv %s1785_s10  ;;  %v348_v0 = vld [vmem:[%s2760_s4 + $0x30] sm:$0xff]  ;;  %v326_v17 = vld [vmem:[%s2759_s3] sm:$0xff]  ;;  %s2207_s30 = sld [smem:[#allocation7 + $0x100]]  ;;  %s2211_s9 = sld [smem:[#allocation7 + $0x81]] }
  0x4b   :  { %v1818_v19 = vadd.f32 %v169_v63, %v166_v13  ;;  %v197_v21 = vmul.f32 %v1693_v4, %v196_v18  ;;  %v134_v23 = vadd.f32 %v133_v48, %v130_v3  ;;  %v201_v26 = vmul.f32 %v1698_v5, %v200_v22  ;;  %v327_v18 = vld [vmem:[%s2759_s3 + $0x8] sm:$0xff]  ;;  %s2213_s10 = sld [smem:[#allocation7 + $0x2]]  ;;  %s1520_s0 = sld [smem:[#allocation7 + $0x103]] }
  0x4c   :  { %v184_v24 = vadd.f32 %v183_v14, %v180_v15  ;;  %v204_v27 = vstv %s1791_s11  ;;  %v152_v28 = vadd.f32 %v151_v12, %v148_v10  ;;  %v211_v31 = vstv %s1796_s12  ;;  %s1508_s11 = sld [smem:[#allocation7 + $0x82]] }
  0x4d   :  { %v198_v29 = vadd.f32 %v197_v21, %v194_v20  ;;  %v205_v30 = vmul.f32 %v1707_v6, %v204_v27  ;;  %v212_v33 = vmul.f32 %v211_v31, %v1684_v1  ;;  %v214_v34 = vstv %s1801_s13  ;;  %v328_v20 = vld [vmem:[%s2759_s3 + $0x10] sm:$0xff]  ;;  %v329_v27 = vld [vmem:[%s2759_s3 + $0x18] sm:$0xff]  ;;  %s1509_s12 = sld [smem:[#allocation7 + $0x102]] }
  0x4e   :  { %v1827_v32 = vadd.f32 %v187_v16, %v184_v24  ;;  %v218_v35 = vstv %s1803_s2  ;;  %v215_v37 = vmul.f32 %v1693_v4, %v214_v34  ;;  %v222_v40 = vstv %s1808_s1  ;;  %v343_v4 = vld [vmem:[%s2760_s4 + $0x8] sm:$0xff]  ;;  %s2063_s1 = sld [smem:[#allocation6]] }
  0x4f   :  { %v202_v36 = vadd.f32 %v201_v26, %v198_v29  ;;  %v219_v38 = vmul.f32 %v1698_v5, %v218_v35  ;;  %v1840_v42 = vadd.f32 %v136_v44, %v134_v23  ;;  %v229_v43 = vcombine.high %v1781_v46, %v1781_v46  ;;  %v344_v44 = vld [vmem:[%s2760_s4 + $0x10] sm:$0xff]  ;;  %v331_v29 = vld [vmem:[%s2759_s3 + $0x28] sm:$0xff] }
  0x50   :  { %v1845_v1 = vsub.s32 0, %v1718_v11  ;;  %v216_v5 = vadd.f32 %v215_v37, %v212_v33  ;;  %v223_v47 = vmul.f32 %v1707_v6, %v222_v40  ;;  %v236_v48 = vrot.slane %v1781_v46, %v1748_v25  ;;  %v345_v11 = vld [vmem:[%s2760_s4 + $0x18] sm:$0xff]  ;;  %v332_v35 = vld [vmem:[%s2759_s3 + $0x30] sm:$0xff] }
  0x51   :  { %v1850_v45 = vadd.f32 %v205_v30, %v202_v36  ;;  %v1863_v49 = vadd.f32 %v118_v39, %v116_v58  ;;  %v1865_v50 = vadd.f32 %v154_v60, %v152_v28  ;;  %v243_v51 = vrot.slane %v229_v43, %v1748_v25  ;;  %v330_v28 = vld [vmem:[%s2759_s3 + $0x20] sm:$0xff]  ;;  %v333_v36 = vld [vmem:[%s2759_s3 + $0x38] sm:$0xff] }
  0x52   :  { %v1869_v6 = vmul.f32 %v342_v41, %v1840_v42  ;;  %v220_v52 = vadd.f32 %v219_v38, %v216_v5  ;;  %v244_v46 = vcombine.high %v236_v48, %v236_v48  ;;  %v252_v53 = vrot.slane %v236_v48, %v1748_v25  ;;  %v349_v37 = vld [vmem:[%s2760_s4 + $0x38] sm:$0xff]  ;;  %v1476_v5 = vld [vmem:[%s2760_s4 + $0x48] sm:$0xff] }
  0x53   :  { %v1876_v55 = vmul.f32 %v343_v4, %v1840_v42  ;;  %v245_v39 = vcombine.high %v243_v51, %v243_v51  ;;  %v259_v56 = vrot.slane %v243_v51, %v1748_v25  ;;  %v1883_v58 = vmul.f32 %v344_v44, %v1840_v42  ;;  %v1475_v4 = vld [vmem:[%s2760_s4 + $0x40] sm:$0xff] }
  0x54   :  { %v1886_v59 = vmul.f32 %v345_v11, %v1840_v42  ;;  %v1888_v60 = vadd.f32 %v223_v47, %v220_v52  ;;  %v266_v61 = vrot.slane %v244_v46, %v1748_v25  ;;  %v274_v62 = vcombine.high %v252_v53, %v252_v53  ;;  %v1477_v47 = vld [vmem:[%s2760_s4 + $0x50] sm:$0xff]  ;;  %v1478_v52 = vld [vmem:[%s2760_s4 + $0x58] sm:$0xff]  ;;  %v1479_v46 = vld [vmem:[%s2760_s4 + $0x60] sm:$0xff] }
  0x55   :  { %v281_v63 = vrot.slane %v252_v53, %v1845_v1  ;;  %v273_v2 = vrot.slane %v245_v39, %v1748_v25  ;;  %v275_v3 = vcombine.high %v259_v56, %v259_v56  ;;  %v297_v7 = vrot.slane %v259_v56, %v1845_v1 }
  0x56   :  { %v1898_v8 = vmul.f32 %v346_v54, %v1840_v42  ;;  %v276_v9 = vcombine.high %v266_v61, %v266_v61  ;;  %v285_v10 = vrot.slane %v266_v61, %v1845_v1  ;;  %v289_v12 = vrot.slane %v274_v62, %v1845_v1  ;;  %v1481_v61 = vld [vmem:[%s2760_s4 + $0x70] sm:$0xff]  ;;  %v1482_v62 = vld [vmem:[%s2760_s4 + $0x78] sm:$0xff] }
  0x57   :  { %v1903_v13 = vmul.f32 %v347_v57, %v1840_v42  ;;  %v277_v14 = vcombine.high %v273_v2, %v273_v2  ;;  %v301_v15 = vrot.slane %v273_v2, %v1845_v1  ;;  %v305_v16 = vrot.slane %v275_v3, %v1845_v1  ;;  %v1480_v57 = vld [vmem:[%s2760_s4 + $0x68] sm:$0xff]  ;;  %s1498_s4 = sld [smem:[#allocation7 + $0x101]] }
  0x58   :  { %v1917_v21 = vmul.f32 %v348_v0, %v1840_v42  ;;  %v293_v22 = vrot.slane %v276_v9, %v1845_v1  ;;  %v1921_v23 = vmul.f32 %v281_v63, %v1840_v42  ;;  %v1924_v24 = vmul.f32 %v285_v10, %v1840_v42 }
  0x59   :  { %v1927_v26 = vmul.f32 %v289_v12, %v1840_v42  ;;  %v309_v30 = vrot.slane %v277_v14, %v1845_v1  ;;  %v1940_v31 = vmul.f32 %v297_v7, %v1840_v42  ;;  %v1943_v33 = vmul.f32 %v301_v15, %v1840_v42 }
  0x5a   :  { %v1946_v34 = vmul.f32 %v305_v16, %v1840_v42  ;;  %v1958_v38 = vmul.f32 %v293_v22, %v1840_v42  ;;  %v1960_v40 = vmul.f32 %v326_v17, %v281_v63  ;;  %v1962_v41 = vmul.f32 %v327_v18, %v285_v10 }
  0x5b   :  { %v1964_v43 = vmul.f32 %v328_v20, %v289_v12  ;;  %v1976_v48 = vmul.f32 %v309_v30, %v1840_v42  ;;  %v1978_v44 = vmul.f32 %v329_v27, %v293_v22  ;;  %v1980_v11 = vmul.f32 %v330_v28, %v297_v7 }
  0x5c   :  { %v1982_v51 = vmul.f32 %v331_v29, %v301_v15  ;;  %v1990_v53 = vmul.f32 %v332_v35, %v305_v16  ;;  %v1992_v54 = vmul.f32 %v333_v36, %v309_v30  ;;  %v359_v39 = vcombine.high %v1863_v49, %v1863_v49 }
  0x5d   :  { %v366_v56 = vrot.slane %v1863_v49, %v1748_v25  ;;  %v2008_v63 = vmul.f32 %v349_v37, %v1840_v42  ;;  %v498_v0 = vmul.f32 %v1475_v4, %v1865_v50  ;;  %v499_v2 = vmul.f32 %v1476_v5, %v1865_v50  ;;  %v1467_v4 = vld [vmem:[%s2759_s3 + $0x40] sm:$0xff] }
  0x5e   :  { %v500_v49 = vmul.f32 %v1477_v47, %v1865_v50  ;;  %v373_v3 = vrot.slane %v359_v39, %v1748_v25  ;;  %v501_v10 = vmul.f32 %v1478_v52, %v1865_v50  ;;  %v2017_v12 = vmul.f32 %v1479_v46, %v1865_v50  ;;  %v1468_v39 = vld [vmem:[%s2759_s3 + $0x48] sm:$0xff] }
  0x5f   :  { %v374_v7 = vcombine.high %v366_v56, %v366_v56  ;;  %v382_v9 = vrot.slane %v366_v56, %v1748_v25  ;;  %v2020_v14 = vmul.f32 %v1480_v57, %v1865_v50  ;;  %v2023_v42 = vmul.f32 %v1481_v61, %v1865_v50 }
  0x60   :  { %v2026_v15 = vmul.f32 %v1482_v62, %v1865_v50  ;;  %v375_v16 = vcombine.high %v373_v3, %v373_v3  ;;  %v389_v17 = vrot.slane %v373_v3, %v1748_v25  ;;  %v2032_v27 = vadd.f32 %v498_v0, %v1869_v6 }
  0x61   :  { %v396_v18 = vrot.slane %v374_v7, %v1748_v25  ;;  %v404_v20 = vcombine.high %v382_v9, %v382_v9  ;;  %v411_v22 = vrot.slane %v382_v9, %v1845_v1  ;;  %v2035_v28 = vadd.f32 %v499_v2, %v1876_v55  ;;  %v1470_v7 = vld [vmem:[%s2759_s3 + $0x58] sm:$0xff]  ;;  %v1471_v9 = vld [vmem:[%s2759_s3 + $0x60] sm:$0xff] }
  0x62   :  { %v2038_v29 = vadd.f32 %v500_v49, %v1883_v58  ;;  %v403_v30 = vrot.slane %v375_v16, %v1748_v25  ;;  %v405_v35 = vcombine.high %v389_v17, %v389_v17  ;;  %v427_v6 = vrot.slane %v389_v17, %v1845_v1 }
  0x63   :  { %v406_v36 = vcombine.high %v396_v18, %v396_v18  ;;  %v415_v37 = vrot.slane %v396_v18, %v1845_v1  ;;  %v419_v5 = vrot.slane %v404_v20, %v1845_v1  ;;  %v448_v55 = vmul.f32 %v411_v22, %v1865_v50  ;;  %v1473_v18 = vld [vmem:[%s2759_s3 + $0x70] sm:$0xff]  ;;  %v1474_v20 = vld [vmem:[%s2759_s3 + $0x78] sm:$0xff] }
  0x64   :  { %v2049_v47 = vadd.f32 %v501_v10, %v1886_v59  ;;  %v407_v58 = vcombine.high %v403_v30, %v403_v30  ;;  %v431_v52 = vrot.slane %v403_v30, %v1845_v1  ;;  %v435_v46 = vrot.slane %v405_v35, %v1845_v1  ;;  %v1469_v59 = vld [vmem:[%s2759_s3 + $0x50] sm:$0xff]  ;;  %v1472_v10 = vld [vmem:[%s2759_s3 + $0x68] sm:$0xff]  ;;  %s2194_s3 = sld [smem:[#allocation4 + $0x4]] }
  0x65   :  { %v423_v25 = vrot.slane %v406_v36, %v1845_v1  ;;  %v449_v56 = vmul.f32 %v415_v37, %v1865_v50  ;;  %v450_v57 = vmul.f32 %v419_v5, %v1865_v50  ;;  %v452_v61 = vmul.f32 %v427_v6, %v1865_v50 }
  0x66   :  { %v473_v62 = vmul.f32 %v1467_v4, %v411_v22  ;;  %v439_v0 = vrot.slane %v407_v58, %v1845_v1  ;;  %v453_v49 = vmul.f32 %v431_v52, %v1865_v50  ;;  %v454_v3 = vmul.f32 %v435_v46, %v1865_v50 }
  0x67   :  { %v451_v2 = vmul.f32 %v423_v25, %v1865_v50  ;;  %v456_v1 = vadd.f32 %v448_v55, %v1921_v23  ;;  %v457_v16 = vadd.f32 %v449_v56, %v1924_v24  ;;  %v458_v17 = vadd.f32 %v450_v57, %v1927_v26 }
  0x68   :  { %v474_v22 = vmul.f32 %v1468_v39, %v415_v37  ;;  %v455_v30 = vmul.f32 %v439_v0, %v1865_v50  ;;  %v460_v23 = vadd.f32 %v452_v61, %v1940_v31  ;;  %v461_v24 = vadd.f32 %v453_v49, %v1943_v33 }
  0x69   :  { %v459_v35 = vadd.f32 %v451_v2, %v1958_v38  ;;  %v475_v26 = vmul.f32 %v1469_v59, %v419_v5  ;;  %v476_v36 = vmul.f32 %v1470_v7, %v423_v25  ;;  %v477_v4 = vmul.f32 %v1471_v9, %v427_v6 }
  0x6a   :  { %v478_v55 = vmul.f32 %v1472_v10, %v431_v52  ;;  %v462_v37 = vadd.f32 %v454_v3, %v1946_v34  ;;  %v463_v58 = vadd.f32 %v455_v30, %v1976_v48  ;;  %v479_v50 = vmul.f32 %v1473_v18, %v435_v46 }
  0x6b   :  { %v480_v39 = vmul.f32 %v1474_v20, %v439_v0  ;;  %v481_v38 = vadd.f32 %v473_v62, %v1960_v40  ;;  %v482_v31 = vadd.f32 %v474_v22, %v1962_v41  ;;  %v483_v33 = vadd.f32 %v475_v26, %v1964_v43 }
  0x6c   :  { %v484_v56 = vadd.f32 %v476_v36, %v1978_v44  ;;  %v485_v5 = vadd.f32 %v477_v4, %v1980_v11  ;;  %v486_v6 = vadd.f32 %v478_v55, %v1982_v51  ;;  %v487_v25 = vadd.f32 %v479_v50, %v1990_v53 }
  0x6d   :  { %v488_v34 = vadd.f32 %v480_v39, %v1992_v54  ;;  %v510_v40 = vadd.f32 %v2017_v12, %v1898_v8  ;;  %v511_v41 = vadd.f32 %v2020_v14, %v1903_v13  ;;  %v512_v43 = vadd.f32 %v2023_v42, %v1917_v21 }
  0x6e   :  { %v515_v48 = vstv %s2063_s1  ;;  %v513_v44 = vadd.f32 %v2026_v15, %v2008_v63  ;;  %v525_v59 = vstv %s2087_s17  ;;  %v543_v8 = vstv %s2093_s22 }
  0x6f   :  { %v516_v11 = vmul.f32 %v515_v48, %v456_v1  ;;  %v517_v51 = vmul.f32 %v515_v48, %v457_v16  ;;  %v518_v53 = vmul.f32 %v515_v48, %v458_v17  ;;  %v519_v52 = vmul.f32 %v515_v48, %v459_v35 }
  0x70   :  { %v520_v46 = vmul.f32 %v515_v48, %v460_v23  ;;  %v521_v54 = vmul.f32 %v515_v48, %v461_v24  ;;  %v522_v57 = vmul.f32 %v515_v48, %v462_v37  ;;  %v523_v61 = vmul.f32 %v515_v48, %v463_v58 }
  0x71   :  { %v561_v12 = vstv %s2095_s23  ;;  %v526_v62 = vmul.f32 %v525_v59, %v481_v38  ;;  %v527_v13 = vmul.f32 %v525_v59, %v482_v31  ;;  %v528_v14 = vmul.f32 %v525_v59, %v483_v33 }
  0x72   :  { %v529_v0 = vmul.f32 %v525_v59, %v484_v56  ;;  %v530_v21 = vmul.f32 %v525_v59, %v485_v5  ;;  %v531_v42 = vmul.f32 %v525_v59, %v486_v6  ;;  %v532_v2 = vmul.f32 %v525_v59, %v487_v25 }
  0x73   :  { %v533_v49 = vmul.f32 %v525_v59, %v488_v34  ;;  %v534_v63 = vadd.f32 %v526_v62, %v516_v11  ;;  %v535_v15 = vadd.f32 %v527_v13, %v517_v51  ;;  %v536_v3 = vadd.f32 %v528_v14, %v518_v53 }
  0x74   :  { %v537_v7 = vadd.f32 %v529_v0, %v519_v52  ;;  %v538_v9 = vadd.f32 %v530_v21, %v520_v46  ;;  %v539_v10 = vadd.f32 %v531_v42, %v521_v54  ;;  %v540_v1 = vadd.f32 %v532_v2, %v522_v57 }
  0x75   :  { %v541_v16 = vadd.f32 %v533_v49, %v523_v61  ;;  %v544_v17 = vmul.f32 %v543_v8, %v2032_v27  ;;  %v545_v18 = vmul.f32 %v543_v8, %v2035_v28  ;;  %v546_v20 = vmul.f32 %v543_v8, %v2038_v29 }
  0x76   :  { %v547_v22 = vmul.f32 %v543_v8, %v2049_v47  ;;  %v548_v30 = vmul.f32 %v543_v8, %v510_v40  ;;  %v549_v35 = vmul.f32 %v543_v8, %v511_v41  ;;  %v550_v23 = vmul.f32 %v543_v8, %v512_v43 }
  0x77   :  { %v551_v24 = vmul.f32 %v543_v8, %v513_v44  ;;  %v552_v26 = vadd.f32 %v544_v17, %v534_v63  ;;  %v553_v36 = vadd.f32 %v545_v18, %v535_v15  ;;  %v554_v4 = vadd.f32 %v546_v20, %v536_v3 }
  0x78   :  { %v555_v55 = vadd.f32 %v547_v22, %v537_v7  ;;  %v556_v37 = vadd.f32 %v548_v30, %v538_v9  ;;  %v557_v58 = vadd.f32 %v549_v35, %v539_v10  ;;  %v558_v50 = vadd.f32 %v550_v23, %v540_v1 }
  0x79   :  { %v559_v39 = vadd.f32 %v551_v24, %v541_v16  ;;  %v2123_v38 = vadd.f32 %v561_v12, %v552_v26  ;;  %v2125_v27 = vadd.f32 %v561_v12, %v553_v36  ;;  %v2127_v28 = vadd.f32 %v561_v12, %v554_v4 }
  0x7a   :  { %v2129_v29 = vadd.f32 %v561_v12, %v555_v55  ;;  %v2131_v47 = vadd.f32 %v561_v12, %v556_v37  ;;  %v2133_v31 = vadd.f32 %v561_v12, %v557_v58  ;;  %v2135_v33 = vadd.f32 %v561_v12, %v558_v50 }
  0x7b   :  { %v2137_v56 = vadd.f32 %v561_v12, %v559_v39  ;;  %v570_v5 = vrot.slane %v2123_v38, 4  ;;  %v576_v6 = vrot.slane %v2125_v27, 4  ;;  %v582_v25 = vrot.slane %v2127_v28, 4 }
  0x7c   :  { %v588_v34 = vrot.slane %v2129_v29, 4  ;;  %v594_v40 = vrot.slane %v2131_v47, 4  ;;  %v600_v41 = vrot.slane %v2133_v31, 4  ;;  %v606_v43 = vrot.slane %v2135_v33, 4 }
  0x7d   :  { %v612_v48 = vrot.slane %v2137_v56, 4  ;;  %v571_v44 = vmax.f32 %v2123_v38, %v570_v5  ;;  %v577_v11 = vmax.f32 %v2125_v27, %v576_v6  ;;  %v583_v51 = vmax.f32 %v2127_v28, %v582_v25 }
  0x7e   :  { %v589_v53 = vmax.f32 %v2129_v29, %v588_v34  ;;  %v595_v52 = vmax.f32 %v2131_v47, %v594_v40  ;;  %v601_v46 = vmax.f32 %v2133_v31, %v600_v41  ;;  %v607_v54 = vmax.f32 %v2135_v33, %v606_v43 }
  0x7f   :  { %v613_v57 = vmax.f32 %v2137_v56, %v612_v48  ;;  %v572_v61 = vrot.slane %v571_v44, 2  ;;  %v578_v59 = vrot.slane %v577_v11, 2  ;;  %v584_v8 = vrot.slane %v583_v51, 2 }
  0x80   :  { %v590_v12 = vrot.slane %v589_v53, 2  ;;  %v596_v62 = vrot.slane %v595_v52, 2  ;;  %v602_v13 = vrot.slane %v601_v46, 2  ;;  %v608_v14 = vrot.slane %v607_v54, 2 }
  0x81   :  { %v614_v0 = vrot.slane %v613_v57, 2  ;;  %v573_v21 = vmax.f32 %v571_v44, %v572_v61  ;;  %v579_v42 = vmax.f32 %v577_v11, %v578_v59  ;;  %v585_v2 = vmax.f32 %v583_v51, %v584_v8 }
  0x82   :  { %v591_v49 = vmax.f32 %v589_v53, %v590_v12  ;;  %v597_v63 = vmax.f32 %v595_v52, %v596_v62  ;;  %v603_v15 = vmax.f32 %v601_v46, %v602_v13  ;;  %v609_v3 = vmax.f32 %v607_v54, %v608_v14 }
  0x83   :  { %v615_v7 = vmax.f32 %v613_v57, %v614_v0  ;;  %v574_v9 = vrot.slane %v573_v21, 1  ;;  %v580_v10 = vrot.slane %v579_v42, 1  ;;  %v586_v1 = vrot.slane %v585_v2, 1 }
  0x84   :  { %v592_v16 = vrot.slane %v591_v49, 1  ;;  %v598_v17 = vrot.slane %v597_v63, 1  ;;  %v604_v18 = vrot.slane %v603_v15, 1  ;;  %v610_v20 = vrot.slane %v609_v3, 1 }
  0x85   :  { %v616_v22 = vrot.slane %v615_v7, 1  ;;  %v575_v30 = vmax.f32 %v573_v21, %v574_v9  ;;  %v581_v35 = vmax.f32 %v579_v42, %v580_v10  ;;  %v587_v23 = vmax.f32 %v585_v2, %v586_v1 }
  0x86   :  { %v593_v24 = vmax.f32 %v591_v49, %v592_v16  ;;  %v599_v26 = vmax.f32 %v597_v63, %v598_v17  ;;  %v605_v36 = vmax.f32 %v603_v15, %v604_v18  ;;  %v611_v4 = vmax.f32 %v609_v3, %v610_v20 }
  0x87   :  { %v617_v55 = vmax.f32 %v615_v7, %v616_v22  ;;  %v618_v37 = vsub.f32 %v2123_v38, %v575_v30  ;;  %v619_v58 = vsub.f32 %v2125_v27, %v581_v35  ;;  %v620_v50 = vsub.f32 %v2127_v28, %v587_v23 }
  0x88   :  { %v621_v39 = vsub.f32 %v2129_v29, %v593_v24  ;;  %v622_v5 = vsub.f32 %v2131_v47, %v599_v26  ;;  %v623_v6 = vsub.f32 %v2133_v31, %v605_v36  ;;  %v624_v25 = vsub.f32 %v2135_v33, %v611_v4 }
  0x89   :  { %v626_v34 = vmul.f32 1.442695, %v618_v37  ;;  %v628_v40 = vmul.f32 1.442695, %v619_v58  ;;  %v630_v41 = vmul.f32 1.442695, %v620_v50  ;;  %v625_v43 = vsub.f32 %v2137_v56, %v617_v55 }
  0x8a   :  { %v632_v48 = vmul.f32 1.442695, %v621_v39  ;;  %v634_v38 = vmul.f32 1.442695, %v622_v5  ;;  %v636_v27 = vmul.f32 1.442695, %v623_v6 }
  0x8b   :  { %1529 = vpow2.f32 %v626_v34  ;;  %v638_v28 = vmul.f32 1.442695, %v624_v25  ;;  %v640_v29 = vmul.f32 1.442695, %v625_v43 }
  0x8c   :  { %1531 = vpow2.f32 %v628_v40 }
  0x8d   :  { %1533 = vpow2.f32 %v630_v41 }
  0x8e   :  { %1535 = vpow2.f32 %v632_v48 }
  0x8f   :  { %1537 = vpow2.f32 %v634_v38  ;;  %v172_v38 = vstv %s2194_s3 }
  0x90   :  { %1539 = vpow2.f32 %v636_v27  ;;  %v190_v27 = vstv %s2197_s24 }
  0x91   :  { %1541 = vpow2.f32 %v638_v28  ;;  %v208_v28 = vstv %s2199_s25 }
  0x92   :  { %1543 = vpow2.f32 %v640_v29  ;;  %v226_v29 = vstv %s2201_s26 }
  0x95   :  { %v2163_v47 = vpop.eup %1529 }
  0x96   :  { %v2165_v31 = vpop.eup %1531  ;;  %v642_v33 = vrot.slane %v2163_v47, 4 }
  0x97   :  { %v2168_v56 = vpop.eup %1533  ;;  %v648_v44 = vrot.slane %v2165_v31, 4 }
  0x98   :  { %v2171_v11 = vpop.eup %1535  ;;  %v643_v51 = vadd.f32 %v2163_v47, %v642_v33  ;;  %v654_v53 = vrot.slane %v2168_v56, 4  ;;  %v173_v33 = vadd.f32 %v172_v38, %v1818_v19  ;;  %v2239_v19 = vstv %s2207_s30 }
  0x99   :  { %v2175_v52 = vpop.eup %1537  ;;  %v649_v46 = vadd.f32 %v2165_v31, %v648_v44  ;;  %v660_v54 = vrot.slane %v2171_v11, 4  ;;  %v2221_v44 = vadd.f32 %v190_v27, %v1827_v32 }
  0x9a   :  { %v2179_v57 = vpop.eup %1539  ;;  %v644_v61 = vrot.slane %v643_v51, 2  ;;  %v655_v59 = vadd.f32 %v2168_v56, %v654_v53  ;;  %v666_v8 = vrot.slane %v2175_v52, 4 }
  0x9b   :  { %v2183_v12 = vpop.eup %1541  ;;  %v650_v62 = vrot.slane %v649_v46, 2  ;;  %v661_v13 = vadd.f32 %v2171_v11, %v660_v54  ;;  %v672_v14 = vrot.slane %v2179_v57, 4  ;;  %v762_v54 = vld [vmem:[%s2761_s5] sm:$0xff] }
  0x9c   :  { %v2187_v0 = vpop.eup %1543  ;;  %v645_v21 = vadd.f32 %v644_v61, %v643_v51  ;;  %v656_v42 = vrot.slane %v655_v59, 2  ;;  %v667_v2 = vadd.f32 %v2175_v52, %v666_v8  ;;  %v678_v49 = vrot.slane %v2183_v12, 4 }
  0x9d   :  { %v651_v63 = vadd.f32 %v650_v62, %v649_v46  ;;  %v662_v15 = vrot.slane %v661_v13, 2  ;;  %v673_v3 = vadd.f32 %v2179_v57, %v672_v14  ;;  %v684_v7 = vrot.slane %v2187_v0, 4 }
  0x9e   :  { %v646_v9 = vrot.slane %v645_v21, 1  ;;  %v657_v10 = vadd.f32 %v656_v42, %v655_v59  ;;  %v668_v1 = vrot.slane %v667_v2, 2  ;;  %v679_v16 = vadd.f32 %v2183_v12, %v678_v49  ;;  %v764_v42 = vld [vmem:[%s2761_s5 + $0x10] sm:$0xff] }
  0x9f   :  { %v652_v17 = vrot.slane %v651_v63, 1  ;;  %v663_v18 = vadd.f32 %v662_v15, %v661_v13  ;;  %v674_v20 = vrot.slane %v673_v3, 2  ;;  %v685_v22 = vadd.f32 %v2187_v0, %v684_v7 }
  0xa0   :  { %v647_v30 = vadd.f32 %v646_v9, %v645_v21  ;;  %v658_v35 = vrot.slane %v657_v10, 1  ;;  %v669_v23 = vadd.f32 %v668_v1, %v667_v2  ;;  %v680_v24 = vrot.slane %v679_v16, 2 }
  0xa1   :  { %v653_v26 = vadd.f32 %v652_v17, %v651_v63  ;;  %v664_v36 = vrot.slane %v663_v18, 1  ;;  %v675_v4 = vadd.f32 %v674_v20, %v673_v3  ;;  %v686_v55 = vrot.slane %v685_v22, 2 }
  0xa2   :  { %v659_v37 = vadd.f32 %v658_v35, %v657_v10  ;;  %v670_v58 = vrot.slane %v669_v23, 1  ;;  %v681_v50 = vadd.f32 %v680_v24, %v679_v16  ;;  %1545 = vrcp.f32 %v647_v30 }
  0xa3   :  { %v665_v39 = vadd.f32 %v664_v36, %v663_v18  ;;  %v676_v5 = vrot.slane %v675_v4, 1  ;;  %v687_v6 = vadd.f32 %v686_v55, %v685_v22  ;;  %1547 = vrcp.f32 %v653_v26 }
  0xa4   :  { %v671_v25 = vadd.f32 %v670_v58, %v669_v23  ;;  %v682_v34 = vrot.slane %v681_v50, 1  ;;  %1549 = vrcp.f32 %v659_v37  ;;  %v2224_v51 = vadd.f32 %v208_v28, %v1850_v45  ;;  %v763_v45 = vld [vmem:[%s2761_s5 + $0x8] sm:$0xff] }
  0xa5   :  { %v677_v40 = vadd.f32 %v676_v5, %v675_v4  ;;  %v688_v41 = vrot.slane %v687_v6, 1  ;;  %1551 = vrcp.f32 %v665_v39  ;;  %v2227_v46 = vadd.f32 %v226_v29, %v1888_v60 }
  0xa6   :  { %v683_v43 = vadd.f32 %v682_v34, %v681_v50  ;;  %1553 = vrcp.f32 %v671_v25  ;;  %v2233_v61 = vstv %s2203_s27  ;;  %v2236_v59 = vstv %s2205_s28 }
  0xa7   :  { %v689_v48 = vadd.f32 %v688_v41, %v687_v6  ;;  %1555 = vrcp.f32 %v677_v40  ;;  %2766 = vst [vmem:[#allocation12_spill] sm:$0xff] %v2227_v46  ;;  %v2248_v60 = vstv %s2209_s29  ;;  %v2251_v62 = vstv %s2211_s9 }
  0xa8   :  { %1557 = vrcp.f32 %v683_v43  ;;  %v2253_v13 = vstv %s1498_s4  ;;  %v2264_v2 = vstv %s1508_s11  ;;  %v2266_v49 = vstv %s1509_s12 }
  0xa9   :  { %1559 = vrcp.f32 %v689_v48 }
  0xac   :  { %v1546_v53 = vpop.eup %1545 }
  0xad   :  { %v1548_v32 = vpop.eup %1547  ;;  %v2242_v8 = vmul.f32 %v1546_v53, %v2163_v47  ;;  %v2262_v47 = vstv %s2213_s10 }
  0xae   :  { %v1550_v14 = vpop.eup %1549  ;;  %v2256_v21 = vmul.f32 %v1548_v32, %v2165_v31  ;;  %v765_v31 = vld [vmem:[%s2761_s5 + $0x18] sm:$0xff] }
  0xaf   :  { %v1552_v63 = vpop.eup %1551  ;;  %v2269_v15 = vmul.f32 %v1550_v14, %v2168_v56  ;;  %v706_v3 = vmul.f32 %v2242_v8, %v173_v33  ;;  %v2276_v7 = vmul.f32 %v762_v54, %v2242_v8  ;;  %v2280_v9 = vmul.f32 %v2242_v8, %v2221_v44 }
  0xb0   :  { %v1554_v10 = vpop.eup %1553  ;;  %v2283_v1 = vmul.f32 %v1552_v63, %v2171_v11  ;;  %v707_v56 = vmul.f32 %v2256_v21, %v173_v33  ;;  %v2287_v16 = vmul.f32 %v763_v45, %v2256_v21  ;;  %v2291_v17 = vmul.f32 %v2256_v21, %v2221_v44 }
  0xb1   :  { %v1556_v18 = vpop.eup %1555  ;;  %v2294_v20 = vmul.f32 %v1554_v10, %v2175_v52  ;;  %v708_v22 = vmul.f32 %v2269_v15, %v173_v33  ;;  %v714_v30 = vrot.slane %v706_v3, 4  ;;  %v2298_v35 = vmul.f32 %v764_v42, %v2269_v15 }
  0xb2   :  { %v1558_v11 = vpop.eup %1557  ;;  %v2301_v23 = vmul.f32 %v1556_v18, %v2179_v57  ;;  %v709_v24 = vmul.f32 %v2283_v1, %v173_v33  ;;  %v720_v26 = vrot.slane %v707_v56, 4  ;;  %v2305_v36 = vmul.f32 %v765_v31, %v2283_v1 }
  0xb3   :  { %v1560_v4 = vpop.eup %1559  ;;  %v2308_v52 = vmul.f32 %v1558_v11, %v2183_v12  ;;  %v710_v55 = vmul.f32 %v2294_v20, %v173_v33  ;;  %v715_v37 = vadd.f32 %v714_v30, %v706_v3  ;;  %v726_v58 = vrot.slane %v708_v22, 4 }
  0xb4   :  { %v2312_v50 = vmul.f32 %v1560_v4, %v2187_v0  ;;  %v711_v57 = vmul.f32 %v2301_v23, %v173_v33  ;;  %v721_v39 = vadd.f32 %v720_v26, %v707_v56  ;;  %v732_v5 = vrot.slane %v709_v24, 4 }
  0xb5   :  { %v712_v6 = vmul.f32 %v2308_v52, %v173_v33  ;;  %v716_v25 = vrot.slane %v715_v37, 2  ;;  %v727_v34 = vadd.f32 %v726_v58, %v708_v22  ;;  %v738_v40 = vrot.slane %v710_v55, 4  ;;  %v768_v58 = vld [vmem:[%s2761_s5 + $0x30] sm:$0xff] }
  0xb6   :  { %v713_v41 = vmul.f32 %v2312_v50, %v173_v33  ;;  %v722_v12 = vrot.slane %v721_v39, 2  ;;  %v733_v43 = vadd.f32 %v732_v5, %v709_v24  ;;  %v744_v48 = vrot.slane %v711_v57, 4  ;;  %v766_v33 = vld [vmem:[%s2761_s5 + $0x20] sm:$0xff]  ;;  %v767_v24 = vld [vmem:[%s2761_s5 + $0x28] sm:$0xff] }
  0xb7   :  { %v717_v38 = vadd.f32 %v716_v25, %v715_v37  ;;  %v728_v27 = vrot.slane %v727_v34, 2  ;;  %v739_v28 = vadd.f32 %v738_v40, %v710_v55  ;;  %v750_v29 = vrot.slane %v712_v6, 4 }
  0xb8   :  { %v723_v0 = vadd.f32 %v722_v12, %v721_v39  ;;  %v734_v53 = vrot.slane %v733_v43, 2  ;;  %v745_v54 = vadd.f32 %v744_v48, %v711_v57  ;;  %v756_v32 = vrot.slane %v713_v41, 4  ;;  %v769_v57 = vld [vmem:[%s2761_s5 + $0x38] sm:$0xff] }
  0xb9   :  { %v718_v45 = vrot.slane %v717_v38, 1  ;;  %v729_v14 = vadd.f32 %v728_v27, %v727_v34  ;;  %v740_v42 = vrot.slane %v739_v28, 2  ;;  %v751_v63 = vadd.f32 %v750_v29, %v712_v6 }
  0xba   :  { %v724_v3 = vrot.slane %v723_v0, 1  ;;  %v735_v31 = vadd.f32 %v734_v53, %v733_v43  ;;  %v746_v10 = vrot.slane %v745_v54, 2  ;;  %v757_v56 = vadd.f32 %v756_v32, %v713_v41 }
  0xbb   :  { %v2320_v18 = vadd.f32 %v718_v45, %v717_v38  ;;  %v730_v22 = vrot.slane %v729_v14, 1  ;;  %v741_v30 = vadd.f32 %v740_v42, %v739_v28  ;;  %v752_v11 = vrot.slane %v751_v63, 2 }
  0xbc   :  { %v2325_v26 = vadd.f32 %v724_v3, %v723_v0  ;;  %v736_v4 = vrot.slane %v735_v31, 1  ;;  %v747_v55 = vadd.f32 %v746_v10, %v745_v54  ;;  %v758_v37 = vrot.slane %v757_v56, 2 }
  0xbd   :  { %v2333_v39 = vadd.f32 %v730_v22, %v729_v14  ;;  %v742_v5 = vrot.slane %v741_v30, 1  ;;  %v753_v6 = vadd.f32 %v752_v11, %v751_v63  ;;  %v774_v25 = vmul.f32 %v766_v33, %v2294_v20 }
  0xbe   :  { %v737_v34 = vadd.f32 %v736_v4, %v735_v31  ;;  %v748_v40 = vrot.slane %v747_v55, 1  ;;  %v759_v41 = vadd.f32 %v758_v37, %v757_v56  ;;  %v775_v12 = vmul.f32 %v767_v24, %v2301_v23 }
  0xbf   :  { %v743_v43 = vadd.f32 %v742_v5, %v741_v30  ;;  %v754_v48 = vrot.slane %v753_v6, 1  ;;  %v776_v38 = vmul.f32 %v768_v58, %v2308_v52  ;;  %v777_v27 = vmul.f32 %v769_v57, %v2312_v50 }
  0xc0   :  { %v749_v28 = vadd.f32 %v748_v40, %v747_v55  ;;  %v760_v29 = vrot.slane %v759_v41, 1  ;;  %v778_v0 = vrot.slane %v2276_v7, 4  ;;  %v784_v53 = vrot.slane %v2287_v16, 4 }
  0xc1   :  { %v755_v54 = vadd.f32 %v754_v48, %v753_v6  ;;  %v790_v32 = vrot.slane %v2298_v35, 4  ;;  %v796_v45 = vrot.slane %v2305_v36, 4  ;;  %v802_v14 = vrot.slane %v774_v25, 4 }
  0xc2   :  { %v761_v42 = vadd.f32 %v760_v29, %v759_v41  ;;  %v779_v63 = vadd.f32 %v778_v0, %v2276_v7  ;;  %v785_v3 = vadd.f32 %v784_v53, %v2287_v16  ;;  %v808_v31 = vrot.slane %v775_v12, 4 }
  0xc3   :  { %v791_v10 = vadd.f32 %v790_v32, %v2298_v35  ;;  %v797_v56 = vadd.f32 %v796_v45, %v2305_v36  ;;  %v803_v33 = vadd.f32 %v802_v14, %v774_v25  ;;  %v814_v22 = vrot.slane %v776_v38, 4 }
  0xc4   :  { %v780_v30 = vrot.slane %v779_v63, 2  ;;  %v786_v11 = vrot.slane %v785_v3, 2  ;;  %v809_v24 = vadd.f32 %v808_v31, %v775_v12  ;;  %v820_v4 = vrot.slane %v777_v27, 4 }
  0xc5   :  { %v792_v55 = vrot.slane %v791_v10, 2  ;;  %v798_v37 = vrot.slane %v797_v56, 2  ;;  %v804_v58 = vrot.slane %v803_v33, 2  ;;  %v815_v57 = vadd.f32 %v814_v22, %v776_v38 }
  0xc6   :  { %v781_v5 = vadd.f32 %v780_v30, %v779_v63  ;;  %v787_v6 = vadd.f32 %v786_v11, %v785_v3  ;;  %v810_v7 = vrot.slane %v809_v24, 2  ;;  %v821_v40 = vadd.f32 %v820_v4, %v777_v27 }
  0xc7   :  { %v793_v16 = vadd.f32 %v792_v55, %v791_v10  ;;  %v799_v41 = vadd.f32 %v798_v37, %v797_v56  ;;  %v805_v48 = vadd.f32 %v804_v58, %v803_v33  ;;  %v816_v35 = vrot.slane %v815_v57, 2 }
  0xc8   :  { %v782_v29 = vrot.slane %v781_v5, 1  ;;  %v788_v36 = vrot.slane %v787_v6, 1  ;;  %v811_v25 = vadd.f32 %v810_v7, %v809_v24  ;;  %v822_v0 = vrot.slane %v821_v40, 2 }
  0xc9   :  { %v794_v53 = vrot.slane %v793_v16, 1  ;;  %v800_v32 = vrot.slane %v799_v41, 1  ;;  %v806_v12 = vrot.slane %v805_v48, 1  ;;  %v817_v45 = vadd.f32 %v816_v35, %v815_v57 }
  0xca   :  { %v783_v14 = vadd.f32 %v782_v29, %v781_v5  ;;  %v789_v31 = vadd.f32 %v788_v36, %v787_v6  ;;  %v812_v46 = vrot.slane %v811_v25, 1  ;;  %v823_v38 = vadd.f32 %v822_v0, %v821_v40 }
  0xcb   :  { %v795_v63 = vadd.f32 %v794_v53, %v793_v16  ;;  %v801_v3 = vadd.f32 %v800_v32, %v799_v41  ;;  %v807_v22 = vadd.f32 %v806_v12, %v805_v48  ;;  %v818_v27 = vrot.slane %v817_v45, 1 }
  0xcc   :  { %v813_v10 = vadd.f32 %v812_v46, %v811_v25  ;;  %v824_v56 = vrot.slane %v823_v38, 1  ;;  %v828_v33 = vmul.f32 %v2233_v61, %v2320_v18  ;;  %v829_v30 = vmul.f32 %v2233_v61, %v2325_v26 }
  0xcd   :  { %v819_v11 = vadd.f32 %v818_v27, %v817_v45  ;;  %v830_v24 = vmul.f32 %v2233_v61, %v2333_v39  ;;  %v831_v4 = vmul.f32 %v2233_v61, %v737_v34  ;;  %v832_v55 = vmul.f32 %v2233_v61, %v743_v43 }
  0xce   :  { %v825_v37 = vadd.f32 %v824_v56, %v823_v38  ;;  %v833_v58 = vmul.f32 %v2233_v61, %v749_v28  ;;  %v834_v46 = vmul.f32 %v2233_v61, %v755_v54  ;;  %v835_v57 = vmul.f32 %v2233_v61, %v761_v42 }
  0xcf   :  { %v838_v18 = vmul.f32 %v2236_v59, %v783_v14  ;;  %v839_v5 = vmul.f32 %v2236_v59, %v789_v31  ;;  %v840_v26 = vmul.f32 %v2236_v59, %v795_v63  ;;  %v841_v6 = vmul.f32 %v2236_v59, %v801_v3 }
  0xd0   :  { %v842_v39 = vmul.f32 %v2236_v59, %v807_v22  ;;  %v843_v34 = vmul.f32 %v2236_v59, %v813_v10  ;;  %v844_v43 = vmul.f32 %v2236_v59, %v819_v11  ;;  %v845_v28 = vmul.f32 %v2236_v59, %v825_v37 }
  0xd1   :  { %v846_v7 = vadd.f32 %v838_v18, %v828_v33  ;;  %v847_v54 = vadd.f32 %v839_v5, %v829_v30  ;;  %v848_v40 = vadd.f32 %v840_v26, %v830_v24  ;;  %v849_v61 = vadd.f32 %v841_v6, %v831_v4 }
  0xd2   :  { %v850_v42 = vadd.f32 %v842_v39, %v832_v55  ;;  %v851_v16 = vadd.f32 %v843_v34, %v833_v58  ;;  %v852_v41 = vadd.f32 %v844_v43, %v834_v46  ;;  %v853_v48 = vadd.f32 %v845_v28, %v835_v57 }
  0xd3   :  { %v2367_v35 = vadd.f32 %v2239_v19, %v846_v7  ;;  %v2370_v29 = vadd.f32 %v2239_v19, %v847_v54  ;;  %v2373_v36 = vadd.f32 %v2239_v19, %v848_v40  ;;  %v2376_v25 = vadd.f32 %v2239_v19, %v849_v61 }
  0xd4   :  { %v2379_v59 = vadd.f32 %v2239_v19, %v850_v42  ;;  %v2382_v0 = vadd.f32 %v2239_v19, %v851_v16  ;;  %v2385_v53 = vadd.f32 %v2239_v19, %v852_v41  ;;  %v2388_v32 = vadd.f32 %v2239_v19, %v853_v48  ;;  %v1488_v48 = vld [vmem:[%s2761_s5 + $0x40] sm:$0xff] }
  0xd5   :  { %v866_v12 = vmul.f32 %v2269_v15, %v2221_v44  ;;  %v867_v45 = vmul.f32 %v2283_v1, %v2221_v44  ;;  %v868_v14 = vmul.f32 %v2294_v20, %v2221_v44  ;;  %v869_v31 = vmul.f32 %v2301_v23, %v2221_v44 }
  0xd6   :  { %2767 = vst [vmem:[#allocation13_spill] sm:$0xff] %v2385_v53  ;;  %2768 = vst [vmem:[#allocation14_spill] sm:$0xff] %v2388_v32  ;;  %v870_v38 = vmul.f32 %v2308_v52, %v2221_v44  ;;  %v871_v63 = vmul.f32 %v2312_v50, %v2221_v44  ;;  %v872_v19 = vrot.slane %v2280_v9, 4  ;;  %v878_v3 = vrot.slane %v2291_v17, 4 }
  0xd7   :  { %v884_v22 = vrot.slane %v866_v12, 4  ;;  %v890_v27 = vrot.slane %v867_v45, 4  ;;  %v896_v10 = vrot.slane %v868_v14, 4  ;;  %v902_v56 = vrot.slane %v869_v31, 4 }
  0xd8   :  { %v873_v33 = vadd.f32 %v872_v19, %v2280_v9  ;;  %v879_v30 = vadd.f32 %v878_v3, %v2291_v17  ;;  %v908_v11 = vrot.slane %v870_v38, 4  ;;  %v914_v24 = vrot.slane %v871_v63, 4 }
  0xd9   :  { %v885_v4 = vadd.f32 %v884_v22, %v866_v12  ;;  %v891_v55 = vadd.f32 %v890_v27, %v867_v45  ;;  %v897_v37 = vadd.f32 %v896_v10, %v868_v14  ;;  %v903_v58 = vadd.f32 %v902_v56, %v869_v31  ;;  %v1491_v10 = vld [vmem:[%s2761_s5 + $0x58] sm:$0xff]  ;;  %v1492_v56 = vld [vmem:[%s2761_s5 + $0x60] sm:$0xff] }
  0xda   :  { %v874_v46 = vrot.slane %v873_v33, 2  ;;  %v880_v44 = vrot.slane %v879_v30, 2  ;;  %v909_v57 = vadd.f32 %v908_v11, %v870_v38  ;;  %v915_v18 = vadd.f32 %v914_v24, %v871_v63  ;;  %v1489_v38 = vld [vmem:[%s2761_s5 + $0x48] sm:$0xff]  ;;  %v1490_v63 = vld [vmem:[%s2761_s5 + $0x50] sm:$0xff] }
  0xdb   :  { %v886_v5 = vrot.slane %v885_v4, 2  ;;  %v892_v26 = vrot.slane %v891_v55, 2  ;;  %v898_v6 = vrot.slane %v897_v37, 2  ;;  %v904_v39 = vrot.slane %v903_v58, 2 }
  0xdc   :  { %v875_v34 = vadd.f32 %v874_v46, %v873_v33  ;;  %v881_v43 = vadd.f32 %v880_v44, %v879_v30  ;;  %v910_v28 = vrot.slane %v909_v57, 2  ;;  %v916_v9 = vrot.slane %v915_v18, 2  ;;  %v1493_v33 = vld [vmem:[%s2761_s5 + $0x68] sm:$0xff] }
  0xdd   :  { %v887_v7 = vadd.f32 %v886_v5, %v885_v4  ;;  %v893_v17 = vadd.f32 %v892_v26, %v891_v55  ;;  %v899_v54 = vadd.f32 %v898_v6, %v897_v37  ;;  %v905_v40 = vadd.f32 %v904_v39, %v903_v58  ;;  %v1494_v55 = vld [vmem:[%s2761_s5 + $0x70] sm:$0xff]  ;;  %v1495_v37 = vld [vmem:[%s2761_s5 + $0x78] sm:$0xff] }
  0xde   :  { %v876_v61 = vrot.slane %v875_v34, 1  ;;  %v882_v42 = vrot.slane %v881_v43, 1  ;;  %v911_v16 = vadd.f32 %v910_v28, %v909_v57  ;;  %v917_v41 = vadd.f32 %v916_v9, %v915_v18 }
  0xdf   :  { %v888_v12 = vrot.slane %v887_v7, 1  ;;  %v894_v45 = vrot.slane %v893_v17, 1  ;;  %v900_v14 = vrot.slane %v899_v54, 1  ;;  %v906_v31 = vrot.slane %v905_v40, 1 }
  0xe0   :  { %v2415_v19 = vadd.f32 %v876_v61, %v875_v34  ;;  %v2417_v3 = vadd.f32 %v882_v42, %v881_v43  ;;  %v912_v22 = vrot.slane %v911_v16, 1  ;;  %v918_v27 = vrot.slane %v917_v41, 1 }
  0xe1   :  { %v2428_v30 = vadd.f32 %v888_v12, %v887_v7  ;;  %v2430_v11 = vadd.f32 %v894_v45, %v893_v17  ;;  %v2432_v24 = vadd.f32 %v900_v14, %v899_v54  ;;  %v2434_v4 = vadd.f32 %v906_v31, %v905_v40 }
  0xe2   :  { %v2442_v58 = vadd.f32 %v912_v22, %v911_v16  ;;  %v2444_v46 = vadd.f32 %v918_v27, %v917_v41  ;;  %v929_v44 = vmul.f32 %v1488_v48, %v2242_v8  ;;  %v930_v57 = vmul.f32 %v1489_v38, %v2256_v21 }
  0xe3   :  { %v931_v18 = vmul.f32 %v1490_v63, %v2269_v15  ;;  %v932_v5 = vmul.f32 %v1491_v10, %v2283_v1  ;;  %v933_v26 = vmul.f32 %v1492_v56, %v2294_v20  ;;  %v934_v6 = vmul.f32 %v1493_v33, %v2301_v23 }
  0xe4   :  { %v935_v39 = vmul.f32 %v1494_v55, %v2308_v52  ;;  %v936_v34 = vmul.f32 %v1495_v37, %v2312_v50  ;;  %v937_v43 = vrot.slane %v929_v44, 4  ;;  %v943_v28 = vrot.slane %v930_v57, 4 }
  0xe5   :  { %v949_v9 = vrot.slane %v931_v18, 4  ;;  %v955_v7 = vrot.slane %v932_v5, 4  ;;  %v961_v17 = vrot.slane %v933_v26, 4  ;;  %v967_v54 = vrot.slane %v934_v6, 4 }
  0xe6   :  { %v938_v40 = vadd.f32 %v937_v43, %v929_v44  ;;  %v944_v61 = vadd.f32 %v943_v28, %v930_v57  ;;  %v973_v42 = vrot.slane %v935_v39, 4  ;;  %v979_v16 = vrot.slane %v936_v34, 4 }
  0xe7   :  { %v950_v41 = vadd.f32 %v949_v9, %v931_v18  ;;  %v956_v48 = vadd.f32 %v955_v7, %v932_v5  ;;  %v962_v12 = vadd.f32 %v961_v17, %v933_v26  ;;  %v968_v45 = vadd.f32 %v967_v54, %v934_v6 }
  0xe8   :  { %v939_v14 = vrot.slane %v938_v40, 2  ;;  %v945_v31 = vrot.slane %v944_v61, 2  ;;  %v974_v38 = vadd.f32 %v973_v42, %v935_v39  ;;  %v980_v63 = vadd.f32 %v979_v16, %v936_v34 }
  0xe9   :  { %v951_v22 = vrot.slane %v950_v41, 2  ;;  %v957_v27 = vrot.slane %v956_v48, 2  ;;  %v963_v10 = vrot.slane %v962_v12, 2  ;;  %v969_v56 = vrot.slane %v968_v45, 2 }
  0xea   :  { %v940_v33 = vadd.f32 %v939_v14, %v938_v40  ;;  %v946_v55 = vadd.f32 %v945_v31, %v944_v61  ;;  %v975_v37 = vrot.slane %v974_v38, 2  ;;  %v981_v32 = vrot.slane %v980_v63, 2 }
  0xeb   :  { %v952_v44 = vadd.f32 %v951_v22, %v950_v41  ;;  %v958_v57 = vadd.f32 %v957_v27, %v956_v48  ;;  %v964_v43 = vadd.f32 %v963_v10, %v962_v12  ;;  %v970_v28 = vadd.f32 %v969_v56, %v968_v45 }
  0xec   :  { %v941_v18 = vrot.slane %v940_v33, 1  ;;  %v947_v5 = vrot.slane %v946_v55, 1  ;;  %v976_v26 = vadd.f32 %v975_v37, %v974_v38  ;;  %v982_v6 = vadd.f32 %v981_v32, %v980_v63 }
  0xed   :  { %v953_v9 = vrot.slane %v952_v44, 1  ;;  %v959_v7 = vrot.slane %v958_v57, 1  ;;  %v965_v39 = vrot.slane %v964_v43, 1  ;;  %v971_v34 = vrot.slane %v970_v28, 1 }
  0xee   :  { %v942_v17 = vadd.f32 %v941_v18, %v940_v33  ;;  %v948_v54 = vadd.f32 %v947_v5, %v946_v55  ;;  %v977_v42 = vrot.slane %v976_v26, 1  ;;  %v983_v16 = vrot.slane %v982_v6, 1 }
  0xef   :  { %v954_v40 = vadd.f32 %v953_v9, %v952_v44  ;;  %v960_v61 = vadd.f32 %v959_v7, %v958_v57  ;;  %v966_v14 = vadd.f32 %v965_v39, %v964_v43  ;;  %v972_v31 = vadd.f32 %v971_v34, %v970_v28 }
  0xf0   :  { %v978_v41 = vadd.f32 %v977_v42, %v976_v26  ;;  %v984_v48 = vadd.f32 %v983_v16, %v982_v6  ;;  %v987_v12 = vmul.f32 %v2248_v60, %v2415_v19  ;;  %v988_v32 = vmul.f32 %v2248_v60, %v2417_v3 }
  0xf1   :  { %v989_v45 = vmul.f32 %v2248_v60, %v2428_v30  ;;  %v990_v38 = vmul.f32 %v2248_v60, %v2430_v11  ;;  %v991_v63 = vmul.f32 %v2248_v60, %v2432_v24  ;;  %v992_v22 = vmul.f32 %v2248_v60, %v2434_v4 }
  0xf2   :  { %v993_v27 = vmul.f32 %v2248_v60, %v2442_v58  ;;  %v994_v19 = vmul.f32 %v2248_v60, %v2444_v46  ;;  %v997_v3 = vmul.f32 %v2251_v62, %v942_v17  ;;  %v998_v10 = vmul.f32 %v2251_v62, %v948_v54 }
  0xf3   :  { %v999_v30 = vmul.f32 %v2251_v62, %v954_v40  ;;  %v1000_v11 = vmul.f32 %v2251_v62, %v960_v61  ;;  %v1001_v56 = vmul.f32 %v2251_v62, %v966_v14  ;;  %v1002_v24 = vmul.f32 %v2251_v62, %v972_v31 }
  0xf4   :  { %v1003_v4 = vmul.f32 %v2251_v62, %v978_v41  ;;  %v1004_v33 = vmul.f32 %v2251_v62, %v984_v48  ;;  %v1005_v58 = vadd.f32 %v997_v3, %v987_v12  ;;  %v1006_v55 = vadd.f32 %v998_v10, %v988_v32 }
  0xf5   :  { %v1007_v37 = vadd.f32 %v999_v30, %v989_v45  ;;  %v1008_v60 = vadd.f32 %v1000_v11, %v990_v38  ;;  %v1009_v46 = vadd.f32 %v1001_v56, %v991_v63  ;;  %v1010_v44 = vadd.f32 %v1002_v24, %v992_v22 }
  0xf6   :  { %v1011_v57 = vadd.f32 %v1003_v4, %v993_v27  ;;  %v1012_v43 = vadd.f32 %v1004_v33, %v994_v19  ;;  %v2479_v28 = vadd.f32 %v2253_v13, %v1005_v58  ;;  %v2482_v18 = vadd.f32 %v2253_v13, %v1006_v55 }
  0xf7   :  { %v2485_v5 = vadd.f32 %v2253_v13, %v1007_v37  ;;  %v2488_v26 = vadd.f32 %v2253_v13, %v1008_v60  ;;  %v2491_v62 = vadd.f32 %v2253_v13, %v1009_v46  ;;  %v2494_v6 = vadd.f32 %v2253_v13, %v1010_v44 }
  0xf8   :  { %v2497_v9 = vadd.f32 %v2253_v13, %v1011_v57  ;;  %v2500_v7 = vadd.f32 %v2253_v13, %v1012_v43  ;;  %v1023_v39 = vmul.f32 %v2242_v8, %v2224_v51  ;;  %v1024_v34 = vmul.f32 %v2256_v21, %v2224_v51 }
  0xf9   :  { %2769 = vst [vmem:[#allocation15_spill] sm:$0xff] %v2494_v6  ;;  %v1025_v17 = vmul.f32 %v2269_v15, %v2224_v51  ;;  %v1026_v54 = vmul.f32 %v2283_v1, %v2224_v51  ;;  %v1027_v42 = vmul.f32 %v2294_v20, %v2224_v51  ;;  %v1028_v16 = vmul.f32 %v2301_v23, %v2224_v51 }
  0xfa   :  { %2770 = vst [vmem:[#allocation16_spill] sm:$0xff] %v2497_v9  ;;  %2771 = vst [vmem:[#allocation17_spill] sm:$0xff] %v2500_v7  ;;  %v1029_v13 = vmul.f32 %v2308_v52, %v2224_v51  ;;  %v1030_v40 = vmul.f32 %v2312_v50, %v2224_v51  ;;  %v1031_v61 = vrot.slane %v1023_v39, 4  ;;  %v1037_v14 = vrot.slane %v1024_v34, 4 }
  0xfb   :  { %v1043_v31 = vrot.slane %v1025_v17, 4  ;;  %v1049_v41 = vrot.slane %v1026_v54, 4  ;;  %v1055_v48 = vrot.slane %v1027_v42, 4  ;;  %v1061_v12 = vrot.slane %v1028_v16, 4 }
  0xfc   :  { %v1032_v32 = vadd.f32 %v1031_v61, %v1023_v39  ;;  %v1038_v45 = vadd.f32 %v1037_v14, %v1024_v34  ;;  %v1067_v38 = vrot.slane %v1029_v13, 4  ;;  %v1073_v63 = vrot.slane %v1030_v40, 4  ;;  %v1500_v14 = vld [vmem:[%s2761_s5 + $0x88] sm:$0xff] }
  0xfd   :  { %v1044_v22 = vadd.f32 %v1043_v31, %v1025_v17  ;;  %v1050_v27 = vadd.f32 %v1049_v41, %v1026_v54  ;;  %v1056_v19 = vadd.f32 %v1055_v48, %v1027_v42  ;;  %v1062_v3 = vadd.f32 %v1061_v12, %v1028_v16  ;;  %v1499_v42 = vld [vmem:[%s2761_s5 + $0x80] sm:$0xff]  ;;  %v1501_v31 = vld [vmem:[%s2761_s5 + $0x90] sm:$0xff] }
  0xfe   :  { %v1033_v10 = vrot.slane %v1032_v32, 2  ;;  %v1039_v30 = vrot.slane %v1038_v45, 2  ;;  %v1068_v11 = vadd.f32 %v1067_v38, %v1029_v13  ;;  %v1074_v56 = vadd.f32 %v1073_v63, %v1030_v40  ;;  %v1503_v38 = vld [vmem:[%s2761_s5 + $0xa0] sm:$0xff]  ;;  %v1504_v63 = vld [vmem:[%s2761_s5 + $0xa8] sm:$0xff] }
  0xff   :  { %v1045_v24 = vrot.slane %v1044_v22, 2  ;;  %v1051_v51 = vrot.slane %v1050_v27, 2  ;;  %v1057_v4 = vrot.slane %v1056_v19, 2  ;;  %v1063_v33 = vrot.slane %v1062_v3, 2 }
 0x100   :  { %v1034_v58 = vadd.f32 %v1033_v10, %v1032_v32  ;;  %v1040_v55 = vadd.f32 %v1039_v30, %v1038_v45  ;;  %v1069_v37 = vrot.slane %v1068_v11, 2  ;;  %v1075_v60 = vrot.slane %v1074_v56, 2  ;;  %v1502_v45 = vld [vmem:[%s2761_s5 + $0x98] sm:$0xff]  ;;  %v1505_v10 = vld [vmem:[%s2761_s5 + $0xb0] sm:$0xff] }
 0x101   :  { %v1046_v46 = vadd.f32 %v1045_v24, %v1044_v22  ;;  %v1052_v44 = vadd.f32 %v1051_v51, %v1050_v27  ;;  %v1058_v57 = vadd.f32 %v1057_v4, %v1056_v19  ;;  %v1064_v43 = vadd.f32 %v1063_v33, %v1062_v3  ;;  %v1506_v30 = vld [vmem:[%s2761_s5 + $0xb8] sm:$0xff] }
 0x102   :  { %v1035_v39 = vrot.slane %v1034_v58, 1  ;;  %v1041_v34 = vrot.slane %v1040_v55, 1  ;;  %v1070_v17 = vadd.f32 %v1069_v37, %v1068_v11  ;;  %v1076_v54 = vadd.f32 %v1075_v60, %v1074_v56 }
 0x103   :  { %v1047_v16 = vrot.slane %v1046_v46, 1  ;;  %v1053_v13 = vrot.slane %v1052_v44, 1  ;;  %v1059_v40 = vrot.slane %v1058_v57, 1  ;;  %v1065_v61 = vrot.slane %v1064_v43, 1 }
 0x104   :  { %v2527_v41 = vadd.f32 %v1035_v39, %v1034_v58  ;;  %v2529_v48 = vadd.f32 %v1041_v34, %v1040_v55  ;;  %v1071_v12 = vrot.slane %v1070_v17, 1  ;;  %v1077_v32 = vrot.slane %v1076_v54, 1 }
 0x105   :  { %v2540_v22 = vadd.f32 %v1047_v16, %v1046_v46  ;;  %v2542_v27 = vadd.f32 %v1053_v13, %v1052_v44  ;;  %v2544_v19 = vadd.f32 %v1059_v40, %v1058_v57  ;;  %v2546_v3 = vadd.f32 %v1065_v61, %v1064_v43 }
 0x106   :  { %v2554_v11 = vadd.f32 %v1071_v12, %v1070_v17  ;;  %v2556_v56 = vadd.f32 %v1077_v32, %v1076_v54  ;;  %v1088_v24 = vmul.f32 %v1499_v42, %v2242_v8  ;;  %v1089_v51 = vmul.f32 %v1500_v14, %v2256_v21 }
 0x107   :  { %v1090_v4 = vmul.f32 %v1501_v31, %v2269_v15  ;;  %v1091_v33 = vmul.f32 %v1502_v45, %v2283_v1  ;;  %v1092_v58 = vmul.f32 %v1503_v38, %v2294_v20  ;;  %v1093_v55 = vmul.f32 %v1504_v63, %v2301_v23 }
 0x108   :  { %v1094_v37 = vmul.f32 %v1505_v10, %v2308_v52  ;;  %v1095_v60 = vmul.f32 %v1506_v30, %v2312_v50  ;;  %v1096_v46 = vrot.slane %v1088_v24, 4  ;;  %v1102_v44 = vrot.slane %v1089_v51, 4 }
 0x109   :  { %v1108_v57 = vrot.slane %v1090_v4, 4  ;;  %v1114_v43 = vrot.slane %v1091_v33, 4  ;;  %v1120_v39 = vrot.slane %v1092_v58, 4  ;;  %v1126_v34 = vrot.slane %v1093_v55, 4 }
 0x10a   :  { %v1097_v17 = vadd.f32 %v1096_v46, %v1088_v24  ;;  %v1103_v54 = vadd.f32 %v1102_v44, %v1089_v51  ;;  %v1132_v42 = vrot.slane %v1094_v37, 4  ;;  %v1138_v16 = vrot.slane %v1095_v60, 4 }
 0x10b   :  { %v1109_v13 = vadd.f32 %v1108_v57, %v1090_v4  ;;  %v1115_v40 = vadd.f32 %v1114_v43, %v1091_v33  ;;  %v1121_v61 = vadd.f32 %v1120_v39, %v1092_v58  ;;  %v1127_v14 = vadd.f32 %v1126_v34, %v1093_v55 }
 0x10c   :  { %v1098_v31 = vrot.slane %v1097_v17, 2  ;;  %v1104_v12 = vrot.slane %v1103_v54, 2  ;;  %v1133_v32 = vadd.f32 %v1132_v42, %v1094_v37  ;;  %v1139_v45 = vadd.f32 %v1138_v16, %v1095_v60 }
 0x10d   :  { %v1110_v38 = vrot.slane %v1109_v13, 2  ;;  %v1116_v63 = vrot.slane %v1115_v40, 2  ;;  %v1122_v10 = vrot.slane %v1121_v61, 2  ;;  %v1128_v30 = vrot.slane %v1127_v14, 2 }
 0x10e   :  { %v1099_v7 = vadd.f32 %v1098_v31, %v1097_v17  ;;  %v1105_v9 = vadd.f32 %v1104_v12, %v1103_v54  ;;  %v1134_v6 = vrot.slane %v1133_v32, 2  ;;  %v1140_v53 = vrot.slane %v1139_v45, 2 }
 0x10f   :  { %v1111_v24 = vadd.f32 %v1110_v38, %v1109_v13  ;;  %v1117_v51 = vadd.f32 %v1116_v63, %v1115_v40  ;;  %v1123_v46 = vadd.f32 %v1122_v10, %v1121_v61  ;;  %v1129_v44 = vadd.f32 %v1128_v30, %v1127_v14 }
 0x110   :  { %v1100_v4 = vrot.slane %v1099_v7, 1  ;;  %v1106_v33 = vrot.slane %v1105_v9, 1  ;;  %v1135_v58 = vadd.f32 %v1134_v6, %v1133_v32  ;;  %v1141_v55 = vadd.f32 %v1140_v53, %v1139_v45 }
 0x111   :  { %v1112_v57 = vrot.slane %v1111_v24, 1  ;;  %v1118_v43 = vrot.slane %v1117_v51, 1  ;;  %v1124_v37 = vrot.slane %v1123_v46, 1  ;;  %v1130_v60 = vrot.slane %v1129_v44, 1 }
 0x112   :  { %v1101_v39 = vadd.f32 %v1100_v4, %v1099_v7  ;;  %v1107_v34 = vadd.f32 %v1106_v33, %v1105_v9  ;;  %v1136_v42 = vrot.slane %v1135_v58, 1  ;;  %v1142_v16 = vrot.slane %v1141_v55, 1 }
 0x113   :  { %v1113_v17 = vadd.f32 %v1112_v57, %v1111_v24  ;;  %v1119_v54 = vadd.f32 %v1118_v43, %v1117_v51  ;;  %v1125_v31 = vadd.f32 %v1124_v37, %v1123_v46  ;;  %v1131_v12 = vadd.f32 %v1130_v60, %v1129_v44  ;;  %v2772_v37 = vld [vmem:[#allocation12_spill] sm:$0xff] }
 0x114   :  { %v1137_v13 = vadd.f32 %v1136_v42, %v1135_v58  ;;  %v1143_v40 = vadd.f32 %v1142_v16, %v1141_v55  ;;  %v1146_v61 = vmul.f32 %v2262_v47, %v2527_v41  ;;  %v1147_v53 = vmul.f32 %v2262_v47, %v2529_v48 }
 0x115   :  { %v1148_v6 = vmul.f32 %v2262_v47, %v2540_v22  ;;  %v1149_v9 = vmul.f32 %v2262_v47, %v2542_v27  ;;  %v1150_v7 = vmul.f32 %v2262_v47, %v2544_v19  ;;  %v1151_v14 = vmul.f32 %v2262_v47, %v2546_v3 }
 0x116   :  { %v1152_v32 = vmul.f32 %v2262_v47, %v2554_v11  ;;  %v1153_v41 = vmul.f32 %v2262_v47, %v2556_v56  ;;  %v1156_v48 = vmul.f32 %v2264_v2, %v1101_v39  ;;  %v1157_v45 = vmul.f32 %v2264_v2, %v1107_v34 }
 0x117   :  { %v1158_v22 = vmul.f32 %v2264_v2, %v1113_v17  ;;  %v1159_v27 = vmul.f32 %v2264_v2, %v1119_v54  ;;  %v1160_v38 = vmul.f32 %v2264_v2, %v1125_v31  ;;  %v1161_v19 = vmul.f32 %v2264_v2, %v1131_v12 }
 0x118   :  { %v1162_v3 = vmul.f32 %v2264_v2, %v1137_v13  ;;  %v1163_v63 = vmul.f32 %v2264_v2, %v1143_v40  ;;  %v1164_v11 = vadd.f32 %v1156_v48, %v1146_v61  ;;  %v1165_v10 = vadd.f32 %v1157_v45, %v1147_v53 }
 0x119   :  { %v1166_v30 = vadd.f32 %v1158_v22, %v1148_v6  ;;  %v1167_v47 = vadd.f32 %v1159_v27, %v1149_v9  ;;  %v1168_v56 = vadd.f32 %v1160_v38, %v1150_v7  ;;  %v1169_v24 = vadd.f32 %v1161_v19, %v1151_v14 }
 0x11a   :  { %v1170_v51 = vadd.f32 %v1162_v3, %v1152_v32  ;;  %v1171_v46 = vadd.f32 %v1163_v63, %v1153_v41  ;;  %v2591_v44 = vadd.f32 %v2266_v49, %v1164_v11  ;;  %v2594_v4 = vadd.f32 %v2266_v49, %v1165_v10 }
 0x11b   :  { %v2597_v33 = vadd.f32 %v2266_v49, %v1166_v30  ;;  %v2600_v58 = vadd.f32 %v2266_v49, %v1167_v47  ;;  %v2603_v2 = vadd.f32 %v2266_v49, %v1168_v56  ;;  %v2606_v55 = vadd.f32 %v2266_v49, %v1169_v24 }
 0x11c   :  { %v2609_v57 = vadd.f32 %v2266_v49, %v1170_v51  ;;  %v2612_v43 = vadd.f32 %v2266_v49, %v1171_v46  ;;  %v1182_v60 = vmul.f32 %v2242_v8, %v2772_v37  ;;  %v1183_v39 = vmul.f32 %v2256_v21, %v2772_v37 }
 0x11d   :  { %v1184_v34 = vmul.f32 %v2269_v15, %v2772_v37  ;;  %v1185_v42 = vmul.f32 %v2283_v1, %v2772_v37  ;;  %v1186_v16 = vmul.f32 %v2294_v20, %v2772_v37  ;;  %v1187_v17 = vmul.f32 %v2301_v23, %v2772_v37 }
 0x11e   :  { %v1188_v49 = vmul.f32 %v2308_v52, %v2772_v37  ;;  %v1189_v54 = vmul.f32 %v2312_v50, %v2772_v37  ;;  %v1190_v31 = vrot.slane %v1182_v60, 4  ;;  %v1196_v12 = vrot.slane %v1183_v39, 4 }
 0x11f   :  { %v1202_v13 = vrot.slane %v1184_v34, 4  ;;  %v1208_v40 = vrot.slane %v1185_v42, 4  ;;  %v1214_v61 = vrot.slane %v1186_v16, 4  ;;  %v1220_v53 = vrot.slane %v1187_v17, 4 }
 0x120   :  { %v1191_v6 = vadd.f32 %v1190_v31, %v1182_v60  ;;  %v1197_v9 = vadd.f32 %v1196_v12, %v1183_v39  ;;  %v1226_v7 = vrot.slane %v1188_v49, 4  ;;  %v1232_v14 = vrot.slane %v1189_v54, 4 }
 0x121   :  { %v1203_v32 = vadd.f32 %v1202_v13, %v1184_v34  ;;  %v1209_v41 = vadd.f32 %v1208_v40, %v1185_v42  ;;  %v1215_v48 = vadd.f32 %v1214_v61, %v1186_v16  ;;  %v1221_v45 = vadd.f32 %v1220_v53, %v1187_v17  ;;  %v1510_v17 = vld [vmem:[%s2761_s5 + $0xc0] sm:$0xff]  ;;  %v1511_v13 = vld [vmem:[%s2761_s5 + $0xc8] sm:$0xff]  ;;  %v1512_v40 = vld [vmem:[%s2761_s5 + $0xd0] sm:$0xff] }
 0x122   :  { %v1192_v22 = vrot.slane %v1191_v6, 2  ;;  %v1198_v27 = vrot.slane %v1197_v9, 2  ;;  %v1227_v38 = vadd.f32 %v1226_v7, %v1188_v49  ;;  %v1233_v19 = vadd.f32 %v1232_v14, %v1189_v54  ;;  %v1513_v7 = vld [vmem:[%s2761_s5 + $0xd8] sm:$0xff]  ;;  %v1514_v14 = vld [vmem:[%s2761_s5 + $0xe0] sm:$0xff] }
 0x123   :  { %v1204_v3 = vrot.slane %v1203_v32, 2  ;;  %v1210_v63 = vrot.slane %v1209_v41, 2  ;;  %v1216_v11 = vrot.slane %v1215_v48, 2  ;;  %v1222_v10 = vrot.slane %v1221_v45, 2 }
 0x124   :  { %v1193_v30 = vadd.f32 %v1192_v22, %v1191_v6  ;;  %v1199_v47 = vadd.f32 %v1198_v27, %v1197_v9  ;;  %v1228_v56 = vrot.slane %v1227_v38, 2  ;;  %v1234_v24 = vrot.slane %v1233_v19, 2  ;;  %v1516_v27 = vld [vmem:[%s2761_s5 + $0xf0] sm:$0xff] }
 0x125   :  { %v1205_v51 = vadd.f32 %v1204_v3, %v1203_v32  ;;  %v1211_v46 = vadd.f32 %v1210_v63, %v1209_v41  ;;  %v1217_v37 = vadd.f32 %v1216_v11, %v1215_v48  ;;  %v1223_v60 = vadd.f32 %v1222_v10, %v1221_v45  ;;  %v1515_v32 = vld [vmem:[%s2761_s5 + $0xe8] sm:$0xff] }
 0x126   :  { %v1194_v39 = vrot.slane %v1193_v30, 1  ;;  %v1200_v34 = vrot.slane %v1199_v47, 1  ;;  %v1229_v42 = vadd.f32 %v1228_v56, %v1227_v38  ;;  %v1235_v16 = vadd.f32 %v1234_v24, %v1233_v19  ;;  %v1517_v38 = vld [vmem:[%s2761_s5 + $0xf8] sm:$0xff]  ;;  %s2678_s5 = sld [smem:[#allocation7 + $0x3]] }
 0x127   :  { %v1206_v49 = vrot.slane %v1205_v51, 1  ;;  %v1212_v54 = vrot.slane %v1211_v46, 1  ;;  %v1218_v31 = vrot.slane %v1217_v37, 1  ;;  %v1224_v12 = vrot.slane %v1223_v60, 1 }
 0x128   :  { %v2639_v61 = vadd.f32 %v1194_v39, %v1193_v30  ;;  %v2641_v53 = vadd.f32 %v1200_v34, %v1199_v47  ;;  %v1230_v6 = vrot.slane %v1229_v42, 1  ;;  %v1236_v9 = vrot.slane %v1235_v16, 1 }
 0x129   :  { %v2652_v41 = vadd.f32 %v1206_v49, %v1205_v51  ;;  %v2654_v48 = vadd.f32 %v1212_v54, %v1211_v46  ;;  %v2656_v45 = vadd.f32 %v1218_v31, %v1217_v37  ;;  %v2658_v22 = vadd.f32 %v1224_v12, %v1223_v60 }
 0x12a   :  { %v2666_v19 = vadd.f32 %v1230_v6, %v1229_v42  ;;  %v2668_v3 = vadd.f32 %v1236_v9, %v1235_v16  ;;  %v1247_v63 = vmul.f32 %v1510_v17, %v2242_v8  ;;  %v1248_v11 = vmul.f32 %v1511_v13, %v2256_v21 }
 0x12b   :  { %v1249_v10 = vmul.f32 %v1512_v40, %v2269_v15  ;;  %v1250_v30 = vmul.f32 %v1513_v7, %v2283_v1  ;;  %v1251_v47 = vmul.f32 %v1514_v14, %v2294_v20  ;;  %v1252_v56 = vmul.f32 %v1515_v32, %v2301_v23 }
 0x12c   :  { %v1253_v24 = vmul.f32 %v1516_v27, %v2308_v52  ;;  %v1254_v51 = vmul.f32 %v1517_v38, %v2312_v50  ;;  %v1255_v46 = vrot.slane %v1247_v63, 4  ;;  %v1261_v37 = vrot.slane %v1248_v11, 4 }
 0x12d   :  { %v1267_v60 = vrot.slane %v1249_v10, 4  ;;  %v1273_v39 = vrot.slane %v1250_v30, 4  ;;  %v1279_v34 = vrot.slane %v1251_v47, 4  ;;  %v1285_v8 = vrot.slane %v1252_v56, 4 }
 0x12e   :  { %v1256_v42 = vadd.f32 %v1255_v46, %v1247_v63  ;;  %v1262_v21 = vadd.f32 %v1261_v37, %v1248_v11  ;;  %v1291_v16 = vrot.slane %v1253_v24, 4  ;;  %v1297_v15 = vrot.slane %v1254_v51, 4 }
 0x12f   :  { %v1268_v17 = vadd.f32 %v1267_v60, %v1249_v10  ;;  %v1274_v1 = vadd.f32 %v1273_v39, %v1250_v30  ;;  %v1280_v49 = vadd.f32 %v1279_v34, %v1251_v47  ;;  %v1286_v20 = vadd.f32 %v1285_v8, %v1252_v56 }
 0x130   :  { %v1257_v54 = vrot.slane %v1256_v42, 2  ;;  %v1263_v23 = vrot.slane %v1262_v21, 2  ;;  %v1292_v31 = vadd.f32 %v1291_v16, %v1253_v24  ;;  %v1298_v52 = vadd.f32 %v1297_v15, %v1254_v51 }
 0x131   :  { %v1269_v50 = vrot.slane %v1268_v17, 2  ;;  %v1275_v12 = vrot.slane %v1274_v1, 2  ;;  %v1281_v13 = vrot.slane %v1280_v49, 2  ;;  %v1287_v40 = vrot.slane %v1286_v20, 2 }
 0x132   :  { %v1258_v6 = vadd.f32 %v1257_v54, %v1256_v42  ;;  %v1264_v9 = vadd.f32 %v1263_v23, %v1262_v21  ;;  %v1293_v7 = vrot.slane %v1292_v31, 2  ;;  %v1299_v14 = vrot.slane %v1298_v52, 2 }
 0x133   :  { %v1270_v32 = vadd.f32 %v1269_v50, %v1268_v17  ;;  %v1276_v27 = vadd.f32 %v1275_v12, %v1274_v1  ;;  %v1282_v38 = vadd.f32 %v1281_v13, %v1280_v49  ;;  %v1288_v63 = vadd.f32 %v1287_v40, %v1286_v20 }
 0x134   :  { %v1259_v11 = vrot.slane %v1258_v6, 1  ;;  %v1265_v10 = vrot.slane %v1264_v9, 1  ;;  %v1294_v30 = vadd.f32 %v1293_v7, %v1292_v31  ;;  %v1300_v47 = vadd.f32 %v1299_v14, %v1298_v52 }
 0x135   :  { %v1271_v56 = vrot.slane %v1270_v32, 1  ;;  %v1277_v24 = vrot.slane %v1276_v27, 1  ;;  %v1283_v51 = vrot.slane %v1282_v38, 1  ;;  %v1289_v46 = vrot.slane %v1288_v63, 1 }
 0x136   :  { %v1260_v37 = vadd.f32 %v1259_v11, %v1258_v6  ;;  %v1266_v60 = vadd.f32 %v1265_v10, %v1264_v9  ;;  %v1295_v39 = vrot.slane %v1294_v30, 1  ;;  %v1301_v34 = vrot.slane %v1300_v47, 1 }
 0x137   :  { %v1272_v8 = vadd.f32 %v1271_v56, %v1270_v32  ;;  %v1278_v42 = vadd.f32 %v1277_v24, %v1276_v27  ;;  %v1284_v21 = vadd.f32 %v1283_v51, %v1282_v38  ;;  %v1290_v16 = vadd.f32 %v1289_v46, %v1288_v63 }
 0x138   :  { %v1296_v15 = vadd.f32 %v1295_v39, %v1294_v30  ;;  %v1302_v17 = vadd.f32 %v1301_v34, %v1300_v47  ;;  %v1304_v1 = vstv %s2678_s5  ;;  %v1314_v49 = vstv %s2680_s18 }
 0x139   :  { %v1305_v20 = vmul.f32 %v1304_v1, %v2639_v61  ;;  %v1306_v54 = vmul.f32 %v1304_v1, %v2641_v53  ;;  %v1307_v23 = vmul.f32 %v1304_v1, %v2652_v41  ;;  %v1308_v31 = vmul.f32 %v1304_v1, %v2654_v48 }
 0x13a   :  { %v1309_v52 = vmul.f32 %v1304_v1, %v2656_v45  ;;  %v1310_v50 = vmul.f32 %v1304_v1, %v2658_v22  ;;  %v1311_v12 = vmul.f32 %v1304_v1, %v2666_v19  ;;  %v1312_v13 = vmul.f32 %v1304_v1, %v2668_v3 }
 0x13b   :  { %v1315_v40 = vmul.f32 %v1314_v49, %v1260_v37  ;;  %v1316_v6 = vmul.f32 %v1314_v49, %v1266_v60  ;;  %v1317_v9 = vmul.f32 %v1314_v49, %v1272_v8  ;;  %v1318_v7 = vmul.f32 %v1314_v49, %v1278_v42 }
 0x13c   :  { %v1319_v14 = vmul.f32 %v1314_v49, %v1284_v21  ;;  %v1320_v61 = vmul.f32 %v1314_v49, %v1290_v16  ;;  %v1321_v32 = vmul.f32 %v1314_v49, %v1296_v15  ;;  %v1322_v53 = vmul.f32 %v1314_v49, %v1302_v17 }
 0x13d   :  { %v1323_v27 = vadd.f32 %v1315_v40, %v1305_v20  ;;  %v1324_v41 = vadd.f32 %v1316_v6, %v1306_v54  ;;  %v1325_v38 = vadd.f32 %v1317_v9, %v1307_v23  ;;  %v1326_v48 = vadd.f32 %v1318_v7, %v1308_v31  ;;  %v2777_v20 = vld [vmem:[#allocation17_spill] sm:$0xff] }
 0x13e   :  { %v1327_v63 = vadd.f32 %v1319_v14, %v1309_v52  ;;  %v1328_v45 = vadd.f32 %v1320_v61, %v1310_v50  ;;  %v1329_v11 = vadd.f32 %v1321_v32, %v1311_v12  ;;  %v1330_v22 = vadd.f32 %v1322_v53, %v1312_v13 }
 0x13f   :  { %v1332_v10 = vstv %s1520_s0  ;;  %v1350_v37 = vsel %vm1349_vm0, %v2370_v29, %v2367_v35  ;;  %v1373_v39 = vsel %vm1349_vm0, %v2482_v18, %v2479_v28  ;;  %v1391_v34 = vsel %vm1349_vm0, %v2594_v4, %v2591_v44 }
 0x140   :  { %v1333_v19 = vadd.f32 %v1332_v10, %v1323_v27  ;;  %v1334_v3 = vadd.f32 %v1332_v10, %v1324_v41  ;;  %v1335_v30 = vadd.f32 %v1332_v10, %v1325_v38  ;;  %v1336_v47 = vadd.f32 %v1332_v10, %v1326_v48 }
 0x141   :  { %v1337_v56 = vadd.f32 %v1332_v10, %v1327_v63  ;;  %v1338_v24 = vadd.f32 %v1332_v10, %v1328_v45  ;;  %v1339_v51 = vadd.f32 %v1332_v10, %v1329_v11  ;;  %v1340_v46 = vadd.f32 %v1332_v10, %v1330_v22 }
 0x142   :  { %v1352_v60 = vsel %vm1351_vm1, %v2373_v36, %v1350_v37  ;;  %v1374_v35 = vsel %vm1351_vm1, %v2485_v5, %v1373_v39  ;;  %v1392_v29 = vsel %vm1351_vm1, %v2597_v33, %v1391_v34  ;;  %v1409_v36 = vsel %vm1349_vm0, %v1334_v3, %v1333_v19 }
 0x143   :  { %v1354_v8 = vsel %vm1353_vm2, %v2376_v25, %v1352_v60  ;;  %v1375_v28 = vsel %vm1353_vm2, %v2488_v26, %v1374_v35  ;;  %v1393_v18 = vsel %vm1353_vm2, %v2600_v58, %v1392_v29  ;;  %v1410_v44 = vsel %vm1351_vm1, %v1335_v30, %v1409_v36  ;;  %v2774_v26 = vld [vmem:[#allocation15_spill] sm:$0xff] }
 0x144   :  { %v1356_v42 = vsel %vm1355_vm3, %v2379_v59, %v1354_v8  ;;  %v1376_v5 = vsel %vm1355_vm3, %v2491_v62, %v1375_v28  ;;  %v1394_v4 = vsel %vm1355_vm3, %v2603_v2, %v1393_v18  ;;  %v1411_v33 = vsel %vm1353_vm2, %v1336_v47, %v1410_v44  ;;  %v2773_v59 = vld [vmem:[#allocation13_spill] sm:$0xff]  ;;  %v2776_v62 = vld [vmem:[#allocation16_spill] sm:$0xff] }
 0x145   :  { %v1358_v25 = vsel %vm1357_vm4, %v2382_v0, %v1356_v42  ;;  %v1377_v16 = vsel %vm1357_vm4, %v2774_v26, %v1376_v5  ;;  %v1395_v58 = vsel %vm1357_vm4, %v2606_v55, %v1394_v4  ;;  %v1412_v15 = vsel %vm1355_vm3, %v1337_v56, %v1411_v33  ;;  %v2775_v0 = vld [vmem:[#allocation14_spill] sm:$0xff] }
 0x146   :  { %v1360_v21 = vsel %vm1359_vm5, %v2773_v59, %v1358_v25  ;;  %v1378_v1 = vsel %vm1359_vm5, %v2776_v62, %v1377_v16  ;;  %v1396_v2 = vsel %vm1359_vm5, %v2609_v57, %v1395_v58  ;;  %v1413_v49 = vsel %vm1357_vm4, %v1338_v24, %v1412_v15 }
 0x147   :  { %v1362_v17 = vsel %vm1361_vm6, %v2775_v0, %v1360_v21  ;;  %v1379_v55 = vsel %vm1361_vm6, %v2777_v20, %v1378_v1  ;;  %v1397_v54 = vsel %vm1361_vm6, %v2612_v43, %v1396_v2  ;;  %v1414_v23 = vsel %vm1359_vm5, %v1339_v51, %v1413_v49 }
 0x148   :  { %1364 = vst [vmem:[%s2764_s8] sm:$0xff] %v1362_v17  ;;  %1521 = vst [vmem:[%s2764_s8 + $0x8] sm:$0xff] %v1379_v55  ;;  %v1415_v57 = vsel %vm1361_vm6, %v1340_v46, %v1414_v23 }
 0x149   :  { %1522 = vst [vmem:[%s2764_s8 + $0x10] sm:$0xff] %v1397_v54  ;;  %1523 = vst [vmem:[%s2764_s8 + $0x18] sm:$0xff] %v1415_v57 }
 0x14a   :  { %1423 = vsyncpa [#allocation3], 1 }
 0x14b   :  { %1424 = vsyncpa [#allocation5], 1 }
 0x14c   :  { %1425 = vsyncpa [#allocation8], 1 }

// kernel: axial_block_forward.3
= control target key start
LH: loop header
LB: loop body
LE: loop exit
PB: predicated region body
PF: predicated region fallthrough
CT: control target
= control target key end

     0   :  { %15 = vsyncpa [#allocation3], 0  ;;  %s3179_s0 = inlined_call_operand.vmem [shape: f32[8,8,128], index: 0, kind: input, shape index: {}]   ;;  %s3180_s1 = inlined_call_operand.vmem [shape: f32[4,8], index: 1, kind: input, shape index: {}]   ;;  %s3181_s2 = inlined_call_operand.vmem [shape: f32[4], index: 2, kind: input, shape index: {}]   ;;  %s3182_s3 = inlined_call_operand.vmem [shape: f32[8,4], index: 3, kind: input, shape index: {}]   ;;  %s3183_s4 = inlined_call_operand.vmem [shape: f32[8], index: 4, kind: input, shape index: {}]   ;;  %s3184_s5 = inlined_call_operand.vmem [shape: f32[2,8,8,128], index: 5, kind: input, shape index: {}]   ;;  %s3185_s6 = inlined_call_operand.vmem [shape: f32[2,8,8,128], index: 6, kind: input, shape index: {}]   ;;  %s3186_s7 = inlined_call_operand.vmem [shape: f32[4,8,8,128], index: 7, kind: input, shape index: {}]   ;;  %s3187_s8 = inlined_call_operand.vmem [shape: f32[4,1], index: 8, kind: input, shape index: {}]   ;;  %s3188_s9 = inlined_call_operand.vmem [shape: f32[3,4], index: 9, kind: input, shape index: {}]   ;;  %s3189_s10 = inlined_call_operand.vmem [shape: f32[4,8,128], index: 10, kind: output, shape index: {}]  }
   0x1   :  { %16 = vsyncpa [#allocation5], 0 }
   0x2   :  { %17 = vsyncpa [#allocation8], 0  ;;  %s37_s15 = sshll.u32 %s3181_s2, 4  ;;  %s38_s15 = int_to_ptr.vmem [resolvable:$true] %s37_s15 }
   0x3   :  { %18 = vsyncpa [#allocation11], 0  ;;  %s57_s18 = sshll.u32 %s3183_s4, 4  ;;  %s1779_s19 = scalar_lea.vmem %s38_s15, 16  ;;  %s58_s18 = int_to_ptr.vmem [resolvable:$true] %s57_s18 }
   0x4   :  { %p1780_p0 = scmp.ne.s32.totalorder %s38_s15, %s1779_s19  ;;  %p1784_p1 = scmp.lt.s32.totalorder %s38_s15, %s38_s15 }
   0x5   :  { %p1785_p2 = scmp.lt.s32.totalorder %s1779_s19, %s1779_s19 }
   0x7   :  { %p1786_p3 = por %p1785_p2, %p1784_p1 }
   0x9   :  { %p1787_p4 = pnand %p1786_p3, %p1780_p0 }
   0xb   :  { %1790 = shalt.err (!%p1787_p4)
}
   0xc   :  { %s1859_s20 = smov [#allocation4]   ;;  %s1791_s21 = scalar_lea.vmem %s58_s18, 16 }
   0xd   :  { %40 = dma.vmem_to_smem %s38_s15, 16, %s1859_s20, [#allocation5]  }
   0xe   :  { %p1792_p5 = scmp.ne.s32.totalorder %s58_s18, %s1791_s21  ;;  %p1796_p6 = scmp.lt.s32.totalorder %s58_s18, %s58_s18 }
   0xf   :  { %p1797_p7 = scmp.lt.s32.totalorder %s1791_s21, %s1791_s21 }
  0x11   :  { %p1798_p8 = por %p1797_p7, %p1796_p6 }
  0x13   :  { %p1799_p9 = pnand %p1798_p8, %p1792_p5 }
  0x15   :  { %1802 = shalt.err (!%p1799_p9)
}
  0x16   :  { %s1860_s2 = smov [#allocation7]   ;;  %s27_s23 = sshll.u32 %s3180_s1, 4  ;;  %s28_s23 = int_to_ptr.vmem [resolvable:$true] %s27_s23 }
  0x17   :  { %60 = dma.vmem_to_smem %s58_s18, 16, %s1860_s2, [#allocation8]  }
  0x18   :  { %s47_s26 = sshll.u32 %s3182_s3, 4  ;;  %s1803_s27 = scalar_lea.vmem %s28_s23, 64  ;;  %s48_s26 = int_to_ptr.vmem [resolvable:$true] %s47_s26 }
  0x19   :  { %p1804_p10 = scmp.ne.s32.totalorder %s28_s23, %s1803_s27  ;;  %p1808_p11 = scmp.lt.s32.totalorder %s28_s23, %s28_s23 }
  0x1a   :  { %p1809_p12 = scmp.lt.s32.totalorder %s1803_s27, %s1803_s27 }
  0x1c   :  { %p1810_p13 = por %p1809_p12, %p1808_p11 }
  0x1e   :  { %p1811_p0 = pnand %p1810_p13, %p1804_p10 }
  0x20   :  { %1814 = shalt.err (!%p1811_p0)
}
  0x21   :  { %s1861_s28 = smov [#allocation2]   ;;  %s1815_s29 = scalar_lea.vmem %s48_s26, 128 }
  0x22   :  { %30 = dma.vmem_to_smem %s28_s23, 64, %s1861_s28, [#allocation3]  }
  0x23   :  { %p1816_p1 = scmp.ne.s32.totalorder %s48_s26, %s1815_s29  ;;  %p1820_p2 = scmp.lt.s32.totalorder %s48_s26, %s48_s26 }
  0x24   :  { %p1821_p3 = scmp.lt.s32.totalorder %s1815_s29, %s1815_s29 }
  0x26   :  { %p1822_p4 = por %p1821_p3, %p1820_p2 }
  0x28   :  { %p1823_p5 = pnand %p1822_p4, %p1816_p1 }
  0x2a   :  { %1826 = shalt.err (!%p1823_p5)
}
  0x2b   :  { %s1862_s1 = smov [#allocation6]   ;;  %s73_s11 = sshll.u32 %s3187_s8, 4  ;;  %s74_s11 = int_to_ptr.vmem [resolvable:$true] %s73_s11 }
  0x2c   :  { %50 = dma.vmem_to_smem %s48_s26, 128, %s1862_s1, [#allocation5]  }
  0x2d   :  { %s83_s14 = sshll.u32 %s3188_s9, 4  ;;  %s1827_s15 = scalar_lea.vmem %s74_s11, 64  ;;  %s84_s14 = int_to_ptr.vmem [resolvable:$true] %s83_s14 }
  0x2e   :  { %p1828_p6 = scmp.ne.s32.totalorder %s74_s11, %s1827_s15  ;;  %p1832_p7 = scmp.lt.s32.totalorder %s74_s11, %s74_s11 }
  0x2f   :  { %p1833_p8 = scmp.lt.s32.totalorder %s1827_s15, %s1827_s15 }
  0x31   :  { %p1834_p9 = por %p1833_p8, %p1832_p7 }
  0x33   :  { %p1835_p10 = pnand %p1834_p9, %p1828_p6 }
  0x35   :  { %1838 = shalt.err (!%p1835_p10)
}
  0x36   :  { %s1863_s16 = smov [#allocation9]   ;;  %s1839_s17 = scalar_lea.vmem %s84_s14, 64 }
  0x37   :  { %76 = dma.vmem_to_smem %s74_s11, 64, %s1863_s16, [#allocation8]  }
  0x38   :  { %p1840_p11 = scmp.ne.s32.totalorder %s84_s14, %s1839_s17  ;;  %p1844_p12 = scmp.lt.s32.totalorder %s84_s14, %s84_s14 }
  0x39   :  { %p1845_p13 = scmp.lt.s32.totalorder %s1839_s17, %s1839_s17 }
  0x3b   :  { %p1846_p0 = por %p1845_p13, %p1844_p12 }
  0x3d   :  { %p1847_p1 = pnand %p1846_p0, %p1840_p11 }
  0x3f   :  { %1850 = shalt.err (!%p1847_p1)
}
  0x40   :  { %s1864_s8 = smov [#allocation10]  }
  0x41   :  { %86 = dma.vmem_to_smem %s84_s14, 64, %s1864_s8, [#allocation11]  }
  0x42   :  { %1851 = dma.done.wait [#allocation3], 64  }
  0x43   :  { %1852 = vsyncadd [#allocation3], 4294967232 }
  0x44   :  { %1853 = dma.done.wait [#allocation5], 144  }
  0x45   :  { %1854 = vsyncadd [#allocation5], 4294967152 }
  0x46   :  { %1855 = dma.done.wait [#allocation8], 80  }
  0x47   :  { %1856 = vsyncadd [#allocation8], 4294967216 }
  0x48   :  { %1857 = dma.done.wait [#allocation11], 64  }
  0x49   :  { %1858 = vsyncadd [#allocation11], 4294967232 }
  0x4a   :  { %105 = sfence }
  0x4b   :  { %s121_s9 = sld [smem:[#allocation2]]  ;;  %s1611_s18 = sld [smem:[#allocation2 + $0x1]]  ;;  %v1946_v0 = vld [vmem:[%s3179_s0] sm:$0xff]  ;;  %v1955_v1 = vld [vmem:[%s3179_s0 + $0x8] sm:$0xff]  ;;  %v1964_v2 = vld [vmem:[%s3179_s0 + $0x10] sm:$0xff]  ;;  %v410_v19 = vlaneseq  ;;  %vm1526_vm0 = vcmask 1041409  }
  0x4c   :  { %s1612_s19 = sld [smem:[#allocation2 + $0x2]]  ;;  %s1613_s20 = sld [smem:[#allocation2 + $0x3]]  ;;  %v1969_v3 = vld [vmem:[%s3179_s0 + $0x18] sm:$0xff]  ;;  %v1983_v7 = vld [vmem:[%s3179_s0 + $0x20] sm:$0xff]  ;;  %v1988_v8 = vld [vmem:[%s3179_s0 + $0x28] sm:$0xff]  ;;  %vm1528_vm1 = vcmask 1042434  }
  0x4d   :  { %s1939_s21 = sld [smem:[#allocation2 + $0x4]]  ;;  %s1941_s2 = sld [smem:[#allocation2 + $0x5]]  ;;  %v1865_v17 = vmov 1966171168   ;;  %v2010_v20 = vld [vmem:[%s3179_s0 + $0x30] sm:$0xff]  ;;  %v2023_v25 = vld [vmem:[%s3179_s0 + $0x38] sm:$0xff] }
  0x4e   :  { %s1948_s23 = sld [smem:[#allocation2 + $0x6]]  ;;  %s1950_s24 = sld [smem:[#allocation2 + $0x7]]  ;;  %v2005_v18 = vunpack.c.l.s4 %v1865_v17  ;;  %vm1530_vm2 = vcmask 1043459   ;;  %vm1532_vm3 = vcmask 1044484   ;;  %vm1534_vm4 = vcmask 1045509  }
  0x4f   :  { %s1957_s27 = sld [smem:[#allocation4]]  ;;  %s1971_s11 = sld [smem:[#allocation2 + $0x81]]  ;;  %vm1536_vm5 = vcmask 1046534   ;;  %vm1538_vm6 = vcmask 1047559  }
  0x50   :  { %s1959_s28 = sld [smem:[#allocation2 + $0x80]]  ;;  %s1973_s12 = sld [smem:[#allocation2 + $0x82]] }
  0x51   :  { %v122_v4 = vstv %s121_s9  ;;  %v125_v6 = vstv %s1611_s18  ;;  %s1976_s13 = sld [smem:[#allocation2 + $0x83]]  ;;  %s1978_s14 = sld [smem:[#allocation2 + $0x84]] }
  0x52   :  { %v123_v5 = vmul.f32 %v122_v4, %v1946_v0  ;;  %v126_v9 = vmul.f32 %v1955_v1, %v125_v6  ;;  %v129_v10 = vstv %s1612_s19  ;;  %v133_v11 = vstv %s1613_s20  ;;  %s1991_s9 = sld [smem:[#allocation2 + $0x85]]  ;;  %s1993_s18 = sld [smem:[#allocation2 + $0x86]] }
  0x53   :  { %v130_v12 = vmul.f32 %v1964_v2, %v129_v10  ;;  %v137_v13 = vstv %s1939_s21  ;;  %v141_v14 = vstv %s1941_s2  ;;  %s1998_s4 = sld [smem:[#allocation2 + $0x87]]  ;;  %v134_v16 = vmul.f32 %v1969_v3, %v133_v11  ;;  %s2001_s22 = sld [smem:[#allocation2 + $0x100]] }
  0x54   :  { %v127_v15 = vadd.f32 %v126_v9, %v123_v5  ;;  %s2003_s19 = sld [smem:[#allocation2 + $0x101]]  ;;  %v138_v21 = vmul.f32 %v1983_v7, %v137_v13  ;;  %v142_v22 = vmul.f32 %v1988_v8, %v141_v14  ;;  %v145_v23 = vstv %s1948_s23  ;;  %s2016_s21 = sld [smem:[#allocation2 + $0x102]] }
  0x55   :  { %s2018_s2 = sld [smem:[#allocation2 + $0x103]]  ;;  %v149_v27 = vstv %s1950_s24  ;;  %v160_v29 = vstv %s1971_s11  ;;  %s2028_s1 = sld [smem:[#allocation2 + $0x104]]  ;;  %v146_v35 = vmul.f32 %v2010_v20, %v145_v23  ;;  %v153_v36 = vstv %s1957_s27 }
  0x56   :  { %v157_v24 = vstv %s1959_s28  ;;  %v131_v26 = vadd.f32 %v130_v12, %v127_v15  ;;  %v161_v30 = vmul.f32 %v1955_v1, %v160_v29  ;;  %v164_v31 = vstv %s1973_s12  ;;  %s2034_s23 = sld [smem:[#allocation2 + $0x105]]  ;;  %s2036_s28 = sld [smem:[#allocation2 + $0x106]] }
  0x57   :  { %v158_v28 = vmul.f32 %v157_v24, %v1946_v0  ;;  %v168_v32 = vstv %s1976_s13  ;;  %v172_v33 = vstv %s1978_s14  ;;  %v165_v37 = vmul.f32 %v1964_v2, %v164_v31  ;;  %s2041_s0 = sld [smem:[#allocation4 + $0x1]]  ;;  %s2046_s24 = sld [smem:[#allocation2 + $0x107]] }
  0x58   :  { %v135_v34 = vadd.f32 %v134_v16, %v131_v26  ;;  %v150_v38 = vmul.f32 %v2023_v25, %v149_v27  ;;  %v169_v40 = vmul.f32 %v1969_v3, %v168_v32  ;;  %v176_v41 = vstv %s1991_s9  ;;  %s2048_s3 = sld [smem:[#allocation2 + $0x180]]  ;;  %s2053_s27 = sld [smem:[#allocation2 + $0x181]] }
  0x59   :  { %v162_v39 = vadd.f32 %v161_v30, %v158_v28  ;;  %v173_v43 = vmul.f32 %v1983_v7, %v172_v33  ;;  %v180_v44 = vstv %s1993_s18  ;;  %v184_v45 = vstv %s1998_s4  ;;  %s2058_s30 = sld [smem:[#allocation2 + $0x182]]  ;;  %s2060_s11 = sld [smem:[#allocation2 + $0x183]] }
  0x5a   :  { %v139_v42 = vadd.f32 %v138_v21, %v135_v34  ;;  %v177_v47 = vmul.f32 %v1988_v8, %v176_v41  ;;  %v192_v48 = vstv %s2001_s22  ;;  %v195_v49 = vstv %s2003_s19  ;;  %s2068_s12 = sld [smem:[#allocation2 + $0x184]]  ;;  %s2070_s13 = sld [smem:[#allocation2 + $0x185]] }
  0x5b   :  { %v166_v46 = vadd.f32 %v165_v37, %v162_v39  ;;  %v193_v51 = vmul.f32 %v192_v48, %v1946_v0  ;;  %v196_v52 = vmul.f32 %v1955_v1, %v195_v49  ;;  %v199_v53 = vstv %s2016_s21  ;;  %s2077_s14 = sld [smem:[#allocation4 + $0x2]]  ;;  %s2081_s15 = sld [smem:[#allocation2 + $0x186]] }
  0x5c   :  { %v143_v50 = vadd.f32 %v142_v22, %v139_v42  ;;  %v200_v55 = vmul.f32 %v1964_v2, %v199_v53  ;;  %v203_v56 = vstv %s2018_s2  ;;  %v207_v57 = vstv %s2028_s1  ;;  %s2086_s16 = sld [smem:[#allocation6]]  ;;  %s2088_s17 = sld [smem:[#allocation6 + $0x1]] }
  0x5d   :  { %v170_v54 = vadd.f32 %v169_v40, %v166_v46  ;;  %v181_v59 = vmul.f32 %v2010_v20, %v180_v44  ;;  %v197_v60 = vadd.f32 %v196_v52, %v193_v51  ;;  %v204_v61 = vmul.f32 %v1969_v3, %v203_v56  ;;  %s2093_s8 = sld [smem:[#allocation2 + $0x187]]  ;;  %s2098_s9 = sld [smem:[#allocation6 + $0x80]] }
  0x5e   :  { %v147_v58 = vadd.f32 %v146_v35, %v143_v50  ;;  %v185_v63 = vmul.f32 %v2023_v25, %v184_v45  ;;  %v211_v4 = vstv %s2034_s23  ;;  %v215_v5 = vstv %s2036_s28  ;;  %s2100_s18 = sld [smem:[#allocation6 + $0x81]]  ;;  %s2106_s4 = sld [smem:[#allocation4 + $0x3]] }
  0x5f   :  { %v174_v62 = vadd.f32 %v173_v43, %v170_v54  ;;  %v188_v9 = vstv %s2041_s0  ;;  %v201_v10 = vadd.f32 %v200_v55, %v197_v60  ;;  %v208_v11 = vmul.f32 %v1983_v7, %v207_v57  ;;  %s2108_s22 = sld [smem:[#allocation6 + $0x2]]  ;;  %s2111_s19 = sld [smem:[#allocation6 + $0x100]] }
  0x60   :  { %v151_v6 = vadd.f32 %v150_v38, %v147_v58  ;;  %v212_v13 = vmul.f32 %v1988_v8, %v211_v4  ;;  %v219_v14 = vstv %s2046_s24  ;;  %v227_v15 = vstv %s2048_s3  ;;  %s2113_s20 = sld [smem:[#allocation6 + $0x101]]  ;;  %s2119_s25 = sld [smem:[#allocation6 + $0x3]] }
  0x61   :  { %v178_v12 = vadd.f32 %v177_v47, %v174_v62  ;;  %v205_v16 = vadd.f32 %v204_v61, %v201_v10  ;;  %v216_v17 = vmul.f32 %v2010_v20, %v215_v5  ;;  %v228_v21 = vmul.f32 %v227_v15, %v1946_v0  ;;  %s2121_s21 = sld [smem:[#allocation7]]  ;;  %s2127_s2 = sld [smem:[#allocation6 + $0x82]] }
  0x62   :  { %v230_v22 = vstv %s2053_s27  ;;  %v234_v26 = vstv %s2058_s30  ;;  %v238_v27 = vstv %s2060_s11  ;;  %v154_v28 = vadd.f32 %v153_v36, %v151_v6  ;;  %s2129_s26 = sld [smem:[#allocation6 + $0x83]]  ;;  %s2135_s29 = sld [smem:[#allocation6 + $0x102]] }
  0x63   :  { %v182_v23 = vadd.f32 %v181_v59, %v178_v12  ;;  %v231_v24 = vmul.f32 %v1955_v1, %v230_v22  ;;  %v209_v29 = vadd.f32 %v208_v11, %v205_v16  ;;  %v235_v30 = vmul.f32 %v1964_v2, %v234_v26  ;;  %s2137_s1 = sld [smem:[#allocation6 + $0x180]]  ;;  %s2140_s23 = sld [smem:[#allocation6 + $0x181]] }
  0x64   :  { %v239_v0 = vmul.f32 %v1969_v3, %v238_v27  ;;  %v242_v33 = vstv %s2068_s12  ;;  %v246_v34 = vstv %s2070_s13  ;;  %v220_v35 = vmul.f32 %v2023_v25, %v219_v14  ;;  %s2147_s28 = sld [smem:[#allocation6 + $0x182]]  ;;  %s2151_s0 = sld [smem:[#allocation6 + $0x200]] }
  0x65   :  { %v186_v31 = vadd.f32 %v185_v63, %v182_v23  ;;  %v232_v32 = vadd.f32 %v231_v24, %v228_v21  ;;  %v213_v1 = vadd.f32 %v212_v13, %v209_v29  ;;  %v409_v2 = vunpack.c.0.s8 %v2005_v18  ;;  %s2158_s24 = sld [smem:[#allocation6 + $0x103]]  ;;  %s2160_s3 = sld [smem:[#allocation6 + $0x201]] }
  0x66   :  { %v411_v3 = vshrl.u32 %v410_v19, 7  ;;  %v223_v37 = vstv %s2077_s14  ;;  %v243_v39 = vmul.f32 %v1983_v7, %v242_v33  ;;  %v2123_v40 = vmax.f32 %v154_v28, 0.0  ;;  %s2167_s27 = sld [smem:[#allocation6 + $0x202]]  ;;  %s2169_s30 = sld [smem:[#allocation6 + $0x203]] }
  0x67   :  { %v189_v36 = vadd.f32 %v188_v9, %v186_v31  ;;  %v236_v38 = vadd.f32 %v235_v30, %v232_v32  ;;  %v217_v41 = vadd.f32 %v216_v17, %v213_v1  ;;  %v247_v42 = vmul.f32 %v1988_v8, %v246_v34  ;;  %s2174_s11 = sld [smem:[#allocation6 + $0x183]]  ;;  %s2182_s12 = sld [smem:[#allocation6 + $0x280]] }
  0x68   :  { %v250_v18 = vstv %s2081_s15  ;;  %v262_v43 = vstv %s2086_s16  ;;  %v265_v44 = vstv %s2088_s17  ;;  %v254_v46 = vstv %s2093_s8  ;;  %s2187_s13 = sld [smem:[#allocation6 + $0x281]]  ;;  %s2192_s15 = sld [smem:[#allocation7 + $0x2]] }
  0x69   :  { %v2131_v19 = vmax.f32 %v189_v36, 0.0  ;;  %v240_v7 = vadd.f32 %v239_v0, %v236_v38  ;;  %v221_v45 = vadd.f32 %v220_v35, %v217_v41  ;;  %v2142_v8 = vsub.s32 0, %v411_v3  ;;  %s2190_s14 = sld [smem:[#allocation7 + $0x1]]  ;;  %s2199_s16 = sld [smem:[#allocation6 + $0x282]] }
  0x6a   :  { %v251_v48 = vmul.f32 %v2010_v20, %v250_v18  ;;  %v280_v49 = vstv %s2098_s9  ;;  %v283_v50 = vstv %s2100_s18  ;;  %v263_v52 = vmul.f32 %v262_v43, %v2123_v40  ;;  %s2201_s17 = sld [smem:[#allocation6 + $0x283]]  ;;  %s2207_s8 = sld [smem:[#allocation6 + $0x300]] }
  0x6b   :  { %v244_v47 = vadd.f32 %v243_v39, %v240_v7  ;;  %v224_v51 = vadd.f32 %v223_v37, %v221_v45  ;;  %v266_v53 = vmul.f32 %v265_v44, %v2131_v19  ;;  %v2153_v54 = vsub.s32 %v409_v2, %v411_v3  ;;  %s2213_s9 = sld [smem:[#allocation6 + $0x301]]  ;;  %s2215_s18 = sld [smem:[#allocation6 + $0x302]] }
  0x6c   :  { %v255_v20 = vmul.f32 %v2023_v25, %v254_v46  ;;  %v258_v56 = vstv %s2106_s4  ;;  %v281_v57 = vmul.f32 %v280_v49, %v2123_v40  ;;  %v284_v59 = vmul.f32 %v283_v50, %v2131_v19  ;;  %s2219_s4 = sld [smem:[#allocation6 + $0x303]] }
  0x6d   :  { %v248_v55 = vadd.f32 %v247_v42, %v244_v47  ;;  %v2162_v58 = vmax.f32 %v224_v51, 0.0  ;;  %v298_v60 = vstv %s2111_s19  ;;  %v301_v61 = vstv %s2113_s20  ;;  %s2226_s19 = sld [smem:[#allocation6 + $0x381]]  ;;  %s2229_s20 = sld [smem:[#allocation7 + $0x3]] }
  0x6e   :  { %v269_v62 = vstv %s2108_s22  ;;  %v273_v63 = vstv %s2119_s25  ;;  %v277_v4 = vstv %s2121_s21  ;;  %v267_v5 = vadd.f32 %v266_v53, %v263_v52  ;;  %s2224_s22 = sld [smem:[#allocation6 + $0x380]]  ;;  %s2235_s25 = sld [smem:[#allocation6 + $0x382]] }
  0x6f   :  { %v252_v25 = vadd.f32 %v251_v48, %v248_v55  ;;  %v287_v6 = vstv %s2127_s2  ;;  %v299_v9 = vmul.f32 %v298_v60, %v2123_v40  ;;  %v302_v10 = vmul.f32 %v301_v61, %v2131_v19  ;;  %s2237_s2 = sld [smem:[#allocation6 + $0x383]] }
  0x70   :  { %v291_v12 = vstv %s2129_s26  ;;  %v305_v13 = vstv %s2135_s29  ;;  %v316_v14 = vstv %s2137_s1  ;;  %v270_v15 = vmul.f32 %v269_v62, %v2162_v58  ;;  %s2489_s26 = sld [smem:[#allocation9 + $0x80]]  ;;  %s3103_s1 = sld [smem:[#allocation10 + $0x83]] }
  0x71   :  { %v256_v11 = vadd.f32 %v255_v20, %v252_v25  ;;  %v285_v16 = vadd.f32 %v284_v59, %v281_v57  ;;  %v317_v17 = vmul.f32 %v316_v14, %v2123_v40  ;;  %v319_v21 = vstv %s2140_s23  ;;  %s1736_s23 = sld [smem:[#allocation10 + $0x103]] }
  0x72   :  { %v288_v23 = vmul.f32 %v287_v6, %v2162_v58  ;;  %v320_v24 = vmul.f32 %v319_v21, %v2131_v19  ;;  %v323_v26 = vstv %s2147_s28  ;;  %v303_v27 = vadd.f32 %v302_v10, %v299_v9  ;;  %s2501_s28 = sld [smem:[#allocation9 + $0x100]] }
  0x73   :  { %v259_v22 = vadd.f32 %v258_v56, %v256_v11  ;;  %v306_v28 = vmul.f32 %v305_v13, %v2162_v58  ;;  %v324_v29 = vmul.f32 %v323_v26, %v2162_v58  ;;  %v334_v30 = vstv %s2151_s0  ;;  %s2503_s0 = sld [smem:[#allocation9 + $0x180]] }
  0x74   :  { %v321_v31 = vadd.f32 %v320_v24, %v317_v17  ;;  %v335_v32 = vmul.f32 %v334_v30, %v2123_v40  ;;  %v337_v33 = vstv %s2160_s3  ;;  %v309_v34 = vstv %s2158_s24  ;;  %v519_v24 = vld [vmem:[%s3185_s6] sm:$0xff] }
  0x75   :  { %v2203_v0 = vmax.f32 %v259_v22, 0.0  ;;  %v338_v1 = vmul.f32 %v337_v33, %v2131_v19  ;;  %v341_v35 = vstv %s2167_s27  ;;  %v345_v2 = vstv %s2169_s30  ;;  %v521_v33 = vld [vmem:[%s3185_s6 + $0x10] sm:$0xff] }
  0x76   :  { %v271_v3 = vadd.f32 %v270_v15, %v267_v5  ;;  %v289_v37 = vadd.f32 %v288_v23, %v285_v16  ;;  %v327_v38 = vstv %s2174_s11  ;;  %v342_v42 = vmul.f32 %v341_v35, %v2162_v58 }
  0x77   :  { %v274_v36 = vmul.f32 %v273_v63, %v2203_v0  ;;  %v292_v39 = vmul.f32 %v291_v12, %v2203_v0  ;;  %v339_v41 = vadd.f32 %v338_v1, %v335_v32  ;;  %v346_v18 = vmul.f32 %v345_v2, %v2203_v0  ;;  %v522_v2 = vld [vmem:[%s3185_s6 + $0x18] sm:$0xff] }
  0x78   :  { %v307_v7 = vadd.f32 %v306_v28, %v303_v27  ;;  %v310_v43 = vmul.f32 %v309_v34, %v2203_v0  ;;  %v325_v44 = vadd.f32 %v324_v29, %v321_v31  ;;  %v352_v45 = vstv %s2182_s12 }
  0x79   :  { %v328_v46 = vmul.f32 %v327_v38, %v2203_v0  ;;  %v343_v47 = vadd.f32 %v342_v42, %v339_v41  ;;  %v353_v48 = vmul.f32 %v352_v45, %v2123_v40  ;;  %v355_v49 = vstv %s2187_s13  ;;  %s2620_s13 = sld [smem:[#allocation7 + $0x5]] }
  0x7a   :  { %v275_v50 = vadd.f32 %v274_v36, %v271_v3  ;;  %v295_v51 = vstv %s2190_s14  ;;  %v313_v52 = vstv %s2192_s15  ;;  %v356_v53 = vmul.f32 %v355_v49, %v2131_v19  ;;  %v523_v3 = vld [vmem:[%s3185_s6 + $0x20] sm:$0xff]  ;;  %s2622_s14 = sld [smem:[#allocation7 + $0x6]]  ;;  %s2624_s15 = sld [smem:[#allocation7 + $0x7]] }
  0x7b   :  { %v293_v55 = vadd.f32 %v292_v39, %v289_v37  ;;  %v2242_v20 = vadd.f32 %v346_v18, %v343_v47  ;;  %v359_v56 = vstv %s2199_s16  ;;  %v363_v57 = vstv %s2201_s17  ;;  %s2626_s16 = sld [smem:[#allocation10]] }
  0x7c   :  { %v311_v59 = vadd.f32 %v310_v43, %v307_v7  ;;  %v357_v60 = vadd.f32 %v356_v53, %v353_v48  ;;  %v360_v61 = vmul.f32 %v359_v56, %v2162_v58  ;;  %v364_v25 = vmul.f32 %v363_v57, %v2203_v0  ;;  %v525_v7 = vld [vmem:[%s3185_s6 + $0x30] sm:$0xff]  ;;  %v526_v43 = vld [vmem:[%s3185_s6 + $0x38] sm:$0xff]  ;;  %s2628_s17 = sld [smem:[#allocation10 + $0x80]] }
  0x7d   :  { %v329_v62 = vadd.f32 %v328_v46, %v325_v44  ;;  %v370_v63 = vstv %s2207_s8  ;;  %v373_v5 = vstv %s2213_s9  ;;  %v377_v6 = vstv %s2215_s18  ;;  %s2630_s8 = sld [smem:[#allocation10 + $0x100]]  ;;  %s2632_s9 = sld [smem:[#allocation10 + $0x1]] }
  0x7e   :  { %v361_v9 = vadd.f32 %v360_v61, %v357_v60  ;;  %v371_v10 = vmul.f32 %v370_v63, %v2123_v40  ;;  %v374_v11 = vmul.f32 %v373_v5, %v2131_v19  ;;  %v378_v12 = vmul.f32 %v377_v6, %v2162_v58  ;;  %v503_v61 = vld [vmem:[%s3184_s5] sm:$0xff]  ;;  %s2634_s18 = sld [smem:[#allocation10 + $0x81]] }
  0x7f   :  { %v278_v13 = vadd.f32 %v277_v4, %v275_v50  ;;  %v381_v14 = vstv %s2219_s4  ;;  %v388_v15 = vstv %s2224_s22  ;;  %v391_v16 = vstv %s2226_s19  ;;  %v520_v4 = vld [vmem:[%s3185_s6 + $0x8] sm:$0xff]  ;;  %s2636_s4 = sld [smem:[#allocation10 + $0x2]] }
  0x80   :  { %v2259_v17 = vadd.f32 %v364_v25, %v361_v9  ;;  %v375_v21 = vadd.f32 %v374_v11, %v371_v10  ;;  %v382_v22 = vmul.f32 %v381_v14, %v2203_v0  ;;  %v389_v23 = vmul.f32 %v388_v15, %v2123_v40  ;;  %v504_v9 = vld [vmem:[%s3184_s5 + $0x8] sm:$0xff]  ;;  %v505_v14 = vld [vmem:[%s3184_s5 + $0x10] sm:$0xff]  ;;  %v506_v15 = vld [vmem:[%s3184_s5 + $0x18] sm:$0xff]  ;;  %s1724_s22 = sld [smem:[#allocation10 + $0x82]] }
  0x81   :  { %v331_v26 = vstv %s2229_s20  ;;  %v392_v27 = vmul.f32 %v391_v16, %v2131_v19  ;;  %v395_v28 = vstv %s2235_s25  ;;  %v399_v29 = vstv %s2237_s2  ;;  %v507_v16 = vld [vmem:[%s3184_s5 + $0x20] sm:$0xff]  ;;  %s2487_s2 = sld [smem:[#allocation9]]  ;;  %s1725_s19 = sld [smem:[#allocation10 + $0x102]] }
  0x82   :  { %v2273_v30 = vadd.f32 %v295_v51, %v293_v55  ;;  %v2275_v31 = vadd.f32 %v313_v52, %v311_v59  ;;  %v379_v32 = vadd.f32 %v378_v12, %v375_v21  ;;  %v396_v40 = vmul.f32 %v395_v28, %v2162_v58  ;;  %v524_v58 = vld [vmem:[%s3185_s6 + $0x28] sm:$0xff] }
  0x83   :  { %v393_v34 = vadd.f32 %v392_v27, %v389_v23  ;;  %v400_v19 = vmul.f32 %v399_v29, %v2203_v0  ;;  %v406_v1 = vcombine.high %v278_v13, %v278_v13  ;;  %v413_v35 = vrot.slane %v278_v13, %v2153_v54  ;;  %v510_v27 = vld [vmem:[%s3184_s5 + $0x38] sm:$0xff] }
  0x84   :  { %v2292_v36 = vadd.f32 %v331_v26, %v329_v62  ;;  %v2294_v37 = vadd.f32 %v382_v22, %v379_v32  ;;  %v2297_v0 = vmul.f32 %v519_v24, %v2275_v31  ;;  %v2300_v38 = vmul.f32 %v520_v4, %v2275_v31  ;;  %v508_v24 = vld [vmem:[%s3184_s5 + $0x28] sm:$0xff]  ;;  %v509_v26 = vld [vmem:[%s3184_s5 + $0x30] sm:$0xff] }
  0x85   :  { %v397_v39 = vadd.f32 %v396_v40, %v393_v34  ;;  %v420_v41 = vrot.slane %v406_v1, %v2153_v54  ;;  %v421_v42 = vcombine.high %v413_v35, %v413_v35  ;;  %v429_v18 = vrot.slane %v413_v35, %v2153_v54  ;;  %v1692_v34 = vld [vmem:[%s3185_s6 + $0x48] sm:$0xff] }
  0x86   :  { %v2311_v44 = vmul.f32 %v521_v33, %v2275_v31  ;;  %v2314_v45 = vmul.f32 %v522_v2, %v2275_v31  ;;  %v2317_v46 = vmul.f32 %v523_v3, %v2275_v31  ;;  %v2320_v47 = vmul.f32 %v524_v58, %v2275_v31  ;;  %v1691_v33 = vld [vmem:[%s3185_s6 + $0x40] sm:$0xff]  ;;  %v1694_v58 = vld [vmem:[%s3185_s6 + $0x58] sm:$0xff] }
  0x87   :  { %v2322_v48 = vadd.f32 %v400_v19, %v397_v39  ;;  %v422_v49 = vcombine.high %v420_v41, %v420_v41  ;;  %v436_v50 = vrot.slane %v420_v41, %v2153_v54  ;;  %v443_v51 = vrot.slane %v421_v42, %v2153_v54  ;;  %v1693_v19 = vld [vmem:[%s3185_s6 + $0x50] sm:$0xff]  ;;  %v1695_v39 = vld [vmem:[%s3185_s6 + $0x60] sm:$0xff]  ;;  %v1696_v41 = vld [vmem:[%s3185_s6 + $0x68] sm:$0xff] }
  0x88   :  { %v451_v52 = vcombine.high %v429_v18, %v429_v18  ;;  %v458_v53 = vrot.slane %v429_v18, %v2142_v8  ;;  %v2328_v55 = vmul.f32 %v525_v7, %v2275_v31  ;;  %v2331_v56 = vmul.f32 %v526_v43, %v2275_v31 }
  0x89   :  { %v450_v57 = vrot.slane %v422_v49, %v2153_v54  ;;  %v452_v59 = vcombine.high %v436_v50, %v436_v50  ;;  %v453_v60 = vcombine.high %v443_v51, %v443_v51  ;;  %v536_v25 = vcombine.high %v2273_v30, %v2273_v30 }
  0x8a   :  { %v462_v62 = vrot.slane %v443_v51, %v2142_v8  ;;  %v466_v63 = vrot.slane %v451_v52, %v2142_v8  ;;  %v474_v5 = vrot.slane %v436_v50, %v2142_v8  ;;  %v2343_v6 = vmul.f32 %v458_v53, %v2275_v31  ;;  %v1697_v51 = vld [vmem:[%s3185_s6 + $0x70] sm:$0xff] }
  0x8b   :  { %v454_v10 = vcombine.high %v450_v57, %v450_v57  ;;  %v470_v11 = vrot.slane %v453_v60, %v2142_v8  ;;  %v478_v12 = vrot.slane %v450_v57, %v2142_v8  ;;  %v482_v13 = vrot.slane %v452_v59, %v2142_v8 }
  0x8c   :  { %v2361_v21 = vmul.f32 %v462_v62, %v2275_v31  ;;  %v2364_v22 = vmul.f32 %v466_v63, %v2275_v31  ;;  %v2367_v23 = vmul.f32 %v474_v5, %v2275_v31  ;;  %v2378_v28 = vmul.f32 %v503_v61, %v458_v53 }
  0x8d   :  { %v486_v29 = vrot.slane %v454_v10, %v2142_v8  ;;  %v2382_v4 = vmul.f32 %v470_v11, %v2275_v31  ;;  %v2385_v32 = vmul.f32 %v478_v12, %v2275_v31  ;;  %v2388_v40 = vmul.f32 %v482_v13, %v2275_v31 }
  0x8e   :  { %v2399_v1 = vmul.f32 %v504_v9, %v462_v62  ;;  %v2401_v35 = vmul.f32 %v505_v14, %v466_v63  ;;  %v2403_v2 = vmul.f32 %v506_v15, %v470_v11  ;;  %v2405_v3 = vmul.f32 %v507_v16, %v474_v5 }
  0x8f   :  { %v2417_v42 = vmul.f32 %v486_v29, %v2275_v31  ;;  %v2419_v18 = vmul.f32 %v508_v24, %v478_v12  ;;  %v2421_v7 = vmul.f32 %v509_v26, %v482_v13  ;;  %v2423_v43 = vmul.f32 %v510_v27, %v486_v29  ;;  %v1698_v31 = vld [vmem:[%s3185_s6 + $0x78] sm:$0xff]  ;;  %s1714_s6 = sld [smem:[#allocation10 + $0x101]] }
  0x90   :  { %v543_v49 = vrot.slane %v2273_v30, %v2153_v54  ;;  %v550_v50 = vrot.slane %v536_v25, %v2153_v54  ;;  %v675_v52 = vmul.f32 %v1691_v33, %v2292_v36  ;;  %v676_v53 = vmul.f32 %v1692_v34, %v2292_v36 }
  0x91   :  { %v677_v57 = vmul.f32 %v1693_v19, %v2292_v36  ;;  %v678_v59 = vmul.f32 %v1694_v58, %v2292_v36  ;;  %v2439_v30 = vmul.f32 %v1695_v39, %v2292_v36  ;;  %v2442_v60 = vmul.f32 %v1696_v41, %v2292_v36 }
  0x92   :  { %v551_v61 = vcombine.high %v543_v49, %v543_v49  ;;  %v552_v25 = vcombine.high %v550_v50, %v550_v50  ;;  %v559_v62 = vrot.slane %v543_v49, %v2153_v54  ;;  %v566_v63 = vrot.slane %v550_v50, %v2153_v54  ;;  %v1684_v50 = vld [vmem:[%s3184_s5 + $0x48] sm:$0xff] }
  0x93   :  { %v2447_v5 = vmul.f32 %v1697_v51, %v2292_v36  ;;  %v2450_v9 = vmul.f32 %v1698_v31, %v2292_v36  ;;  %v2453_v10 = vadd.f32 %v675_v52, %v2297_v0  ;;  %v2456_v11 = vadd.f32 %v676_v53, %v2300_v38  ;;  %v1685_v51 = vld [vmem:[%s3184_s5 + $0x50] sm:$0xff] }
  0x94   :  { %v573_v12 = vrot.slane %v551_v61, %v2153_v54  ;;  %v580_v13 = vrot.slane %v552_v25, %v2153_v54  ;;  %v581_v14 = vcombine.high %v559_v62, %v559_v62  ;;  %v582_v15 = vcombine.high %v566_v63, %v566_v63 }
  0x95   :  { %v588_v16 = vrot.slane %v559_v62, %v2142_v8  ;;  %v604_v24 = vrot.slane %v566_v63, %v2142_v8  ;;  %v2463_v26 = vadd.f32 %v677_v57, %v2311_v44  ;;  %v2466_v27 = vadd.f32 %v678_v59, %v2314_v45  ;;  %v1683_v44 = vld [vmem:[%s3184_s5 + $0x40] sm:$0xff]  ;;  %v1686_v57 = vld [vmem:[%s3184_s5 + $0x58] sm:$0xff]  ;;  %v1688_v62 = vld [vmem:[%s3184_s5 + $0x68] sm:$0xff] }
  0x96   :  { %v583_v0 = vcombine.high %v573_v12, %v573_v12  ;;  %v584_v29 = vcombine.high %v580_v13, %v580_v13  ;;  %v592_v38 = vrot.slane %v573_v12, %v2142_v8  ;;  %v596_v33 = vrot.slane %v581_v14, %v2142_v8  ;;  %v1687_v59 = vld [vmem:[%s3184_s5 + $0x60] sm:$0xff]  ;;  %v1689_v63 = vld [vmem:[%s3184_s5 + $0x70] sm:$0xff]  ;;  %v1690_v12 = vld [vmem:[%s3184_s5 + $0x78] sm:$0xff]  ;;  %s2617_s5 = sld [smem:[#allocation7 + $0x4]] }
  0x97   :  { %v608_v54 = vrot.slane %v580_v13, %v2142_v8  ;;  %v612_v34 = vrot.slane %v582_v15, %v2142_v8  ;;  %v625_v19 = vmul.f32 %v588_v16, %v2292_v36  ;;  %v629_v58 = vmul.f32 %v604_v24, %v2292_v36 }
  0x98   :  { %v600_v45 = vrot.slane %v583_v0, %v2142_v8  ;;  %v616_v39 = vrot.slane %v584_v29, %v2142_v8  ;;  %v626_v41 = vmul.f32 %v592_v38, %v2292_v36  ;;  %v627_v49 = vmul.f32 %v596_v33, %v2292_v36 }
  0x99   :  { %v630_v31 = vmul.f32 %v608_v54, %v2292_v36  ;;  %v631_v8 = vmul.f32 %v612_v34, %v2292_v36  ;;  %v633_v52 = vadd.f32 %v625_v19, %v2343_v6  ;;  %v637_v53 = vadd.f32 %v629_v58, %v2367_v23 }
  0x9a   :  { %v628_v61 = vmul.f32 %v600_v45, %v2292_v36  ;;  %v632_v25 = vmul.f32 %v616_v39, %v2292_v36  ;;  %v634_v6 = vadd.f32 %v626_v41, %v2361_v21  ;;  %v635_v23 = vadd.f32 %v627_v49, %v2364_v22 }
  0x9b   :  { %v638_v13 = vadd.f32 %v630_v31, %v2385_v32  ;;  %v639_v36 = vadd.f32 %v631_v8, %v2388_v40  ;;  %v650_v14 = vmul.f32 %v1683_v44, %v588_v16  ;;  %v651_v21 = vmul.f32 %v1684_v50, %v592_v38 }
  0x9c   :  { %v636_v22 = vadd.f32 %v628_v61, %v2382_v4  ;;  %v640_v15 = vadd.f32 %v632_v25, %v2417_v42  ;;  %v652_v0 = vmul.f32 %v1685_v51, %v596_v33  ;;  %v653_v29 = vmul.f32 %v1686_v57, %v600_v45 }
  0x9d   :  { %v654_v19 = vmul.f32 %v1687_v59, %v604_v24  ;;  %v655_v58 = vmul.f32 %v1688_v62, %v608_v54  ;;  %v656_v41 = vmul.f32 %v1689_v63, %v612_v34  ;;  %v657_v49 = vmul.f32 %v1690_v12, %v616_v39 }
  0x9e   :  { %v658_v32 = vadd.f32 %v650_v14, %v2378_v28  ;;  %v659_v40 = vadd.f32 %v651_v21, %v2399_v1  ;;  %v660_v16 = vadd.f32 %v652_v0, %v2401_v35  ;;  %v661_v4 = vadd.f32 %v653_v29, %v2403_v2 }
  0x9f   :  { %v662_v42 = vadd.f32 %v654_v19, %v2405_v3  ;;  %v663_v38 = vadd.f32 %v655_v58, %v2419_v18  ;;  %v664_v24 = vadd.f32 %v656_v41, %v2421_v7  ;;  %v665_v33 = vadd.f32 %v657_v49, %v2423_v43 }
  0xa0   :  { %v687_v54 = vadd.f32 %v2439_v30, %v2317_v46  ;;  %v688_v28 = vadd.f32 %v2442_v60, %v2320_v47  ;;  %v689_v1 = vadd.f32 %v2447_v5, %v2328_v55  ;;  %v690_v35 = vadd.f32 %v2450_v9, %v2331_v56 }
  0xa1   :  { %v692_v2 = vstv %s2487_s2  ;;  %v702_v3 = vstv %s2489_s26  ;;  %v720_v34 = vstv %s2501_s28  ;;  %v738_v18 = vstv %s2503_s0 }
  0xa2   :  { %v693_v44 = vmul.f32 %v692_v2, %v633_v52  ;;  %v694_v7 = vmul.f32 %v692_v2, %v634_v6  ;;  %v695_v45 = vmul.f32 %v692_v2, %v635_v23  ;;  %v696_v43 = vmul.f32 %v692_v2, %v636_v22 }
  0xa3   :  { %v697_v39 = vmul.f32 %v692_v2, %v637_v53  ;;  %v698_v50 = vmul.f32 %v692_v2, %v638_v13  ;;  %v699_v46 = vmul.f32 %v692_v2, %v639_v36  ;;  %v700_v30 = vmul.f32 %v692_v2, %v640_v15 }
  0xa4   :  { %v703_v51 = vmul.f32 %v702_v3, %v658_v32  ;;  %v704_v47 = vmul.f32 %v702_v3, %v659_v40  ;;  %v705_v60 = vmul.f32 %v702_v3, %v660_v16  ;;  %v706_v31 = vmul.f32 %v702_v3, %v661_v4 }
  0xa5   :  { %v707_v55 = vmul.f32 %v702_v3, %v662_v42  ;;  %v708_v5 = vmul.f32 %v702_v3, %v663_v38  ;;  %v709_v8 = vmul.f32 %v702_v3, %v664_v24  ;;  %v710_v56 = vmul.f32 %v702_v3, %v665_v33 }
  0xa6   :  { %v711_v9 = vadd.f32 %v703_v51, %v693_v44  ;;  %v712_v57 = vadd.f32 %v704_v47, %v694_v7  ;;  %v713_v59 = vadd.f32 %v705_v60, %v695_v45  ;;  %v714_v61 = vadd.f32 %v706_v31, %v696_v43 }
  0xa7   :  { %v715_v52 = vadd.f32 %v707_v55, %v697_v39  ;;  %v716_v25 = vadd.f32 %v708_v5, %v698_v50  ;;  %v717_v6 = vadd.f32 %v709_v8, %v699_v46  ;;  %v718_v23 = vadd.f32 %v710_v56, %v700_v30 }
  0xa8   :  { %v721_v53 = vmul.f32 %v720_v34, %v2453_v10  ;;  %v722_v62 = vmul.f32 %v720_v34, %v2456_v11  ;;  %v723_v63 = vmul.f32 %v720_v34, %v2463_v26  ;;  %v724_v12 = vmul.f32 %v720_v34, %v2466_v27 }
  0xa9   :  { %v725_v13 = vmul.f32 %v720_v34, %v687_v54  ;;  %v726_v36 = vmul.f32 %v720_v34, %v688_v28  ;;  %v727_v14 = vmul.f32 %v720_v34, %v689_v1  ;;  %v728_v21 = vmul.f32 %v720_v34, %v690_v35 }
  0xaa   :  { %v729_v22 = vadd.f32 %v721_v53, %v711_v9  ;;  %v730_v15 = vadd.f32 %v722_v62, %v712_v57  ;;  %v731_v0 = vadd.f32 %v723_v63, %v713_v59  ;;  %v732_v29 = vadd.f32 %v724_v12, %v714_v61 }
  0xab   :  { %v733_v19 = vadd.f32 %v725_v13, %v715_v52  ;;  %v734_v58 = vadd.f32 %v726_v36, %v716_v25  ;;  %v735_v41 = vadd.f32 %v727_v14, %v717_v6  ;;  %v736_v49 = vadd.f32 %v728_v21, %v718_v23 }
  0xac   :  { %v2546_v32 = vadd.f32 %v738_v18, %v729_v22  ;;  %v2548_v10 = vadd.f32 %v738_v18, %v730_v15  ;;  %v2550_v11 = vadd.f32 %v738_v18, %v731_v0  ;;  %v2552_v26 = vadd.f32 %v738_v18, %v732_v29 }
  0xad   :  { %v2554_v27 = vadd.f32 %v738_v18, %v733_v19  ;;  %v2556_v40 = vadd.f32 %v738_v18, %v734_v58  ;;  %v2558_v16 = vadd.f32 %v738_v18, %v735_v41  ;;  %v2560_v4 = vadd.f32 %v738_v18, %v736_v49 }
  0xae   :  { %v747_v42 = vrot.slane %v2546_v32, 4  ;;  %v753_v38 = vrot.slane %v2548_v10, 4  ;;  %v759_v24 = vrot.slane %v2550_v11, 4  ;;  %v765_v33 = vrot.slane %v2552_v26, 4 }
  0xaf   :  { %v771_v54 = vrot.slane %v2554_v27, 4  ;;  %v777_v28 = vrot.slane %v2556_v40, 4  ;;  %v783_v1 = vrot.slane %v2558_v16, 4  ;;  %v789_v35 = vrot.slane %v2560_v4, 4 }
  0xb0   :  { %v748_v2 = vmax.f32 %v2546_v32, %v747_v42  ;;  %v754_v3 = vmax.f32 %v2548_v10, %v753_v38  ;;  %v760_v34 = vmax.f32 %v2550_v11, %v759_v24  ;;  %v766_v18 = vmax.f32 %v2552_v26, %v765_v33 }
  0xb1   :  { %v772_v44 = vmax.f32 %v2554_v27, %v771_v54  ;;  %v778_v7 = vmax.f32 %v2556_v40, %v777_v28  ;;  %v784_v45 = vmax.f32 %v2558_v16, %v783_v1  ;;  %v790_v43 = vmax.f32 %v2560_v4, %v789_v35 }
  0xb2   :  { %v749_v39 = vrot.slane %v748_v2, 2  ;;  %v755_v50 = vrot.slane %v754_v3, 2  ;;  %v761_v46 = vrot.slane %v760_v34, 2  ;;  %v767_v30 = vrot.slane %v766_v18, 2 }
  0xb3   :  { %v773_v51 = vrot.slane %v772_v44, 2  ;;  %v779_v47 = vrot.slane %v778_v7, 2  ;;  %v785_v60 = vrot.slane %v784_v45, 2  ;;  %v791_v31 = vrot.slane %v790_v43, 2 }
  0xb4   :  { %v750_v55 = vmax.f32 %v748_v2, %v749_v39  ;;  %v756_v5 = vmax.f32 %v754_v3, %v755_v50  ;;  %v762_v8 = vmax.f32 %v760_v34, %v761_v46  ;;  %v768_v56 = vmax.f32 %v766_v18, %v767_v30 }
  0xb5   :  { %v774_v9 = vmax.f32 %v772_v44, %v773_v51  ;;  %v780_v57 = vmax.f32 %v778_v7, %v779_v47  ;;  %v786_v59 = vmax.f32 %v784_v45, %v785_v60  ;;  %v792_v61 = vmax.f32 %v790_v43, %v791_v31 }
  0xb6   :  { %v751_v52 = vrot.slane %v750_v55, 1  ;;  %v757_v25 = vrot.slane %v756_v5, 1  ;;  %v763_v6 = vrot.slane %v762_v8, 1  ;;  %v769_v23 = vrot.slane %v768_v56, 1 }
  0xb7   :  { %v775_v53 = vrot.slane %v774_v9, 1  ;;  %v781_v62 = vrot.slane %v780_v57, 1  ;;  %v787_v63 = vrot.slane %v786_v59, 1  ;;  %v793_v12 = vrot.slane %v792_v61, 1 }
  0xb8   :  { %v752_v13 = vmax.f32 %v750_v55, %v751_v52  ;;  %v758_v36 = vmax.f32 %v756_v5, %v757_v25  ;;  %v764_v14 = vmax.f32 %v762_v8, %v763_v6  ;;  %v770_v21 = vmax.f32 %v768_v56, %v769_v23 }
  0xb9   :  { %v776_v22 = vmax.f32 %v774_v9, %v775_v53  ;;  %v782_v15 = vmax.f32 %v780_v57, %v781_v62  ;;  %v788_v0 = vmax.f32 %v786_v59, %v787_v63  ;;  %v794_v29 = vmax.f32 %v792_v61, %v793_v12 }
  0xba   :  { %v795_v19 = vsub.f32 %v2546_v32, %v752_v13  ;;  %v796_v58 = vsub.f32 %v2548_v10, %v758_v36  ;;  %v797_v41 = vsub.f32 %v2550_v11, %v764_v14  ;;  %v798_v49 = vsub.f32 %v2552_v26, %v770_v21 }
  0xbb   :  { %v799_v42 = vsub.f32 %v2554_v27, %v776_v22  ;;  %v800_v38 = vsub.f32 %v2556_v40, %v782_v15  ;;  %v801_v24 = vsub.f32 %v2558_v16, %v788_v0  ;;  %v802_v1 = vsub.f32 %v2560_v4, %v794_v29 }
  0xbc   :  { %v803_v33 = vmul.f32 1.442695, %v795_v19  ;;  %v805_v54 = vmul.f32 1.442695, %v796_v58  ;;  %v807_v28 = vmul.f32 1.442695, %v797_v41 }
  0xbd   :  { %v809_v35 = vmul.f32 1.442695, %v798_v49  ;;  %v811_v32 = vmul.f32 1.442695, %v799_v42  ;;  %v813_v10 = vmul.f32 1.442695, %v800_v38 }
  0xbe   :  { %1747 = vpow2.f32 %v803_v33  ;;  %v815_v11 = vmul.f32 1.442695, %v801_v24  ;;  %v817_v26 = vmul.f32 1.442695, %v802_v1 }
  0xbf   :  { %1749 = vpow2.f32 %v805_v54 }
  0xc0   :  { %1751 = vpow2.f32 %v807_v28 }
  0xc1   :  { %1753 = vpow2.f32 %v809_v35 }
  0xc2   :  { %1755 = vpow2.f32 %v811_v32  ;;  %v349_v32 = vstv %s2617_s5 }
  0xc3   :  { %1757 = vpow2.f32 %v813_v10  ;;  %v367_v10 = vstv %s2620_s13 }
  0xc4   :  { %1759 = vpow2.f32 %v815_v11  ;;  %v385_v11 = vstv %s2622_s14 }
  0xc5   :  { %1761 = vpow2.f32 %v817_v26  ;;  %v403_v26 = vstv %s2624_s15 }
  0xc8   :  { %v2586_v27 = vpop.eup %1747 }
  0xc9   :  { %v2588_v40 = vpop.eup %1749  ;;  %v819_v16 = vrot.slane %v2586_v27, 4 }
  0xca   :  { %v2591_v4 = vpop.eup %1751  ;;  %v825_v2 = vrot.slane %v2588_v40, 4 }
  0xcb   :  { %v2594_v3 = vpop.eup %1753  ;;  %v820_v34 = vadd.f32 %v2586_v27, %v819_v16  ;;  %v831_v18 = vrot.slane %v2591_v4, 4  ;;  %v350_v16 = vadd.f32 %v349_v32, %v2242_v20  ;;  %v2662_v20 = vstv %s2630_s8 }
  0xcc   :  { %v2598_v44 = vpop.eup %1755  ;;  %v826_v7 = vadd.f32 %v2588_v40, %v825_v2  ;;  %v837_v45 = vrot.slane %v2594_v3, 4  ;;  %v2644_v2 = vadd.f32 %v367_v10, %v2259_v17 }
  0xcd   :  { %v2602_v43 = vpop.eup %1757  ;;  %v821_v39 = vrot.slane %v820_v34, 2  ;;  %v832_v50 = vadd.f32 %v2591_v4, %v831_v18  ;;  %v843_v46 = vrot.slane %v2598_v44, 4 }
  0xce   :  { %v2606_v30 = vpop.eup %1759  ;;  %v827_v51 = vrot.slane %v826_v7, 2  ;;  %v838_v47 = vadd.f32 %v2594_v3, %v837_v45  ;;  %v849_v60 = vrot.slane %v2602_v43, 4  ;;  %v939_v45 = vld [vmem:[%s3186_s7] sm:$0xff] }
  0xcf   :  { %v2610_v31 = vpop.eup %1761  ;;  %v822_v55 = vadd.f32 %v821_v39, %v820_v34  ;;  %v833_v5 = vrot.slane %v832_v50, 2  ;;  %v844_v8 = vadd.f32 %v2598_v44, %v843_v46  ;;  %v855_v56 = vrot.slane %v2606_v30, 4 }
  0xd0   :  { %v828_v9 = vadd.f32 %v827_v51, %v826_v7  ;;  %v839_v57 = vrot.slane %v838_v47, 2  ;;  %v850_v59 = vadd.f32 %v2602_v43, %v849_v60  ;;  %v861_v61 = vrot.slane %v2610_v31, 4 }
  0xd1   :  { %v823_v52 = vrot.slane %v822_v55, 1  ;;  %v834_v25 = vadd.f32 %v833_v5, %v832_v50  ;;  %v845_v6 = vrot.slane %v844_v8, 2  ;;  %v856_v23 = vadd.f32 %v2606_v30, %v855_v56  ;;  %v941_v5 = vld [vmem:[%s3186_s7 + $0x10] sm:$0xff] }
  0xd2   :  { %v829_v53 = vrot.slane %v828_v9, 1  ;;  %v840_v62 = vadd.f32 %v839_v57, %v838_v47  ;;  %v851_v63 = vrot.slane %v850_v59, 2  ;;  %v862_v12 = vadd.f32 %v2610_v31, %v861_v61 }
  0xd3   :  { %v824_v13 = vadd.f32 %v823_v52, %v822_v55  ;;  %v835_v36 = vrot.slane %v834_v25, 1  ;;  %v846_v14 = vadd.f32 %v845_v6, %v844_v8  ;;  %v857_v21 = vrot.slane %v856_v23, 2 }
  0xd4   :  { %v830_v22 = vadd.f32 %v829_v53, %v828_v9  ;;  %v841_v15 = vrot.slane %v840_v62, 1  ;;  %v852_v0 = vadd.f32 %v851_v63, %v850_v59  ;;  %v863_v29 = vrot.slane %v862_v12, 2 }
  0xd5   :  { %v836_v19 = vadd.f32 %v835_v36, %v834_v25  ;;  %v847_v58 = vrot.slane %v846_v14, 1  ;;  %v858_v41 = vadd.f32 %v857_v21, %v856_v23  ;;  %1763 = vrcp.f32 %v824_v13 }
  0xd6   :  { %v842_v49 = vadd.f32 %v841_v15, %v840_v62  ;;  %v853_v42 = vrot.slane %v852_v0, 1  ;;  %v864_v38 = vadd.f32 %v863_v29, %v862_v12  ;;  %1765 = vrcp.f32 %v830_v22 }
  0xd7   :  { %v848_v24 = vadd.f32 %v847_v58, %v846_v14  ;;  %v859_v33 = vrot.slane %v858_v41, 1  ;;  %1767 = vrcp.f32 %v836_v19  ;;  %v2647_v34 = vadd.f32 %v385_v11, %v2294_v37  ;;  %v940_v37 = vld [vmem:[%s3186_s7 + $0x8] sm:$0xff] }
  0xd8   :  { %v854_v54 = vadd.f32 %v853_v42, %v852_v0  ;;  %v865_v28 = vrot.slane %v864_v38, 1  ;;  %1769 = vrcp.f32 %v842_v49  ;;  %v2650_v7 = vadd.f32 %v403_v26, %v2322_v48 }
  0xd9   :  { %v860_v1 = vadd.f32 %v859_v33, %v858_v41  ;;  %1771 = vrcp.f32 %v848_v24  ;;  %v2656_v39 = vstv %s2626_s16  ;;  %v2659_v50 = vstv %s2628_s17 }
  0xda   :  { %v866_v35 = vadd.f32 %v865_v28, %v864_v38  ;;  %1773 = vrcp.f32 %v854_v54  ;;  %3191 = vst [vmem:[#allocation16_spill] sm:$0xff] %v2650_v7  ;;  %v2671_v48 = vstv %s2632_s9  ;;  %v2674_v51 = vstv %s2634_s18 }
  0xdb   :  { %1775 = vrcp.f32 %v860_v1  ;;  %v2676_v47 = vstv %s1714_s6  ;;  %v2687_v8 = vstv %s1724_s22  ;;  %v2689_v56 = vstv %s1725_s19 }
  0xdc   :  { %1777 = vrcp.f32 %v866_v35 }
  0xdf   :  { %v1764_v18 = vpop.eup %1763 }
  0xe0   :  { %v1766_v17 = vpop.eup %1765  ;;  %v2665_v46 = vmul.f32 %v1764_v18, %v2586_v27  ;;  %v2685_v27 = vstv %s2636_s4 }
  0xe1   :  { %v1768_v60 = vpop.eup %1767  ;;  %v2679_v55 = vmul.f32 %v1766_v17, %v2588_v40  ;;  %v942_v40 = vld [vmem:[%s3186_s7 + $0x18] sm:$0xff] }
  0xe2   :  { %v1770_v9 = vpop.eup %1769  ;;  %v2692_v57 = vmul.f32 %v1768_v60, %v2591_v4  ;;  %v883_v59 = vmul.f32 %v2665_v46, %v350_v16  ;;  %v2699_v61 = vmul.f32 %v939_v45, %v2665_v46  ;;  %v2703_v52 = vmul.f32 %v2665_v46, %v2644_v2 }
  0xe3   :  { %v1772_v25 = vpop.eup %1771  ;;  %v2706_v6 = vmul.f32 %v1770_v9, %v2594_v3  ;;  %v884_v4 = vmul.f32 %v2679_v55, %v350_v16  ;;  %v2710_v23 = vmul.f32 %v940_v37, %v2679_v55  ;;  %v2714_v53 = vmul.f32 %v2679_v55, %v2644_v2 }
  0xe4   :  { %v1774_v62 = vpop.eup %1773  ;;  %v2717_v63 = vmul.f32 %v1772_v25, %v2598_v44  ;;  %v885_v12 = vmul.f32 %v2692_v57, %v350_v16  ;;  %v891_v13 = vrot.slane %v883_v59, 4  ;;  %v2721_v36 = vmul.f32 %v941_v5, %v2692_v57 }
  0xe5   :  { %v1776_v3 = vpop.eup %1775  ;;  %v2724_v14 = vmul.f32 %v1774_v62, %v2602_v43  ;;  %v886_v21 = vmul.f32 %v2706_v6, %v350_v16  ;;  %v897_v22 = vrot.slane %v884_v4, 4  ;;  %v2728_v15 = vmul.f32 %v942_v40, %v2706_v6 }
  0xe6   :  { %v1778_v0 = vpop.eup %1777  ;;  %v2731_v44 = vmul.f32 %v1776_v3, %v2606_v30  ;;  %v887_v29 = vmul.f32 %v2717_v63, %v350_v16  ;;  %v892_v19 = vadd.f32 %v891_v13, %v883_v59  ;;  %v903_v58 = vrot.slane %v885_v12, 4 }
  0xe7   :  { %v2735_v41 = vmul.f32 %v1778_v0, %v2610_v31  ;;  %v888_v43 = vmul.f32 %v2724_v14, %v350_v16  ;;  %v898_v49 = vadd.f32 %v897_v22, %v884_v4  ;;  %v909_v42 = vrot.slane %v886_v21, 4 }
  0xe8   :  { %v889_v38 = vmul.f32 %v2731_v44, %v350_v16  ;;  %v893_v24 = vrot.slane %v892_v19, 2  ;;  %v904_v33 = vadd.f32 %v903_v58, %v885_v12  ;;  %v915_v54 = vrot.slane %v887_v29, 4  ;;  %v945_v58 = vld [vmem:[%s3186_s7 + $0x30] sm:$0xff] }
  0xe9   :  { %v890_v28 = vmul.f32 %v2735_v41, %v350_v16  ;;  %v899_v30 = vrot.slane %v898_v49, 2  ;;  %v910_v1 = vadd.f32 %v909_v42, %v886_v21  ;;  %v921_v35 = vrot.slane %v888_v43, 4  ;;  %v943_v16 = vld [vmem:[%s3186_s7 + $0x20] sm:$0xff]  ;;  %v944_v21 = vld [vmem:[%s3186_s7 + $0x28] sm:$0xff] }
  0xea   :  { %v894_v32 = vadd.f32 %v893_v24, %v892_v19  ;;  %v905_v10 = vrot.slane %v904_v33, 2  ;;  %v916_v11 = vadd.f32 %v915_v54, %v887_v29  ;;  %v927_v26 = vrot.slane %v889_v38, 4 }
  0xeb   :  { %v900_v31 = vadd.f32 %v899_v30, %v898_v49  ;;  %v911_v18 = vrot.slane %v910_v1, 2  ;;  %v922_v45 = vadd.f32 %v921_v35, %v888_v43  ;;  %v933_v17 = vrot.slane %v890_v28, 4  ;;  %v946_v43 = vld [vmem:[%s3186_s7 + $0x38] sm:$0xff] }
  0xec   :  { %v895_v37 = vrot.slane %v894_v32, 1  ;;  %v906_v60 = vadd.f32 %v905_v10, %v904_v33  ;;  %v917_v5 = vrot.slane %v916_v11, 2  ;;  %v928_v9 = vadd.f32 %v927_v26, %v889_v38 }
  0xed   :  { %v901_v59 = vrot.slane %v900_v31, 1  ;;  %v912_v40 = vadd.f32 %v911_v18, %v910_v1  ;;  %v923_v25 = vrot.slane %v922_v45, 2  ;;  %v934_v4 = vadd.f32 %v933_v17, %v890_v28 }
  0xee   :  { %v2743_v62 = vadd.f32 %v895_v37, %v894_v32  ;;  %v907_v12 = vrot.slane %v906_v60, 1  ;;  %v918_v13 = vadd.f32 %v917_v5, %v916_v11  ;;  %v929_v3 = vrot.slane %v928_v9, 2 }
  0xef   :  { %v2748_v22 = vadd.f32 %v901_v59, %v900_v31  ;;  %v913_v0 = vrot.slane %v912_v40, 1  ;;  %v924_v29 = vadd.f32 %v923_v25, %v922_v45  ;;  %v935_v19 = vrot.slane %v934_v4, 2 }
  0xf0   :  { %v2756_v49 = vadd.f32 %v907_v12, %v906_v60  ;;  %v919_v42 = vrot.slane %v918_v13, 1  ;;  %v930_v38 = vadd.f32 %v929_v3, %v928_v9  ;;  %v951_v24 = vmul.f32 %v943_v16, %v2717_v63 }
  0xf1   :  { %v914_v33 = vadd.f32 %v913_v0, %v912_v40  ;;  %v925_v54 = vrot.slane %v924_v29, 1  ;;  %v936_v28 = vadd.f32 %v935_v19, %v934_v4  ;;  %v952_v30 = vmul.f32 %v944_v21, %v2724_v14 }
  0xf2   :  { %v920_v1 = vadd.f32 %v919_v42, %v918_v13  ;;  %v931_v35 = vrot.slane %v930_v38, 1  ;;  %v953_v32 = vmul.f32 %v945_v58, %v2731_v44  ;;  %v954_v10 = vmul.f32 %v946_v43, %v2735_v41 }
  0xf3   :  { %v926_v11 = vadd.f32 %v925_v54, %v924_v29  ;;  %v937_v26 = vrot.slane %v936_v28, 1  ;;  %v955_v31 = vrot.slane %v2699_v61, 4  ;;  %v961_v18 = vrot.slane %v2710_v23, 4 }
  0xf4   :  { %v932_v45 = vadd.f32 %v931_v35, %v930_v38  ;;  %v967_v17 = vrot.slane %v2721_v36, 4  ;;  %v973_v37 = vrot.slane %v2728_v15, 4  ;;  %v979_v60 = vrot.slane %v951_v24, 4 }
  0xf5   :  { %v938_v5 = vadd.f32 %v937_v26, %v936_v28  ;;  %v956_v9 = vadd.f32 %v955_v31, %v2699_v61  ;;  %v962_v59 = vadd.f32 %v961_v18, %v2710_v23  ;;  %v985_v40 = vrot.slane %v952_v30, 4 }
  0xf6   :  { %v968_v25 = vadd.f32 %v967_v17, %v2721_v36  ;;  %v974_v4 = vadd.f32 %v973_v37, %v2728_v15  ;;  %v980_v16 = vadd.f32 %v979_v60, %v951_v24  ;;  %v991_v12 = vrot.slane %v953_v32, 4 }
  0xf7   :  { %v957_v13 = vrot.slane %v956_v9, 2  ;;  %v963_v3 = vrot.slane %v962_v59, 2  ;;  %v986_v21 = vadd.f32 %v985_v40, %v952_v30  ;;  %v997_v0 = vrot.slane %v954_v10, 4 }
  0xf8   :  { %v969_v29 = vrot.slane %v968_v25, 2  ;;  %v975_v19 = vrot.slane %v974_v4, 2  ;;  %v981_v58 = vrot.slane %v980_v16, 2  ;;  %v992_v43 = vadd.f32 %v991_v12, %v953_v32 }
  0xf9   :  { %v958_v42 = vadd.f32 %v957_v13, %v956_v9  ;;  %v964_v38 = vadd.f32 %v963_v3, %v962_v59  ;;  %v987_v61 = vrot.slane %v986_v21, 2  ;;  %v998_v54 = vadd.f32 %v997_v0, %v954_v10 }
  0xfa   :  { %v970_v23 = vadd.f32 %v969_v29, %v968_v25  ;;  %v976_v28 = vadd.f32 %v975_v19, %v974_v4  ;;  %v982_v35 = vadd.f32 %v981_v58, %v980_v16  ;;  %v993_v36 = vrot.slane %v992_v43, 2 }
  0xfb   :  { %v959_v26 = vrot.slane %v958_v42, 1  ;;  %v965_v15 = vrot.slane %v964_v38, 1  ;;  %v988_v24 = vadd.f32 %v987_v61, %v986_v21  ;;  %v999_v31 = vrot.slane %v998_v54, 2 }
  0xfc   :  { %v971_v18 = vrot.slane %v970_v23, 1  ;;  %v977_v17 = vrot.slane %v976_v28, 1  ;;  %v983_v30 = vrot.slane %v982_v35, 1  ;;  %v994_v37 = vadd.f32 %v993_v36, %v992_v43 }
  0xfd   :  { %v960_v60 = vadd.f32 %v959_v26, %v958_v42  ;;  %v966_v40 = vadd.f32 %v965_v15, %v964_v38  ;;  %v989_v7 = vrot.slane %v988_v24, 1  ;;  %v1000_v32 = vadd.f32 %v999_v31, %v998_v54 }
  0xfe   :  { %v972_v9 = vadd.f32 %v971_v18, %v970_v23  ;;  %v978_v59 = vadd.f32 %v977_v17, %v976_v28  ;;  %v984_v12 = vadd.f32 %v983_v30, %v982_v35  ;;  %v995_v10 = vrot.slane %v994_v37, 1 }
  0xff   :  { %v990_v25 = vadd.f32 %v989_v7, %v988_v24  ;;  %v1001_v4 = vrot.slane %v1000_v32, 1  ;;  %v1005_v16 = vmul.f32 %v2656_v39, %v2743_v62  ;;  %v1006_v13 = vmul.f32 %v2656_v39, %v2748_v22 }
 0x100   :  { %v996_v3 = vadd.f32 %v995_v10, %v994_v37  ;;  %v1007_v21 = vmul.f32 %v2656_v39, %v2756_v49  ;;  %v1008_v0 = vmul.f32 %v2656_v39, %v914_v33  ;;  %v1009_v29 = vmul.f32 %v2656_v39, %v920_v1 }
 0x101   :  { %v1002_v19 = vadd.f32 %v1001_v4, %v1000_v32  ;;  %v1010_v58 = vmul.f32 %v2656_v39, %v926_v11  ;;  %v1011_v7 = vmul.f32 %v2656_v39, %v932_v45  ;;  %v1012_v43 = vmul.f32 %v2656_v39, %v938_v5 }
 0x102   :  { %v1015_v62 = vmul.f32 %v2659_v50, %v960_v60  ;;  %v1016_v42 = vmul.f32 %v2659_v50, %v966_v40  ;;  %v1017_v22 = vmul.f32 %v2659_v50, %v972_v9  ;;  %v1018_v38 = vmul.f32 %v2659_v50, %v978_v59 }
 0x103   :  { %v1019_v49 = vmul.f32 %v2659_v50, %v984_v12  ;;  %v1020_v33 = vmul.f32 %v2659_v50, %v990_v25  ;;  %v1021_v1 = vmul.f32 %v2659_v50, %v996_v3  ;;  %v1022_v11 = vmul.f32 %v2659_v50, %v1002_v19 }
 0x104   :  { %v1023_v61 = vadd.f32 %v1015_v62, %v1005_v16  ;;  %v1024_v45 = vadd.f32 %v1016_v42, %v1006_v13  ;;  %v1025_v54 = vadd.f32 %v1017_v22, %v1007_v21  ;;  %v1026_v39 = vadd.f32 %v1018_v38, %v1008_v0 }
 0x105   :  { %v1027_v5 = vadd.f32 %v1019_v49, %v1009_v29  ;;  %v1028_v23 = vadd.f32 %v1020_v33, %v1010_v58  ;;  %v1029_v28 = vadd.f32 %v1021_v1, %v1011_v7  ;;  %v1030_v35 = vadd.f32 %v1022_v11, %v1012_v43 }
 0x106   :  { %v2790_v36 = vadd.f32 %v2662_v20, %v1023_v61  ;;  %v2793_v26 = vadd.f32 %v2662_v20, %v1024_v45  ;;  %v2796_v15 = vadd.f32 %v2662_v20, %v1025_v54  ;;  %v2799_v24 = vadd.f32 %v2662_v20, %v1026_v39 }
 0x107   :  { %v2802_v50 = vadd.f32 %v2662_v20, %v1027_v5  ;;  %v2805_v31 = vadd.f32 %v2662_v20, %v1028_v23  ;;  %v2808_v18 = vadd.f32 %v2662_v20, %v1029_v28  ;;  %v2811_v17 = vadd.f32 %v2662_v20, %v1030_v35  ;;  %v1704_v35 = vld [vmem:[%s3186_s7 + $0x40] sm:$0xff] }
 0x108   :  { %v1043_v30 = vmul.f32 %v2692_v57, %v2644_v2  ;;  %v1044_v37 = vmul.f32 %v2706_v6, %v2644_v2  ;;  %v1045_v60 = vmul.f32 %v2717_v63, %v2644_v2  ;;  %v1046_v40 = vmul.f32 %v2724_v14, %v2644_v2 }
 0x109   :  { %3192 = vst [vmem:[#allocation17_spill] sm:$0xff] %v2808_v18  ;;  %3193 = vst [vmem:[#allocation18_spill] sm:$0xff] %v2811_v17  ;;  %v1047_v32 = vmul.f32 %v2731_v44, %v2644_v2  ;;  %v1048_v9 = vmul.f32 %v2735_v41, %v2644_v2  ;;  %v1049_v20 = vrot.slane %v2703_v52, 4  ;;  %v1055_v59 = vrot.slane %v2714_v53, 4 }
 0x10a   :  { %v1061_v12 = vrot.slane %v1043_v30, 4  ;;  %v1067_v10 = vrot.slane %v1044_v37, 4  ;;  %v1073_v25 = vrot.slane %v1045_v60, 4  ;;  %v1079_v4 = vrot.slane %v1046_v40, 4 }
 0x10b   :  { %v1050_v16 = vadd.f32 %v1049_v20, %v2703_v52  ;;  %v1056_v13 = vadd.f32 %v1055_v59, %v2714_v53  ;;  %v1085_v3 = vrot.slane %v1047_v32, 4  ;;  %v1091_v21 = vrot.slane %v1048_v9, 4 }
 0x10c   :  { %v1062_v0 = vadd.f32 %v1061_v12, %v1043_v30  ;;  %v1068_v29 = vadd.f32 %v1067_v10, %v1044_v37  ;;  %v1074_v19 = vadd.f32 %v1073_v25, %v1045_v60  ;;  %v1080_v58 = vadd.f32 %v1079_v4, %v1046_v40  ;;  %v1707_v25 = vld [vmem:[%s3186_s7 + $0x58] sm:$0xff]  ;;  %v1708_v4 = vld [vmem:[%s3186_s7 + $0x60] sm:$0xff] }
 0x10d   :  { %v1051_v7 = vrot.slane %v1050_v16, 2  ;;  %v1057_v2 = vrot.slane %v1056_v13, 2  ;;  %v1086_v43 = vadd.f32 %v1085_v3, %v1047_v32  ;;  %v1092_v62 = vadd.f32 %v1091_v21, %v1048_v9  ;;  %v1705_v32 = vld [vmem:[%s3186_s7 + $0x48] sm:$0xff]  ;;  %v1706_v9 = vld [vmem:[%s3186_s7 + $0x50] sm:$0xff] }
 0x10e   :  { %v1063_v42 = vrot.slane %v1062_v0, 2  ;;  %v1069_v22 = vrot.slane %v1068_v29, 2  ;;  %v1075_v38 = vrot.slane %v1074_v19, 2  ;;  %v1081_v49 = vrot.slane %v1080_v58, 2 }
 0x10f   :  { %v1052_v33 = vadd.f32 %v1051_v7, %v1050_v16  ;;  %v1058_v1 = vadd.f32 %v1057_v2, %v1056_v13  ;;  %v1087_v11 = vrot.slane %v1086_v43, 2  ;;  %v1093_v52 = vrot.slane %v1092_v62, 2  ;;  %v1709_v16 = vld [vmem:[%s3186_s7 + $0x68] sm:$0xff] }
 0x110   :  { %v1064_v61 = vadd.f32 %v1063_v42, %v1062_v0  ;;  %v1070_v53 = vadd.f32 %v1069_v22, %v1068_v29  ;;  %v1076_v45 = vadd.f32 %v1075_v38, %v1074_v19  ;;  %v1082_v54 = vadd.f32 %v1081_v49, %v1080_v58  ;;  %v1710_v29 = vld [vmem:[%s3186_s7 + $0x70] sm:$0xff]  ;;  %v1711_v19 = vld [vmem:[%s3186_s7 + $0x78] sm:$0xff] }
 0x111   :  { %v1053_v39 = vrot.slane %v1052_v33, 1  ;;  %v1059_v5 = vrot.slane %v1058_v1, 1  ;;  %v1088_v23 = vadd.f32 %v1087_v11, %v1086_v43  ;;  %v1094_v28 = vadd.f32 %v1093_v52, %v1092_v62 }
 0x112   :  { %v1065_v30 = vrot.slane %v1064_v61, 1  ;;  %v1071_v37 = vrot.slane %v1070_v53, 1  ;;  %v1077_v60 = vrot.slane %v1076_v45, 1  ;;  %v1083_v40 = vrot.slane %v1082_v54, 1 }
 0x113   :  { %v2838_v20 = vadd.f32 %v1053_v39, %v1052_v33  ;;  %v2840_v59 = vadd.f32 %v1059_v5, %v1058_v1  ;;  %v1089_v12 = vrot.slane %v1088_v23, 1  ;;  %v1095_v10 = vrot.slane %v1094_v28, 1 }
 0x114   :  { %v2851_v13 = vadd.f32 %v1065_v30, %v1064_v61  ;;  %v2853_v3 = vadd.f32 %v1071_v37, %v1070_v53  ;;  %v2855_v21 = vadd.f32 %v1077_v60, %v1076_v45  ;;  %v2857_v0 = vadd.f32 %v1083_v40, %v1082_v54 }
 0x115   :  { %v2865_v58 = vadd.f32 %v1089_v12, %v1088_v23  ;;  %v2867_v7 = vadd.f32 %v1095_v10, %v1094_v28  ;;  %v1106_v2 = vmul.f32 %v1704_v35, %v2665_v46  ;;  %v1107_v43 = vmul.f32 %v1705_v32, %v2679_v55 }
 0x116   :  { %v1108_v62 = vmul.f32 %v1706_v9, %v2692_v57  ;;  %v1109_v42 = vmul.f32 %v1707_v25, %v2706_v6  ;;  %v1110_v22 = vmul.f32 %v1708_v4, %v2717_v63  ;;  %v1111_v38 = vmul.f32 %v1709_v16, %v2724_v14 }
 0x117   :  { %v1112_v49 = vmul.f32 %v1710_v29, %v2731_v44  ;;  %v1113_v33 = vmul.f32 %v1711_v19, %v2735_v41  ;;  %v1114_v1 = vrot.slane %v1106_v2, 4  ;;  %v1120_v11 = vrot.slane %v1107_v43, 4 }
 0x118   :  { %v1126_v52 = vrot.slane %v1108_v62, 4  ;;  %v1132_v61 = vrot.slane %v1109_v42, 4  ;;  %v1138_v53 = vrot.slane %v1110_v22, 4  ;;  %v1144_v45 = vrot.slane %v1111_v38, 4 }
 0x119   :  { %v1115_v54 = vadd.f32 %v1114_v1, %v1106_v2  ;;  %v1121_v39 = vadd.f32 %v1120_v11, %v1107_v43  ;;  %v1150_v5 = vrot.slane %v1112_v49, 4  ;;  %v1156_v23 = vrot.slane %v1113_v33, 4 }
 0x11a   :  { %v1127_v28 = vadd.f32 %v1126_v52, %v1108_v62  ;;  %v1133_v35 = vadd.f32 %v1132_v61, %v1109_v42  ;;  %v1139_v30 = vadd.f32 %v1138_v53, %v1110_v22  ;;  %v1145_v37 = vadd.f32 %v1144_v45, %v1111_v38 }
 0x11b   :  { %v1116_v60 = vrot.slane %v1115_v54, 2  ;;  %v1122_v40 = vrot.slane %v1121_v39, 2  ;;  %v1151_v32 = vadd.f32 %v1150_v5, %v1112_v49  ;;  %v1157_v9 = vadd.f32 %v1156_v23, %v1113_v33 }
 0x11c   :  { %v1128_v12 = vrot.slane %v1127_v28, 2  ;;  %v1134_v10 = vrot.slane %v1133_v35, 2  ;;  %v1140_v25 = vrot.slane %v1139_v30, 2  ;;  %v1146_v4 = vrot.slane %v1145_v37, 2 }
 0x11d   :  { %v1117_v16 = vadd.f32 %v1116_v60, %v1115_v54  ;;  %v1123_v29 = vadd.f32 %v1122_v40, %v1121_v39  ;;  %v1152_v19 = vrot.slane %v1151_v32, 2  ;;  %v1158_v17 = vrot.slane %v1157_v9, 2 }
 0x11e   :  { %v1129_v2 = vadd.f32 %v1128_v12, %v1127_v28  ;;  %v1135_v43 = vadd.f32 %v1134_v10, %v1133_v35  ;;  %v1141_v1 = vadd.f32 %v1140_v25, %v1139_v30  ;;  %v1147_v11 = vadd.f32 %v1146_v4, %v1145_v37 }
 0x11f   :  { %v1118_v62 = vrot.slane %v1117_v16, 1  ;;  %v1124_v42 = vrot.slane %v1123_v29, 1  ;;  %v1153_v22 = vadd.f32 %v1152_v19, %v1151_v32  ;;  %v1159_v38 = vadd.f32 %v1158_v17, %v1157_v9 }
 0x120   :  { %v1130_v52 = vrot.slane %v1129_v2, 1  ;;  %v1136_v61 = vrot.slane %v1135_v43, 1  ;;  %v1142_v49 = vrot.slane %v1141_v1, 1  ;;  %v1148_v33 = vrot.slane %v1147_v11, 1 }
 0x121   :  { %v1119_v53 = vadd.f32 %v1118_v62, %v1117_v16  ;;  %v1125_v45 = vadd.f32 %v1124_v42, %v1123_v29  ;;  %v1154_v5 = vrot.slane %v1153_v22, 1  ;;  %v1160_v23 = vrot.slane %v1159_v38, 1 }
 0x122   :  { %v1131_v54 = vadd.f32 %v1130_v52, %v1129_v2  ;;  %v1137_v39 = vadd.f32 %v1136_v61, %v1135_v43  ;;  %v1143_v60 = vadd.f32 %v1142_v49, %v1141_v1  ;;  %v1149_v40 = vadd.f32 %v1148_v33, %v1147_v11 }
 0x123   :  { %v1155_v28 = vadd.f32 %v1154_v5, %v1153_v22  ;;  %v1161_v35 = vadd.f32 %v1160_v23, %v1159_v38  ;;  %v1164_v30 = vmul.f32 %v2671_v48, %v2838_v20  ;;  %v1165_v17 = vmul.f32 %v2671_v48, %v2840_v59 }
 0x124   :  { %v1166_v37 = vmul.f32 %v2671_v48, %v2851_v13  ;;  %v1167_v32 = vmul.f32 %v2671_v48, %v2853_v3  ;;  %v1168_v9 = vmul.f32 %v2671_v48, %v2855_v21  ;;  %v1169_v12 = vmul.f32 %v2671_v48, %v2857_v0 }
 0x125   :  { %v1170_v10 = vmul.f32 %v2671_v48, %v2865_v58  ;;  %v1171_v20 = vmul.f32 %v2671_v48, %v2867_v7  ;;  %v1174_v59 = vmul.f32 %v2674_v51, %v1119_v53  ;;  %v1175_v25 = vmul.f32 %v2674_v51, %v1125_v45 }
 0x126   :  { %v1176_v13 = vmul.f32 %v2674_v51, %v1131_v54  ;;  %v1177_v3 = vmul.f32 %v2674_v51, %v1137_v39  ;;  %v1178_v4 = vmul.f32 %v2674_v51, %v1143_v60  ;;  %v1179_v21 = vmul.f32 %v2674_v51, %v1149_v40 }
 0x127   :  { %v1180_v0 = vmul.f32 %v2674_v51, %v1155_v28  ;;  %v1181_v16 = vmul.f32 %v2674_v51, %v1161_v35  ;;  %v1182_v58 = vadd.f32 %v1174_v59, %v1164_v30  ;;  %v1183_v29 = vadd.f32 %v1175_v25, %v1165_v17 }
 0x128   :  { %v1184_v19 = vadd.f32 %v1176_v13, %v1166_v37  ;;  %v1185_v48 = vadd.f32 %v1177_v3, %v1167_v32  ;;  %v1186_v7 = vadd.f32 %v1178_v4, %v1168_v9  ;;  %v1187_v2 = vadd.f32 %v1179_v21, %v1169_v12 }
 0x129   :  { %v1188_v43 = vadd.f32 %v1180_v0, %v1170_v10  ;;  %v1189_v1 = vadd.f32 %v1181_v16, %v1171_v20  ;;  %v2902_v11 = vadd.f32 %v2676_v47, %v1182_v58  ;;  %v2905_v62 = vadd.f32 %v2676_v47, %v1183_v29 }
 0x12a   :  { %v2908_v42 = vadd.f32 %v2676_v47, %v1184_v19  ;;  %v2911_v22 = vadd.f32 %v2676_v47, %v1185_v48  ;;  %v2914_v51 = vadd.f32 %v2676_v47, %v1186_v7  ;;  %v2917_v38 = vadd.f32 %v2676_v47, %v1187_v2 }
 0x12b   :  { %v2920_v52 = vadd.f32 %v2676_v47, %v1188_v43  ;;  %v2923_v61 = vadd.f32 %v2676_v47, %v1189_v1  ;;  %v1200_v49 = vmul.f32 %v2665_v46, %v2647_v34  ;;  %v1201_v33 = vmul.f32 %v2679_v55, %v2647_v34 }
 0x12c   :  { %3194 = vst [vmem:[#allocation19_spill] sm:$0xff] %v2917_v38  ;;  %v1202_v53 = vmul.f32 %v2692_v57, %v2647_v34  ;;  %v1203_v45 = vmul.f32 %v2706_v6, %v2647_v34  ;;  %v1204_v5 = vmul.f32 %v2717_v63, %v2647_v34  ;;  %v1205_v23 = vmul.f32 %v2724_v14, %v2647_v34 }
 0x12d   :  { %3195 = vst [vmem:[#allocation20_spill] sm:$0xff] %v2920_v52  ;;  %3196 = vst [vmem:[#allocation21_spill] sm:$0xff] %v2923_v61  ;;  %v1206_v47 = vmul.f32 %v2731_v44, %v2647_v34  ;;  %v1207_v54 = vmul.f32 %v2735_v41, %v2647_v34  ;;  %v1208_v39 = vrot.slane %v1200_v49, 4  ;;  %v1214_v60 = vrot.slane %v1201_v33, 4 }
 0x12e   :  { %v1220_v40 = vrot.slane %v1202_v53, 4  ;;  %v1226_v28 = vrot.slane %v1203_v45, 4  ;;  %v1232_v35 = vrot.slane %v1204_v5, 4  ;;  %v1238_v30 = vrot.slane %v1205_v23, 4 }
 0x12f   :  { %v1209_v17 = vadd.f32 %v1208_v39, %v1200_v49  ;;  %v1215_v37 = vadd.f32 %v1214_v60, %v1201_v33  ;;  %v1244_v32 = vrot.slane %v1206_v47, 4  ;;  %v1250_v9 = vrot.slane %v1207_v54, 4  ;;  %v1716_v60 = vld [vmem:[%s3186_s7 + $0x88] sm:$0xff] }
 0x130   :  { %v1221_v12 = vadd.f32 %v1220_v40, %v1202_v53  ;;  %v1227_v10 = vadd.f32 %v1226_v28, %v1203_v45  ;;  %v1233_v20 = vadd.f32 %v1232_v35, %v1204_v5  ;;  %v1239_v59 = vadd.f32 %v1238_v30, %v1205_v23  ;;  %v1715_v5 = vld [vmem:[%s3186_s7 + $0x80] sm:$0xff]  ;;  %v1717_v40 = vld [vmem:[%s3186_s7 + $0x90] sm:$0xff] }
 0x131   :  { %v1210_v25 = vrot.slane %v1209_v17, 2  ;;  %v1216_v13 = vrot.slane %v1215_v37, 2  ;;  %v1245_v3 = vadd.f32 %v1244_v32, %v1206_v47  ;;  %v1251_v4 = vadd.f32 %v1250_v9, %v1207_v54  ;;  %v1719_v32 = vld [vmem:[%s3186_s7 + $0xa0] sm:$0xff]  ;;  %v1720_v9 = vld [vmem:[%s3186_s7 + $0xa8] sm:$0xff] }
 0x132   :  { %v1222_v21 = vrot.slane %v1221_v12, 2  ;;  %v1228_v34 = vrot.slane %v1227_v10, 2  ;;  %v1234_v0 = vrot.slane %v1233_v20, 2  ;;  %v1240_v16 = vrot.slane %v1239_v59, 2 }
 0x133   :  { %v1211_v58 = vadd.f32 %v1210_v25, %v1209_v17  ;;  %v1217_v29 = vadd.f32 %v1216_v13, %v1215_v37  ;;  %v1246_v19 = vrot.slane %v1245_v3, 2  ;;  %v1252_v48 = vrot.slane %v1251_v4, 2  ;;  %v1718_v37 = vld [vmem:[%s3186_s7 + $0x98] sm:$0xff]  ;;  %v1721_v25 = vld [vmem:[%s3186_s7 + $0xb0] sm:$0xff] }
 0x134   :  { %v1223_v7 = vadd.f32 %v1222_v21, %v1221_v12  ;;  %v1229_v2 = vadd.f32 %v1228_v34, %v1227_v10  ;;  %v1235_v43 = vadd.f32 %v1234_v0, %v1233_v20  ;;  %v1241_v1 = vadd.f32 %v1240_v16, %v1239_v59  ;;  %v1722_v13 = vld [vmem:[%s3186_s7 + $0xb8] sm:$0xff] }
 0x135   :  { %v1212_v49 = vrot.slane %v1211_v58, 1  ;;  %v1218_v33 = vrot.slane %v1217_v29, 1  ;;  %v1247_v53 = vadd.f32 %v1246_v19, %v1245_v3  ;;  %v1253_v45 = vadd.f32 %v1252_v48, %v1251_v4 }
 0x136   :  { %v1224_v23 = vrot.slane %v1223_v7, 1  ;;  %v1230_v47 = vrot.slane %v1229_v2, 1  ;;  %v1236_v54 = vrot.slane %v1235_v43, 1  ;;  %v1242_v39 = vrot.slane %v1241_v1, 1 }
 0x137   :  { %v2950_v28 = vadd.f32 %v1212_v49, %v1211_v58  ;;  %v2952_v35 = vadd.f32 %v1218_v33, %v1217_v29  ;;  %v1248_v30 = vrot.slane %v1247_v53, 1  ;;  %v1254_v17 = vrot.slane %v1253_v45, 1 }
 0x138   :  { %v2963_v12 = vadd.f32 %v1224_v23, %v1223_v7  ;;  %v2965_v10 = vadd.f32 %v1230_v47, %v1229_v2  ;;  %v2967_v20 = vadd.f32 %v1236_v54, %v1235_v43  ;;  %v2969_v59 = vadd.f32 %v1242_v39, %v1241_v1 }
 0x139   :  { %v2977_v3 = vadd.f32 %v1248_v30, %v1247_v53  ;;  %v2979_v4 = vadd.f32 %v1254_v17, %v1253_v45  ;;  %v1265_v21 = vmul.f32 %v1715_v5, %v2665_v46  ;;  %v1266_v34 = vmul.f32 %v1716_v60, %v2679_v55 }
 0x13a   :  { %v1267_v0 = vmul.f32 %v1717_v40, %v2692_v57  ;;  %v1268_v16 = vmul.f32 %v1718_v37, %v2706_v6  ;;  %v1269_v58 = vmul.f32 %v1719_v32, %v2717_v63  ;;  %v1270_v29 = vmul.f32 %v1720_v9, %v2724_v14 }
 0x13b   :  { %v1271_v19 = vmul.f32 %v1721_v25, %v2731_v44  ;;  %v1272_v48 = vmul.f32 %v1722_v13, %v2735_v41  ;;  %v1273_v7 = vrot.slane %v1265_v21, 4  ;;  %v1279_v2 = vrot.slane %v1266_v34, 4 }
 0x13c   :  { %v1285_v43 = vrot.slane %v1267_v0, 4  ;;  %v1291_v1 = vrot.slane %v1268_v16, 4  ;;  %v1297_v49 = vrot.slane %v1269_v58, 4  ;;  %v1303_v33 = vrot.slane %v1270_v29, 4 }
 0x13d   :  { %v1274_v53 = vadd.f32 %v1273_v7, %v1265_v21  ;;  %v1280_v45 = vadd.f32 %v1279_v2, %v1266_v34  ;;  %v1309_v5 = vrot.slane %v1271_v19, 4  ;;  %v1315_v23 = vrot.slane %v1272_v48, 4 }
 0x13e   :  { %v1286_v47 = vadd.f32 %v1285_v43, %v1267_v0  ;;  %v1292_v54 = vadd.f32 %v1291_v1, %v1268_v16  ;;  %v1298_v39 = vadd.f32 %v1297_v49, %v1269_v58  ;;  %v1304_v60 = vadd.f32 %v1303_v33, %v1270_v29 }
 0x13f   :  { %v1275_v40 = vrot.slane %v1274_v53, 2  ;;  %v1281_v30 = vrot.slane %v1280_v45, 2  ;;  %v1310_v17 = vadd.f32 %v1309_v5, %v1271_v19  ;;  %v1316_v37 = vadd.f32 %v1315_v23, %v1272_v48 }
 0x140   :  { %v1287_v32 = vrot.slane %v1286_v47, 2  ;;  %v1293_v9 = vrot.slane %v1292_v54, 2  ;;  %v1299_v25 = vrot.slane %v1298_v39, 2  ;;  %v1305_v13 = vrot.slane %v1304_v60, 2 }
 0x141   :  { %v1276_v61 = vadd.f32 %v1275_v40, %v1274_v53  ;;  %v1282_v52 = vadd.f32 %v1281_v30, %v1280_v45  ;;  %v1311_v38 = vrot.slane %v1310_v17, 2  ;;  %v1317_v18 = vrot.slane %v1316_v37, 2 }
 0x142   :  { %v1288_v21 = vadd.f32 %v1287_v32, %v1286_v47  ;;  %v1294_v34 = vadd.f32 %v1293_v9, %v1292_v54  ;;  %v1300_v7 = vadd.f32 %v1299_v25, %v1298_v39  ;;  %v1306_v2 = vadd.f32 %v1305_v13, %v1304_v60 }
 0x143   :  { %v1277_v0 = vrot.slane %v1276_v61, 1  ;;  %v1283_v16 = vrot.slane %v1282_v52, 1  ;;  %v1312_v58 = vadd.f32 %v1311_v38, %v1310_v17  ;;  %v1318_v29 = vadd.f32 %v1317_v18, %v1316_v37 }
 0x144   :  { %v1289_v43 = vrot.slane %v1288_v21, 1  ;;  %v1295_v1 = vrot.slane %v1294_v34, 1  ;;  %v1301_v19 = vrot.slane %v1300_v7, 1  ;;  %v1307_v48 = vrot.slane %v1306_v2, 1 }
 0x145   :  { %v1278_v49 = vadd.f32 %v1277_v0, %v1276_v61  ;;  %v1284_v33 = vadd.f32 %v1283_v16, %v1282_v52  ;;  %v1313_v5 = vrot.slane %v1312_v58, 1  ;;  %v1319_v23 = vrot.slane %v1318_v29, 1 }
 0x146   :  { %v1290_v53 = vadd.f32 %v1289_v43, %v1288_v21  ;;  %v1296_v45 = vadd.f32 %v1295_v1, %v1294_v34  ;;  %v1302_v40 = vadd.f32 %v1301_v19, %v1300_v7  ;;  %v1308_v30 = vadd.f32 %v1307_v48, %v1306_v2  ;;  %v3197_v19 = vld [vmem:[#allocation16_spill] sm:$0xff] }
 0x147   :  { %v1314_v47 = vadd.f32 %v1313_v5, %v1312_v58  ;;  %v1320_v54 = vadd.f32 %v1319_v23, %v1318_v29  ;;  %v1323_v39 = vmul.f32 %v2685_v27, %v2950_v28  ;;  %v1324_v18 = vmul.f32 %v2685_v27, %v2952_v35 }
 0x148   :  { %v1325_v38 = vmul.f32 %v2685_v27, %v2963_v12  ;;  %v1326_v52 = vmul.f32 %v2685_v27, %v2965_v10  ;;  %v1327_v61 = vmul.f32 %v2685_v27, %v2967_v20  ;;  %v1328_v60 = vmul.f32 %v2685_v27, %v2969_v59 }
 0x149   :  { %v1329_v17 = vmul.f32 %v2685_v27, %v2977_v3  ;;  %v1330_v28 = vmul.f32 %v2685_v27, %v2979_v4  ;;  %v1333_v35 = vmul.f32 %v2687_v8, %v1278_v49  ;;  %v1334_v37 = vmul.f32 %v2687_v8, %v1284_v33 }
 0x14a   :  { %v1335_v12 = vmul.f32 %v2687_v8, %v1290_v53  ;;  %v1336_v10 = vmul.f32 %v2687_v8, %v1296_v45  ;;  %v1337_v32 = vmul.f32 %v2687_v8, %v1302_v40  ;;  %v1338_v20 = vmul.f32 %v2687_v8, %v1308_v30 }
 0x14b   :  { %v1339_v59 = vmul.f32 %v2687_v8, %v1314_v47  ;;  %v1340_v9 = vmul.f32 %v2687_v8, %v1320_v54  ;;  %v1341_v3 = vadd.f32 %v1333_v35, %v1323_v39  ;;  %v1342_v25 = vadd.f32 %v1334_v37, %v1324_v18 }
 0x14c   :  { %v1343_v13 = vadd.f32 %v1335_v12, %v1325_v38  ;;  %v1344_v27 = vadd.f32 %v1336_v10, %v1326_v52  ;;  %v1345_v4 = vadd.f32 %v1337_v32, %v1327_v61  ;;  %v1346_v21 = vadd.f32 %v1338_v20, %v1328_v60 }
 0x14d   :  { %v1347_v34 = vadd.f32 %v1339_v59, %v1329_v17  ;;  %v1348_v7 = vadd.f32 %v1340_v9, %v1330_v28  ;;  %v3014_v2 = vadd.f32 %v2689_v56, %v1341_v3  ;;  %v3017_v0 = vadd.f32 %v2689_v56, %v1342_v25 }
 0x14e   :  { %v3020_v16 = vadd.f32 %v2689_v56, %v1343_v13  ;;  %v3023_v58 = vadd.f32 %v2689_v56, %v1344_v27  ;;  %v3026_v8 = vadd.f32 %v2689_v56, %v1345_v4  ;;  %v3029_v29 = vadd.f32 %v2689_v56, %v1346_v21 }
 0x14f   :  { %v3032_v43 = vadd.f32 %v2689_v56, %v1347_v34  ;;  %v3035_v1 = vadd.f32 %v2689_v56, %v1348_v7  ;;  %v1359_v48 = vmul.f32 %v2665_v46, %v3197_v19  ;;  %v1360_v49 = vmul.f32 %v2679_v55, %v3197_v19 }
 0x150   :  { %v1361_v33 = vmul.f32 %v2692_v57, %v3197_v19  ;;  %v1362_v5 = vmul.f32 %v2706_v6, %v3197_v19  ;;  %v1363_v23 = vmul.f32 %v2717_v63, %v3197_v19  ;;  %v1364_v53 = vmul.f32 %v2724_v14, %v3197_v19 }
 0x151   :  { %v1365_v56 = vmul.f32 %v2731_v44, %v3197_v19  ;;  %v1366_v45 = vmul.f32 %v2735_v41, %v3197_v19  ;;  %v1367_v40 = vrot.slane %v1359_v48, 4  ;;  %v1373_v30 = vrot.slane %v1360_v49, 4 }
 0x152   :  { %v1379_v47 = vrot.slane %v1361_v33, 4  ;;  %v1385_v54 = vrot.slane %v1362_v5, 4  ;;  %v1391_v39 = vrot.slane %v1363_v23, 4  ;;  %v1397_v18 = vrot.slane %v1364_v53, 4 }
 0x153   :  { %v1368_v38 = vadd.f32 %v1367_v40, %v1359_v48  ;;  %v1374_v52 = vadd.f32 %v1373_v30, %v1360_v49  ;;  %v1403_v61 = vrot.slane %v1365_v56, 4  ;;  %v1409_v60 = vrot.slane %v1366_v45, 4 }
 0x154   :  { %v1380_v17 = vadd.f32 %v1379_v47, %v1361_v33  ;;  %v1386_v28 = vadd.f32 %v1385_v54, %v1362_v5  ;;  %v1392_v35 = vadd.f32 %v1391_v39, %v1363_v23  ;;  %v1398_v37 = vadd.f32 %v1397_v18, %v1364_v53  ;;  %v1726_v53 = vld [vmem:[%s3186_s7 + $0xc0] sm:$0xff]  ;;  %v1727_v47 = vld [vmem:[%s3186_s7 + $0xc8] sm:$0xff]  ;;  %v1728_v54 = vld [vmem:[%s3186_s7 + $0xd0] sm:$0xff] }
 0x155   :  { %v1369_v12 = vrot.slane %v1368_v38, 2  ;;  %v1375_v10 = vrot.slane %v1374_v52, 2  ;;  %v1404_v32 = vadd.f32 %v1403_v61, %v1365_v56  ;;  %v1410_v20 = vadd.f32 %v1409_v60, %v1366_v45  ;;  %v1729_v61 = vld [vmem:[%s3186_s7 + $0xd8] sm:$0xff]  ;;  %v1730_v60 = vld [vmem:[%s3186_s7 + $0xe0] sm:$0xff] }
 0x156   :  { %v1381_v59 = vrot.slane %v1380_v17, 2  ;;  %v1387_v9 = vrot.slane %v1386_v28, 2  ;;  %v1393_v3 = vrot.slane %v1392_v35, 2  ;;  %v1399_v25 = vrot.slane %v1398_v37, 2 }
 0x157   :  { %v1370_v13 = vadd.f32 %v1369_v12, %v1368_v38  ;;  %v1376_v27 = vadd.f32 %v1375_v10, %v1374_v52  ;;  %v1405_v4 = vrot.slane %v1404_v32, 2  ;;  %v1411_v21 = vrot.slane %v1410_v20, 2  ;;  %v1732_v10 = vld [vmem:[%s3186_s7 + $0xf0] sm:$0xff] }
 0x158   :  { %v1382_v34 = vadd.f32 %v1381_v59, %v1380_v17  ;;  %v1388_v7 = vadd.f32 %v1387_v9, %v1386_v28  ;;  %v1394_v19 = vadd.f32 %v1393_v3, %v1392_v35  ;;  %v1400_v48 = vadd.f32 %v1399_v25, %v1398_v37  ;;  %v1731_v17 = vld [vmem:[%s3186_s7 + $0xe8] sm:$0xff] }
 0x159   :  { %v1371_v49 = vrot.slane %v1370_v13, 1  ;;  %v1377_v33 = vrot.slane %v1376_v27, 1  ;;  %v1406_v5 = vadd.f32 %v1405_v4, %v1404_v32  ;;  %v1412_v23 = vadd.f32 %v1411_v21, %v1410_v20  ;;  %v1733_v32 = vld [vmem:[%s3186_s7 + $0xf8] sm:$0xff]  ;;  %s3101_s7 = sld [smem:[#allocation10 + $0x3]] }
 0x15a   :  { %v1383_v56 = vrot.slane %v1382_v34, 1  ;;  %v1389_v45 = vrot.slane %v1388_v7, 1  ;;  %v1395_v40 = vrot.slane %v1394_v19, 1  ;;  %v1401_v30 = vrot.slane %v1400_v48, 1 }
 0x15b   :  { %v3062_v39 = vadd.f32 %v1371_v49, %v1370_v13  ;;  %v3064_v18 = vadd.f32 %v1377_v33, %v1376_v27  ;;  %v1407_v38 = vrot.slane %v1406_v5, 1  ;;  %v1413_v52 = vrot.slane %v1412_v23, 1 }
 0x15c   :  { %v3075_v28 = vadd.f32 %v1383_v56, %v1382_v34  ;;  %v3077_v35 = vadd.f32 %v1389_v45, %v1388_v7  ;;  %v3079_v37 = vadd.f32 %v1395_v40, %v1394_v19  ;;  %v3081_v12 = vadd.f32 %v1401_v30, %v1400_v48 }
 0x15d   :  { %v3089_v20 = vadd.f32 %v1407_v38, %v1406_v5  ;;  %v3091_v59 = vadd.f32 %v1413_v52, %v1412_v23  ;;  %v1424_v9 = vmul.f32 %v1726_v53, %v2665_v46  ;;  %v1425_v3 = vmul.f32 %v1727_v47, %v2679_v55 }
 0x15e   :  { %v1426_v25 = vmul.f32 %v1728_v54, %v2692_v57  ;;  %v1427_v13 = vmul.f32 %v1729_v61, %v2706_v6  ;;  %v1428_v27 = vmul.f32 %v1730_v60, %v2717_v63  ;;  %v1429_v4 = vmul.f32 %v1731_v17, %v2724_v14 }
 0x15f   :  { %v1430_v21 = vmul.f32 %v1732_v10, %v2731_v44  ;;  %v1431_v34 = vmul.f32 %v1733_v32, %v2735_v41  ;;  %v1432_v7 = vrot.slane %v1424_v9, 4  ;;  %v1438_v19 = vrot.slane %v1425_v3, 4 }
 0x160   :  { %v1444_v48 = vrot.slane %v1426_v25, 4  ;;  %v1450_v49 = vrot.slane %v1427_v13, 4  ;;  %v1456_v33 = vrot.slane %v1428_v27, 4  ;;  %v1462_v46 = vrot.slane %v1429_v4, 4 }
 0x161   :  { %v1433_v5 = vadd.f32 %v1432_v7, %v1424_v9  ;;  %v1439_v55 = vadd.f32 %v1438_v19, %v1425_v3  ;;  %v1468_v23 = vrot.slane %v1430_v21, 4  ;;  %v1474_v57 = vrot.slane %v1431_v34, 4 }
 0x162   :  { %v1445_v53 = vadd.f32 %v1444_v48, %v1426_v25  ;;  %v1451_v6 = vadd.f32 %v1450_v49, %v1427_v13  ;;  %v1457_v56 = vadd.f32 %v1456_v33, %v1428_v27  ;;  %v1463_v63 = vadd.f32 %v1462_v46, %v1429_v4 }
 0x163   :  { %v1434_v45 = vrot.slane %v1433_v5, 2  ;;  %v1440_v14 = vrot.slane %v1439_v55, 2  ;;  %v1469_v40 = vadd.f32 %v1468_v23, %v1430_v21  ;;  %v1475_v44 = vadd.f32 %v1474_v57, %v1431_v34 }
 0x164   :  { %v1446_v41 = vrot.slane %v1445_v53, 2  ;;  %v1452_v30 = vrot.slane %v1451_v6, 2  ;;  %v1458_v47 = vrot.slane %v1457_v56, 2  ;;  %v1464_v54 = vrot.slane %v1463_v63, 2 }
 0x165   :  { %v1435_v38 = vadd.f32 %v1434_v45, %v1433_v5  ;;  %v1441_v52 = vadd.f32 %v1440_v14, %v1439_v55  ;;  %v1470_v61 = vrot.slane %v1469_v40, 2  ;;  %v1476_v60 = vrot.slane %v1475_v44, 2 }
 0x166   :  { %v1447_v17 = vadd.f32 %v1446_v41, %v1445_v53  ;;  %v1453_v10 = vadd.f32 %v1452_v30, %v1451_v6  ;;  %v1459_v32 = vadd.f32 %v1458_v47, %v1457_v56  ;;  %v1465_v9 = vadd.f32 %v1464_v54, %v1463_v63 }
 0x167   :  { %v1436_v3 = vrot.slane %v1435_v38, 1  ;;  %v1442_v25 = vrot.slane %v1441_v52, 1  ;;  %v1471_v13 = vadd.f32 %v1470_v61, %v1469_v40  ;;  %v1477_v27 = vadd.f32 %v1476_v60, %v1475_v44 }
 0x168   :  { %v1448_v4 = vrot.slane %v1447_v17, 1  ;;  %v1454_v21 = vrot.slane %v1453_v10, 1  ;;  %v1460_v34 = vrot.slane %v1459_v32, 1  ;;  %v1466_v7 = vrot.slane %v1465_v9, 1 }
 0x169   :  { %v1437_v19 = vadd.f32 %v1436_v3, %v1435_v38  ;;  %v1443_v48 = vadd.f32 %v1442_v25, %v1441_v52  ;;  %v1472_v49 = vrot.slane %v1471_v13, 1  ;;  %v1478_v33 = vrot.slane %v1477_v27, 1 }
 0x16a   :  { %v1449_v46 = vadd.f32 %v1448_v4, %v1447_v17  ;;  %v1455_v5 = vadd.f32 %v1454_v21, %v1453_v10  ;;  %v1461_v55 = vadd.f32 %v1460_v34, %v1459_v32  ;;  %v1467_v23 = vadd.f32 %v1466_v7, %v1465_v9 }
 0x16b   :  { %v1473_v57 = vadd.f32 %v1472_v49, %v1471_v13  ;;  %v1479_v53 = vadd.f32 %v1478_v33, %v1477_v27  ;;  %v1481_v6 = vstv %s3101_s7  ;;  %v1491_v56 = vstv %s3103_s1 }
 0x16c   :  { %v1482_v63 = vmul.f32 %v1481_v6, %v3062_v39  ;;  %v1483_v45 = vmul.f32 %v1481_v6, %v3064_v18  ;;  %v1484_v14 = vmul.f32 %v1481_v6, %v3075_v28  ;;  %v1485_v40 = vmul.f32 %v1481_v6, %v3077_v35 }
 0x16d   :  { %v1486_v44 = vmul.f32 %v1481_v6, %v3079_v37  ;;  %v1487_v41 = vmul.f32 %v1481_v6, %v3081_v12  ;;  %v1488_v30 = vmul.f32 %v1481_v6, %v3089_v20  ;;  %v1489_v47 = vmul.f32 %v1481_v6, %v3091_v59 }
 0x16e   :  { %v1492_v54 = vmul.f32 %v1491_v56, %v1437_v19  ;;  %v1493_v38 = vmul.f32 %v1491_v56, %v1443_v48  ;;  %v1494_v52 = vmul.f32 %v1491_v56, %v1449_v46  ;;  %v1495_v61 = vmul.f32 %v1491_v56, %v1455_v5 }
 0x16f   :  { %v1496_v60 = vmul.f32 %v1491_v56, %v1461_v55  ;;  %v1497_v39 = vmul.f32 %v1491_v56, %v1467_v23  ;;  %v1498_v17 = vmul.f32 %v1491_v56, %v1473_v57  ;;  %v1499_v18 = vmul.f32 %v1491_v56, %v1479_v53 }
 0x170   :  { %v1500_v10 = vadd.f32 %v1492_v54, %v1482_v63  ;;  %v1501_v28 = vadd.f32 %v1493_v38, %v1483_v45  ;;  %v1502_v32 = vadd.f32 %v1494_v52, %v1484_v14  ;;  %v1503_v35 = vadd.f32 %v1495_v61, %v1485_v40  ;;  %v3202_v63 = vld [vmem:[#allocation21_spill] sm:$0xff] }
 0x171   :  { %v1504_v9 = vadd.f32 %v1496_v60, %v1486_v44  ;;  %v1505_v37 = vadd.f32 %v1497_v39, %v1487_v41  ;;  %v1506_v3 = vadd.f32 %v1498_v17, %v1488_v30  ;;  %v1507_v12 = vadd.f32 %v1499_v18, %v1489_v47 }
 0x172   :  { %v1509_v25 = vstv %s1736_s23  ;;  %v1527_v19 = vsel %vm1526_vm0, %v2793_v26, %v2790_v36  ;;  %v1550_v49 = vsel %vm1526_vm0, %v2905_v62, %v2902_v11  ;;  %v1568_v33 = vsel %vm1526_vm0, %v3017_v0, %v3014_v2 }
 0x173   :  { %v1510_v20 = vadd.f32 %v1509_v25, %v1500_v10  ;;  %v1511_v59 = vadd.f32 %v1509_v25, %v1501_v28  ;;  %v1512_v13 = vadd.f32 %v1509_v25, %v1502_v32  ;;  %v1513_v27 = vadd.f32 %v1509_v25, %v1503_v35 }
 0x174   :  { %v1514_v4 = vadd.f32 %v1509_v25, %v1504_v9  ;;  %v1515_v21 = vadd.f32 %v1509_v25, %v1505_v37  ;;  %v1516_v34 = vadd.f32 %v1509_v25, %v1506_v3  ;;  %v1517_v7 = vadd.f32 %v1509_v25, %v1507_v12 }
 0x175   :  { %v1529_v48 = vsel %vm1528_vm1, %v2796_v15, %v1527_v19  ;;  %v1551_v36 = vsel %vm1528_vm1, %v2908_v42, %v1550_v49  ;;  %v1569_v26 = vsel %vm1528_vm1, %v3020_v16, %v1568_v33  ;;  %v1586_v15 = vsel %vm1526_vm0, %v1511_v59, %v1510_v20 }
 0x176   :  { %v1531_v46 = vsel %vm1530_vm2, %v2799_v24, %v1529_v48  ;;  %v1552_v11 = vsel %vm1530_vm2, %v2911_v22, %v1551_v36  ;;  %v1570_v62 = vsel %vm1530_vm2, %v3023_v58, %v1569_v26  ;;  %v1587_v2 = vsel %vm1528_vm1, %v1512_v13, %v1586_v15  ;;  %v3199_v22 = vld [vmem:[#allocation19_spill] sm:$0xff] }
 0x177   :  { %v1533_v5 = vsel %vm1532_vm3, %v2802_v50, %v1531_v46  ;;  %v1553_v42 = vsel %vm1532_vm3, %v2914_v51, %v1552_v11  ;;  %v1571_v0 = vsel %vm1532_vm3, %v3026_v8, %v1570_v62  ;;  %v1588_v16 = vsel %vm1530_vm2, %v1513_v27, %v1587_v2  ;;  %v3198_v50 = vld [vmem:[#allocation17_spill] sm:$0xff]  ;;  %v3201_v51 = vld [vmem:[#allocation20_spill] sm:$0xff] }
 0x178   :  { %v1535_v24 = vsel %vm1534_vm4, %v2805_v31, %v1533_v5  ;;  %v1554_v23 = vsel %vm1534_vm4, %v3199_v22, %v1553_v42  ;;  %v1572_v58 = vsel %vm1534_vm4, %v3029_v29, %v1571_v0  ;;  %v1589_v57 = vsel %vm1532_vm3, %v1514_v4, %v1588_v16  ;;  %v3200_v31 = vld [vmem:[#allocation18_spill] sm:$0xff] }
 0x179   :  { %v1537_v55 = vsel %vm1536_vm5, %v3198_v50, %v1535_v24  ;;  %v1555_v6 = vsel %vm1536_vm5, %v3201_v51, %v1554_v23  ;;  %v1573_v8 = vsel %vm1536_vm5, %v3032_v43, %v1572_v58  ;;  %v1590_v56 = vsel %vm1534_vm4, %v1515_v21, %v1589_v57 }
 0x17a   :  { %v1539_v53 = vsel %vm1538_vm6, %v3200_v31, %v1537_v55  ;;  %v1556_v29 = vsel %vm1538_vm6, %v3202_v63, %v1555_v6  ;;  %v1574_v45 = vsel %vm1538_vm6, %v3035_v1, %v1573_v8  ;;  %v1591_v14 = vsel %vm1536_vm5, %v1516_v34, %v1590_v56 }
 0x17b   :  { %1541 = vst [vmem:[%s3189_s10] sm:$0xff] %v1539_v53  ;;  %1737 = vst [vmem:[%s3189_s10 + $0x8] sm:$0xff] %v1556_v29  ;;  %v1592_v43 = vsel %vm1538_vm6, %v1517_v7, %v1591_v14 }
 0x17c   :  { %1738 = vst [vmem:[%s3189_s10 + $0x10] sm:$0xff] %v1574_v45  ;;  %1739 = vst [vmem:[%s3189_s10 + $0x18] sm:$0xff] %v1592_v43 }
 0x17d   :  { %1600 = vsyncpa [#allocation3], 1 }
 0x17e   :  { %1601 = vsyncpa [#allocation5], 1 }
 0x17f   :  { %1602 = vsyncpa [#allocation8], 1 }
 0x180   :  { %1603 = vsyncpa [#allocation11], 1 }

// kernel: axial_block_forward.5
= control target key start
LH: loop header
LB: loop body
LE: loop exit
PB: predicated region body
PF: predicated region fallthrough
CT: control target
= control target key end

     0   :  { %16 = vsyncpa [#allocation3], 0  ;;  %s4378_s0 = inlined_call_operand.vmem [shape: f32[4,8,128], index: 0, kind: input, shape index: {}]   ;;  %s4379_s1 = inlined_call_operand.vmem [shape: f32[8,4], index: 1, kind: input, shape index: {}]   ;;  %s4380_s2 = inlined_call_operand.vmem [shape: f32[8], index: 2, kind: input, shape index: {}]   ;;  %s4381_s3 = inlined_call_operand.vmem [shape: f32[2,8,8,128], index: 3, kind: input, shape index: {}]   ;;  %s4382_s4 = inlined_call_operand.vmem [shape: f32[2,8,8,128], index: 4, kind: input, shape index: {}]   ;;  %s4383_s5 = inlined_call_operand.vmem [shape: f32[4,8,8,128], index: 5, kind: input, shape index: {}]   ;;  %s4384_s6 = inlined_call_operand.vmem [shape: f32[4,1], index: 6, kind: input, shape index: {}]   ;;  %s4385_s7 = inlined_call_operand.vmem [shape: f32[3,4], index: 7, kind: input, shape index: {}]   ;;  %s4386_s8 = inlined_call_operand.vmem [shape: f32[8,4], index: 8, kind: input, shape index: {}]   ;;  %s4387_s9 = inlined_call_operand.vmem [shape: f32[8], index: 9, kind: input, shape index: {}]   ;;  %s4388_s10 = inlined_call_operand.vmem [shape: f32[8,8,128], index: 10, kind: input, shape index: {}]   ;;  %s4389_s11 = inlined_call_operand.vmem [shape: f32[8,8,128], index: 11, kind: output, shape index: {}]  }
   0x1   :  { %17 = vsyncpa [#allocation5], 0 }
   0x2   :  { %18 = vsyncpa [#allocation8], 0  ;;  %s38_s19 = sshll.u32 %s4380_s2, 4  ;;  %s39_s19 = int_to_ptr.vmem [resolvable:$true] %s38_s19 }
   0x3   :  { %19 = vsyncpa [#allocation11], 0  ;;  %s64_s22 = sshll.u32 %s4385_s7, 4  ;;  %s2668_s23 = scalar_lea.vmem %s39_s19, 16  ;;  %s65_s22 = int_to_ptr.vmem [resolvable:$true] %s64_s22 }
   0x4   :  { %p2669_p0 = scmp.ne.s32.totalorder %s39_s19, %s2668_s23  ;;  %p2673_p1 = scmp.lt.s32.totalorder %s39_s19, %s39_s19 }
   0x5   :  { %p2674_p2 = scmp.lt.s32.totalorder %s2668_s23, %s2668_s23 }
   0x7   :  { %p2675_p3 = por %p2674_p2, %p2673_p1 }
   0x9   :  { %p2676_p4 = pnand %p2675_p3, %p2669_p0 }
   0xb   :  { %2679 = shalt.err (!%p2676_p4)
}
   0xc   :  { %s2748_s24 = smov [#allocation4]   ;;  %s2680_s25 = scalar_lea.vmem %s65_s22, 64 }
   0xd   :  { %41 = dma.vmem_to_smem %s39_s19, 16, %s2748_s24, [#allocation5]  }
   0xe   :  { %p2681_p5 = scmp.ne.s32.totalorder %s65_s22, %s2680_s25  ;;  %p2685_p6 = scmp.lt.s32.totalorder %s65_s22, %s65_s22 }
   0xf   :  { %p2686_p7 = scmp.lt.s32.totalorder %s2680_s25, %s2680_s25 }
  0x11   :  { %p2687_p8 = por %p2686_p7, %p2685_p6 }
  0x13   :  { %p2688_p9 = pnand %p2687_p8, %p2681_p5 }
  0x15   :  { %2691 = shalt.err (!%p2688_p9)
}
  0x16   :  { %s2749_s2 = smov [#allocation7]   ;;  %s28_s27 = sshll.u32 %s4379_s1, 4  ;;  %s29_s27 = int_to_ptr.vmem [resolvable:$true] %s28_s27 }
  0x17   :  { %67 = dma.vmem_to_smem %s65_s22, 64, %s2749_s2, [#allocation8]  }
  0x18   :  { %s54_s30 = sshll.u32 %s4384_s6, 4  ;;  %s2692_s12 = scalar_lea.vmem %s29_s27, 128  ;;  %s55_s30 = int_to_ptr.vmem [resolvable:$true] %s54_s30 }
  0x19   :  { %p2693_p10 = scmp.ne.s32.totalorder %s29_s27, %s2692_s12  ;;  %p2697_p11 = scmp.lt.s32.totalorder %s29_s27, %s29_s27 }
  0x1a   :  { %p2698_p12 = scmp.lt.s32.totalorder %s2692_s12, %s2692_s12 }
  0x1c   :  { %p2699_p13 = por %p2698_p12, %p2697_p11 }
  0x1e   :  { %p2700_p0 = pnand %p2699_p13, %p2693_p10 }
  0x20   :  { %2703 = shalt.err (!%p2700_p0)
}
  0x21   :  { %s2750_s13 = smov [#allocation2]   ;;  %s2704_s14 = scalar_lea.vmem %s55_s30, 64 }
  0x22   :  { %31 = dma.vmem_to_smem %s29_s27, 128, %s2750_s13, [#allocation3]  }
  0x23   :  { %p2705_p1 = scmp.ne.s32.totalorder %s55_s30, %s2704_s14  ;;  %p2709_p2 = scmp.lt.s32.totalorder %s55_s30, %s55_s30 }
  0x24   :  { %p2710_p3 = scmp.lt.s32.totalorder %s2704_s14, %s2704_s14 }
  0x26   :  { %p2711_p4 = por %p2710_p3, %p2709_p2 }
  0x28   :  { %p2712_p5 = pnand %p2711_p4, %p2705_p1 }
  0x2a   :  { %2715 = shalt.err (!%p2712_p5)
}
  0x2b   :  { %s2751_s1 = smov [#allocation6]   ;;  %s74_s16 = sshll.u32 %s4386_s8, 4  ;;  %s75_s16 = int_to_ptr.vmem [resolvable:$true] %s74_s16 }
  0x2c   :  { %57 = dma.vmem_to_smem %s55_s30, 64, %s2751_s1, [#allocation5]  }
  0x2d   :  { %s84_s19 = sshll.u32 %s4387_s9, 4  ;;  %s2716_s20 = scalar_lea.vmem %s75_s16, 128  ;;  %s85_s19 = int_to_ptr.vmem [resolvable:$true] %s84_s19 }
  0x2e   :  { %p2717_p6 = scmp.ne.s32.totalorder %s75_s16, %s2716_s20  ;;  %p2721_p7 = scmp.lt.s32.totalorder %s75_s16, %s75_s16 }
  0x2f   :  { %p2722_p8 = scmp.lt.s32.totalorder %s2716_s20, %s2716_s20 }
  0x31   :  { %p2723_p9 = por %p2722_p8, %p2721_p7 }
  0x33   :  { %p2724_p10 = pnand %p2723_p9, %p2717_p6 }
  0x35   :  { %2727 = shalt.err (!%p2724_p10)
}
  0x36   :  { %s2752_s21 = smov [#allocation9]   ;;  %s2728_s22 = scalar_lea.vmem %s85_s19, 16 }
  0x37   :  { %77 = dma.vmem_to_smem %s75_s16, 128, %s2752_s21, [#allocation8]  }
  0x38   :  { %p2729_p11 = scmp.ne.s32.totalorder %s85_s19, %s2728_s22  ;;  %p2733_p12 = scmp.lt.s32.totalorder %s85_s19, %s85_s19 }
  0x39   :  { %p2734_p13 = scmp.lt.s32.totalorder %s2728_s22, %s2728_s22 }
  0x3b   :  { %p2735_p0 = por %p2734_p13, %p2733_p12 }
  0x3d   :  { %p2736_p1 = pnand %p2735_p0, %p2729_p11 }
  0x3f   :  { %2739 = shalt.err (!%p2736_p1)
}
  0x40   :  { %s2753_s8 = smov [#allocation10]  }
  0x41   :  { %87 = dma.vmem_to_smem %s85_s19, 16, %s2753_s8, [#allocation11]  }
  0x42   :  { %2740 = dma.done.wait [#allocation3], 128  }
  0x43   :  { %2741 = vsyncadd [#allocation3], 4294967168 }
  0x44   :  { %2742 = dma.done.wait [#allocation5], 80  }
  0x45   :  { %2743 = vsyncadd [#allocation5], 4294967216 }
  0x46   :  { %2744 = dma.done.wait [#allocation8], 192  }
  0x47   :  { %2745 = vsyncadd [#allocation8], 4294967104 }
  0x48   :  { %2746 = dma.done.wait [#allocation11], 16  }
  0x49   :  { %2747 = vsyncadd [#allocation11], 4294967280 }
  0x4a   :  { %108 = sfence }
  0x4b   :  { %s116_s9 = sld [smem:[#allocation2]]  ;;  %s2485_s23 = sld [smem:[#allocation2 + $0x1]]  ;;  %v265_v0 = vlaneseq  ;;  %v2840_v1 = vld [vmem:[%s4378_s0] sm:$0xff]  ;;  %v2754_v2 = vmov 1966171168   ;;  %v2849_v4 = vld [vmem:[%s4378_s0 + $0x8] sm:$0xff] }
  0x4c   :  { %s2486_s24 = sld [smem:[#allocation2 + $0x2]]  ;;  %s2487_s25 = sld [smem:[#allocation2 + $0x3]]  ;;  %v263_v3 = vunpack.c.l.s4 %v2754_v2  ;;  %v2854_v5 = vld [vmem:[%s4378_s0 + $0x10] sm:$0xff]  ;;  %v2863_v6 = vld [vmem:[%s4378_s0 + $0x18] sm:$0xff]  ;;  %vm1521_vm0 = vcmask 1041409   ;;  %vm1524_vm1 = vcmask 1042434  }
  0x4d   :  { %s2833_s2 = sld [smem:[#allocation2 + $0x80]]  ;;  %s2835_s7 = sld [smem:[#allocation2 + $0x81]]  ;;  %v2874_v11 = vshrl.u32 %v265_v0, 7  ;;  %vm1527_vm2 = vcmask 1043459   ;;  %vm1530_vm3 = vcmask 1044484   ;;  %vm1533_vm4 = vcmask 1045509  }
  0x4e   :  { %s2842_s28 = sld [smem:[#allocation4]]  ;;  %s2844_s29 = sld [smem:[#allocation2 + $0x82]]  ;;  %v264_v15 = vunpack.c.0.s8 %v263_v3  ;;  %vm1536_vm5 = vcmask 1046534   ;;  %vm1539_vm6 = vcmask 1047559  }
  0x4f   :  { %s2856_s1 = sld [smem:[#allocation2 + $0x83]]  ;;  %s2858_s6 = sld [smem:[#allocation2 + $0x100]] }
  0x50   :  { %s2865_s17 = sld [smem:[#allocation2 + $0x101]]  ;;  %s2867_s18 = sld [smem:[#allocation2 + $0x102]]  ;;  %v2904_v25 = vsub.s32 %v264_v15, %v2874_v11 }
  0x51   :  { %v117_v7 = vstv %s116_s9  ;;  %v120_v9 = vstv %s2485_s23  ;;  %s2870_s19 = sld [smem:[#allocation4 + $0x1]]  ;;  %s2872_s20 = sld [smem:[#allocation2 + $0x103]] }
  0x52   :  { %v118_v8 = vmul.f32 %v117_v7, %v2840_v1  ;;  %v124_v10 = vstv %s2486_s24  ;;  %v121_v12 = vmul.f32 %v2849_v4, %v120_v9  ;;  %v128_v14 = vstv %s2487_s25  ;;  %s2878_s0 = sld [smem:[#allocation2 + $0x180]]  ;;  %s2880_s21 = sld [smem:[#allocation2 + $0x181]] }
  0x53   :  { %v125_v13 = vmul.f32 %v2854_v5, %v124_v10  ;;  %v129_v16 = vmul.f32 %v2863_v6, %v128_v14  ;;  %v135_v17 = vstv %s2833_s2  ;;  %v138_v18 = vstv %s2835_s7  ;;  %s2885_s22 = sld [smem:[#allocation4 + $0x2]]  ;;  %s2892_s9 = sld [smem:[#allocation2 + $0x200]] }
  0x54   :  { %s2887_s8 = sld [smem:[#allocation2 + $0x182]]  ;;  %v122_v19 = vadd.f32 %v121_v12, %v118_v8  ;;  %v136_v20 = vmul.f32 %v135_v17, %v2840_v1  ;;  %v139_v21 = vmul.f32 %v2849_v4, %v138_v18  ;;  %v142_v22 = vstv %s2844_s29  ;;  %s2895_s23 = sld [smem:[#allocation2 + $0x201]] }
  0x55   :  { %v153_v23 = vstv %s2858_s6  ;;  %s2897_s24 = sld [smem:[#allocation2 + $0x202]]  ;;  %s2899_s25 = sld [smem:[#allocation2 + $0x183]]  ;;  %v143_v27 = vmul.f32 %v2854_v5, %v142_v22  ;;  %v146_v28 = vstv %s2856_s1  ;;  %v132_v34 = vstv %s2842_s28 }
  0x56   :  { %v126_v24 = vadd.f32 %v125_v13, %v122_v19  ;;  %s2901_s2 = sld [smem:[#allocation2 + $0x203]]  ;;  %v140_v26 = vadd.f32 %v139_v21, %v136_v20  ;;  %v156_v29 = vstv %s2865_s17  ;;  %s2911_s26 = sld [smem:[#allocation2 + $0x280]]  ;;  %v154_v31 = vmul.f32 %v153_v23, %v2840_v1 }
  0x57   :  { %s2909_s7 = sld [smem:[#allocation4 + $0x3]]  ;;  %v157_v32 = vmul.f32 %v2849_v4, %v156_v29  ;;  %v160_v33 = vstv %s2867_s18  ;;  %s2916_s27 = sld [smem:[#allocation2 + $0x281]]  ;;  %v164_v35 = vstv %s2872_s20  ;;  %v147_v38 = vmul.f32 %v2863_v6, %v146_v28 }
  0x58   :  { %v130_v30 = vadd.f32 %v129_v16, %v126_v24  ;;  %v171_v36 = vstv %s2878_s0  ;;  %v174_v37 = vstv %s2880_s21  ;;  %s2922_s29 = sld [smem:[#allocation2 + $0x282]]  ;;  %s2924_s30 = sld [smem:[#allocation2 + $0x283]]  ;;  %v150_v39 = vstv %s2870_s19 }
  0x59   :  { %v172_v40 = vmul.f32 %v171_v36, %v2840_v1  ;;  %v144_v42 = vadd.f32 %v143_v27, %v140_v26  ;;  %v161_v43 = vmul.f32 %v2854_v5, %v160_v33  ;;  %v168_v44 = vstv %s2885_s22  ;;  %s2933_s28 = sld [smem:[#allocation2 + $0x300]]  ;;  %s2935_s12 = sld [smem:[#allocation2 + $0x301]] }
  0x5a   :  { %v178_v41 = vstv %s2887_s8  ;;  %v175_v45 = vmul.f32 %v2849_v4, %v174_v37  ;;  %v2937_v46 = vadd.f32 %v132_v34, %v130_v30  ;;  %v158_v47 = vadd.f32 %v157_v32, %v154_v31  ;;  %s2941_s13 = sld [smem:[#allocation2 + $0x302]]  ;;  %s2947_s14 = sld [smem:[#allocation2 + $0x303]] }
  0x5b   :  { %v165_v48 = vmul.f32 %v2863_v6, %v164_v35  ;;  %v189_v49 = vstv %s2892_s9  ;;  %v179_v50 = vmul.f32 %v2854_v5, %v178_v41  ;;  %v192_v52 = vstv %s2895_s23  ;;  %s2952_s1 = sld [smem:[#allocation2 + $0x380]]  ;;  %s2957_s6 = sld [smem:[#allocation2 + $0x381]]  ;;  %v374_v41 = vld [vmem:[%s4382_s4] sm:$0xff] }
  0x5c   :  { %v190_v51 = vmul.f32 %v189_v49, %v2840_v1  ;;  %v196_v53 = vstv %s2897_s24  ;;  %v176_v54 = vadd.f32 %v175_v45, %v172_v40  ;;  %v193_v55 = vmul.f32 %v2849_v4, %v192_v52  ;;  %s2959_s15 = sld [smem:[#allocation2 + $0x382]]  ;;  %s2964_s16 = sld [smem:[#allocation2 + $0x383]] }
  0x5d   :  { %v197_v56 = vmul.f32 %v2854_v5, %v196_v53  ;;  %v200_v57 = vstv %s2901_s2  ;;  %v148_v58 = vadd.f32 %v147_v38, %v144_v42  ;;  %v182_v59 = vstv %s2899_s25  ;;  %s3219_s18 = sld [smem:[#allocation6]]  ;;  %s3836_s23 = sld [smem:[#allocation7 + $0x83]] }
  0x5e   :  { %v186_v60 = vstv %s2909_s7  ;;  %v207_v61 = vstv %s2911_s26  ;;  %v194_v62 = vadd.f32 %v193_v55, %v190_v51  ;;  %v201_v63 = vmul.f32 %v2863_v6, %v200_v57  ;;  %v379_v57 = vld [vmem:[%s4382_s4 + $0x28] sm:$0xff]  ;;  %s3243_s2 = sld [smem:[#allocation6 + $0x80]]  ;;  %s3838_s24 = sld [smem:[#allocation7 + $0x103]] }
  0x5f   :  { %v208_v0 = vmul.f32 %v207_v61, %v2840_v1  ;;  %v210_v2 = vstv %s2916_s27  ;;  %v162_v3 = vadd.f32 %v161_v43, %v158_v47  ;;  %v214_v8 = vstv %s2922_s29  ;;  %s3249_s7 = sld [smem:[#allocation6 + $0x100]]  ;;  %s3353_s27 = sld [smem:[#allocation4 + $0x5]] }
  0x60   :  { %v211_v7 = vmul.f32 %v2849_v4, %v210_v2  ;;  %v218_v9 = vstv %s2924_s30  ;;  %v180_v10 = vadd.f32 %v179_v50, %v176_v54  ;;  %v183_v12 = vmul.f32 %v2863_v6, %v182_v59  ;;  %v378_v54 = vld [vmem:[%s4382_s4 + $0x20] sm:$0xff]  ;;  %s3251_s26 = sld [smem:[#allocation6 + $0x180]]  ;;  %s3355_s29 = sld [smem:[#allocation4 + $0x6]] }
  0x61   :  { %v198_v13 = vadd.f32 %v197_v56, %v194_v62  ;;  %v215_v14 = vmul.f32 %v2854_v5, %v214_v8  ;;  %v219_v16 = vmul.f32 %v2863_v6, %v218_v9  ;;  %v225_v17 = vstv %s2933_s28  ;;  %s3357_s30 = sld [smem:[#allocation4 + $0x7]]  ;;  %s3359_s28 = sld [smem:[#allocation7]] }
  0x62   :  { %v212_v15 = vadd.f32 %v211_v7, %v208_v0  ;;  %v228_v18 = vstv %s2935_s12  ;;  %v226_v20 = vmul.f32 %v225_v17, %v2840_v1  ;;  %v232_v22 = vstv %s2941_s13  ;;  %v380_v0 = vld [vmem:[%s4382_s4 + $0x30] sm:$0xff]  ;;  %v358_v17 = vld [vmem:[%s4381_s3] sm:$0xff]  ;;  %s3361_s12 = sld [smem:[#allocation7 + $0x80]]  ;;  %s3842_s25 = sld [smem:[#allocation9 + $0x1]] }
  0x63   :  { %v2974_v19 = vadd.f32 %v201_v63, %v198_v13  ;;  %v229_v21 = vmul.f32 %v2849_v4, %v228_v18  ;;  %v166_v23 = vadd.f32 %v165_v48, %v162_v3  ;;  %v233_v26 = vmul.f32 %v2854_v5, %v232_v22  ;;  %v359_v18 = vld [vmem:[%s4381_s3 + $0x8] sm:$0xff]  ;;  %s3363_s13 = sld [smem:[#allocation7 + $0x100]]  ;;  %s3991_s17 = sld [smem:[#allocation9 + $0x102]] }
  0x64   :  { %v216_v24 = vadd.f32 %v215_v14, %v212_v15  ;;  %v236_v27 = vstv %s2947_s14  ;;  %v184_v28 = vadd.f32 %v183_v12, %v180_v10  ;;  %v243_v31 = vstv %s2952_s1  ;;  %s3365_s14 = sld [smem:[#allocation7 + $0x1]]  ;;  %s3840_s19 = sld [smem:[#allocation9]] }
  0x65   :  { %v230_v29 = vadd.f32 %v229_v21, %v226_v20  ;;  %v237_v30 = vmul.f32 %v2863_v6, %v236_v27  ;;  %v244_v33 = vmul.f32 %v243_v31, %v2840_v1  ;;  %v246_v34 = vstv %s2957_s6  ;;  %v360_v20 = vld [vmem:[%s4381_s3 + $0x10] sm:$0xff]  ;;  %v361_v27 = vld [vmem:[%s4381_s3 + $0x18] sm:$0xff]  ;;  %s2554_s1 = sld [smem:[#allocation7 + $0x101]]  ;;  %s3369_s6 = sld [smem:[#allocation7 + $0x2]] }
  0x66   :  { %v2983_v32 = vadd.f32 %v219_v16, %v216_v24  ;;  %v250_v35 = vstv %s2959_s15  ;;  %v247_v37 = vmul.f32 %v2849_v4, %v246_v34  ;;  %v254_v40 = vstv %s2964_s16  ;;  %v375_v4 = vld [vmem:[%s4382_s4 + $0x8] sm:$0xff]  ;;  %s2564_s15 = sld [smem:[#allocation7 + $0x82]]  ;;  %s4044_s9 = sld [smem:[#allocation9 + $0x180]] }
  0x67   :  { %v234_v36 = vadd.f32 %v233_v26, %v230_v29  ;;  %v251_v38 = vmul.f32 %v2854_v5, %v250_v35  ;;  %v2996_v42 = vadd.f32 %v168_v44, %v166_v23  ;;  %v261_v43 = vcombine.high %v2937_v46, %v2937_v46  ;;  %v376_v44 = vld [vmem:[%s4382_s4 + $0x10] sm:$0xff]  ;;  %v363_v29 = vld [vmem:[%s4381_s3 + $0x28] sm:$0xff]  ;;  %s2565_s16 = sld [smem:[#allocation7 + $0x102]]  ;;  %s4234_s22 = sld [smem:[#allocation9 + $0x300]] }
  0x68   :  { %v3001_v1 = vsub.s32 0, %v2874_v11  ;;  %v248_v5 = vadd.f32 %v247_v37, %v244_v33  ;;  %v255_v47 = vmul.f32 %v2863_v6, %v254_v40  ;;  %v268_v48 = vrot.slane %v2937_v46, %v2904_v25  ;;  %v377_v11 = vld [vmem:[%s4382_s4 + $0x18] sm:$0xff]  ;;  %v364_v35 = vld [vmem:[%s4381_s3 + $0x30] sm:$0xff]  ;;  %s2591_s21 = sld [smem:[#allocation10 + $0x2]]  ;;  %s4243_s8 = sld [smem:[#allocation9 + $0x301]] }
  0x69   :  { %v3006_v45 = vadd.f32 %v237_v30, %v234_v36  ;;  %v3019_v49 = vadd.f32 %v150_v39, %v148_v58  ;;  %v3021_v50 = vadd.f32 %v186_v60, %v184_v28  ;;  %v275_v51 = vrot.slane %v261_v43, %v2904_v25  ;;  %v362_v28 = vld [vmem:[%s4381_s3 + $0x20] sm:$0xff]  ;;  %v365_v36 = vld [vmem:[%s4381_s3 + $0x38] sm:$0xff] }
  0x6a   :  { %v3025_v6 = vmul.f32 %v374_v41, %v2996_v42  ;;  %v252_v52 = vadd.f32 %v251_v38, %v248_v5  ;;  %v276_v46 = vcombine.high %v268_v48, %v268_v48  ;;  %v284_v53 = vrot.slane %v268_v48, %v2904_v25  ;;  %v381_v37 = vld [vmem:[%s4382_s4 + $0x38] sm:$0xff]  ;;  %v2532_v5 = vld [vmem:[%s4382_s4 + $0x48] sm:$0xff] }
  0x6b   :  { %v3032_v55 = vmul.f32 %v375_v4, %v2996_v42  ;;  %v277_v39 = vcombine.high %v275_v51, %v275_v51  ;;  %v291_v56 = vrot.slane %v275_v51, %v2904_v25  ;;  %v3039_v58 = vmul.f32 %v376_v44, %v2996_v42  ;;  %v2531_v4 = vld [vmem:[%s4382_s4 + $0x40] sm:$0xff] }
  0x6c   :  { %v3042_v59 = vmul.f32 %v377_v11, %v2996_v42  ;;  %v3044_v60 = vadd.f32 %v255_v47, %v252_v52  ;;  %v298_v61 = vrot.slane %v276_v46, %v2904_v25  ;;  %v306_v62 = vcombine.high %v284_v53, %v284_v53  ;;  %v2533_v47 = vld [vmem:[%s4382_s4 + $0x50] sm:$0xff]  ;;  %v2534_v52 = vld [vmem:[%s4382_s4 + $0x58] sm:$0xff]  ;;  %v2535_v46 = vld [vmem:[%s4382_s4 + $0x60] sm:$0xff] }
  0x6d   :  { %v313_v63 = vrot.slane %v284_v53, %v3001_v1  ;;  %v305_v2 = vrot.slane %v277_v39, %v2904_v25  ;;  %v307_v3 = vcombine.high %v291_v56, %v291_v56  ;;  %v329_v7 = vrot.slane %v291_v56, %v3001_v1 }
  0x6e   :  { %v3054_v8 = vmul.f32 %v378_v54, %v2996_v42  ;;  %v308_v9 = vcombine.high %v298_v61, %v298_v61  ;;  %v317_v10 = vrot.slane %v298_v61, %v3001_v1  ;;  %v321_v12 = vrot.slane %v306_v62, %v3001_v1  ;;  %v2537_v61 = vld [vmem:[%s4382_s4 + $0x70] sm:$0xff]  ;;  %v2538_v62 = vld [vmem:[%s4382_s4 + $0x78] sm:$0xff] }
  0x6f   :  { %v3059_v13 = vmul.f32 %v379_v57, %v2996_v42  ;;  %v309_v14 = vcombine.high %v305_v2, %v305_v2  ;;  %v333_v15 = vrot.slane %v305_v2, %v3001_v1  ;;  %v337_v16 = vrot.slane %v307_v3, %v3001_v1  ;;  %v2536_v57 = vld [vmem:[%s4382_s4 + $0x68] sm:$0xff]  ;;  %s3367_s4 = sld [smem:[#allocation7 + $0x81]] }
  0x70   :  { %v3073_v21 = vmul.f32 %v380_v0, %v2996_v42  ;;  %v325_v22 = vrot.slane %v308_v9, %v3001_v1  ;;  %v3077_v23 = vmul.f32 %v313_v63, %v2996_v42  ;;  %v3080_v24 = vmul.f32 %v317_v10, %v2996_v42 }
  0x71   :  { %v3083_v26 = vmul.f32 %v321_v12, %v2996_v42  ;;  %v341_v30 = vrot.slane %v309_v14, %v3001_v1  ;;  %v3096_v31 = vmul.f32 %v329_v7, %v2996_v42  ;;  %v3099_v33 = vmul.f32 %v333_v15, %v2996_v42 }
  0x72   :  { %v3102_v34 = vmul.f32 %v337_v16, %v2996_v42  ;;  %v3114_v38 = vmul.f32 %v325_v22, %v2996_v42  ;;  %v3116_v40 = vmul.f32 %v358_v17, %v313_v63  ;;  %v3118_v41 = vmul.f32 %v359_v18, %v317_v10 }
  0x73   :  { %v3120_v43 = vmul.f32 %v360_v20, %v321_v12  ;;  %v3132_v48 = vmul.f32 %v341_v30, %v2996_v42  ;;  %v3134_v44 = vmul.f32 %v361_v27, %v325_v22  ;;  %v3136_v11 = vmul.f32 %v362_v28, %v329_v7 }
  0x74   :  { %v3138_v51 = vmul.f32 %v363_v29, %v333_v15  ;;  %v3146_v53 = vmul.f32 %v364_v35, %v337_v16  ;;  %v3148_v54 = vmul.f32 %v365_v36, %v341_v30  ;;  %v391_v39 = vcombine.high %v3019_v49, %v3019_v49 }
  0x75   :  { %v398_v56 = vrot.slane %v3019_v49, %v2904_v25  ;;  %v3164_v63 = vmul.f32 %v381_v37, %v2996_v42  ;;  %v530_v0 = vmul.f32 %v2531_v4, %v3021_v50  ;;  %v531_v2 = vmul.f32 %v2532_v5, %v3021_v50  ;;  %v2523_v4 = vld [vmem:[%s4381_s3 + $0x40] sm:$0xff] }
  0x76   :  { %v532_v49 = vmul.f32 %v2533_v47, %v3021_v50  ;;  %v405_v3 = vrot.slane %v391_v39, %v2904_v25  ;;  %v533_v10 = vmul.f32 %v2534_v52, %v3021_v50  ;;  %v3173_v12 = vmul.f32 %v2535_v46, %v3021_v50  ;;  %v2524_v39 = vld [vmem:[%s4381_s3 + $0x48] sm:$0xff] }
  0x77   :  { %v406_v7 = vcombine.high %v398_v56, %v398_v56  ;;  %v414_v9 = vrot.slane %v398_v56, %v2904_v25  ;;  %v3176_v14 = vmul.f32 %v2536_v57, %v3021_v50  ;;  %v3179_v42 = vmul.f32 %v2537_v61, %v3021_v50 }
  0x78   :  { %v3182_v15 = vmul.f32 %v2538_v62, %v3021_v50  ;;  %v407_v16 = vcombine.high %v405_v3, %v405_v3  ;;  %v421_v17 = vrot.slane %v405_v3, %v2904_v25  ;;  %v3188_v27 = vadd.f32 %v530_v0, %v3025_v6 }
  0x79   :  { %v428_v18 = vrot.slane %v406_v7, %v2904_v25  ;;  %v436_v20 = vcombine.high %v414_v9, %v414_v9  ;;  %v443_v22 = vrot.slane %v414_v9, %v3001_v1  ;;  %v3191_v28 = vadd.f32 %v531_v2, %v3032_v55  ;;  %v2526_v7 = vld [vmem:[%s4381_s3 + $0x58] sm:$0xff]  ;;  %v2527_v9 = vld [vmem:[%s4381_s3 + $0x60] sm:$0xff] }
  0x7a   :  { %v3194_v29 = vadd.f32 %v532_v49, %v3039_v58  ;;  %v435_v30 = vrot.slane %v407_v16, %v2904_v25  ;;  %v437_v35 = vcombine.high %v421_v17, %v421_v17  ;;  %v459_v6 = vrot.slane %v421_v17, %v3001_v1 }
  0x7b   :  { %v438_v36 = vcombine.high %v428_v18, %v428_v18  ;;  %v447_v37 = vrot.slane %v428_v18, %v3001_v1  ;;  %v451_v5 = vrot.slane %v436_v20, %v3001_v1  ;;  %v480_v55 = vmul.f32 %v443_v22, %v3021_v50  ;;  %v2529_v18 = vld [vmem:[%s4381_s3 + $0x70] sm:$0xff]  ;;  %v2530_v20 = vld [vmem:[%s4381_s3 + $0x78] sm:$0xff] }
  0x7c   :  { %v3205_v47 = vadd.f32 %v533_v10, %v3042_v59  ;;  %v439_v58 = vcombine.high %v435_v30, %v435_v30  ;;  %v463_v52 = vrot.slane %v435_v30, %v3001_v1  ;;  %v467_v46 = vrot.slane %v437_v35, %v3001_v1  ;;  %v2525_v59 = vld [vmem:[%s4381_s3 + $0x50] sm:$0xff]  ;;  %v2528_v10 = vld [vmem:[%s4381_s3 + $0x68] sm:$0xff]  ;;  %s3350_s3 = sld [smem:[#allocation4 + $0x4]] }
  0x7d   :  { %v455_v25 = vrot.slane %v438_v36, %v3001_v1  ;;  %v481_v56 = vmul.f32 %v447_v37, %v3021_v50  ;;  %v482_v57 = vmul.f32 %v451_v5, %v3021_v50  ;;  %v484_v61 = vmul.f32 %v459_v6, %v3021_v50 }
  0x7e   :  { %v505_v62 = vmul.f32 %v2523_v4, %v443_v22  ;;  %v471_v0 = vrot.slane %v439_v58, %v3001_v1  ;;  %v485_v49 = vmul.f32 %v463_v52, %v3021_v50  ;;  %v486_v3 = vmul.f32 %v467_v46, %v3021_v50 }
  0x7f   :  { %v483_v2 = vmul.f32 %v455_v25, %v3021_v50  ;;  %v488_v1 = vadd.f32 %v480_v55, %v3077_v23  ;;  %v489_v16 = vadd.f32 %v481_v56, %v3080_v24  ;;  %v490_v17 = vadd.f32 %v482_v57, %v3083_v26 }
  0x80   :  { %v506_v22 = vmul.f32 %v2524_v39, %v447_v37  ;;  %v487_v30 = vmul.f32 %v471_v0, %v3021_v50  ;;  %v492_v23 = vadd.f32 %v484_v61, %v3096_v31  ;;  %v493_v24 = vadd.f32 %v485_v49, %v3099_v33 }
  0x81   :  { %v491_v35 = vadd.f32 %v483_v2, %v3114_v38  ;;  %v507_v26 = vmul.f32 %v2525_v59, %v451_v5  ;;  %v508_v36 = vmul.f32 %v2526_v7, %v455_v25  ;;  %v509_v4 = vmul.f32 %v2527_v9, %v459_v6 }
  0x82   :  { %v510_v55 = vmul.f32 %v2528_v10, %v463_v52  ;;  %v494_v37 = vadd.f32 %v486_v3, %v3102_v34  ;;  %v495_v58 = vadd.f32 %v487_v30, %v3132_v48  ;;  %v511_v50 = vmul.f32 %v2529_v18, %v467_v46 }
  0x83   :  { %v512_v39 = vmul.f32 %v2530_v20, %v471_v0  ;;  %v513_v38 = vadd.f32 %v505_v62, %v3116_v40  ;;  %v514_v31 = vadd.f32 %v506_v22, %v3118_v41  ;;  %v515_v33 = vadd.f32 %v507_v26, %v3120_v43 }
  0x84   :  { %v516_v56 = vadd.f32 %v508_v36, %v3134_v44  ;;  %v517_v5 = vadd.f32 %v509_v4, %v3136_v11  ;;  %v518_v6 = vadd.f32 %v510_v55, %v3138_v51  ;;  %v519_v25 = vadd.f32 %v511_v50, %v3146_v53 }
  0x85   :  { %v520_v34 = vadd.f32 %v512_v39, %v3148_v54  ;;  %v542_v40 = vadd.f32 %v3173_v12, %v3054_v8  ;;  %v543_v41 = vadd.f32 %v3176_v14, %v3059_v13  ;;  %v544_v43 = vadd.f32 %v3179_v42, %v3073_v21 }
  0x86   :  { %v547_v48 = vstv %s3219_s18  ;;  %v545_v44 = vadd.f32 %v3182_v15, %v3164_v63  ;;  %v557_v59 = vstv %s3243_s2  ;;  %v575_v8 = vstv %s3249_s7  ;;  %s3844_s2 = sld [smem:[#allocation9 + $0x2]]  ;;  %s3888_s7 = sld [smem:[#allocation9 + $0x3]] }
  0x87   :  { %v548_v11 = vmul.f32 %v547_v48, %v488_v1  ;;  %v549_v51 = vmul.f32 %v547_v48, %v489_v16  ;;  %v550_v53 = vmul.f32 %v547_v48, %v490_v17  ;;  %v551_v52 = vmul.f32 %v547_v48, %v491_v35  ;;  %s4012_s18 = sld [smem:[#allocation9 + $0x103]] }
  0x88   :  { %v552_v46 = vmul.f32 %v547_v48, %v492_v23  ;;  %v553_v54 = vmul.f32 %v547_v48, %v493_v24  ;;  %v554_v57 = vmul.f32 %v547_v48, %v494_v37  ;;  %v555_v61 = vmul.f32 %v547_v48, %v495_v58 }
  0x89   :  { %v593_v12 = vstv %s3251_s26  ;;  %v558_v62 = vmul.f32 %v557_v59, %v513_v38  ;;  %v559_v13 = vmul.f32 %v557_v59, %v514_v31  ;;  %v560_v14 = vmul.f32 %v557_v59, %v515_v33  ;;  %s3890_s26 = sld [smem:[#allocation10]] }
  0x8a   :  { %v561_v0 = vmul.f32 %v557_v59, %v516_v56  ;;  %v562_v21 = vmul.f32 %v557_v59, %v517_v5  ;;  %v563_v42 = vmul.f32 %v557_v59, %v518_v6  ;;  %v564_v2 = vmul.f32 %v557_v59, %v519_v25 }
  0x8b   :  { %v565_v49 = vmul.f32 %v557_v59, %v520_v34  ;;  %v566_v63 = vadd.f32 %v558_v62, %v548_v11  ;;  %v567_v15 = vadd.f32 %v559_v13, %v549_v51  ;;  %v568_v3 = vadd.f32 %v560_v14, %v550_v53 }
  0x8c   :  { %v569_v7 = vadd.f32 %v561_v0, %v551_v52  ;;  %v570_v9 = vadd.f32 %v562_v21, %v552_v46  ;;  %v571_v10 = vadd.f32 %v563_v42, %v553_v54  ;;  %v572_v1 = vadd.f32 %v564_v2, %v554_v57 }
  0x8d   :  { %v573_v16 = vadd.f32 %v565_v49, %v555_v61  ;;  %v576_v17 = vmul.f32 %v575_v8, %v3188_v27  ;;  %v577_v18 = vmul.f32 %v575_v8, %v3191_v28  ;;  %v578_v20 = vmul.f32 %v575_v8, %v3194_v29 }
  0x8e   :  { %v579_v22 = vmul.f32 %v575_v8, %v3205_v47  ;;  %v580_v30 = vmul.f32 %v575_v8, %v542_v40  ;;  %v581_v35 = vmul.f32 %v575_v8, %v543_v41  ;;  %v582_v23 = vmul.f32 %v575_v8, %v544_v43 }
  0x8f   :  { %v583_v24 = vmul.f32 %v575_v8, %v545_v44  ;;  %v584_v26 = vadd.f32 %v576_v17, %v566_v63  ;;  %v585_v36 = vadd.f32 %v577_v18, %v567_v15  ;;  %v586_v4 = vadd.f32 %v578_v20, %v568_v3 }
  0x90   :  { %v587_v55 = vadd.f32 %v579_v22, %v569_v7  ;;  %v588_v37 = vadd.f32 %v580_v30, %v570_v9  ;;  %v589_v58 = vadd.f32 %v581_v35, %v571_v10  ;;  %v590_v50 = vadd.f32 %v582_v23, %v572_v1 }
  0x91   :  { %v591_v39 = vadd.f32 %v583_v24, %v573_v16  ;;  %v3279_v38 = vadd.f32 %v593_v12, %v584_v26  ;;  %v3281_v27 = vadd.f32 %v593_v12, %v585_v36  ;;  %v3283_v28 = vadd.f32 %v593_v12, %v586_v4 }
  0x92   :  { %v3285_v29 = vadd.f32 %v593_v12, %v587_v55  ;;  %v3287_v47 = vadd.f32 %v593_v12, %v588_v37  ;;  %v3289_v31 = vadd.f32 %v593_v12, %v589_v58  ;;  %v3291_v33 = vadd.f32 %v593_v12, %v590_v50 }
  0x93   :  { %v3293_v56 = vadd.f32 %v593_v12, %v591_v39  ;;  %v602_v5 = vrot.slane %v3279_v38, 4  ;;  %v608_v6 = vrot.slane %v3281_v27, 4  ;;  %v614_v25 = vrot.slane %v3283_v28, 4 }
  0x94   :  { %v620_v34 = vrot.slane %v3285_v29, 4  ;;  %v626_v40 = vrot.slane %v3287_v47, 4  ;;  %v632_v41 = vrot.slane %v3289_v31, 4  ;;  %v638_v43 = vrot.slane %v3291_v33, 4 }
  0x95   :  { %v644_v48 = vrot.slane %v3293_v56, 4  ;;  %v603_v44 = vmax.f32 %v3279_v38, %v602_v5  ;;  %v609_v11 = vmax.f32 %v3281_v27, %v608_v6  ;;  %v615_v51 = vmax.f32 %v3283_v28, %v614_v25 }
  0x96   :  { %v621_v53 = vmax.f32 %v3285_v29, %v620_v34  ;;  %v627_v52 = vmax.f32 %v3287_v47, %v626_v40  ;;  %v633_v46 = vmax.f32 %v3289_v31, %v632_v41  ;;  %v639_v54 = vmax.f32 %v3291_v33, %v638_v43 }
  0x97   :  { %v645_v57 = vmax.f32 %v3293_v56, %v644_v48  ;;  %v604_v61 = vrot.slane %v603_v44, 2  ;;  %v610_v59 = vrot.slane %v609_v11, 2  ;;  %v616_v8 = vrot.slane %v615_v51, 2 }
  0x98   :  { %v622_v12 = vrot.slane %v621_v53, 2  ;;  %v628_v62 = vrot.slane %v627_v52, 2  ;;  %v634_v13 = vrot.slane %v633_v46, 2  ;;  %v640_v14 = vrot.slane %v639_v54, 2 }
  0x99   :  { %v646_v0 = vrot.slane %v645_v57, 2  ;;  %v605_v21 = vmax.f32 %v603_v44, %v604_v61  ;;  %v611_v42 = vmax.f32 %v609_v11, %v610_v59  ;;  %v617_v2 = vmax.f32 %v615_v51, %v616_v8 }
  0x9a   :  { %v623_v49 = vmax.f32 %v621_v53, %v622_v12  ;;  %v629_v63 = vmax.f32 %v627_v52, %v628_v62  ;;  %v635_v15 = vmax.f32 %v633_v46, %v634_v13  ;;  %v641_v3 = vmax.f32 %v639_v54, %v640_v14 }
  0x9b   :  { %v647_v7 = vmax.f32 %v645_v57, %v646_v0  ;;  %v606_v9 = vrot.slane %v605_v21, 1  ;;  %v612_v10 = vrot.slane %v611_v42, 1  ;;  %v618_v1 = vrot.slane %v617_v2, 1 }
  0x9c   :  { %v624_v16 = vrot.slane %v623_v49, 1  ;;  %v630_v17 = vrot.slane %v629_v63, 1  ;;  %v636_v18 = vrot.slane %v635_v15, 1  ;;  %v642_v20 = vrot.slane %v641_v3, 1 }
  0x9d   :  { %v648_v22 = vrot.slane %v647_v7, 1  ;;  %v607_v30 = vmax.f32 %v605_v21, %v606_v9  ;;  %v613_v35 = vmax.f32 %v611_v42, %v612_v10  ;;  %v619_v23 = vmax.f32 %v617_v2, %v618_v1 }
  0x9e   :  { %v625_v24 = vmax.f32 %v623_v49, %v624_v16  ;;  %v631_v26 = vmax.f32 %v629_v63, %v630_v17  ;;  %v637_v36 = vmax.f32 %v635_v15, %v636_v18  ;;  %v643_v4 = vmax.f32 %v641_v3, %v642_v20 }
  0x9f   :  { %v649_v55 = vmax.f32 %v647_v7, %v648_v22  ;;  %v650_v37 = vsub.f32 %v3279_v38, %v607_v30  ;;  %v651_v58 = vsub.f32 %v3281_v27, %v613_v35  ;;  %v652_v50 = vsub.f32 %v3283_v28, %v619_v23 }
  0xa0   :  { %v653_v39 = vsub.f32 %v3285_v29, %v625_v24  ;;  %v654_v5 = vsub.f32 %v3287_v47, %v631_v26  ;;  %v655_v6 = vsub.f32 %v3289_v31, %v637_v36  ;;  %v656_v25 = vsub.f32 %v3291_v33, %v643_v4 }
  0xa1   :  { %v658_v34 = vmul.f32 1.442695, %v650_v37  ;;  %v660_v40 = vmul.f32 1.442695, %v651_v58  ;;  %v662_v41 = vmul.f32 1.442695, %v652_v50  ;;  %v657_v43 = vsub.f32 %v3293_v56, %v649_v55 }
  0xa2   :  { %v664_v48 = vmul.f32 1.442695, %v653_v39  ;;  %v666_v38 = vmul.f32 1.442695, %v654_v5  ;;  %v668_v27 = vmul.f32 1.442695, %v655_v6 }
  0xa3   :  { %2636 = vpow2.f32 %v658_v34  ;;  %v670_v28 = vmul.f32 1.442695, %v656_v25  ;;  %v672_v29 = vmul.f32 1.442695, %v657_v43 }
  0xa4   :  { %2638 = vpow2.f32 %v660_v40 }
  0xa5   :  { %2640 = vpow2.f32 %v662_v41 }
  0xa6   :  { %2642 = vpow2.f32 %v664_v48 }
  0xa7   :  { %2644 = vpow2.f32 %v666_v38  ;;  %v204_v38 = vstv %s3350_s3  ;;  %s4107_s3 = sld [smem:[#allocation9 + $0x200]] }
  0xa8   :  { %2646 = vpow2.f32 %v668_v27  ;;  %v222_v27 = vstv %s3353_s27  ;;  %s4116_s27 = sld [smem:[#allocation9 + $0x201]] }
  0xa9   :  { %2648 = vpow2.f32 %v670_v28  ;;  %v240_v28 = vstv %s3355_s29  ;;  %s3917_s29 = sld [smem:[#allocation9 + $0x80]] }
  0xaa   :  { %2650 = vpow2.f32 %v672_v29  ;;  %v258_v29 = vstv %s3357_s30  ;;  %s3919_s30 = sld [smem:[#allocation9 + $0x81]] }
  0xad   :  { %v3319_v47 = vpop.eup %2636 }
  0xae   :  { %v3321_v31 = vpop.eup %2638  ;;  %v674_v33 = vrot.slane %v3319_v47, 4 }
  0xaf   :  { %v3324_v56 = vpop.eup %2640  ;;  %v680_v44 = vrot.slane %v3321_v31, 4 }
  0xb0   :  { %v3327_v11 = vpop.eup %2642  ;;  %v675_v51 = vadd.f32 %v3319_v47, %v674_v33  ;;  %v686_v53 = vrot.slane %v3324_v56, 4  ;;  %v205_v33 = vadd.f32 %v204_v38, %v2974_v19  ;;  %v3395_v19 = vstv %s3363_s13  ;;  %s3930_s13 = sld [smem:[#allocation10 + $0x1]] }
  0xb1   :  { %v3331_v52 = vpop.eup %2644  ;;  %v681_v46 = vadd.f32 %v3321_v31, %v680_v44  ;;  %v692_v54 = vrot.slane %v3327_v11, 4  ;;  %v3377_v44 = vadd.f32 %v222_v27, %v2983_v32 }
  0xb2   :  { %v3335_v57 = vpop.eup %2646  ;;  %v676_v61 = vrot.slane %v675_v51, 2  ;;  %v687_v59 = vadd.f32 %v3324_v56, %v686_v53  ;;  %v698_v8 = vrot.slane %v3331_v52, 4 }
  0xb3   :  { %v3339_v12 = vpop.eup %2648  ;;  %v682_v62 = vrot.slane %v681_v46, 2  ;;  %v693_v13 = vadd.f32 %v3327_v11, %v692_v54  ;;  %v704_v14 = vrot.slane %v3335_v57, 4  ;;  %v794_v54 = vld [vmem:[%s4383_s5] sm:$0xff] }
  0xb4   :  { %v3343_v0 = vpop.eup %2650  ;;  %v677_v21 = vadd.f32 %v676_v61, %v675_v51  ;;  %v688_v42 = vrot.slane %v687_v59, 2  ;;  %v699_v2 = vadd.f32 %v3331_v52, %v698_v8  ;;  %v710_v49 = vrot.slane %v3339_v12, 4 }
  0xb5   :  { %v683_v63 = vadd.f32 %v682_v62, %v681_v46  ;;  %v694_v15 = vrot.slane %v693_v13, 2  ;;  %v705_v3 = vadd.f32 %v3335_v57, %v704_v14  ;;  %v716_v7 = vrot.slane %v3343_v0, 4 }
  0xb6   :  { %v678_v9 = vrot.slane %v677_v21, 1  ;;  %v689_v10 = vadd.f32 %v688_v42, %v687_v59  ;;  %v700_v1 = vrot.slane %v699_v2, 2  ;;  %v711_v16 = vadd.f32 %v3339_v12, %v710_v49  ;;  %v796_v42 = vld [vmem:[%s4383_s5 + $0x10] sm:$0xff] }
  0xb7   :  { %v684_v17 = vrot.slane %v683_v63, 1  ;;  %v695_v18 = vadd.f32 %v694_v15, %v693_v13  ;;  %v706_v20 = vrot.slane %v705_v3, 2  ;;  %v717_v22 = vadd.f32 %v3343_v0, %v716_v7 }
  0xb8   :  { %v679_v30 = vadd.f32 %v678_v9, %v677_v21  ;;  %v690_v35 = vrot.slane %v689_v10, 1  ;;  %v701_v23 = vadd.f32 %v700_v1, %v699_v2  ;;  %v712_v24 = vrot.slane %v711_v16, 2 }
  0xb9   :  { %v685_v26 = vadd.f32 %v684_v17, %v683_v63  ;;  %v696_v36 = vrot.slane %v695_v18, 1  ;;  %v707_v4 = vadd.f32 %v706_v20, %v705_v3  ;;  %v718_v55 = vrot.slane %v717_v22, 2 }
  0xba   :  { %v691_v37 = vadd.f32 %v690_v35, %v689_v10  ;;  %v702_v58 = vrot.slane %v701_v23, 1  ;;  %v713_v50 = vadd.f32 %v712_v24, %v711_v16  ;;  %2652 = vrcp.f32 %v679_v30 }
  0xbb   :  { %v697_v39 = vadd.f32 %v696_v36, %v695_v18  ;;  %v708_v5 = vrot.slane %v707_v4, 1  ;;  %v719_v6 = vadd.f32 %v718_v55, %v717_v22  ;;  %2654 = vrcp.f32 %v685_v26 }
  0xbc   :  { %v703_v25 = vadd.f32 %v702_v58, %v701_v23  ;;  %v714_v34 = vrot.slane %v713_v50, 1  ;;  %2656 = vrcp.f32 %v691_v37  ;;  %v3380_v51 = vadd.f32 %v240_v28, %v3006_v45  ;;  %v795_v45 = vld [vmem:[%s4383_s5 + $0x8] sm:$0xff] }
  0xbd   :  { %v709_v40 = vadd.f32 %v708_v5, %v707_v4  ;;  %v720_v41 = vrot.slane %v719_v6, 1  ;;  %2658 = vrcp.f32 %v697_v39  ;;  %v3383_v46 = vadd.f32 %v258_v29, %v3044_v60 }
  0xbe   :  { %v715_v43 = vadd.f32 %v714_v34, %v713_v50  ;;  %2660 = vrcp.f32 %v703_v25  ;;  %v3389_v61 = vstv %s3359_s28  ;;  %v3392_v59 = vstv %s3361_s12  ;;  %s3923_s28 = sld [smem:[#allocation9 + $0x82]]  ;;  %s3928_s12 = sld [smem:[#allocation9 + $0x83]] }
  0xbf   :  { %v721_v48 = vadd.f32 %v720_v41, %v719_v6  ;;  %2662 = vrcp.f32 %v709_v40  ;;  %4422 = vst [vmem:[#allocation16_spill] sm:$0xff] %v3383_v46  ;;  %v3404_v60 = vstv %s3365_s14  ;;  %v3407_v62 = vstv %s3367_s4 }
  0xc0   :  { %2664 = vrcp.f32 %v715_v43  ;;  %v3409_v13 = vstv %s2554_s1  ;;  %v3420_v2 = vstv %s2564_s15  ;;  %v3422_v49 = vstv %s2565_s16  ;;  %s3980_s15 = sld [smem:[#allocation9 + $0x100]]  ;;  %s3989_s16 = sld [smem:[#allocation9 + $0x101]] }
  0xc1   :  { %2666 = vrcp.f32 %v721_v48  ;;  %s4171_s1 = sld [smem:[#allocation9 + $0x280]] }
  0xc4   :  { %v2653_v53 = vpop.eup %2652 }
  0xc5   :  { %v2655_v32 = vpop.eup %2654  ;;  %v3398_v8 = vmul.f32 %v2653_v53, %v3319_v47  ;;  %v3418_v47 = vstv %s3369_s6  ;;  %s4173_s6 = sld [smem:[#allocation9 + $0x281]] }
  0xc6   :  { %v2657_v14 = vpop.eup %2656  ;;  %v3412_v21 = vmul.f32 %v2655_v32, %v3321_v31  ;;  %v797_v31 = vld [vmem:[%s4383_s5 + $0x18] sm:$0xff] }
  0xc7   :  { %v2659_v63 = vpop.eup %2658  ;;  %v3425_v15 = vmul.f32 %v2657_v14, %v3324_v56  ;;  %v738_v3 = vmul.f32 %v3398_v8, %v205_v33  ;;  %v3432_v7 = vmul.f32 %v794_v54, %v3398_v8  ;;  %v3436_v9 = vmul.f32 %v3398_v8, %v3377_v44 }
  0xc8   :  { %v2661_v10 = vpop.eup %2660  ;;  %v3439_v1 = vmul.f32 %v2659_v63, %v3327_v11  ;;  %v739_v56 = vmul.f32 %v3412_v21, %v205_v33  ;;  %v3443_v16 = vmul.f32 %v795_v45, %v3412_v21  ;;  %v3447_v17 = vmul.f32 %v3412_v21, %v3377_v44 }
  0xc9   :  { %v2663_v18 = vpop.eup %2662  ;;  %v3450_v20 = vmul.f32 %v2661_v10, %v3331_v52  ;;  %v740_v22 = vmul.f32 %v3425_v15, %v205_v33  ;;  %v746_v30 = vrot.slane %v738_v3, 4  ;;  %v3454_v35 = vmul.f32 %v796_v42, %v3425_v15 }
  0xca   :  { %v2665_v11 = vpop.eup %2664  ;;  %v3457_v23 = vmul.f32 %v2663_v18, %v3335_v57  ;;  %v741_v24 = vmul.f32 %v3439_v1, %v205_v33  ;;  %v752_v26 = vrot.slane %v739_v56, 4  ;;  %v3461_v36 = vmul.f32 %v797_v31, %v3439_v1 }
  0xcb   :  { %v2667_v4 = vpop.eup %2666  ;;  %v3464_v52 = vmul.f32 %v2665_v11, %v3339_v12  ;;  %v742_v55 = vmul.f32 %v3450_v20, %v205_v33  ;;  %v747_v37 = vadd.f32 %v746_v30, %v738_v3  ;;  %v758_v58 = vrot.slane %v740_v22, 4 }
  0xcc   :  { %v3468_v50 = vmul.f32 %v2667_v4, %v3343_v0  ;;  %v743_v57 = vmul.f32 %v3457_v23, %v205_v33  ;;  %v753_v39 = vadd.f32 %v752_v26, %v739_v56  ;;  %v764_v5 = vrot.slane %v741_v24, 4 }
  0xcd   :  { %v744_v6 = vmul.f32 %v3464_v52, %v205_v33  ;;  %v748_v25 = vrot.slane %v747_v37, 2  ;;  %v759_v34 = vadd.f32 %v758_v58, %v740_v22  ;;  %v770_v40 = vrot.slane %v742_v55, 4  ;;  %v800_v58 = vld [vmem:[%s4383_s5 + $0x30] sm:$0xff] }
  0xce   :  { %v745_v41 = vmul.f32 %v3468_v50, %v205_v33  ;;  %v754_v12 = vrot.slane %v753_v39, 2  ;;  %v765_v43 = vadd.f32 %v764_v5, %v741_v24  ;;  %v776_v48 = vrot.slane %v743_v57, 4  ;;  %v798_v33 = vld [vmem:[%s4383_s5 + $0x20] sm:$0xff]  ;;  %v799_v24 = vld [vmem:[%s4383_s5 + $0x28] sm:$0xff] }
  0xcf   :  { %v749_v38 = vadd.f32 %v748_v25, %v747_v37  ;;  %v760_v27 = vrot.slane %v759_v34, 2  ;;  %v771_v28 = vadd.f32 %v770_v40, %v742_v55  ;;  %v782_v29 = vrot.slane %v744_v6, 4 }
  0xd0   :  { %v755_v0 = vadd.f32 %v754_v12, %v753_v39  ;;  %v766_v53 = vrot.slane %v765_v43, 2  ;;  %v777_v54 = vadd.f32 %v776_v48, %v743_v57  ;;  %v788_v32 = vrot.slane %v745_v41, 4  ;;  %v801_v57 = vld [vmem:[%s4383_s5 + $0x38] sm:$0xff] }
  0xd1   :  { %v750_v45 = vrot.slane %v749_v38, 1  ;;  %v761_v14 = vadd.f32 %v760_v27, %v759_v34  ;;  %v772_v42 = vrot.slane %v771_v28, 2  ;;  %v783_v63 = vadd.f32 %v782_v29, %v744_v6 }
  0xd2   :  { %v756_v3 = vrot.slane %v755_v0, 1  ;;  %v767_v31 = vadd.f32 %v766_v53, %v765_v43  ;;  %v778_v10 = vrot.slane %v777_v54, 2  ;;  %v789_v56 = vadd.f32 %v788_v32, %v745_v41 }
  0xd3   :  { %v3476_v18 = vadd.f32 %v750_v45, %v749_v38  ;;  %v762_v22 = vrot.slane %v761_v14, 1  ;;  %v773_v30 = vadd.f32 %v772_v42, %v771_v28  ;;  %v784_v11 = vrot.slane %v783_v63, 2 }
  0xd4   :  { %v3481_v26 = vadd.f32 %v756_v3, %v755_v0  ;;  %v768_v4 = vrot.slane %v767_v31, 1  ;;  %v779_v55 = vadd.f32 %v778_v10, %v777_v54  ;;  %v790_v37 = vrot.slane %v789_v56, 2 }
  0xd5   :  { %v3489_v39 = vadd.f32 %v762_v22, %v761_v14  ;;  %v774_v5 = vrot.slane %v773_v30, 1  ;;  %v785_v6 = vadd.f32 %v784_v11, %v783_v63  ;;  %v806_v25 = vmul.f32 %v798_v33, %v3450_v20 }
  0xd6   :  { %v769_v34 = vadd.f32 %v768_v4, %v767_v31  ;;  %v780_v40 = vrot.slane %v779_v55, 1  ;;  %v791_v41 = vadd.f32 %v790_v37, %v789_v56  ;;  %v807_v12 = vmul.f32 %v799_v24, %v3457_v23 }
  0xd7   :  { %v775_v43 = vadd.f32 %v774_v5, %v773_v30  ;;  %v786_v48 = vrot.slane %v785_v6, 1  ;;  %v808_v38 = vmul.f32 %v800_v58, %v3464_v52  ;;  %v809_v27 = vmul.f32 %v801_v57, %v3468_v50 }
  0xd8   :  { %v781_v28 = vadd.f32 %v780_v40, %v779_v55  ;;  %v792_v29 = vrot.slane %v791_v41, 1  ;;  %v810_v0 = vrot.slane %v3432_v7, 4  ;;  %v816_v53 = vrot.slane %v3443_v16, 4 }
  0xd9   :  { %v787_v54 = vadd.f32 %v786_v48, %v785_v6  ;;  %v822_v32 = vrot.slane %v3454_v35, 4  ;;  %v828_v45 = vrot.slane %v3461_v36, 4  ;;  %v834_v14 = vrot.slane %v806_v25, 4 }
  0xda   :  { %v793_v42 = vadd.f32 %v792_v29, %v791_v41  ;;  %v811_v63 = vadd.f32 %v810_v0, %v3432_v7  ;;  %v817_v3 = vadd.f32 %v816_v53, %v3443_v16  ;;  %v840_v31 = vrot.slane %v807_v12, 4 }
  0xdb   :  { %v823_v10 = vadd.f32 %v822_v32, %v3454_v35  ;;  %v829_v56 = vadd.f32 %v828_v45, %v3461_v36  ;;  %v835_v33 = vadd.f32 %v834_v14, %v806_v25  ;;  %v846_v22 = vrot.slane %v808_v38, 4 }
  0xdc   :  { %v812_v30 = vrot.slane %v811_v63, 2  ;;  %v818_v11 = vrot.slane %v817_v3, 2  ;;  %v841_v24 = vadd.f32 %v840_v31, %v807_v12  ;;  %v852_v4 = vrot.slane %v809_v27, 4 }
  0xdd   :  { %v824_v55 = vrot.slane %v823_v10, 2  ;;  %v830_v37 = vrot.slane %v829_v56, 2  ;;  %v836_v58 = vrot.slane %v835_v33, 2  ;;  %v847_v57 = vadd.f32 %v846_v22, %v808_v38 }
  0xde   :  { %v813_v5 = vadd.f32 %v812_v30, %v811_v63  ;;  %v819_v6 = vadd.f32 %v818_v11, %v817_v3  ;;  %v842_v7 = vrot.slane %v841_v24, 2  ;;  %v853_v40 = vadd.f32 %v852_v4, %v809_v27 }
  0xdf   :  { %v825_v16 = vadd.f32 %v824_v55, %v823_v10  ;;  %v831_v41 = vadd.f32 %v830_v37, %v829_v56  ;;  %v837_v48 = vadd.f32 %v836_v58, %v835_v33  ;;  %v848_v35 = vrot.slane %v847_v57, 2 }
  0xe0   :  { %v814_v29 = vrot.slane %v813_v5, 1  ;;  %v820_v36 = vrot.slane %v819_v6, 1  ;;  %v843_v25 = vadd.f32 %v842_v7, %v841_v24  ;;  %v854_v0 = vrot.slane %v853_v40, 2 }
  0xe1   :  { %v826_v53 = vrot.slane %v825_v16, 1  ;;  %v832_v32 = vrot.slane %v831_v41, 1  ;;  %v838_v12 = vrot.slane %v837_v48, 1  ;;  %v849_v45 = vadd.f32 %v848_v35, %v847_v57 }
  0xe2   :  { %v815_v14 = vadd.f32 %v814_v29, %v813_v5  ;;  %v821_v31 = vadd.f32 %v820_v36, %v819_v6  ;;  %v844_v46 = vrot.slane %v843_v25, 1  ;;  %v855_v38 = vadd.f32 %v854_v0, %v853_v40 }
  0xe3   :  { %v827_v63 = vadd.f32 %v826_v53, %v825_v16  ;;  %v833_v3 = vadd.f32 %v832_v32, %v831_v41  ;;  %v839_v22 = vadd.f32 %v838_v12, %v837_v48  ;;  %v850_v27 = vrot.slane %v849_v45, 1 }
  0xe4   :  { %v845_v10 = vadd.f32 %v844_v46, %v843_v25  ;;  %v856_v56 = vrot.slane %v855_v38, 1  ;;  %v860_v33 = vmul.f32 %v3389_v61, %v3476_v18  ;;  %v861_v30 = vmul.f32 %v3389_v61, %v3481_v26 }
  0xe5   :  { %v851_v11 = vadd.f32 %v850_v27, %v849_v45  ;;  %v862_v24 = vmul.f32 %v3389_v61, %v3489_v39  ;;  %v863_v4 = vmul.f32 %v3389_v61, %v769_v34  ;;  %v864_v55 = vmul.f32 %v3389_v61, %v775_v43 }
  0xe6   :  { %v857_v37 = vadd.f32 %v856_v56, %v855_v38  ;;  %v865_v58 = vmul.f32 %v3389_v61, %v781_v28  ;;  %v866_v46 = vmul.f32 %v3389_v61, %v787_v54  ;;  %v867_v57 = vmul.f32 %v3389_v61, %v793_v42 }
  0xe7   :  { %v870_v18 = vmul.f32 %v3392_v59, %v815_v14  ;;  %v871_v5 = vmul.f32 %v3392_v59, %v821_v31  ;;  %v872_v26 = vmul.f32 %v3392_v59, %v827_v63  ;;  %v873_v6 = vmul.f32 %v3392_v59, %v833_v3 }
  0xe8   :  { %v874_v39 = vmul.f32 %v3392_v59, %v839_v22  ;;  %v875_v34 = vmul.f32 %v3392_v59, %v845_v10  ;;  %v876_v43 = vmul.f32 %v3392_v59, %v851_v11  ;;  %v877_v28 = vmul.f32 %v3392_v59, %v857_v37 }
  0xe9   :  { %v878_v7 = vadd.f32 %v870_v18, %v860_v33  ;;  %v879_v54 = vadd.f32 %v871_v5, %v861_v30  ;;  %v880_v40 = vadd.f32 %v872_v26, %v862_v24  ;;  %v881_v61 = vadd.f32 %v873_v6, %v863_v4 }
  0xea   :  { %v882_v42 = vadd.f32 %v874_v39, %v864_v55  ;;  %v883_v16 = vadd.f32 %v875_v34, %v865_v58  ;;  %v884_v41 = vadd.f32 %v876_v43, %v866_v46  ;;  %v885_v48 = vadd.f32 %v877_v28, %v867_v57 }
  0xeb   :  { %v888_v35 = vadd.f32 %v3395_v19, %v878_v7  ;;  %v889_v29 = vadd.f32 %v3395_v19, %v879_v54  ;;  %v890_v36 = vadd.f32 %v3395_v19, %v880_v40  ;;  %v891_v25 = vadd.f32 %v3395_v19, %v881_v61 }
  0xec   :  { %v892_v0 = vadd.f32 %v3395_v19, %v882_v42  ;;  %v893_v59 = vadd.f32 %v3395_v19, %v883_v16  ;;  %v894_v53 = vadd.f32 %v3395_v19, %v884_v41  ;;  %v895_v32 = vadd.f32 %v3395_v19, %v885_v48 }
  0xed   :  { %v3530_v12 = vmax.f32 %v888_v35, 0.0  ;;  %v3532_v45 = vmax.f32 %v889_v29, 0.0  ;;  %v3534_v14 = vmax.f32 %v890_v36, 0.0  ;;  %v3536_v31 = vmax.f32 %v891_v25, 0.0 }
  0xee   :  { %v3538_v38 = vmax.f32 %v892_v0, 0.0  ;;  %v3540_v63 = vmax.f32 %v893_v59, 0.0  ;;  %v3542_v3 = vmax.f32 %v894_v53, 0.0  ;;  %v3544_v22 = vmax.f32 %v895_v32, 0.0  ;;  %v2545_v32 = vld [vmem:[%s4383_s5 + $0x48] sm:$0xff] }
  0xef   :  { %v906_v27 = vmul.f32 %v3425_v15, %v3377_v44  ;;  %v907_v19 = vmul.f32 %v3439_v1, %v3377_v44  ;;  %v908_v10 = vmul.f32 %v3450_v20, %v3377_v44  ;;  %v909_v56 = vmul.f32 %v3457_v23, %v3377_v44 }
  0xf0   :  { %4423 = vst [vmem:[#allocation17_spill] sm:$0xff] %v3544_v22  ;;  %v910_v33 = vmul.f32 %v3464_v52, %v3377_v44  ;;  %v911_v30 = vmul.f32 %v3468_v50, %v3377_v44  ;;  %v912_v11 = vrot.slane %v3436_v9, 4  ;;  %v918_v24 = vrot.slane %v3447_v17, 4 }
  0xf1   :  { %v924_v4 = vrot.slane %v906_v27, 4  ;;  %v930_v55 = vrot.slane %v907_v19, 4  ;;  %v936_v37 = vrot.slane %v908_v10, 4  ;;  %v942_v58 = vrot.slane %v909_v56, 4 }
  0xf2   :  { %v913_v46 = vadd.f32 %v912_v11, %v3436_v9  ;;  %v919_v57 = vadd.f32 %v918_v24, %v3447_v17  ;;  %v948_v18 = vrot.slane %v910_v33, 4  ;;  %v954_v5 = vrot.slane %v911_v30, 4 }
  0xf3   :  { %v925_v26 = vadd.f32 %v924_v4, %v906_v27  ;;  %v931_v6 = vadd.f32 %v930_v55, %v907_v19  ;;  %v937_v39 = vadd.f32 %v936_v37, %v908_v10  ;;  %v943_v34 = vadd.f32 %v942_v58, %v909_v56  ;;  %v2547_v37 = vld [vmem:[%s4383_s5 + $0x58] sm:$0xff]  ;;  %v2548_v58 = vld [vmem:[%s4383_s5 + $0x60] sm:$0xff] }
  0xf4   :  { %v914_v43 = vrot.slane %v913_v46, 2  ;;  %v920_v44 = vrot.slane %v919_v57, 2  ;;  %v949_v28 = vadd.f32 %v948_v18, %v910_v33  ;;  %v955_v7 = vadd.f32 %v954_v5, %v911_v30  ;;  %v2544_v33 = vld [vmem:[%s4383_s5 + $0x40] sm:$0xff]  ;;  %v2546_v30 = vld [vmem:[%s4383_s5 + $0x50] sm:$0xff] }
  0xf5   :  { %v926_v54 = vrot.slane %v925_v26, 2  ;;  %v932_v40 = vrot.slane %v931_v6, 2  ;;  %v938_v61 = vrot.slane %v937_v39, 2  ;;  %v944_v42 = vrot.slane %v943_v34, 2 }
  0xf6   :  { %v915_v16 = vadd.f32 %v914_v43, %v913_v46  ;;  %v921_v41 = vadd.f32 %v920_v44, %v919_v57  ;;  %v950_v48 = vrot.slane %v949_v28, 2  ;;  %v956_v9 = vrot.slane %v955_v7, 2  ;;  %v2549_v46 = vld [vmem:[%s4383_s5 + $0x68] sm:$0xff] }
  0xf7   :  { %v927_v35 = vadd.f32 %v926_v54, %v925_v26  ;;  %v933_v17 = vadd.f32 %v932_v40, %v931_v6  ;;  %v939_v29 = vadd.f32 %v938_v61, %v937_v39  ;;  %v945_v36 = vadd.f32 %v944_v42, %v943_v34  ;;  %v2550_v6 = vld [vmem:[%s4383_s5 + $0x70] sm:$0xff]  ;;  %v2551_v39 = vld [vmem:[%s4383_s5 + $0x78] sm:$0xff] }
  0xf8   :  { %v916_v25 = vrot.slane %v915_v16, 1  ;;  %v922_v0 = vrot.slane %v921_v41, 1  ;;  %v951_v59 = vadd.f32 %v950_v48, %v949_v28  ;;  %v957_v53 = vadd.f32 %v956_v9, %v955_v7 }
  0xf9   :  { %v928_v27 = vrot.slane %v927_v35, 1  ;;  %v934_v19 = vrot.slane %v933_v17, 1  ;;  %v940_v10 = vrot.slane %v939_v29, 1  ;;  %v946_v56 = vrot.slane %v945_v36, 1 }
  0xfa   :  { %v3571_v11 = vadd.f32 %v916_v25, %v915_v16  ;;  %v3573_v24 = vadd.f32 %v922_v0, %v921_v41  ;;  %v952_v4 = vrot.slane %v951_v59, 1  ;;  %v958_v55 = vrot.slane %v957_v53, 1 }
  0xfb   :  { %v3584_v57 = vadd.f32 %v928_v27, %v927_v35  ;;  %v3586_v18 = vadd.f32 %v934_v19, %v933_v17  ;;  %v3588_v5 = vadd.f32 %v940_v10, %v939_v29  ;;  %v3590_v26 = vadd.f32 %v946_v56, %v945_v36 }
  0xfc   :  { %v3598_v34 = vadd.f32 %v952_v4, %v951_v59  ;;  %v3600_v43 = vadd.f32 %v958_v55, %v957_v53  ;;  %v969_v44 = vmul.f32 %v2544_v33, %v3398_v8  ;;  %v970_v28 = vmul.f32 %v2545_v32, %v3412_v21 }
  0xfd   :  { %v971_v7 = vmul.f32 %v2546_v30, %v3425_v15  ;;  %v972_v54 = vmul.f32 %v2547_v37, %v3439_v1  ;;  %v973_v40 = vmul.f32 %v2548_v58, %v3450_v20  ;;  %v974_v61 = vmul.f32 %v2549_v46, %v3457_v23 }
  0xfe   :  { %v975_v42 = vmul.f32 %v2550_v6, %v3464_v52  ;;  %v976_v16 = vmul.f32 %v2551_v39, %v3468_v50  ;;  %v977_v41 = vrot.slane %v969_v44, 4  ;;  %v983_v48 = vrot.slane %v970_v28, 4 }
  0xff   :  { %v989_v9 = vrot.slane %v971_v7, 4  ;;  %v995_v35 = vrot.slane %v972_v54, 4  ;;  %v1001_v17 = vrot.slane %v973_v40, 4  ;;  %v1007_v29 = vrot.slane %v974_v61, 4 }
 0x100   :  { %v978_v36 = vadd.f32 %v977_v41, %v969_v44  ;;  %v984_v25 = vadd.f32 %v983_v48, %v970_v28  ;;  %v1013_v0 = vrot.slane %v975_v42, 4  ;;  %v1019_v59 = vrot.slane %v976_v16, 4 }
 0x101   :  { %v990_v53 = vadd.f32 %v989_v9, %v971_v7  ;;  %v996_v32 = vadd.f32 %v995_v35, %v972_v54  ;;  %v1002_v27 = vadd.f32 %v1001_v17, %v973_v40  ;;  %v1008_v19 = vadd.f32 %v1007_v29, %v974_v61 }
 0x102   :  { %v979_v10 = vrot.slane %v978_v36, 2  ;;  %v985_v56 = vrot.slane %v984_v25, 2  ;;  %v1014_v33 = vadd.f32 %v1013_v0, %v975_v42  ;;  %v1020_v30 = vadd.f32 %v1019_v59, %v976_v16 }
 0x103   :  { %v991_v4 = vrot.slane %v990_v53, 2  ;;  %v997_v55 = vrot.slane %v996_v32, 2  ;;  %v1003_v37 = vrot.slane %v1002_v27, 2  ;;  %v1009_v58 = vrot.slane %v1008_v19, 2 }
 0x104   :  { %v980_v46 = vadd.f32 %v979_v10, %v978_v36  ;;  %v986_v6 = vadd.f32 %v985_v56, %v984_v25  ;;  %v1015_v39 = vrot.slane %v1014_v33, 2  ;;  %v1021_v22 = vrot.slane %v1020_v30, 2 }
 0x105   :  { %v992_v44 = vadd.f32 %v991_v4, %v990_v53  ;;  %v998_v28 = vadd.f32 %v997_v55, %v996_v32  ;;  %v1004_v41 = vadd.f32 %v1003_v37, %v1002_v27  ;;  %v1010_v48 = vadd.f32 %v1009_v58, %v1008_v19 }
 0x106   :  { %v981_v7 = vrot.slane %v980_v46, 1  ;;  %v987_v54 = vrot.slane %v986_v6, 1  ;;  %v1016_v40 = vadd.f32 %v1015_v39, %v1014_v33  ;;  %v1022_v61 = vadd.f32 %v1021_v22, %v1020_v30 }
 0x107   :  { %v993_v9 = vrot.slane %v992_v44, 1  ;;  %v999_v35 = vrot.slane %v998_v28, 1  ;;  %v1005_v42 = vrot.slane %v1004_v41, 1  ;;  %v1011_v16 = vrot.slane %v1010_v48, 1 }
 0x108   :  { %v982_v17 = vadd.f32 %v981_v7, %v980_v46  ;;  %v988_v29 = vadd.f32 %v987_v54, %v986_v6  ;;  %v1017_v0 = vrot.slane %v1016_v40, 1  ;;  %v1023_v59 = vrot.slane %v1022_v61, 1 }
 0x109   :  { %v994_v36 = vadd.f32 %v993_v9, %v992_v44  ;;  %v1000_v25 = vadd.f32 %v999_v35, %v998_v28  ;;  %v1006_v10 = vadd.f32 %v1005_v42, %v1004_v41  ;;  %v1012_v56 = vadd.f32 %v1011_v16, %v1010_v48 }
 0x10a   :  { %v1018_v53 = vadd.f32 %v1017_v0, %v1016_v40  ;;  %v1024_v32 = vadd.f32 %v1023_v59, %v1022_v61  ;;  %v1027_v27 = vmul.f32 %v3404_v60, %v3571_v11  ;;  %v1028_v22 = vmul.f32 %v3404_v60, %v3573_v24 }
 0x10b   :  { %v1029_v19 = vmul.f32 %v3404_v60, %v3584_v57  ;;  %v1030_v33 = vmul.f32 %v3404_v60, %v3586_v18  ;;  %v1031_v30 = vmul.f32 %v3404_v60, %v3588_v5  ;;  %v1032_v4 = vmul.f32 %v3404_v60, %v3590_v26 }
 0x10c   :  { %v1033_v55 = vmul.f32 %v3404_v60, %v3598_v34  ;;  %v1034_v11 = vmul.f32 %v3404_v60, %v3600_v43  ;;  %v1037_v24 = vmul.f32 %v3407_v62, %v982_v17  ;;  %v1038_v37 = vmul.f32 %v3407_v62, %v988_v29 }
 0x10d   :  { %v1039_v57 = vmul.f32 %v3407_v62, %v994_v36  ;;  %v1040_v18 = vmul.f32 %v3407_v62, %v1000_v25  ;;  %v1041_v58 = vmul.f32 %v3407_v62, %v1006_v10  ;;  %v1042_v5 = vmul.f32 %v3407_v62, %v1012_v56 }
 0x10e   :  { %v1043_v26 = vmul.f32 %v3407_v62, %v1018_v53  ;;  %v1044_v46 = vmul.f32 %v3407_v62, %v1024_v32  ;;  %v1045_v34 = vadd.f32 %v1037_v24, %v1027_v27  ;;  %v1046_v6 = vadd.f32 %v1038_v37, %v1028_v22 }
 0x10f   :  { %v1047_v39 = vadd.f32 %v1039_v57, %v1029_v19  ;;  %v1048_v60 = vadd.f32 %v1040_v18, %v1030_v33  ;;  %v1049_v43 = vadd.f32 %v1041_v58, %v1031_v30  ;;  %v1050_v44 = vadd.f32 %v1042_v5, %v1032_v4 }
 0x110   :  { %v1051_v28 = vadd.f32 %v1043_v26, %v1033_v55  ;;  %v1052_v41 = vadd.f32 %v1044_v46, %v1034_v11  ;;  %v1055_v48 = vadd.f32 %v3409_v13, %v1045_v34  ;;  %v1056_v7 = vadd.f32 %v3409_v13, %v1046_v6 }
 0x111   :  { %v1057_v54 = vadd.f32 %v3409_v13, %v1047_v39  ;;  %v1058_v40 = vadd.f32 %v3409_v13, %v1048_v60  ;;  %v1059_v61 = vadd.f32 %v3409_v13, %v1049_v43  ;;  %v1060_v62 = vadd.f32 %v3409_v13, %v1050_v44 }
 0x112   :  { %v1061_v9 = vadd.f32 %v3409_v13, %v1051_v28  ;;  %v1062_v35 = vadd.f32 %v3409_v13, %v1052_v41  ;;  %v3642_v42 = vmax.f32 %v1055_v48, 0.0  ;;  %v3644_v16 = vmax.f32 %v1056_v7, 0.0 }
 0x113   :  { %v3646_v17 = vmax.f32 %v1057_v54, 0.0  ;;  %v3648_v29 = vmax.f32 %v1058_v40, 0.0  ;;  %v3650_v0 = vmax.f32 %v1059_v61, 0.0  ;;  %v3652_v59 = vmax.f32 %v1060_v62, 0.0 }
 0x114   :  { %v3654_v36 = vmax.f32 %v1061_v9, 0.0  ;;  %v3656_v25 = vmax.f32 %v1062_v35, 0.0  ;;  %v1071_v10 = vmul.f32 %v3398_v8, %v3380_v51  ;;  %v1072_v13 = vmul.f32 %v3412_v21, %v3380_v51 }
 0x115   :  { %4424 = vst [vmem:[#allocation18_spill] sm:$0xff] %v3650_v0  ;;  %4425 = vst [vmem:[#allocation19_spill] sm:$0xff] %v3652_v59  ;;  %v1073_v56 = vmul.f32 %v3425_v15, %v3380_v51  ;;  %v1074_v53 = vmul.f32 %v3439_v1, %v3380_v51  ;;  %v1075_v32 = vmul.f32 %v3450_v20, %v3380_v51 }
 0x116   :  { %4426 = vst [vmem:[#allocation20_spill] sm:$0xff] %v3654_v36  ;;  %4427 = vst [vmem:[#allocation21_spill] sm:$0xff] %v3656_v25  ;;  %v1076_v27 = vmul.f32 %v3457_v23, %v3380_v51  ;;  %v1077_v22 = vmul.f32 %v3464_v52, %v3380_v51  ;;  %v1078_v19 = vmul.f32 %v3468_v50, %v3380_v51  ;;  %v1079_v33 = vrot.slane %v1071_v10, 4 }
 0x117   :  { %v1085_v30 = vrot.slane %v1072_v13, 4  ;;  %v1091_v4 = vrot.slane %v1073_v56, 4  ;;  %v1097_v55 = vrot.slane %v1074_v53, 4  ;;  %v1103_v11 = vrot.slane %v1075_v32, 4 }
 0x118   :  { %v1109_v24 = vrot.slane %v1076_v27, 4  ;;  %v1080_v37 = vadd.f32 %v1079_v33, %v1071_v10  ;;  %v1115_v18 = vrot.slane %v1077_v22, 4  ;;  %v1121_v58 = vrot.slane %v1078_v19, 4 }
 0x119   :  { %v1086_v57 = vadd.f32 %v1085_v30, %v1072_v13  ;;  %v1092_v5 = vadd.f32 %v1091_v4, %v1073_v56  ;;  %v1098_v26 = vadd.f32 %v1097_v55, %v1074_v53  ;;  %v1104_v46 = vadd.f32 %v1103_v11, %v1075_v32  ;;  %v2556_v32 = vld [vmem:[%s4383_s5 + $0x88] sm:$0xff]  ;;  %v2555_v30 = vld [vmem:[%s4383_s5 + $0x80] sm:$0xff]  ;;  %v2557_v4 = vld [vmem:[%s4383_s5 + $0x90] sm:$0xff] }
 0x11a   :  { %v1110_v34 = vadd.f32 %v1109_v24, %v1076_v27  ;;  %v1081_v6 = vrot.slane %v1080_v37, 2  ;;  %v1116_v60 = vadd.f32 %v1115_v18, %v1077_v22  ;;  %v1122_v43 = vadd.f32 %v1121_v58, %v1078_v19  ;;  %v2559_v18 = vld [vmem:[%s4383_s5 + $0xa0] sm:$0xff]  ;;  %v2560_v58 = vld [vmem:[%s4383_s5 + $0xa8] sm:$0xff] }
 0x11b   :  { %v1087_v39 = vrot.slane %v1086_v57, 2  ;;  %v1093_v44 = vrot.slane %v1092_v5, 2  ;;  %v1099_v51 = vrot.slane %v1098_v26, 2  ;;  %v1105_v28 = vrot.slane %v1104_v46, 2 }
 0x11c   :  { %v1111_v41 = vrot.slane %v1110_v34, 2  ;;  %v1082_v48 = vadd.f32 %v1081_v6, %v1080_v37  ;;  %v1117_v54 = vrot.slane %v1116_v60, 2  ;;  %v1123_v40 = vrot.slane %v1122_v43, 2  ;;  %v2561_v6 = vld [vmem:[%s4383_s5 + $0xb0] sm:$0xff] }
 0x11d   :  { %v1088_v7 = vadd.f32 %v1087_v39, %v1086_v57  ;;  %v1094_v61 = vadd.f32 %v1093_v44, %v1092_v5  ;;  %v1100_v62 = vadd.f32 %v1099_v51, %v1098_v26  ;;  %v1106_v9 = vadd.f32 %v1105_v28, %v1104_v46  ;;  %v2558_v57 = vld [vmem:[%s4383_s5 + $0x98] sm:$0xff] }
 0x11e   :  { %v1112_v35 = vadd.f32 %v1111_v41, %v1110_v34  ;;  %v1083_v10 = vrot.slane %v1082_v48, 1  ;;  %v1118_v56 = vadd.f32 %v1117_v54, %v1116_v60  ;;  %v1124_v53 = vadd.f32 %v1123_v40, %v1122_v43  ;;  %v2562_v39 = vld [vmem:[%s4383_s5 + $0xb8] sm:$0xff] }
 0x11f   :  { %v1089_v13 = vrot.slane %v1088_v7, 1  ;;  %v1095_v27 = vrot.slane %v1094_v61, 1  ;;  %v1101_v22 = vrot.slane %v1100_v62, 1  ;;  %v1107_v19 = vrot.slane %v1106_v9, 1 }
 0x120   :  { %v1113_v33 = vrot.slane %v1112_v35, 1  ;;  %v3683_v55 = vadd.f32 %v1083_v10, %v1082_v48  ;;  %v1119_v24 = vrot.slane %v1118_v56, 1  ;;  %v1125_v37 = vrot.slane %v1124_v53, 1 }
 0x121   :  { %v3685_v11 = vadd.f32 %v1089_v13, %v1088_v7  ;;  %v3696_v5 = vadd.f32 %v1095_v27, %v1094_v61  ;;  %v3698_v26 = vadd.f32 %v1101_v22, %v1100_v62  ;;  %v3700_v46 = vadd.f32 %v1107_v19, %v1106_v9 }
 0x122   :  { %v3702_v34 = vadd.f32 %v1113_v33, %v1112_v35  ;;  %v3710_v60 = vadd.f32 %v1119_v24, %v1118_v56  ;;  %v3712_v43 = vadd.f32 %v1125_v37, %v1124_v53  ;;  %v1136_v44 = vmul.f32 %v2555_v30, %v3398_v8 }
 0x123   :  { %v1137_v51 = vmul.f32 %v2556_v32, %v3412_v21  ;;  %v1138_v28 = vmul.f32 %v2557_v4, %v3425_v15  ;;  %v1139_v41 = vmul.f32 %v2558_v57, %v3439_v1  ;;  %v1140_v48 = vmul.f32 %v2559_v18, %v3450_v20 }
 0x124   :  { %v1141_v7 = vmul.f32 %v2560_v58, %v3457_v23  ;;  %v1142_v54 = vmul.f32 %v2561_v6, %v3464_v52  ;;  %v1143_v40 = vmul.f32 %v2562_v39, %v3468_v50  ;;  %v1144_v61 = vrot.slane %v1136_v44, 4 }
 0x125   :  { %v1150_v62 = vrot.slane %v1137_v51, 4  ;;  %v1156_v9 = vrot.slane %v1138_v28, 4  ;;  %v1162_v35 = vrot.slane %v1139_v41, 4  ;;  %v1168_v10 = vrot.slane %v1140_v48, 4 }
 0x126   :  { %v1174_v13 = vrot.slane %v1141_v7, 4  ;;  %v1145_v56 = vadd.f32 %v1144_v61, %v1136_v44  ;;  %v1180_v32 = vrot.slane %v1142_v54, 4  ;;  %v1186_v27 = vrot.slane %v1143_v40, 4 }
 0x127   :  { %v1151_v53 = vadd.f32 %v1150_v62, %v1137_v51  ;;  %v1157_v22 = vadd.f32 %v1156_v9, %v1138_v28  ;;  %v1163_v19 = vadd.f32 %v1162_v35, %v1139_v41  ;;  %v1169_v33 = vadd.f32 %v1168_v10, %v1140_v48 }
 0x128   :  { %v1175_v30 = vadd.f32 %v1174_v13, %v1141_v7  ;;  %v1146_v4 = vrot.slane %v1145_v56, 2  ;;  %v1181_v37 = vadd.f32 %v1180_v32, %v1142_v54  ;;  %v1187_v57 = vadd.f32 %v1186_v27, %v1143_v40 }
 0x129   :  { %v1152_v24 = vrot.slane %v1151_v53, 2  ;;  %v1158_v18 = vrot.slane %v1157_v22, 2  ;;  %v1164_v58 = vrot.slane %v1163_v19, 2  ;;  %v1170_v6 = vrot.slane %v1169_v33, 2 }
 0x12a   :  { %v1176_v39 = vrot.slane %v1175_v30, 2  ;;  %v1147_v25 = vadd.f32 %v1146_v4, %v1145_v56  ;;  %v1182_v59 = vrot.slane %v1181_v37, 2  ;;  %v1188_v0 = vrot.slane %v1187_v57, 2 }
 0x12b   :  { %v1153_v36 = vadd.f32 %v1152_v24, %v1151_v53  ;;  %v1159_v44 = vadd.f32 %v1158_v18, %v1157_v22  ;;  %v1165_v51 = vadd.f32 %v1164_v58, %v1163_v19  ;;  %v1171_v61 = vadd.f32 %v1170_v6, %v1169_v33 }
 0x12c   :  { %v1177_v62 = vadd.f32 %v1176_v39, %v1175_v30  ;;  %v1148_v28 = vrot.slane %v1147_v25, 1  ;;  %v1183_v48 = vadd.f32 %v1182_v59, %v1181_v37  ;;  %v1189_v7 = vadd.f32 %v1188_v0, %v1187_v57 }
 0x12d   :  { %v1154_v41 = vrot.slane %v1153_v36, 1  ;;  %v1160_v9 = vrot.slane %v1159_v44, 1  ;;  %v1166_v35 = vrot.slane %v1165_v51, 1  ;;  %v1172_v54 = vrot.slane %v1171_v61, 1 }
 0x12e   :  { %v1178_v40 = vrot.slane %v1177_v62, 1  ;;  %v1149_v10 = vadd.f32 %v1148_v28, %v1147_v25  ;;  %v1184_v32 = vrot.slane %v1183_v48, 1  ;;  %v1190_v27 = vrot.slane %v1189_v7, 1 }
 0x12f   :  { %v1155_v13 = vadd.f32 %v1154_v41, %v1153_v36  ;;  %v1161_v56 = vadd.f32 %v1160_v9, %v1159_v44  ;;  %v1167_v53 = vadd.f32 %v1166_v35, %v1165_v51  ;;  %v1173_v4 = vadd.f32 %v1172_v54, %v1171_v61 }
 0x130   :  { %v1179_v24 = vadd.f32 %v1178_v40, %v1177_v62  ;;  %v1185_v22 = vadd.f32 %v1184_v32, %v1183_v48  ;;  %v1191_v19 = vadd.f32 %v1190_v27, %v1189_v7  ;;  %v1194_v33 = vmul.f32 %v3418_v47, %v3683_v55 }
 0x131   :  { %v1195_v0 = vmul.f32 %v3418_v47, %v3685_v11  ;;  %v1196_v59 = vmul.f32 %v3418_v47, %v3696_v5  ;;  %v1197_v36 = vmul.f32 %v3418_v47, %v3698_v26  ;;  %v1198_v25 = vmul.f32 %v3418_v47, %v3700_v46 }
 0x132   :  { %v1199_v30 = vmul.f32 %v3418_v47, %v3702_v34  ;;  %v1200_v37 = vmul.f32 %v3418_v47, %v3710_v60  ;;  %v1201_v55 = vmul.f32 %v3418_v47, %v3712_v43  ;;  %v1204_v11 = vmul.f32 %v3420_v2, %v1149_v10 }
 0x133   :  { %v1205_v57 = vmul.f32 %v3420_v2, %v1155_v13  ;;  %v1206_v5 = vmul.f32 %v3420_v2, %v1161_v56  ;;  %v1207_v26 = vmul.f32 %v3420_v2, %v1167_v53  ;;  %v1208_v18 = vmul.f32 %v3420_v2, %v1173_v4  ;;  %v4430_v4 = vld [vmem:[#allocation16_spill] sm:$0xff] }
 0x134   :  { %v1209_v46 = vmul.f32 %v3420_v2, %v1179_v24  ;;  %v1210_v34 = vmul.f32 %v3420_v2, %v1185_v22  ;;  %v1211_v58 = vmul.f32 %v3420_v2, %v1191_v19  ;;  %v1212_v60 = vadd.f32 %v1204_v11, %v1194_v33 }
 0x135   :  { %v1213_v6 = vadd.f32 %v1205_v57, %v1195_v0  ;;  %v1214_v39 = vadd.f32 %v1206_v5, %v1196_v59  ;;  %v1215_v47 = vadd.f32 %v1207_v26, %v1197_v36  ;;  %v1216_v43 = vadd.f32 %v1208_v18, %v1198_v25 }
 0x136   :  { %v1217_v44 = vadd.f32 %v1209_v46, %v1199_v30  ;;  %v1218_v51 = vadd.f32 %v1210_v34, %v1200_v37  ;;  %v1219_v61 = vadd.f32 %v1211_v58, %v1201_v55  ;;  %v1222_v62 = vadd.f32 %v3422_v49, %v1212_v60 }
 0x137   :  { %v1223_v28 = vadd.f32 %v3422_v49, %v1213_v6  ;;  %v1224_v41 = vadd.f32 %v3422_v49, %v1214_v39  ;;  %v1225_v48 = vadd.f32 %v3422_v49, %v1215_v47  ;;  %v1226_v7 = vadd.f32 %v3422_v49, %v1216_v43 }
 0x138   :  { %v1227_v2 = vadd.f32 %v3422_v49, %v1217_v44  ;;  %v1228_v9 = vadd.f32 %v3422_v49, %v1218_v51  ;;  %v1229_v35 = vadd.f32 %v3422_v49, %v1219_v61  ;;  %v3754_v54 = vmax.f32 %v1222_v62, 0.0 }
 0x139   :  { %v3756_v40 = vmax.f32 %v1223_v28, 0.0  ;;  %v3758_v10 = vmax.f32 %v1224_v41, 0.0  ;;  %v3760_v13 = vmax.f32 %v1225_v48, 0.0  ;;  %v3762_v32 = vmax.f32 %v1226_v7, 0.0 }
 0x13a   :  { %v3764_v27 = vmax.f32 %v1227_v2, 0.0  ;;  %v3766_v56 = vmax.f32 %v1228_v9, 0.0  ;;  %v3768_v53 = vmax.f32 %v1229_v35, 0.0  ;;  %v1238_v24 = vmul.f32 %v3398_v8, %v4430_v4 }
 0x13b   :  { %v1239_v49 = vmul.f32 %v3412_v21, %v4430_v4  ;;  %v1240_v22 = vmul.f32 %v3425_v15, %v4430_v4  ;;  %v1241_v19 = vmul.f32 %v3439_v1, %v4430_v4  ;;  %v1242_v33 = vmul.f32 %v3450_v20, %v4430_v4 }
 0x13c   :  { %4428 = vst [vmem:[#allocation22_spill] sm:$0xff] %v3766_v56  ;;  %4429 = vst [vmem:[#allocation23_spill] sm:$0xff] %v3768_v53  ;;  %v1243_v0 = vmul.f32 %v3457_v23, %v4430_v4  ;;  %v1244_v59 = vmul.f32 %v3464_v52, %v4430_v4  ;;  %v1245_v36 = vmul.f32 %v3468_v50, %v4430_v4  ;;  %v1246_v25 = vrot.slane %v1238_v24, 4 }
 0x13d   :  { %v1252_v30 = vrot.slane %v1239_v49, 4  ;;  %v1258_v37 = vrot.slane %v1240_v22, 4  ;;  %v1264_v55 = vrot.slane %v1241_v19, 4  ;;  %v1270_v11 = vrot.slane %v1242_v33, 4 }
 0x13e   :  { %v1276_v57 = vrot.slane %v1243_v0, 4  ;;  %v1247_v5 = vadd.f32 %v1246_v25, %v1238_v24  ;;  %v1282_v18 = vrot.slane %v1244_v59, 4  ;;  %v1288_v46 = vrot.slane %v1245_v36, 4 }
 0x13f   :  { %v1253_v26 = vadd.f32 %v1252_v30, %v1239_v49  ;;  %v1259_v34 = vadd.f32 %v1258_v37, %v1240_v22  ;;  %v1265_v58 = vadd.f32 %v1264_v55, %v1241_v19  ;;  %v1271_v60 = vadd.f32 %v1270_v11, %v1242_v33  ;;  %v2566_v37 = vld [vmem:[%s4383_s5 + $0xc0] sm:$0xff]  ;;  %v2568_v55 = vld [vmem:[%s4383_s5 + $0xd0] sm:$0xff] }
 0x140   :  { %v1277_v6 = vadd.f32 %v1276_v57, %v1243_v0  ;;  %v1248_v39 = vrot.slane %v1247_v5, 2  ;;  %v1283_v43 = vadd.f32 %v1282_v18, %v1244_v59  ;;  %v1289_v44 = vadd.f32 %v1288_v46, %v1245_v36  ;;  %v2567_v0 = vld [vmem:[%s4383_s5 + $0xc8] sm:$0xff]  ;;  %v2569_v18 = vld [vmem:[%s4383_s5 + $0xd8] sm:$0xff]  ;;  %v2570_v46 = vld [vmem:[%s4383_s5 + $0xe0] sm:$0xff] }
 0x141   :  { %v1254_v47 = vrot.slane %v1253_v26, 2  ;;  %v1260_v51 = vrot.slane %v1259_v34, 2  ;;  %v1266_v61 = vrot.slane %v1265_v58, 2  ;;  %v1272_v62 = vrot.slane %v1271_v60, 2 }
 0x142   :  { %v1278_v28 = vrot.slane %v1277_v6, 2  ;;  %v1249_v41 = vadd.f32 %v1248_v39, %v1247_v5  ;;  %v1284_v7 = vrot.slane %v1283_v43, 2  ;;  %v1290_v2 = vrot.slane %v1289_v44, 2 }
 0x143   :  { %v1255_v48 = vadd.f32 %v1254_v47, %v1253_v26  ;;  %v1261_v9 = vadd.f32 %v1260_v51, %v1259_v34  ;;  %v1267_v35 = vadd.f32 %v1266_v61, %v1265_v58  ;;  %v1273_v4 = vadd.f32 %v1272_v62, %v1271_v60  ;;  %v2571_v34 = vld [vmem:[%s4383_s5 + $0xe8] sm:$0xff]  ;;  %v2572_v47 = vld [vmem:[%s4383_s5 + $0xf0] sm:$0xff] }
 0x144   :  { %v1279_v24 = vadd.f32 %v1278_v28, %v1277_v6  ;;  %v1250_v49 = vrot.slane %v1249_v41, 1  ;;  %v1285_v19 = vadd.f32 %v1284_v7, %v1283_v43  ;;  %v1291_v33 = vadd.f32 %v1290_v2, %v1289_v44  ;;  %v2573_v43 = vld [vmem:[%s4383_s5 + $0xf8] sm:$0xff]  ;;  %s3834_s5 = sld [smem:[#allocation7 + $0x3]] }
 0x145   :  { %v1256_v22 = vrot.slane %v1255_v48, 1  ;;  %v1262_v59 = vrot.slane %v1261_v9, 1  ;;  %v1268_v36 = vrot.slane %v1267_v35, 1  ;;  %v1274_v25 = vrot.slane %v1273_v4, 1 }
 0x146   :  { %v1280_v30 = vrot.slane %v1279_v24, 1  ;;  %v3795_v11 = vadd.f32 %v1250_v49, %v1249_v41  ;;  %v1286_v5 = vrot.slane %v1285_v19, 1  ;;  %v1292_v26 = vrot.slane %v1291_v33, 1 }
 0x147   :  { %v3797_v57 = vadd.f32 %v1256_v22, %v1255_v48  ;;  %v3808_v58 = vadd.f32 %v1262_v59, %v1261_v9  ;;  %v3810_v60 = vadd.f32 %v1268_v36, %v1267_v35  ;;  %v3812_v6 = vadd.f32 %v1274_v25, %v1273_v4 }
 0x148   :  { %v3814_v39 = vadd.f32 %v1280_v30, %v1279_v24  ;;  %v3822_v44 = vadd.f32 %v1286_v5, %v1285_v19  ;;  %v3824_v51 = vadd.f32 %v1292_v26, %v1291_v33  ;;  %v1303_v61 = vmul.f32 %v2566_v37, %v3398_v8 }
 0x149   :  { %v1304_v62 = vmul.f32 %v2567_v0, %v3412_v21  ;;  %v1305_v28 = vmul.f32 %v2568_v55, %v3425_v15  ;;  %v1306_v41 = vmul.f32 %v2569_v18, %v3439_v1  ;;  %v1307_v48 = vmul.f32 %v2570_v46, %v3450_v20 }
 0x14a   :  { %v1308_v7 = vmul.f32 %v2571_v34, %v3457_v23  ;;  %v1309_v2 = vmul.f32 %v2572_v47, %v3464_v52  ;;  %v1310_v9 = vmul.f32 %v2573_v43, %v3468_v50  ;;  %v1311_v35 = vrot.slane %v1303_v61, 4 }
 0x14b   :  { %v1317_v4 = vrot.slane %v1304_v62, 4  ;;  %v1323_v24 = vrot.slane %v1305_v28, 4  ;;  %v1329_v49 = vrot.slane %v1306_v41, 4  ;;  %v1335_v22 = vrot.slane %v1307_v48, 4 }
 0x14c   :  { %v1341_v8 = vrot.slane %v1308_v7, 4  ;;  %v1312_v19 = vadd.f32 %v1311_v35, %v1303_v61  ;;  %v1347_v33 = vrot.slane %v1309_v2, 4  ;;  %v1353_v15 = vrot.slane %v1310_v9, 4 }
 0x14d   :  { %v1318_v21 = vadd.f32 %v1317_v4, %v1304_v62  ;;  %v1324_v0 = vadd.f32 %v1323_v24, %v1305_v28  ;;  %v1330_v1 = vadd.f32 %v1329_v49, %v1306_v41  ;;  %v1336_v59 = vadd.f32 %v1335_v22, %v1307_v48 }
 0x14e   :  { %v1342_v20 = vadd.f32 %v1341_v8, %v1308_v7  ;;  %v1313_v36 = vrot.slane %v1312_v19, 2  ;;  %v1348_v25 = vadd.f32 %v1347_v33, %v1309_v2  ;;  %v1354_v52 = vadd.f32 %v1353_v15, %v1310_v9 }
 0x14f   :  { %v1319_v23 = vrot.slane %v1318_v21, 2  ;;  %v1325_v50 = vrot.slane %v1324_v0, 2  ;;  %v1331_v30 = vrot.slane %v1330_v1, 2  ;;  %v1337_v37 = vrot.slane %v1336_v59, 2 }
 0x150   :  { %v1343_v55 = vrot.slane %v1342_v20, 2  ;;  %v1314_v5 = vadd.f32 %v1313_v36, %v1312_v19  ;;  %v1349_v18 = vrot.slane %v1348_v25, 2  ;;  %v1355_v46 = vrot.slane %v1354_v52, 2 }
 0x151   :  { %v1320_v26 = vadd.f32 %v1319_v23, %v1318_v21  ;;  %v1326_v34 = vadd.f32 %v1325_v50, %v1324_v0  ;;  %v1332_v47 = vadd.f32 %v1331_v30, %v1330_v1  ;;  %v1338_v43 = vadd.f32 %v1337_v37, %v1336_v59 }
 0x152   :  { %v1344_v61 = vadd.f32 %v1343_v55, %v1342_v20  ;;  %v1315_v62 = vrot.slane %v1314_v5, 1  ;;  %v1350_v41 = vadd.f32 %v1349_v18, %v1348_v25  ;;  %v1356_v48 = vadd.f32 %v1355_v46, %v1354_v52 }
 0x153   :  { %v1321_v28 = vrot.slane %v1320_v26, 1  ;;  %v1327_v7 = vrot.slane %v1326_v34, 1  ;;  %v1333_v2 = vrot.slane %v1332_v47, 1  ;;  %v1339_v9 = vrot.slane %v1338_v43, 1 }
 0x154   :  { %v1345_v35 = vrot.slane %v1344_v61, 1  ;;  %v1316_v4 = vadd.f32 %v1315_v62, %v1314_v5  ;;  %v1351_v49 = vrot.slane %v1350_v41, 1  ;;  %v1357_v22 = vrot.slane %v1356_v48, 1 }
 0x155   :  { %v1322_v24 = vadd.f32 %v1321_v28, %v1320_v26  ;;  %v1328_v8 = vadd.f32 %v1327_v7, %v1326_v34  ;;  %v1334_v19 = vadd.f32 %v1333_v2, %v1332_v47  ;;  %v1340_v21 = vadd.f32 %v1339_v9, %v1338_v43 }
 0x156   :  { %v1346_v33 = vadd.f32 %v1345_v35, %v1344_v61  ;;  %v1352_v15 = vadd.f32 %v1351_v49, %v1350_v41  ;;  %v1358_v0 = vadd.f32 %v1357_v22, %v1356_v48  ;;  %v1360_v1 = vstv %s3834_s5  ;;  %s4046_s5 = sld [smem:[#allocation9 + $0x181]] }
 0x157   :  { %v1370_v59 = vstv %s3836_s23  ;;  %v1361_v20 = vmul.f32 %v1360_v1, %v3795_v11  ;;  %v1362_v36 = vmul.f32 %v1360_v1, %v3797_v57  ;;  %v1363_v23 = vmul.f32 %v1360_v1, %v3808_v58  ;;  %s4049_s23 = sld [smem:[#allocation9 + $0x182]] }
 0x158   :  { %v1364_v25 = vmul.f32 %v1360_v1, %v3810_v60  ;;  %v1365_v52 = vmul.f32 %v1360_v1, %v3812_v6  ;;  %v1366_v50 = vmul.f32 %v1360_v1, %v3814_v39  ;;  %v1367_v30 = vmul.f32 %v1360_v1, %v3822_v44 }
 0x159   :  { %v1368_v37 = vmul.f32 %v1360_v1, %v3824_v51  ;;  %v1371_v55 = vmul.f32 %v1370_v59, %v1316_v4  ;;  %v1372_v5 = vmul.f32 %v1370_v59, %v1322_v24  ;;  %v1373_v26 = vmul.f32 %v1370_v59, %v1328_v8 }
 0x15a   :  { %v1374_v11 = vmul.f32 %v1370_v59, %v1334_v19  ;;  %v1375_v57 = vmul.f32 %v1370_v59, %v1340_v21  ;;  %v1376_v58 = vmul.f32 %v1370_v59, %v1346_v33  ;;  %v1377_v18 = vmul.f32 %v1370_v59, %v1352_v15 }
 0x15b   :  { %v1378_v60 = vmul.f32 %v1370_v59, %v1358_v0  ;;  %v1379_v46 = vadd.f32 %v1371_v55, %v1361_v20  ;;  %v1380_v6 = vadd.f32 %v1372_v5, %v1362_v36  ;;  %v1381_v34 = vadd.f32 %v1373_v26, %v1363_v23 }
 0x15c   :  { %v1382_v39 = vadd.f32 %v1374_v11, %v1364_v25  ;;  %v1383_v47 = vadd.f32 %v1375_v57, %v1365_v52  ;;  %v1384_v44 = vadd.f32 %v1376_v58, %v1366_v50  ;;  %v1385_v43 = vadd.f32 %v1377_v18, %v1367_v30  ;;  %v4439_v30 = vld [vmem:[#allocation17_spill] sm:$0xff]  ;;  %v4440_v57 = vld [vmem:[#allocation18_spill] sm:$0xff]  ;;  %v4441_v18 = vld [vmem:[#allocation19_spill] sm:$0xff] }
 0x15d   :  { %v1386_v51 = vadd.f32 %v1378_v60, %v1368_v37  ;;  %v1388_v61 = vstv %s3838_s24  ;;  %v1406_v62 = vstv %s3840_s19  ;;  %v1416_v28 = vstv %s3842_s25  ;;  %s4055_s24 = sld [smem:[#allocation9 + $0x183]] }
 0x15e   :  { %v1434_v41 = vstv %s3844_s2  ;;  %v1389_v48 = vadd.f32 %v1388_v61, %v1379_v46  ;;  %v1390_v7 = vadd.f32 %v1388_v61, %v1380_v6  ;;  %v1391_v2 = vadd.f32 %v1388_v61, %v1381_v34  ;;  %v4442_v46 = vld [vmem:[#allocation20_spill] sm:$0xff]  ;;  %v4443_v34 = vld [vmem:[#allocation21_spill] sm:$0xff]  ;;  %s4057_s19 = sld [smem:[#allocation10 + $0x3]] }
 0x15f   :  { %v1392_v9 = vadd.f32 %v1388_v61, %v1382_v39  ;;  %v1393_v35 = vadd.f32 %v1388_v61, %v1383_v47  ;;  %v1394_v4 = vadd.f32 %v1388_v61, %v1384_v44  ;;  %v1395_v24 = vadd.f32 %v1388_v61, %v1385_v43 }
 0x160   :  { %v1396_v49 = vadd.f32 %v1388_v61, %v1386_v51  ;;  %v3860_v22 = vmax.f32 %v1389_v48, 0.0  ;;  %v3862_v8 = vmax.f32 %v1390_v7, 0.0  ;;  %v3864_v19 = vmax.f32 %v1391_v2, 0.0 }
 0x161   :  { %v3866_v21 = vmax.f32 %v1392_v9, 0.0  ;;  %v3868_v33 = vmax.f32 %v1393_v35, 0.0  ;;  %v3870_v15 = vmax.f32 %v1394_v4, 0.0  ;;  %v3872_v0 = vmax.f32 %v1395_v24, 0.0 }
 0x162   :  { %4431 = vst [vmem:[#allocation16_spill] sm:$0xff] %v3860_v22  ;;  %4432 = vst [vmem:[#allocation24_spill] sm:$0xff] %v3862_v8  ;;  %v3874_v1 = vmax.f32 %v1396_v49, 0.0  ;;  %v1407_v59 = vmul.f32 %v1406_v62, %v3530_v12  ;;  %v1408_v20 = vmul.f32 %v1406_v62, %v3532_v45  ;;  %v1409_v36 = vmul.f32 %v1406_v62, %v3534_v14 }
 0x163   :  { %4433 = vst [vmem:[#allocation25_spill] sm:$0xff] %v3864_v19  ;;  %4434 = vst [vmem:[#allocation26_spill] sm:$0xff] %v3866_v21  ;;  %v1410_v23 = vmul.f32 %v1406_v62, %v3536_v31  ;;  %v1411_v25 = vmul.f32 %v1406_v62, %v3538_v38  ;;  %v1412_v52 = vmul.f32 %v1406_v62, %v3540_v63 }
 0x164   :  { %4435 = vst [vmem:[#allocation27_spill] sm:$0xff] %v3868_v33  ;;  %4436 = vst [vmem:[#allocation28_spill] sm:$0xff] %v3870_v15  ;;  %v1413_v50 = vmul.f32 %v1406_v62, %v3542_v3  ;;  %v1414_v37 = vmul.f32 %v1406_v62, %v4439_v30  ;;  %v1417_v55 = vmul.f32 %v1416_v28, %v3642_v42 }
 0x165   :  { %4437 = vst [vmem:[#allocation29_spill] sm:$0xff] %v3872_v0  ;;  %4438 = vst [vmem:[#allocation30_spill] sm:$0xff] %v3874_v1  ;;  %v1418_v5 = vmul.f32 %v1416_v28, %v3644_v16  ;;  %v1419_v26 = vmul.f32 %v1416_v28, %v3646_v17  ;;  %v1420_v11 = vmul.f32 %v1416_v28, %v3648_v29 }
 0x166   :  { %v1421_v58 = vmul.f32 %v1416_v28, %v4440_v57  ;;  %v1422_v60 = vmul.f32 %v1416_v28, %v4441_v18  ;;  %v1423_v6 = vmul.f32 %v1416_v28, %v4442_v46  ;;  %v1424_v39 = vmul.f32 %v1416_v28, %v4443_v34 }
 0x167   :  { %v1425_v47 = vadd.f32 %v1417_v55, %v1407_v59  ;;  %v1426_v44 = vadd.f32 %v1418_v5, %v1408_v20  ;;  %v1427_v43 = vadd.f32 %v1419_v26, %v1409_v36  ;;  %v1428_v51 = vadd.f32 %v1420_v11, %v1410_v23  ;;  %v1479_v20 = vld [vmem:[%s4388_s10] sm:$0xff] }
 0x168   :  { %v1429_v61 = vadd.f32 %v1421_v58, %v1411_v25  ;;  %v1430_v62 = vadd.f32 %v1422_v60, %v1412_v52  ;;  %v1431_v48 = vadd.f32 %v1423_v6, %v1413_v50  ;;  %v1432_v7 = vadd.f32 %v1424_v39, %v1414_v37 }
 0x169   :  { %v1435_v2 = vmul.f32 %v1434_v41, %v3754_v54  ;;  %v1436_v9 = vmul.f32 %v1434_v41, %v3756_v40  ;;  %v1437_v35 = vmul.f32 %v1434_v41, %v3758_v10  ;;  %v1438_v4 = vmul.f32 %v1434_v41, %v3760_v13 }
 0x16a   :  { %v1439_v28 = vmul.f32 %v1434_v41, %v3762_v32  ;;  %v1440_v24 = vmul.f32 %v1434_v41, %v3764_v27  ;;  %v1441_v49 = vmul.f32 %v1434_v41, %v3766_v56  ;;  %v1442_v59 = vmul.f32 %v1434_v41, %v3768_v53 }
 0x16b   :  { %v1443_v36 = vadd.f32 %v1435_v2, %v1425_v47  ;;  %v1444_v23 = vadd.f32 %v1436_v9, %v1426_v44  ;;  %v1445_v25 = vadd.f32 %v1437_v35, %v1427_v43  ;;  %v1446_v52 = vadd.f32 %v1438_v4, %v1428_v51 }
 0x16c   :  { %v1447_v50 = vadd.f32 %v1439_v28, %v1429_v61  ;;  %v1448_v37 = vadd.f32 %v1440_v24, %v1430_v62  ;;  %v1449_v55 = vadd.f32 %v1441_v49, %v1431_v48  ;;  %v1450_v5 = vadd.f32 %v1442_v59, %v1432_v7 }
 0x16d   :  { %v1452_v26 = vstv %s3888_s7  ;;  %v1470_v11 = vstv %s3890_s26  ;;  %v1481_v58 = vrot.slane %v1479_v20, 1  ;;  %v1482_v60 = vrot.slane %v1479_v20, 2  ;;  %s4298_s7 = sld [smem:[#allocation9 + $0x380]]  ;;  %s4300_s26 = sld [smem:[#allocation9 + $0x381]] }
 0x16e   :  { %v1453_v6 = vmul.f32 %v1452_v26, %v3860_v22  ;;  %v1454_v41 = vmul.f32 %v1452_v26, %v3862_v8  ;;  %v1455_v39 = vmul.f32 %v1452_v26, %v3864_v19  ;;  %v1456_v53 = vmul.f32 %v1452_v26, %v3866_v21 }
 0x16f   :  { %v1457_v47 = vmul.f32 %v1452_v26, %v3868_v33  ;;  %v1458_v44 = vmul.f32 %v1452_v26, %v3870_v15  ;;  %v1459_v43 = vmul.f32 %v1452_v26, %v3872_v0  ;;  %v1460_v51 = vmul.f32 %v1452_v26, %v3874_v1 }
 0x170   :  { %v1461_v61 = vadd.f32 %v1453_v6, %v1443_v36  ;;  %v1462_v62 = vadd.f32 %v1454_v41, %v1444_v23  ;;  %v1463_v48 = vadd.f32 %v1455_v39, %v1445_v25  ;;  %v1464_v7 = vadd.f32 %v1456_v53, %v1446_v52 }
 0x171   :  { %v1465_v2 = vadd.f32 %v1457_v47, %v1447_v50  ;;  %v1466_v9 = vadd.f32 %v1458_v44, %v1448_v37  ;;  %v1467_v35 = vadd.f32 %v1459_v43, %v1449_v55  ;;  %v1468_v4 = vadd.f32 %v1460_v51, %v1450_v5 }
 0x172   :  { %v1471_v28 = vadd.f32 %v1470_v11, %v1461_v61  ;;  %v1472_v24 = vadd.f32 %v1470_v11, %v1462_v62  ;;  %v1473_v49 = vadd.f32 %v1470_v11, %v1463_v48  ;;  %v1474_v59 = vadd.f32 %v1470_v11, %v1464_v7 }
 0x173   :  { %v1475_v21 = vadd.f32 %v1470_v11, %v1465_v2  ;;  %v1476_v33 = vadd.f32 %v1470_v11, %v1466_v9  ;;  %v1477_v19 = vadd.f32 %v1470_v11, %v1467_v35  ;;  %v1478_v15 = vadd.f32 %v1470_v11, %v1468_v4 }
 0x174   :  { %v1483_v8 = vrot.slane %v1479_v20, 3  ;;  %v1484_v0 = vrot.slane %v1479_v20, 4  ;;  %v1485_v22 = vrot.slane %v1479_v20, 5  ;;  %v1486_v26 = vrot.slane %v1479_v20, 6 }
 0x175   :  { %v1487_v36 = vrot.slane %v1479_v20, 7  ;;  %v1496_v23 = vadd.f32 %v1479_v20, %v1471_v28  ;;  %v1497_v25 = vadd.f32 %v1481_v58, %v1472_v24  ;;  %v1498_v53 = vadd.f32 %v1482_v60, %v1473_v49 }
 0x176   :  { %v1499_v52 = vadd.f32 %v1483_v8, %v1474_v59  ;;  %v1500_v50 = vadd.f32 %v1484_v0, %v1475_v21  ;;  %v1501_v37 = vadd.f32 %v1485_v22, %v1476_v33  ;;  %v1502_v55 = vadd.f32 %v1486_v26, %v1477_v19 }
 0x177   :  { %v1503_v5 = vadd.f32 %v1487_v36, %v1478_v15  ;;  %v1504_v6 = vmax.f32 %v1496_v23, 0.0  ;;  %v1505_v41 = vmax.f32 %v1497_v25, 0.0  ;;  %v1506_v11 = vmax.f32 %v1498_v53, 0.0 }
 0x178   :  { %v1507_v39 = vmax.f32 %v1499_v52, 0.0  ;;  %v1508_v47 = vmax.f32 %v1500_v50, 0.0  ;;  %v1509_v44 = vmax.f32 %v1501_v37, 0.0  ;;  %v1510_v43 = vmax.f32 %v1502_v55, 0.0 }
 0x179   :  { %v1511_v51 = vmax.f32 %v1503_v5, 0.0  ;;  %v1520_v20 = vrot.slane %v1505_v41, 7  ;;  %v1523_v58 = vrot.slane %v1506_v11, 6  ;;  %v1544_v61 = vstv %s3917_s29  ;;  %s4118_s29 = sld [smem:[#allocation9 + $0x202]] }
 0x17a   :  { %v1526_v60 = vrot.slane %v1507_v39, 5  ;;  %v1529_v8 = vrot.slane %v1508_v47, 4  ;;  %v1532_v19 = vrot.slane %v1509_v44, 3  ;;  %v1535_v33 = vrot.slane %v1510_v43, 2 }
 0x17b   :  { %v1522_v22 = vsel %vm1521_vm0, %v1520_v20, %v1504_v6  ;;  %v1538_v15 = vrot.slane %v1511_v51, 1  ;;  %v1554_v62 = vstv %s3919_s30  ;;  %v1545_v7 = vmul.f32 %v1544_v61, %v3530_v12  ;;  %v3958_v6 = vld [vmem:[%s4388_s10 + $0x8] sm:$0xff]  ;;  %s4139_s30 = sld [smem:[#allocation9 + $0x203]] }
 0x17c   :  { %v1525_v21 = vsel %vm1524_vm1, %v1523_v58, %v1522_v22  ;;  %v1546_v2 = vmul.f32 %v1544_v61, %v3532_v45  ;;  %v1547_v9 = vmul.f32 %v1544_v61, %v3534_v14  ;;  %v1548_v4 = vmul.f32 %v1544_v61, %v3536_v31 }
 0x17d   :  { %v1528_v0 = vsel %vm1527_vm2, %v1526_v60, %v1525_v21  ;;  %v1549_v28 = vmul.f32 %v1544_v61, %v3538_v38  ;;  %v1550_v24 = vmul.f32 %v1544_v61, %v3540_v63  ;;  %v1551_v59 = vmul.f32 %v1544_v61, %v3542_v3 }
 0x17e   :  { %v1531_v48 = vsel %vm1530_vm3, %v1529_v8, %v1528_v0  ;;  %v1552_v26 = vmul.f32 %v1544_v61, %v4439_v30  ;;  %v1555_v36 = vmul.f32 %v1554_v62, %v3642_v42  ;;  %v1556_v25 = vmul.f32 %v1554_v62, %v3644_v16 }
 0x17f   :  { %v1534_v35 = vsel %vm1533_vm4, %v1532_v19, %v1531_v48  ;;  %v1557_v53 = vmul.f32 %v1554_v62, %v3646_v17  ;;  %v1558_v52 = vmul.f32 %v1554_v62, %v3648_v29  ;;  %v1559_v50 = vmul.f32 %v1554_v62, %v4440_v57  ;;  %v4444_v48 = vld [vmem:[#allocation23_spill] sm:$0xff] }
 0x180   :  { %v1537_v49 = vsel %vm1536_vm5, %v1535_v33, %v1534_v35  ;;  %v1560_v37 = vmul.f32 %v1554_v62, %v4441_v18  ;;  %v1561_v55 = vmul.f32 %v1554_v62, %v4442_v46  ;;  %v1562_v5 = vmul.f32 %v1554_v62, %v4443_v34 }
 0x181   :  { %v1540_v23 = vsel %vm1539_vm6, %v1538_v15, %v1537_v49  ;;  %v1563_v41 = vadd.f32 %v1555_v36, %v1545_v7  ;;  %v1564_v11 = vadd.f32 %v1556_v25, %v1546_v2  ;;  %v1565_v39 = vadd.f32 %v1557_v53, %v1547_v9  ;;  %v4447_v53 = vld [vmem:[#allocation25_spill] sm:$0xff] }
 0x182   :  { %1542 = vst [vmem:[%s4389_s11] sm:$0xff] %v1540_v23  ;;  %v1566_v47 = vadd.f32 %v1558_v52, %v1548_v4  ;;  %v1567_v44 = vadd.f32 %v1559_v50, %v1549_v28  ;;  %v1568_v43 = vadd.f32 %v1560_v37, %v1550_v24  ;;  %v1569_v51 = vadd.f32 %v1561_v55, %v1551_v59  ;;  %v4446_v23 = vld [vmem:[#allocation24_spill] sm:$0xff]  ;;  %v4448_v50 = vld [vmem:[#allocation26_spill] sm:$0xff]  ;;  %v4449_v55 = vld [vmem:[#allocation27_spill] sm:$0xff] }
 0x183   :  { %v1570_v20 = vadd.f32 %v1562_v5, %v1552_v26  ;;  %v1572_v58 = vstv %s3923_s28  ;;  %v1590_v60 = vstv %s3928_s12  ;;  %v1608_v8 = vstv %s3930_s13  ;;  %v4445_v26 = vld [vmem:[#allocation16_spill] sm:$0xff]  ;;  %s2605_s13 = sld [smem:[#allocation10 + $0x4]] }
 0x184   :  { %v1620_v22 = vrot.slane %v3958_v6, 1  ;;  %v1573_v19 = vmul.f32 %v1572_v58, %v3754_v54  ;;  %v1574_v21 = vmul.f32 %v1572_v58, %v3756_v40  ;;  %v1575_v33 = vmul.f32 %v1572_v58, %v3758_v10 }
 0x185   :  { %v1576_v15 = vmul.f32 %v1572_v58, %v3760_v13  ;;  %v1577_v0 = vmul.f32 %v1572_v58, %v3762_v32  ;;  %v1578_v61 = vmul.f32 %v1572_v58, %v3764_v27  ;;  %v1579_v62 = vmul.f32 %v1572_v58, %v3766_v56  ;;  %v4450_v56 = vld [vmem:[#allocation28_spill] sm:$0xff] }
 0x186   :  { %v1580_v7 = vmul.f32 %v1572_v58, %v4444_v48  ;;  %v1581_v2 = vadd.f32 %v1573_v19, %v1563_v41  ;;  %v1582_v9 = vadd.f32 %v1574_v21, %v1564_v11  ;;  %v1583_v35 = vadd.f32 %v1575_v33, %v1565_v39  ;;  %v4451_v41 = vld [vmem:[#allocation29_spill] sm:$0xff] }
 0x187   :  { %v1584_v4 = vadd.f32 %v1576_v15, %v1566_v47  ;;  %v1585_v28 = vadd.f32 %v1577_v0, %v1567_v44  ;;  %v1586_v24 = vadd.f32 %v1578_v61, %v1568_v43  ;;  %v1587_v49 = vadd.f32 %v1579_v62, %v1569_v51 }
 0x188   :  { %v1588_v59 = vadd.f32 %v1580_v7, %v1570_v20  ;;  %v1591_v36 = vmul.f32 %v1590_v60, %v4445_v26  ;;  %v1592_v25 = vmul.f32 %v1590_v60, %v4446_v23  ;;  %v1593_v52 = vmul.f32 %v1590_v60, %v4447_v53 }
 0x189   :  { %v1594_v37 = vmul.f32 %v1590_v60, %v4448_v50  ;;  %v1595_v5 = vmul.f32 %v1590_v60, %v4449_v55  ;;  %v1596_v58 = vmul.f32 %v1590_v60, %v4450_v56  ;;  %v1597_v11 = vmul.f32 %v1590_v60, %v4451_v41 }
 0x18a   :  { %v1598_v39 = vmul.f32 %v1590_v60, %v3874_v1  ;;  %v1599_v47 = vadd.f32 %v1591_v36, %v1581_v2  ;;  %v1600_v44 = vadd.f32 %v1592_v25, %v1582_v9  ;;  %v1601_v43 = vadd.f32 %v1593_v52, %v1583_v35 }
 0x18b   :  { %v1602_v51 = vadd.f32 %v1594_v37, %v1584_v4  ;;  %v1603_v20 = vadd.f32 %v1595_v5, %v1585_v28  ;;  %v1604_v19 = vadd.f32 %v1596_v58, %v1586_v24  ;;  %v1605_v21 = vadd.f32 %v1597_v11, %v1587_v49 }
 0x18c   :  { %v1606_v33 = vadd.f32 %v1598_v39, %v1588_v59  ;;  %v1609_v15 = vadd.f32 %v1608_v8, %v1599_v47  ;;  %v1610_v0 = vadd.f32 %v1608_v8, %v1600_v44  ;;  %v1611_v61 = vadd.f32 %v1608_v8, %v1601_v43 }
 0x18d   :  { %v1612_v62 = vadd.f32 %v1608_v8, %v1602_v51  ;;  %v1613_v7 = vadd.f32 %v1608_v8, %v1603_v20  ;;  %v1614_v56 = vadd.f32 %v1608_v8, %v1604_v19  ;;  %v1615_v55 = vadd.f32 %v1608_v8, %v1605_v21 }
 0x18e   :  { %v1616_v41 = vadd.f32 %v1608_v8, %v1606_v33  ;;  %v1621_v60 = vrot.slane %v3958_v6, 2  ;;  %v1622_v2 = vrot.slane %v3958_v6, 3  ;;  %v1623_v9 = vrot.slane %v3958_v6, 4 }
 0x18f   :  { %v1624_v35 = vrot.slane %v3958_v6, 5  ;;  %v1625_v4 = vrot.slane %v3958_v6, 6  ;;  %v1626_v28 = vrot.slane %v3958_v6, 7  ;;  %v1635_v24 = vadd.f32 %v3958_v6, %v1609_v15 }
 0x190   :  { %v1636_v49 = vadd.f32 %v1620_v22, %v1610_v0  ;;  %v1637_v59 = vadd.f32 %v1621_v60, %v1611_v61  ;;  %v1638_v36 = vadd.f32 %v1622_v2, %v1612_v62  ;;  %v1639_v25 = vadd.f32 %v1623_v9, %v1613_v7 }
 0x191   :  { %v1640_v8 = vadd.f32 %v1624_v35, %v1614_v56  ;;  %v1641_v52 = vadd.f32 %v1625_v4, %v1615_v55  ;;  %v1642_v37 = vadd.f32 %v1626_v28, %v1616_v41  ;;  %v1643_v5 = vmax.f32 %v1635_v24, 0.0 }
 0x192   :  { %v1644_v58 = vmax.f32 %v1636_v49, 0.0  ;;  %v1645_v11 = vmax.f32 %v1637_v59, 0.0  ;;  %v1646_v39 = vmax.f32 %v1638_v36, 0.0  ;;  %v1647_v47 = vmax.f32 %v1639_v25, 0.0 }
 0x193   :  { %v1648_v44 = vmax.f32 %v1640_v8, 0.0  ;;  %v1649_v43 = vmax.f32 %v1641_v52, 0.0  ;;  %v1650_v6 = vmax.f32 %v1642_v37, 0.0  ;;  %v1677_v51 = vstv %s3980_s15  ;;  %s4176_s15 = sld [smem:[#allocation9 + $0x282]] }
 0x194   :  { %v1659_v22 = vrot.slane %v1644_v58, 7  ;;  %v1661_v20 = vrot.slane %v1645_v11, 6  ;;  %v1663_v19 = vrot.slane %v1646_v39, 5  ;;  %v1665_v21 = vrot.slane %v1647_v47, 4 }
 0x195   :  { %v1667_v56 = vrot.slane %v1648_v44, 3  ;;  %v1669_v55 = vrot.slane %v1649_v43, 2  ;;  %v1671_v41 = vrot.slane %v1650_v6, 1  ;;  %v1678_v15 = vmul.f32 %v1677_v51, %v3530_v12 }
 0x196   :  { %v1660_v33 = vsel %vm1521_vm0, %v1659_v22, %v1643_v5  ;;  %v1679_v61 = vmul.f32 %v1677_v51, %v3532_v45  ;;  %v1680_v62 = vmul.f32 %v1677_v51, %v3534_v14  ;;  %v1681_v7 = vmul.f32 %v1677_v51, %v3536_v31 }
 0x197   :  { %v1662_v0 = vsel %vm1524_vm1, %v1661_v20, %v1660_v33  ;;  %v1682_v2 = vmul.f32 %v1677_v51, %v3538_v38  ;;  %v1683_v9 = vmul.f32 %v1677_v51, %v3540_v63  ;;  %v1684_v35 = vmul.f32 %v1677_v51, %v3542_v3 }
 0x198   :  { %v1664_v60 = vsel %vm1527_vm2, %v1663_v19, %v1662_v0  ;;  %v1685_v28 = vmul.f32 %v1677_v51, %v4439_v30  ;;  %v1687_v24 = vstv %s3989_s16  ;;  %v1705_v49 = vstv %s3991_s17  ;;  %s4182_s16 = sld [smem:[#allocation9 + $0x283]]  ;;  %s4184_s17 = sld [smem:[#allocation10 + $0x5]] }
 0x199   :  { %v1666_v4 = vsel %vm1530_vm3, %v1665_v21, %v1664_v60  ;;  %v1688_v36 = vmul.f32 %v1687_v24, %v3642_v42  ;;  %v1689_v25 = vmul.f32 %v1687_v24, %v3644_v16  ;;  %v1690_v8 = vmul.f32 %v1687_v24, %v3646_v17 }
 0x19a   :  { %v1668_v59 = vsel %vm1533_vm4, %v1667_v56, %v1666_v4  ;;  %v1691_v37 = vmul.f32 %v1687_v24, %v3648_v29  ;;  %v1692_v5 = vmul.f32 %v1687_v24, %v4440_v57  ;;  %v1693_v58 = vmul.f32 %v1687_v24, %v4441_v18 }
 0x19b   :  { %v1670_v52 = vsel %vm1536_vm5, %v1669_v55, %v1668_v59  ;;  %v1694_v39 = vmul.f32 %v1687_v24, %v4442_v46  ;;  %v1695_v47 = vmul.f32 %v1687_v24, %v4443_v34  ;;  %v1696_v44 = vadd.f32 %v1688_v36, %v1678_v15 }
 0x19c   :  { %v1672_v11 = vsel %vm1539_vm6, %v1671_v41, %v1670_v52  ;;  %v1697_v43 = vadd.f32 %v1689_v25, %v1679_v61  ;;  %v1698_v6 = vadd.f32 %v1690_v8, %v1680_v62  ;;  %v1699_v22 = vadd.f32 %v1691_v37, %v1681_v7  ;;  %v4452_v61 = vld [vmem:[#allocation22_spill] sm:$0xff] }
 0x19d   :  { %2586 = vst [vmem:[%s4389_s11 + $0x8] sm:$0xff] %v1672_v11  ;;  %v1700_v51 = vadd.f32 %v1692_v5, %v1682_v2  ;;  %v1701_v20 = vadd.f32 %v1693_v58, %v1683_v9  ;;  %v1702_v19 = vadd.f32 %v1694_v39, %v1684_v35  ;;  %v1703_v21 = vadd.f32 %v1695_v47, %v1685_v28  ;;  %v4453_v5 = vld [vmem:[#allocation27_spill] sm:$0xff]  ;;  %v4455_v39 = vld [vmem:[#allocation29_spill] sm:$0xff] }
 0x19e   :  { %v1706_v56 = vmul.f32 %v1705_v49, %v3754_v54  ;;  %v1707_v33 = vmul.f32 %v1705_v49, %v3756_v40  ;;  %v1708_v55 = vmul.f32 %v1705_v49, %v3758_v10  ;;  %v1709_v41 = vmul.f32 %v1705_v49, %v3760_v13 }
 0x19f   :  { %v1710_v15 = vmul.f32 %v1705_v49, %v3762_v32  ;;  %v1711_v0 = vmul.f32 %v1705_v49, %v3764_v27  ;;  %v1712_v62 = vmul.f32 %v1705_v49, %v4452_v61  ;;  %v1713_v7 = vmul.f32 %v1705_v49, %v4444_v48  ;;  %v4454_v49 = vld [vmem:[#allocation28_spill] sm:$0xff] }
 0x1a0   :  { %v1714_v60 = vadd.f32 %v1706_v56, %v1696_v44  ;;  %v1715_v2 = vadd.f32 %v1707_v33, %v1697_v43  ;;  %v1716_v9 = vadd.f32 %v1708_v55, %v1698_v6  ;;  %v1717_v35 = vadd.f32 %v1709_v41, %v1699_v22  ;;  %v2592_v43 = vld [vmem:[%s4388_s10 + $0x10] sm:$0xff] }
 0x1a1   :  { %v1718_v4 = vadd.f32 %v1710_v15, %v1700_v51  ;;  %v1719_v28 = vadd.f32 %v1711_v0, %v1701_v20  ;;  %v1720_v24 = vadd.f32 %v1712_v62, %v1702_v19  ;;  %v1721_v59 = vadd.f32 %v1713_v7, %v1703_v21 }
 0x1a2   :  { %v1723_v36 = vstv %s4012_s18  ;;  %v1741_v55 = vstv %s2591_s21  ;;  %v1753_v41 = vrot.slane %v2592_v43, 1  ;;  %v1754_v15 = vrot.slane %v2592_v43, 2 }
 0x1a3   :  { %v1724_v25 = vmul.f32 %v1723_v36, %v4445_v26  ;;  %v1725_v8 = vmul.f32 %v1723_v36, %v4446_v23  ;;  %v1726_v52 = vmul.f32 %v1723_v36, %v4447_v53  ;;  %v1727_v37 = vmul.f32 %v1723_v36, %v4448_v50 }
 0x1a4   :  { %v1728_v58 = vmul.f32 %v1723_v36, %v4453_v5  ;;  %v1729_v11 = vmul.f32 %v1723_v36, %v4454_v49  ;;  %v1730_v47 = vmul.f32 %v1723_v36, %v4455_v39  ;;  %v1731_v44 = vmul.f32 %v1723_v36, %v3874_v1 }
 0x1a5   :  { %v1732_v6 = vadd.f32 %v1724_v25, %v1714_v60  ;;  %v1733_v22 = vadd.f32 %v1725_v8, %v1715_v2  ;;  %v1734_v51 = vadd.f32 %v1726_v52, %v1716_v9  ;;  %v1735_v20 = vadd.f32 %v1727_v37, %v1717_v35 }
 0x1a6   :  { %v1736_v19 = vadd.f32 %v1728_v58, %v1718_v4  ;;  %v1737_v21 = vadd.f32 %v1729_v11, %v1719_v28  ;;  %v1738_v56 = vadd.f32 %v1730_v47, %v1720_v24  ;;  %v1739_v33 = vadd.f32 %v1731_v44, %v1721_v59 }
 0x1a7   :  { %v1755_v0 = vrot.slane %v2592_v43, 3  ;;  %v1742_v62 = vadd.f32 %v1741_v55, %v1732_v6  ;;  %v1743_v7 = vadd.f32 %v1741_v55, %v1733_v22  ;;  %v1744_v36 = vadd.f32 %v1741_v55, %v1734_v51 }
 0x1a8   :  { %v1745_v1 = vadd.f32 %v1741_v55, %v1735_v20  ;;  %v1746_v39 = vadd.f32 %v1741_v55, %v1736_v19  ;;  %v1747_v49 = vadd.f32 %v1741_v55, %v1737_v21  ;;  %v1748_v60 = vadd.f32 %v1741_v55, %v1738_v56 }
 0x1a9   :  { %v1749_v2 = vadd.f32 %v1741_v55, %v1739_v33  ;;  %v1756_v9 = vrot.slane %v2592_v43, 4  ;;  %v1757_v35 = vrot.slane %v2592_v43, 5  ;;  %v1758_v4 = vrot.slane %v2592_v43, 6 }
 0x1aa   :  { %v1759_v28 = vrot.slane %v2592_v43, 7  ;;  %v1768_v24 = vadd.f32 %v2592_v43, %v1742_v62  ;;  %v1769_v59 = vadd.f32 %v1753_v41, %v1743_v7  ;;  %v1770_v25 = vadd.f32 %v1754_v15, %v1744_v36 }
 0x1ab   :  { %v1771_v8 = vadd.f32 %v1755_v0, %v1745_v1  ;;  %v1772_v52 = vadd.f32 %v1756_v9, %v1746_v39  ;;  %v1773_v37 = vadd.f32 %v1757_v35, %v1747_v49  ;;  %v1774_v58 = vadd.f32 %v1758_v4, %v1748_v60 }
 0x1ac   :  { %v1775_v11 = vadd.f32 %v1759_v28, %v1749_v2  ;;  %v1776_v47 = vmax.f32 %v1768_v24, 0.0  ;;  %v1777_v44 = vmax.f32 %v1769_v59, 0.0  ;;  %v1778_v6 = vmax.f32 %v1770_v25, 0.0 }
 0x1ad   :  { %v1779_v22 = vmax.f32 %v1771_v8, 0.0  ;;  %v1780_v51 = vmax.f32 %v1772_v52, 0.0  ;;  %v1781_v20 = vmax.f32 %v1773_v37, 0.0  ;;  %v1782_v19 = vmax.f32 %v1774_v58, 0.0 }
 0x1ae   :  { %v1783_v21 = vmax.f32 %v1775_v11, 0.0  ;;  %v1792_v56 = vrot.slane %v1777_v44, 7  ;;  %v1794_v43 = vrot.slane %v1778_v6, 6  ;;  %v1810_v55 = vstv %s4044_s9  ;;  %s4245_s9 = sld [smem:[#allocation9 + $0x302]] }
 0x1af   :  { %v1796_v33 = vrot.slane %v1779_v22, 5  ;;  %v1798_v1 = vrot.slane %v1780_v51, 4  ;;  %v1800_v41 = vrot.slane %v1781_v20, 3  ;;  %v1802_v15 = vrot.slane %v1782_v19, 2  ;;  %v4081_v20 = vld [vmem:[%s4388_s10 + $0x18] sm:$0xff] }
 0x1b0   :  { %v1804_v39 = vrot.slane %v1783_v21, 1  ;;  %v1793_v49 = vsel %vm1521_vm0, %v1792_v56, %v1776_v47  ;;  %v1811_v0 = vmul.f32 %v1810_v55, %v3530_v12  ;;  %v1812_v62 = vmul.f32 %v1810_v55, %v3532_v45 }
 0x1b1   :  { %v1813_v7 = vmul.f32 %v1810_v55, %v3534_v14  ;;  %v1795_v36 = vsel %vm1524_vm1, %v1794_v43, %v1793_v49  ;;  %v1814_v60 = vmul.f32 %v1810_v55, %v3536_v31  ;;  %v1815_v2 = vmul.f32 %v1810_v55, %v3538_v38 }
 0x1b2   :  { %v1816_v9 = vmul.f32 %v1810_v55, %v3540_v63  ;;  %v1797_v35 = vsel %vm1527_vm2, %v1796_v33, %v1795_v36  ;;  %v1817_v4 = vmul.f32 %v1810_v55, %v3542_v3  ;;  %v1818_v28 = vmul.f32 %v1810_v55, %v4439_v30 }
 0x1b3   :  { %v1820_v24 = vstv %s4046_s5  ;;  %v1799_v59 = vsel %vm1530_vm3, %v1798_v1, %v1797_v35  ;;  %v1856_v49 = vstv %s4055_s24  ;;  %v1886_v36 = vrot.slane %v4081_v20, 1  ;;  %s4266_s5 = sld [smem:[#allocation9 + $0x303]] }
 0x1b4   :  { %v1821_v25 = vmul.f32 %v1820_v24, %v3642_v42  ;;  %v1822_v8 = vmul.f32 %v1820_v24, %v3644_v16  ;;  %v1823_v52 = vmul.f32 %v1820_v24, %v3646_v17  ;;  %v1801_v37 = vsel %vm1533_vm4, %v1800_v41, %v1799_v59 }
 0x1b5   :  { %v1824_v58 = vmul.f32 %v1820_v24, %v3648_v29  ;;  %v1825_v11 = vmul.f32 %v1820_v24, %v4440_v57  ;;  %v1826_v47 = vmul.f32 %v1820_v24, %v4441_v18  ;;  %v1803_v44 = vsel %vm1536_vm5, %v1802_v15, %v1801_v37 }
 0x1b6   :  { %v1827_v6 = vmul.f32 %v1820_v24, %v4442_v46  ;;  %v1828_v22 = vmul.f32 %v1820_v24, %v4443_v34  ;;  %v1829_v51 = vadd.f32 %v1821_v25, %v1811_v0  ;;  %v1805_v19 = vsel %vm1539_vm6, %v1804_v39, %v1803_v44 }
 0x1b7   :  { %v1830_v21 = vadd.f32 %v1822_v8, %v1812_v62  ;;  %v1831_v56 = vadd.f32 %v1823_v52, %v1813_v7  ;;  %v1832_v43 = vadd.f32 %v1824_v58, %v1814_v60  ;;  %2593 = vst [vmem:[%s4389_s11 + $0x10] sm:$0xff] %v1805_v19  ;;  %v1833_v33 = vadd.f32 %v1825_v11, %v1815_v2  ;;  %v4456_v19 = vld [vmem:[#allocation28_spill] sm:$0xff] }
 0x1b8   :  { %v1834_v55 = vadd.f32 %v1826_v47, %v1816_v9  ;;  %v1835_v1 = vadd.f32 %v1827_v6, %v1817_v4  ;;  %v1836_v41 = vadd.f32 %v1828_v22, %v1818_v28  ;;  %v1838_v15 = vstv %s4049_s23 }
 0x1b9   :  { %v1874_v0 = vstv %s4057_s19  ;;  %v1839_v35 = vmul.f32 %v1838_v15, %v3754_v54  ;;  %v1840_v39 = vmul.f32 %v1838_v15, %v3756_v40  ;;  %v1841_v62 = vmul.f32 %v1838_v15, %v3758_v10  ;;  %s2619_s19 = sld [smem:[#allocation10 + $0x6]] }
 0x1ba   :  { %v1842_v7 = vmul.f32 %v1838_v15, %v3760_v13  ;;  %v1843_v60 = vmul.f32 %v1838_v15, %v3762_v32  ;;  %v1844_v2 = vmul.f32 %v1838_v15, %v3764_v27  ;;  %v1845_v9 = vmul.f32 %v1838_v15, %v4452_v61 }
 0x1bb   :  { %v1846_v4 = vmul.f32 %v1838_v15, %v4444_v48  ;;  %v1847_v28 = vadd.f32 %v1839_v35, %v1829_v51  ;;  %v1848_v24 = vadd.f32 %v1840_v39, %v1830_v21  ;;  %v1849_v59 = vadd.f32 %v1841_v62, %v1831_v56  ;;  %v4457_v51 = vld [vmem:[#allocation29_spill] sm:$0xff]  ;;  %v4458_v56 = vld [vmem:[#allocation30_spill] sm:$0xff] }
 0x1bc   :  { %v1850_v25 = vadd.f32 %v1842_v7, %v1832_v43  ;;  %v1851_v8 = vadd.f32 %v1843_v60, %v1833_v33  ;;  %v1852_v52 = vadd.f32 %v1844_v2, %v1834_v55  ;;  %v1853_v37 = vadd.f32 %v1845_v9, %v1835_v1 }
 0x1bd   :  { %v1854_v58 = vadd.f32 %v1846_v4, %v1836_v41  ;;  %v1857_v11 = vmul.f32 %v1856_v49, %v4445_v26  ;;  %v1858_v47 = vmul.f32 %v1856_v49, %v4446_v23  ;;  %v1859_v44 = vmul.f32 %v1856_v49, %v4447_v53 }
 0x1be   :  { %v1860_v6 = vmul.f32 %v1856_v49, %v4448_v50  ;;  %v1861_v22 = vmul.f32 %v1856_v49, %v4453_v5  ;;  %v1862_v15 = vmul.f32 %v1856_v49, %v4456_v19  ;;  %v1863_v21 = vmul.f32 %v1856_v49, %v4457_v51 }
 0x1bf   :  { %v1864_v43 = vmul.f32 %v1856_v49, %v4458_v56  ;;  %v1865_v33 = vadd.f32 %v1857_v11, %v1847_v28  ;;  %v1866_v55 = vadd.f32 %v1858_v47, %v1848_v24  ;;  %v1867_v1 = vadd.f32 %v1859_v44, %v1849_v59 }
 0x1c0   :  { %v1868_v41 = vadd.f32 %v1860_v6, %v1850_v25  ;;  %v1869_v35 = vadd.f32 %v1861_v22, %v1851_v8  ;;  %v1870_v39 = vadd.f32 %v1862_v15, %v1852_v52  ;;  %v1871_v62 = vadd.f32 %v1863_v21, %v1853_v37 }
 0x1c1   :  { %v1872_v7 = vadd.f32 %v1864_v43, %v1854_v58  ;;  %v1875_v60 = vadd.f32 %v1874_v0, %v1865_v33  ;;  %v1876_v2 = vadd.f32 %v1874_v0, %v1866_v55  ;;  %v1877_v9 = vadd.f32 %v1874_v0, %v1867_v1 }
 0x1c2   :  { %v1878_v4 = vadd.f32 %v1874_v0, %v1868_v41  ;;  %v1879_v5 = vadd.f32 %v1874_v0, %v1869_v35  ;;  %v1880_v19 = vadd.f32 %v1874_v0, %v1870_v39  ;;  %v1881_v50 = vadd.f32 %v1874_v0, %v1871_v62 }
 0x1c3   :  { %v1882_v51 = vadd.f32 %v1874_v0, %v1872_v7  ;;  %v1887_v49 = vrot.slane %v4081_v20, 2  ;;  %v1888_v28 = vrot.slane %v4081_v20, 3  ;;  %v1889_v24 = vrot.slane %v4081_v20, 4 }
 0x1c4   :  { %v1890_v59 = vrot.slane %v4081_v20, 5  ;;  %v1891_v25 = vrot.slane %v4081_v20, 6  ;;  %v1892_v8 = vrot.slane %v4081_v20, 7  ;;  %v1901_v52 = vadd.f32 %v4081_v20, %v1875_v60 }
 0x1c5   :  { %v1902_v37 = vadd.f32 %v1886_v36, %v1876_v2  ;;  %v1903_v58 = vadd.f32 %v1887_v49, %v1877_v9  ;;  %v1904_v11 = vadd.f32 %v1888_v28, %v1878_v4  ;;  %v1905_v47 = vadd.f32 %v1889_v24, %v1879_v5 }
 0x1c6   :  { %v1906_v0 = vadd.f32 %v1890_v59, %v1880_v19  ;;  %v1907_v44 = vadd.f32 %v1891_v25, %v1881_v50  ;;  %v1908_v6 = vadd.f32 %v1892_v8, %v1882_v51  ;;  %v1909_v22 = vmax.f32 %v1901_v52, 0.0 }
 0x1c7   :  { %v1910_v15 = vmax.f32 %v1902_v37, 0.0  ;;  %v1911_v21 = vmax.f32 %v1903_v58, 0.0  ;;  %v1912_v43 = vmax.f32 %v1904_v11, 0.0  ;;  %v1913_v33 = vmax.f32 %v1905_v47, 0.0 }
 0x1c8   :  { %v1914_v55 = vmax.f32 %v1906_v0, 0.0  ;;  %v1915_v1 = vmax.f32 %v1907_v44, 0.0  ;;  %v1916_v20 = vmax.f32 %v1908_v6, 0.0  ;;  %v1943_v41 = vstv %s4107_s3  ;;  %s4303_s3 = sld [smem:[#allocation9 + $0x382]] }
 0x1c9   :  { %v1925_v36 = vrot.slane %v1910_v15, 7  ;;  %v1927_v35 = vrot.slane %v1911_v21, 6  ;;  %v1929_v39 = vrot.slane %v1912_v43, 5  ;;  %v1931_v5 = vrot.slane %v1913_v33, 4 }
 0x1ca   :  { %v1933_v19 = vrot.slane %v1914_v55, 3  ;;  %v1935_v50 = vrot.slane %v1915_v1, 2  ;;  %v1937_v51 = vrot.slane %v1916_v20, 1  ;;  %v1944_v7 = vmul.f32 %v1943_v41, %v3530_v12 }
 0x1cb   :  { %v1926_v62 = vsel %vm1521_vm0, %v1925_v36, %v1909_v22  ;;  %v1945_v2 = vmul.f32 %v1943_v41, %v3532_v45  ;;  %v1946_v9 = vmul.f32 %v1943_v41, %v3534_v14  ;;  %v1947_v4 = vmul.f32 %v1943_v41, %v3536_v31 }
 0x1cc   :  { %v1928_v60 = vsel %vm1524_vm1, %v1927_v35, %v1926_v62  ;;  %v1948_v28 = vmul.f32 %v1943_v41, %v3538_v38  ;;  %v1949_v24 = vmul.f32 %v1943_v41, %v3540_v63  ;;  %v1950_v59 = vmul.f32 %v1943_v41, %v3542_v3 }
 0x1cd   :  { %v1930_v49 = vsel %vm1527_vm2, %v1929_v39, %v1928_v60  ;;  %v1951_v8 = vmul.f32 %v1943_v41, %v4439_v30  ;;  %v1953_v52 = vstv %s4116_s27  ;;  %v1971_v37 = vstv %s4118_s29  ;;  %s4309_s27 = sld [smem:[#allocation9 + $0x383]]  ;;  %s4311_s29 = sld [smem:[#allocation10 + $0x7]] }
 0x1ce   :  { %v1932_v25 = vsel %vm1530_vm3, %v1931_v5, %v1930_v49  ;;  %v1954_v11 = vmul.f32 %v1953_v52, %v3642_v42  ;;  %v1955_v47 = vmul.f32 %v1953_v52, %v3644_v16  ;;  %v1956_v0 = vmul.f32 %v1953_v52, %v3646_v17 }
 0x1cf   :  { %v1934_v58 = vsel %vm1533_vm4, %v1933_v19, %v1932_v25  ;;  %v1957_v6 = vmul.f32 %v1953_v52, %v3648_v29  ;;  %v1958_v22 = vmul.f32 %v1953_v52, %v4440_v57  ;;  %v1959_v15 = vmul.f32 %v1953_v52, %v4441_v18 }
 0x1d0   :  { %v1936_v44 = vsel %vm1536_vm5, %v1935_v50, %v1934_v58  ;;  %v1960_v43 = vmul.f32 %v1953_v52, %v4442_v46  ;;  %v1961_v33 = vmul.f32 %v1953_v52, %v4443_v34  ;;  %v1962_v55 = vadd.f32 %v1954_v11, %v1944_v7 }
 0x1d1   :  { %v1938_v21 = vsel %vm1539_vm6, %v1937_v51, %v1936_v44  ;;  %v1963_v1 = vadd.f32 %v1955_v47, %v1945_v2  ;;  %v1964_v20 = vadd.f32 %v1956_v0, %v1946_v9  ;;  %v1965_v36 = vadd.f32 %v1957_v6, %v1947_v4  ;;  %v4459_v44 = vld [vmem:[#allocation26_spill] sm:$0xff] }
 0x1d2   :  { %2600 = vst [vmem:[%s4389_s11 + $0x18] sm:$0xff] %v1938_v21  ;;  %v1966_v41 = vadd.f32 %v1958_v22, %v1948_v28  ;;  %v1967_v35 = vadd.f32 %v1959_v15, %v1949_v24  ;;  %v1968_v39 = vadd.f32 %v1960_v43, %v1950_v59  ;;  %v1969_v5 = vadd.f32 %v1961_v33, %v1951_v8  ;;  %v4460_v22 = vld [vmem:[#allocation27_spill] sm:$0xff]  ;;  %v4462_v43 = vld [vmem:[#allocation29_spill] sm:$0xff] }
 0x1d3   :  { %v1972_v19 = vmul.f32 %v1971_v37, %v3754_v54  ;;  %v1973_v62 = vmul.f32 %v1971_v37, %v3756_v40  ;;  %v1974_v50 = vmul.f32 %v1971_v37, %v3758_v10  ;;  %v1975_v51 = vmul.f32 %v1971_v37, %v3760_v13 }
 0x1d4   :  { %v1976_v7 = vmul.f32 %v1971_v37, %v3762_v32  ;;  %v1977_v60 = vmul.f32 %v1971_v37, %v3764_v27  ;;  %v1978_v2 = vmul.f32 %v1971_v37, %v4452_v61  ;;  %v1979_v9 = vmul.f32 %v1971_v37, %v4444_v48  ;;  %v4461_v37 = vld [vmem:[#allocation28_spill] sm:$0xff] }
 0x1d5   :  { %v1980_v4 = vadd.f32 %v1972_v19, %v1962_v55  ;;  %v1981_v49 = vadd.f32 %v1973_v62, %v1963_v1  ;;  %v1982_v28 = vadd.f32 %v1974_v50, %v1964_v20  ;;  %v1983_v24 = vadd.f32 %v1975_v51, %v1965_v36  ;;  %v2606_v1 = vld [vmem:[%s4388_s10 + $0x20] sm:$0xff] }
 0x1d6   :  { %v1984_v59 = vadd.f32 %v1976_v7, %v1966_v41  ;;  %v1985_v25 = vadd.f32 %v1977_v60, %v1967_v35  ;;  %v1986_v8 = vadd.f32 %v1978_v2, %v1968_v39  ;;  %v1987_v52 = vadd.f32 %v1979_v9, %v1969_v5 }
 0x1d7   :  { %v1989_v58 = vstv %s4139_s30  ;;  %v2007_v50 = vstv %s2605_s13  ;;  %v2019_v51 = vrot.slane %v2606_v1, 1  ;;  %v2020_v7 = vrot.slane %v2606_v1, 2 }
 0x1d8   :  { %v1990_v11 = vmul.f32 %v1989_v58, %v4445_v26  ;;  %v1991_v47 = vmul.f32 %v1989_v58, %v4446_v23  ;;  %v1992_v0 = vmul.f32 %v1989_v58, %v4447_v53  ;;  %v1993_v6 = vmul.f32 %v1989_v58, %v4459_v44 }
 0x1d9   :  { %v1994_v15 = vmul.f32 %v1989_v58, %v4460_v22  ;;  %v1995_v21 = vmul.f32 %v1989_v58, %v4461_v37  ;;  %v1996_v33 = vmul.f32 %v1989_v58, %v4462_v43  ;;  %v1997_v55 = vmul.f32 %v1989_v58, %v4458_v56 }
 0x1da   :  { %v1998_v20 = vadd.f32 %v1990_v11, %v1980_v4  ;;  %v1999_v36 = vadd.f32 %v1991_v47, %v1981_v49  ;;  %v2000_v41 = vadd.f32 %v1992_v0, %v1982_v28  ;;  %v2001_v35 = vadd.f32 %v1993_v6, %v1983_v24 }
 0x1db   :  { %v2002_v39 = vadd.f32 %v1994_v15, %v1984_v59  ;;  %v2003_v5 = vadd.f32 %v1995_v21, %v1985_v25  ;;  %v2004_v19 = vadd.f32 %v1996_v33, %v1986_v8  ;;  %v2005_v62 = vadd.f32 %v1997_v55, %v1987_v52 }
 0x1dc   :  { %v2021_v60 = vrot.slane %v2606_v1, 3  ;;  %v2008_v2 = vadd.f32 %v2007_v50, %v1998_v20  ;;  %v2009_v9 = vadd.f32 %v2007_v50, %v1999_v36  ;;  %v2010_v58 = vadd.f32 %v2007_v50, %v2000_v41 }
 0x1dd   :  { %v2011_v56 = vadd.f32 %v2007_v50, %v2001_v35  ;;  %v2012_v43 = vadd.f32 %v2007_v50, %v2002_v39  ;;  %v2013_v37 = vadd.f32 %v2007_v50, %v2003_v5  ;;  %v2014_v4 = vadd.f32 %v2007_v50, %v2004_v19 }
 0x1de   :  { %v2015_v49 = vadd.f32 %v2007_v50, %v2005_v62  ;;  %v2022_v28 = vrot.slane %v2606_v1, 4  ;;  %v2023_v24 = vrot.slane %v2606_v1, 5  ;;  %v2024_v59 = vrot.slane %v2606_v1, 6 }
 0x1df   :  { %v2025_v25 = vrot.slane %v2606_v1, 7  ;;  %v2034_v8 = vadd.f32 %v2606_v1, %v2008_v2  ;;  %v2035_v52 = vadd.f32 %v2019_v51, %v2009_v9  ;;  %v2036_v11 = vadd.f32 %v2020_v7, %v2010_v58 }
 0x1e0   :  { %v2037_v47 = vadd.f32 %v2021_v60, %v2011_v56  ;;  %v2038_v0 = vadd.f32 %v2022_v28, %v2012_v43  ;;  %v2039_v6 = vadd.f32 %v2023_v24, %v2013_v37  ;;  %v2040_v15 = vadd.f32 %v2024_v59, %v2014_v4 }
 0x1e1   :  { %v2041_v21 = vadd.f32 %v2025_v25, %v2015_v49  ;;  %v2042_v33 = vmax.f32 %v2034_v8, 0.0  ;;  %v2043_v55 = vmax.f32 %v2035_v52, 0.0  ;;  %v2044_v20 = vmax.f32 %v2036_v11, 0.0 }
 0x1e2   :  { %v2045_v36 = vmax.f32 %v2037_v47, 0.0  ;;  %v2046_v41 = vmax.f32 %v2038_v0, 0.0  ;;  %v2047_v35 = vmax.f32 %v2039_v6, 0.0  ;;  %v2048_v39 = vmax.f32 %v2040_v15, 0.0 }
 0x1e3   :  { %v2049_v5 = vmax.f32 %v2041_v21, 0.0  ;;  %v2058_v19 = vrot.slane %v2043_v55, 7  ;;  %v2060_v1 = vrot.slane %v2044_v20, 6  ;;  %v2076_v50 = vstv %s4171_s1 }
 0x1e4   :  { %v2062_v62 = vrot.slane %v2045_v36, 5  ;;  %v2064_v56 = vrot.slane %v2046_v41, 4  ;;  %v2066_v51 = vrot.slane %v2047_v35, 3  ;;  %v2068_v7 = vrot.slane %v2048_v39, 2  ;;  %v4208_v35 = vld [vmem:[%s4388_s10 + $0x28] sm:$0xff] }
 0x1e5   :  { %v2070_v43 = vrot.slane %v2049_v5, 1  ;;  %v2059_v37 = vsel %vm1521_vm0, %v2058_v19, %v2042_v33  ;;  %v2077_v60 = vmul.f32 %v2076_v50, %v3530_v12  ;;  %v2078_v2 = vmul.f32 %v2076_v50, %v3532_v45 }
 0x1e6   :  { %v2079_v9 = vmul.f32 %v2076_v50, %v3534_v14  ;;  %v2061_v58 = vsel %vm1524_vm1, %v2060_v1, %v2059_v37  ;;  %v2080_v4 = vmul.f32 %v2076_v50, %v3536_v31  ;;  %v2081_v49 = vmul.f32 %v2076_v50, %v3538_v38 }
 0x1e7   :  { %v2082_v28 = vmul.f32 %v2076_v50, %v3540_v63  ;;  %v2063_v24 = vsel %vm1527_vm2, %v2062_v62, %v2061_v58  ;;  %v2083_v59 = vmul.f32 %v2076_v50, %v3542_v3  ;;  %v2084_v25 = vmul.f32 %v2076_v50, %v4439_v30 }
 0x1e8   :  { %v2086_v8 = vstv %s4173_s6  ;;  %v2065_v52 = vsel %vm1530_vm3, %v2064_v56, %v2063_v24  ;;  %v2122_v37 = vstv %s4182_s16  ;;  %v2152_v58 = vrot.slane %v4208_v35, 1 }
 0x1e9   :  { %v2087_v11 = vmul.f32 %v2086_v8, %v3642_v42  ;;  %v2088_v47 = vmul.f32 %v2086_v8, %v3644_v16  ;;  %v2089_v0 = vmul.f32 %v2086_v8, %v3646_v17  ;;  %v2067_v6 = vsel %vm1533_vm4, %v2066_v51, %v2065_v52 }
 0x1ea   :  { %v2090_v15 = vmul.f32 %v2086_v8, %v3648_v29  ;;  %v2091_v21 = vmul.f32 %v2086_v8, %v4440_v57  ;;  %v2092_v33 = vmul.f32 %v2086_v8, %v4441_v18  ;;  %v2069_v55 = vsel %vm1536_vm5, %v2068_v7, %v2067_v6 }
 0x1eb   :  { %v2093_v20 = vmul.f32 %v2086_v8, %v4442_v46  ;;  %v2094_v36 = vmul.f32 %v2086_v8, %v4443_v34  ;;  %v2095_v41 = vadd.f32 %v2087_v11, %v2077_v60  ;;  %v2071_v39 = vsel %vm1539_vm6, %v2070_v43, %v2069_v55 }
 0x1ec   :  { %v2096_v5 = vadd.f32 %v2088_v47, %v2078_v2  ;;  %v2097_v19 = vadd.f32 %v2089_v0, %v2079_v9  ;;  %v2098_v1 = vadd.f32 %v2090_v15, %v2080_v4  ;;  %2607 = vst [vmem:[%s4389_s11 + $0x20] sm:$0xff] %v2071_v39  ;;  %v2099_v62 = vadd.f32 %v2091_v21, %v2081_v49  ;;  %v4463_v39 = vld [vmem:[#allocation28_spill] sm:$0xff] }
 0x1ed   :  { %v2100_v50 = vadd.f32 %v2092_v33, %v2082_v28  ;;  %v2101_v56 = vadd.f32 %v2093_v20, %v2083_v59  ;;  %v2102_v51 = vadd.f32 %v2094_v36, %v2084_v25  ;;  %v2104_v7 = vstv %s4176_s15 }
 0x1ee   :  { %v2140_v60 = vstv %s4184_s17  ;;  %v2105_v24 = vmul.f32 %v2104_v7, %v3754_v54  ;;  %v2106_v43 = vmul.f32 %v2104_v7, %v3756_v40  ;;  %v2107_v2 = vmul.f32 %v2104_v7, %v3758_v10 }
 0x1ef   :  { %v2108_v9 = vmul.f32 %v2104_v7, %v3760_v13  ;;  %v2109_v4 = vmul.f32 %v2104_v7, %v3762_v32  ;;  %v2110_v49 = vmul.f32 %v2104_v7, %v3764_v27  ;;  %v2111_v28 = vmul.f32 %v2104_v7, %v4452_v61 }
 0x1f0   :  { %v2112_v59 = vmul.f32 %v2104_v7, %v4444_v48  ;;  %v2113_v25 = vadd.f32 %v2105_v24, %v2095_v41  ;;  %v2114_v8 = vadd.f32 %v2106_v43, %v2096_v5  ;;  %v2115_v52 = vadd.f32 %v2107_v2, %v2097_v19  ;;  %v4464_v41 = vld [vmem:[#allocation29_spill] sm:$0xff]  ;;  %v4465_v19 = vld [vmem:[#allocation30_spill] sm:$0xff] }
 0x1f1   :  { %v2116_v11 = vadd.f32 %v2108_v9, %v2098_v1  ;;  %v2117_v47 = vadd.f32 %v2109_v4, %v2099_v62  ;;  %v2118_v0 = vadd.f32 %v2110_v49, %v2100_v50  ;;  %v2119_v6 = vadd.f32 %v2111_v28, %v2101_v56 }
 0x1f2   :  { %v2120_v15 = vadd.f32 %v2112_v59, %v2102_v51  ;;  %v2123_v21 = vmul.f32 %v2122_v37, %v4445_v26  ;;  %v2124_v33 = vmul.f32 %v2122_v37, %v4446_v23  ;;  %v2125_v55 = vmul.f32 %v2122_v37, %v4447_v53 }
 0x1f3   :  { %v2126_v20 = vmul.f32 %v2122_v37, %v4459_v44  ;;  %v2127_v36 = vmul.f32 %v2122_v37, %v4460_v22  ;;  %v2128_v7 = vmul.f32 %v2122_v37, %v4463_v39  ;;  %v2129_v5 = vmul.f32 %v2122_v37, %v4464_v41 }
 0x1f4   :  { %v2130_v1 = vmul.f32 %v2122_v37, %v4465_v19  ;;  %v2131_v62 = vadd.f32 %v2123_v21, %v2113_v25  ;;  %v2132_v50 = vadd.f32 %v2124_v33, %v2114_v8  ;;  %v2133_v56 = vadd.f32 %v2125_v55, %v2115_v52 }
 0x1f5   :  { %v2134_v51 = vadd.f32 %v2126_v20, %v2116_v11  ;;  %v2135_v24 = vadd.f32 %v2127_v36, %v2117_v47  ;;  %v2136_v43 = vadd.f32 %v2128_v7, %v2118_v0  ;;  %v2137_v2 = vadd.f32 %v2129_v5, %v2119_v6 }
 0x1f6   :  { %v2138_v9 = vadd.f32 %v2130_v1, %v2120_v15  ;;  %v2141_v4 = vadd.f32 %v2140_v60, %v2131_v62  ;;  %v2142_v49 = vadd.f32 %v2140_v60, %v2132_v50  ;;  %v2143_v28 = vadd.f32 %v2140_v60, %v2133_v56 }
 0x1f7   :  { %v2144_v59 = vadd.f32 %v2140_v60, %v2134_v51  ;;  %v2145_v22 = vadd.f32 %v2140_v60, %v2135_v24  ;;  %v2146_v39 = vadd.f32 %v2140_v60, %v2136_v43  ;;  %v2147_v44 = vadd.f32 %v2140_v60, %v2137_v2 }
 0x1f8   :  { %v2148_v41 = vadd.f32 %v2140_v60, %v2138_v9  ;;  %v2153_v37 = vrot.slane %v4208_v35, 2  ;;  %v2154_v25 = vrot.slane %v4208_v35, 3  ;;  %v2155_v8 = vrot.slane %v4208_v35, 4 }
 0x1f9   :  { %v2156_v52 = vrot.slane %v4208_v35, 5  ;;  %v2157_v11 = vrot.slane %v4208_v35, 6  ;;  %v2158_v47 = vrot.slane %v4208_v35, 7  ;;  %v2167_v0 = vadd.f32 %v4208_v35, %v2141_v4 }
 0x1fa   :  { %v2168_v6 = vadd.f32 %v2152_v58, %v2142_v49  ;;  %v2169_v15 = vadd.f32 %v2153_v37, %v2143_v28  ;;  %v2170_v21 = vadd.f32 %v2154_v25, %v2144_v59  ;;  %v2171_v33 = vadd.f32 %v2155_v8, %v2145_v22 }
 0x1fb   :  { %v2172_v60 = vadd.f32 %v2156_v52, %v2146_v39  ;;  %v2173_v55 = vadd.f32 %v2157_v11, %v2147_v44  ;;  %v2174_v20 = vadd.f32 %v2158_v47, %v2148_v41  ;;  %v2175_v36 = vmax.f32 %v2167_v0, 0.0 }
 0x1fc   :  { %v2176_v7 = vmax.f32 %v2168_v6, 0.0  ;;  %v2177_v5 = vmax.f32 %v2169_v15, 0.0  ;;  %v2178_v1 = vmax.f32 %v2170_v21, 0.0  ;;  %v2179_v62 = vmax.f32 %v2171_v33, 0.0 }
 0x1fd   :  { %v2180_v50 = vmax.f32 %v2172_v60, 0.0  ;;  %v2181_v56 = vmax.f32 %v2173_v55, 0.0  ;;  %v2182_v35 = vmax.f32 %v2174_v20, 0.0  ;;  %v2209_v51 = vstv %s4234_s22 }
 0x1fe   :  { %v2191_v58 = vrot.slane %v2176_v7, 7  ;;  %v2193_v24 = vrot.slane %v2177_v5, 6  ;;  %v2195_v43 = vrot.slane %v2178_v1, 5  ;;  %v2197_v22 = vrot.slane %v2179_v62, 4 }
 0x1ff   :  { %v2199_v39 = vrot.slane %v2180_v50, 3  ;;  %v2201_v44 = vrot.slane %v2181_v56, 2  ;;  %v2203_v41 = vrot.slane %v2182_v35, 1  ;;  %v2210_v9 = vmul.f32 %v2209_v51, %v3530_v12 }
 0x200   :  { %v2192_v2 = vsel %vm1521_vm0, %v2191_v58, %v2175_v36  ;;  %v2211_v49 = vmul.f32 %v2209_v51, %v3532_v45  ;;  %v2212_v28 = vmul.f32 %v2209_v51, %v3534_v14  ;;  %v2213_v59 = vmul.f32 %v2209_v51, %v3536_v31 }
 0x201   :  { %v2194_v4 = vsel %vm1524_vm1, %v2193_v24, %v2192_v2  ;;  %v2214_v25 = vmul.f32 %v2209_v51, %v3538_v38  ;;  %v2215_v8 = vmul.f32 %v2209_v51, %v3540_v63  ;;  %v2216_v52 = vmul.f32 %v2209_v51, %v3542_v3 }
 0x202   :  { %v2196_v37 = vsel %vm1527_vm2, %v2195_v43, %v2194_v4  ;;  %v2217_v47 = vmul.f32 %v2209_v51, %v4439_v30  ;;  %v2219_v0 = vstv %s4243_s8  ;;  %v2237_v6 = vstv %s4245_s9 }
 0x203   :  { %v2198_v11 = vsel %vm1530_vm3, %v2197_v22, %v2196_v37  ;;  %v2220_v21 = vmul.f32 %v2219_v0, %v3642_v42  ;;  %v2221_v33 = vmul.f32 %v2219_v0, %v3644_v16  ;;  %v2222_v60 = vmul.f32 %v2219_v0, %v3646_v17 }
 0x204   :  { %v2200_v15 = vsel %vm1533_vm4, %v2199_v39, %v2198_v11  ;;  %v2223_v20 = vmul.f32 %v2219_v0, %v3648_v29  ;;  %v2224_v36 = vmul.f32 %v2219_v0, %v4440_v57  ;;  %v2225_v7 = vmul.f32 %v2219_v0, %v4441_v18 }
 0x205   :  { %v2202_v55 = vsel %vm1536_vm5, %v2201_v44, %v2200_v15  ;;  %v2226_v1 = vmul.f32 %v2219_v0, %v4442_v46  ;;  %v2227_v62 = vmul.f32 %v2219_v0, %v4443_v34  ;;  %v2228_v50 = vadd.f32 %v2220_v21, %v2210_v9 }
 0x206   :  { %v2204_v5 = vsel %vm1539_vm6, %v2203_v41, %v2202_v55  ;;  %v2229_v56 = vadd.f32 %v2221_v33, %v2211_v49  ;;  %v2230_v35 = vadd.f32 %v2222_v60, %v2212_v28  ;;  %v2231_v58 = vadd.f32 %v2223_v20, %v2213_v59  ;;  %v4466_v55 = vld [vmem:[#allocation26_spill] sm:$0xff] }
 0x207   :  { %2614 = vst [vmem:[%s4389_s11 + $0x28] sm:$0xff] %v2204_v5  ;;  %v2232_v51 = vadd.f32 %v2224_v36, %v2214_v25  ;;  %v2233_v24 = vadd.f32 %v2225_v7, %v2215_v8  ;;  %v2234_v43 = vadd.f32 %v2226_v1, %v2216_v52  ;;  %v2235_v22 = vadd.f32 %v2227_v62, %v2217_v47  ;;  %v4467_v36 = vld [vmem:[#allocation27_spill] sm:$0xff]  ;;  %v4469_v1 = vld [vmem:[#allocation29_spill] sm:$0xff] }
 0x208   :  { %v2238_v39 = vmul.f32 %v2237_v6, %v3754_v54  ;;  %v2239_v2 = vmul.f32 %v2237_v6, %v3756_v40  ;;  %v2240_v44 = vmul.f32 %v2237_v6, %v3758_v10  ;;  %v2241_v41 = vmul.f32 %v2237_v6, %v3760_v13 }
 0x209   :  { %v2242_v9 = vmul.f32 %v2237_v6, %v3762_v32  ;;  %v2243_v4 = vmul.f32 %v2237_v6, %v3764_v27  ;;  %v2244_v49 = vmul.f32 %v2237_v6, %v4452_v61  ;;  %v2245_v28 = vmul.f32 %v2237_v6, %v4444_v48  ;;  %v4468_v6 = vld [vmem:[#allocation28_spill] sm:$0xff] }
 0x20a   :  { %v2246_v59 = vadd.f32 %v2238_v39, %v2228_v50  ;;  %v2247_v37 = vadd.f32 %v2239_v2, %v2229_v56  ;;  %v2248_v25 = vadd.f32 %v2240_v44, %v2230_v35  ;;  %v2249_v8 = vadd.f32 %v2241_v41, %v2231_v58  ;;  %v2620_v56 = vld [vmem:[%s4388_s10 + $0x30] sm:$0xff] }
 0x20b   :  { %v2250_v52 = vadd.f32 %v2242_v9, %v2232_v51  ;;  %v2251_v11 = vadd.f32 %v2243_v4, %v2233_v24  ;;  %v2252_v47 = vadd.f32 %v2244_v49, %v2234_v43  ;;  %v2253_v0 = vadd.f32 %v2245_v28, %v2235_v22 }
 0x20c   :  { %v2255_v15 = vstv %s4266_s5  ;;  %v2273_v44 = vstv %s2619_s19  ;;  %v2285_v41 = vrot.slane %v2620_v56, 1  ;;  %v2286_v9 = vrot.slane %v2620_v56, 2 }
 0x20d   :  { %v2256_v21 = vmul.f32 %v2255_v15, %v4445_v26  ;;  %v2257_v33 = vmul.f32 %v2255_v15, %v4446_v23  ;;  %v2258_v60 = vmul.f32 %v2255_v15, %v4447_v53  ;;  %v2259_v20 = vmul.f32 %v2255_v15, %v4466_v55 }
 0x20e   :  { %v2260_v7 = vmul.f32 %v2255_v15, %v4467_v36  ;;  %v2261_v5 = vmul.f32 %v2255_v15, %v4468_v6  ;;  %v2262_v62 = vmul.f32 %v2255_v15, %v4469_v1  ;;  %v2263_v50 = vmul.f32 %v2255_v15, %v4465_v19 }
 0x20f   :  { %v2264_v35 = vadd.f32 %v2256_v21, %v2246_v59  ;;  %v2265_v58 = vadd.f32 %v2257_v33, %v2247_v37  ;;  %v2266_v51 = vadd.f32 %v2258_v60, %v2248_v25  ;;  %v2267_v24 = vadd.f32 %v2259_v20, %v2249_v8 }
 0x210   :  { %v2268_v43 = vadd.f32 %v2260_v7, %v2250_v52  ;;  %v2269_v22 = vadd.f32 %v2261_v5, %v2251_v11  ;;  %v2270_v39 = vadd.f32 %v2262_v62, %v2252_v47  ;;  %v2271_v2 = vadd.f32 %v2263_v50, %v2253_v0 }
 0x211   :  { %v2287_v4 = vrot.slane %v2620_v56, 3  ;;  %v2274_v49 = vadd.f32 %v2273_v44, %v2264_v35  ;;  %v2275_v28 = vadd.f32 %v2273_v44, %v2265_v58  ;;  %v2276_v15 = vadd.f32 %v2273_v44, %v2266_v51 }
 0x212   :  { %v2277_v19 = vadd.f32 %v2273_v44, %v2267_v24  ;;  %v2278_v1 = vadd.f32 %v2273_v44, %v2268_v43  ;;  %v2279_v6 = vadd.f32 %v2273_v44, %v2269_v22  ;;  %v2280_v59 = vadd.f32 %v2273_v44, %v2270_v39 }
 0x213   :  { %v2281_v37 = vadd.f32 %v2273_v44, %v2271_v2  ;;  %v2288_v25 = vrot.slane %v2620_v56, 4  ;;  %v2289_v8 = vrot.slane %v2620_v56, 5  ;;  %v2290_v52 = vrot.slane %v2620_v56, 6 }
 0x214   :  { %v2291_v11 = vrot.slane %v2620_v56, 7  ;;  %v2300_v47 = vadd.f32 %v2620_v56, %v2274_v49  ;;  %v2301_v0 = vadd.f32 %v2285_v41, %v2275_v28  ;;  %v2302_v21 = vadd.f32 %v2286_v9, %v2276_v15 }
 0x215   :  { %v2303_v33 = vadd.f32 %v2287_v4, %v2277_v19  ;;  %v2304_v60 = vadd.f32 %v2288_v25, %v2278_v1  ;;  %v2305_v20 = vadd.f32 %v2289_v8, %v2279_v6  ;;  %v2306_v7 = vadd.f32 %v2290_v52, %v2280_v59 }
 0x216   :  { %v2307_v5 = vadd.f32 %v2291_v11, %v2281_v37  ;;  %v2308_v62 = vmax.f32 %v2300_v47, 0.0  ;;  %v2309_v50 = vmax.f32 %v2301_v0, 0.0  ;;  %v2310_v35 = vmax.f32 %v2302_v21, 0.0 }
 0x217   :  { %v2311_v58 = vmax.f32 %v2303_v33, 0.0  ;;  %v2312_v51 = vmax.f32 %v2304_v60, 0.0  ;;  %v2313_v24 = vmax.f32 %v2305_v20, 0.0  ;;  %v2314_v43 = vmax.f32 %v2306_v7, 0.0 }
 0x218   :  { %v2315_v22 = vmax.f32 %v2307_v5, 0.0  ;;  %v2324_v39 = vrot.slane %v2309_v50, 7  ;;  %v2326_v56 = vrot.slane %v2310_v35, 6  ;;  %v2342_v44 = vstv %s4298_s7 }
 0x219   :  { %v2328_v2 = vrot.slane %v2311_v58, 5  ;;  %v2330_v19 = vrot.slane %v2312_v51, 4  ;;  %v2332_v41 = vrot.slane %v2313_v24, 3  ;;  %v2334_v9 = vrot.slane %v2314_v43, 2 }
 0x21a   :  { %v2336_v1 = vrot.slane %v2315_v22, 1  ;;  %v2325_v6 = vsel %vm1521_vm0, %v2324_v39, %v2308_v62  ;;  %v2343_v4 = vmul.f32 %v2342_v44, %v3530_v12  ;;  %v2344_v49 = vmul.f32 %v2342_v44, %v3532_v45 }
 0x21b   :  { %v2345_v28 = vmul.f32 %v2342_v44, %v3534_v14  ;;  %v2327_v15 = vsel %vm1524_vm1, %v2326_v56, %v2325_v6  ;;  %v2346_v59 = vmul.f32 %v2342_v44, %v3536_v31  ;;  %v2347_v37 = vmul.f32 %v2342_v44, %v3538_v38  ;;  %v4470_v6 = vld [vmem:[#allocation28_spill] sm:$0xff] }
 0x21c   :  { %v2348_v25 = vmul.f32 %v2342_v44, %v3540_v63  ;;  %v2329_v8 = vsel %vm1527_vm2, %v2328_v2, %v2327_v15  ;;  %v2349_v12 = vmul.f32 %v2342_v44, %v3542_v3  ;;  %v2350_v45 = vmul.f32 %v2342_v44, %v4439_v30 }
 0x21d   :  { %v2352_v52 = vstv %s4300_s26  ;;  %v2331_v14 = vsel %vm1530_vm3, %v2330_v19, %v2329_v8  ;;  %v2388_v5 = vstv %s4309_s27  ;;  %v2406_v62 = vstv %s4311_s29 }
 0x21e   :  { %v2353_v11 = vmul.f32 %v2352_v52, %v3642_v42  ;;  %v2354_v47 = vmul.f32 %v2352_v52, %v3644_v16  ;;  %v2355_v0 = vmul.f32 %v2352_v52, %v3646_v17  ;;  %v2333_v31 = vsel %vm1533_vm4, %v2332_v41, %v2331_v14  ;;  %v4335_v17 = vld [vmem:[%s4388_s10 + $0x38] sm:$0xff] }
 0x21f   :  { %v2356_v38 = vmul.f32 %v2352_v52, %v3648_v29  ;;  %v2357_v63 = vmul.f32 %v2352_v52, %v4440_v57  ;;  %v2358_v3 = vmul.f32 %v2352_v52, %v4441_v18  ;;  %v2335_v30 = vsel %vm1536_vm5, %v2334_v9, %v2333_v31 }
 0x220   :  { %v2359_v21 = vmul.f32 %v2352_v52, %v4442_v46  ;;  %v2360_v42 = vmul.f32 %v2352_v52, %v4443_v34  ;;  %v2361_v16 = vadd.f32 %v2353_v11, %v2343_v4  ;;  %v2337_v29 = vsel %vm1539_vm6, %v2336_v1, %v2335_v30  ;;  %v4471_v4 = vld [vmem:[#allocation29_spill] sm:$0xff] }
 0x221   :  { %v2362_v57 = vadd.f32 %v2354_v47, %v2344_v49  ;;  %v2363_v33 = vadd.f32 %v2355_v0, %v2345_v28  ;;  %v2364_v60 = vadd.f32 %v2356_v38, %v2346_v59  ;;  %2621 = vst [vmem:[%s4389_s11 + $0x30] sm:$0xff] %v2337_v29  ;;  %v2365_v18 = vadd.f32 %v2357_v63, %v2347_v37  ;;  %v4472_v28 = vld [vmem:[#allocation30_spill] sm:$0xff] }
 0x222   :  { %v2366_v20 = vadd.f32 %v2358_v3, %v2348_v25  ;;  %v2367_v46 = vadd.f32 %v2359_v21, %v2349_v12  ;;  %v2368_v7 = vadd.f32 %v2360_v42, %v2350_v45  ;;  %v2370_v34 = vstv %s4303_s3 }
 0x223   :  { %v2418_v50 = vrot.slane %v4335_v17, 1  ;;  %v2371_v35 = vmul.f32 %v2370_v34, %v3754_v54  ;;  %v2372_v58 = vmul.f32 %v2370_v34, %v3756_v40  ;;  %v2373_v51 = vmul.f32 %v2370_v34, %v3758_v10 }
 0x224   :  { %v2374_v24 = vmul.f32 %v2370_v34, %v3760_v13  ;;  %v2375_v43 = vmul.f32 %v2370_v34, %v3762_v32  ;;  %v2376_v22 = vmul.f32 %v2370_v34, %v3764_v27  ;;  %v2377_v39 = vmul.f32 %v2370_v34, %v4452_v61 }
 0x225   :  { %v2378_v56 = vmul.f32 %v2370_v34, %v4444_v48  ;;  %v2379_v2 = vadd.f32 %v2371_v35, %v2361_v16  ;;  %v2380_v44 = vadd.f32 %v2372_v58, %v2362_v57  ;;  %v2381_v19 = vadd.f32 %v2373_v51, %v2363_v33 }
 0x226   :  { %v2382_v41 = vadd.f32 %v2374_v24, %v2364_v60  ;;  %v2383_v9 = vadd.f32 %v2375_v43, %v2365_v18  ;;  %v2384_v54 = vadd.f32 %v2376_v22, %v2366_v20  ;;  %v2385_v1 = vadd.f32 %v2377_v39, %v2367_v46 }
 0x227   :  { %v2386_v40 = vadd.f32 %v2378_v56, %v2368_v7  ;;  %v2389_v10 = vmul.f32 %v2388_v5, %v4445_v26  ;;  %v2390_v13 = vmul.f32 %v2388_v5, %v4446_v23  ;;  %v2391_v32 = vmul.f32 %v2388_v5, %v4447_v53 }
 0x228   :  { %v2392_v27 = vmul.f32 %v2388_v5, %v4466_v55  ;;  %v2393_v61 = vmul.f32 %v2388_v5, %v4467_v36  ;;  %v2394_v48 = vmul.f32 %v2388_v5, %v4470_v6  ;;  %v2395_v49 = vmul.f32 %v2388_v5, %v4471_v4 }
 0x229   :  { %v2396_v15 = vmul.f32 %v2388_v5, %v4472_v28  ;;  %v2397_v59 = vadd.f32 %v2389_v10, %v2379_v2  ;;  %v2398_v37 = vadd.f32 %v2390_v13, %v2380_v44  ;;  %v2399_v25 = vadd.f32 %v2391_v32, %v2381_v19 }
 0x22a   :  { %v2400_v8 = vadd.f32 %v2392_v27, %v2382_v41  ;;  %v2401_v12 = vadd.f32 %v2393_v61, %v2383_v9  ;;  %v2402_v26 = vadd.f32 %v2394_v48, %v2384_v54  ;;  %v2403_v45 = vadd.f32 %v2395_v49, %v2385_v1 }
 0x22b   :  { %v2404_v23 = vadd.f32 %v2396_v15, %v2386_v40  ;;  %v2407_v52 = vadd.f32 %v2406_v62, %v2397_v59  ;;  %v2408_v53 = vadd.f32 %v2406_v62, %v2398_v37  ;;  %v2409_v14 = vadd.f32 %v2406_v62, %v2399_v25 }
 0x22c   :  { %v2410_v55 = vadd.f32 %v2406_v62, %v2400_v8  ;;  %v2411_v11 = vadd.f32 %v2406_v62, %v2401_v12  ;;  %v2412_v36 = vadd.f32 %v2406_v62, %v2402_v26  ;;  %v2413_v47 = vadd.f32 %v2406_v62, %v2403_v45 }
 0x22d   :  { %v2414_v0 = vadd.f32 %v2406_v62, %v2404_v23  ;;  %v2419_v31 = vrot.slane %v4335_v17, 2  ;;  %v2420_v38 = vrot.slane %v4335_v17, 3  ;;  %v2421_v63 = vrot.slane %v4335_v17, 4 }
 0x22e   :  { %v2422_v3 = vrot.slane %v4335_v17, 5  ;;  %v2423_v30 = vrot.slane %v4335_v17, 6  ;;  %v2424_v21 = vrot.slane %v4335_v17, 7  ;;  %v2433_v42 = vadd.f32 %v4335_v17, %v2407_v52 }
 0x22f   :  { %v2434_v16 = vadd.f32 %v2418_v50, %v2408_v53  ;;  %v2435_v29 = vadd.f32 %v2419_v31, %v2409_v14  ;;  %v2436_v57 = vadd.f32 %v2420_v38, %v2410_v55  ;;  %v2437_v33 = vadd.f32 %v2421_v63, %v2411_v11 }
 0x230   :  { %v2438_v60 = vadd.f32 %v2422_v3, %v2412_v36  ;;  %v2439_v18 = vadd.f32 %v2423_v30, %v2413_v47  ;;  %v2440_v20 = vadd.f32 %v2424_v21, %v2414_v0  ;;  %v2441_v46 = vmax.f32 %v2433_v42, 0.0 }
 0x231   :  { %v2442_v7 = vmax.f32 %v2434_v16, 0.0  ;;  %v2443_v34 = vmax.f32 %v2435_v29, 0.0  ;;  %v2444_v5 = vmax.f32 %v2436_v57, 0.0  ;;  %v2445_v62 = vmax.f32 %v2437_v33, 0.0 }
 0x232   :  { %v2446_v35 = vmax.f32 %v2438_v60, 0.0  ;;  %v2447_v58 = vmax.f32 %v2439_v18, 0.0  ;;  %v2448_v51 = vmax.f32 %v2440_v20, 0.0 }
 0x233   :  { %v2457_v24 = vrot.slane %v2442_v7, 7  ;;  %v2459_v43 = vrot.slane %v2443_v34, 6  ;;  %v2461_v22 = vrot.slane %v2444_v5, 5  ;;  %v2463_v39 = vrot.slane %v2445_v62, 4 }
 0x234   :  { %v2465_v50 = vrot.slane %v2446_v35, 3  ;;  %v2467_v2 = vrot.slane %v2447_v58, 2  ;;  %v2469_v19 = vrot.slane %v2448_v51, 1 }
 0x235   :  { %v2458_v17 = vsel %vm1521_vm0, %v2457_v24, %v2441_v46 }
 0x236   :  { %v2460_v56 = vsel %vm1524_vm1, %v2459_v43, %v2458_v17 }
 0x237   :  { %v2462_v44 = vsel %vm1527_vm2, %v2461_v22, %v2460_v56 }
 0x238   :  { %v2464_v41 = vsel %vm1530_vm3, %v2463_v39, %v2462_v44 }
 0x239   :  { %v2466_v9 = vsel %vm1533_vm4, %v2465_v50, %v2464_v41 }
 0x23a   :  { %v2468_v54 = vsel %vm1536_vm5, %v2467_v2, %v2466_v9 }
 0x23b   :  { %v2470_v1 = vsel %vm1539_vm6, %v2469_v19, %v2468_v54 }
 0x23c   :  { %2628 = vst [vmem:[%s4389_s11 + $0x38] sm:$0xff] %v2470_v1 }
 0x23d   :  { %2478 = vsyncpa [#allocation3], 1 }
 0x23e   :  { %2479 = vsyncpa [#allocation5], 1 }
 0x23f   :  { %2480 = vsyncpa [#allocation8], 1 }
 0x240   :  { %2481 = vsyncpa [#allocation11], 1 }

</bundles_post_ra>
